<compile_context>
chip_gen: v6e
topology: v6e:2x2x1
jax: 0.10.0
libtpu: 0.0.40
codegen_flags: <defaults>
</compile_context>

<pallas_src>
import math

import jax
import jax.numpy as jnp
from jax.experimental import pallas as pl
from jax.experimental.pallas import tpu as pltpu

INPUT_DIM = 16
OUTPUT_DIM = 8
NET_DEPTH = 8
NET_WIDTH = 256
SKIP_LAYER = 4


def mlp_kernel(x_ref,
               w0, b0, w1, b1, w2, b2, w3, b3, w4, b4,
               w5a, w5b, b5, w6, b6, w7, b7, wo, bo,
               o_ref):
    # Rows -> sublanes, features -> lanes.  Matmul inputs are bf16, the MXU
    # accumulates in f32; bias add + ReLU run in f32 on the VPU.
    x0 = x_ref[...].astype(jnp.bfloat16)

    def lin_relu(h, w, b):
        y = jnp.dot(h.astype(jnp.bfloat16), w[...],
                    preferred_element_type=jnp.float32) + b[...]
        return jnp.maximum(y, 0.0)

    h = lin_relu(x0, w0, b0)          # layer 0: (TB, 16) @ (16, 256)
    h = lin_relu(h, w1, b1)           # layer 1
    h = lin_relu(h, w2, b2)           # layer 2
    h = lin_relu(h, w3, b3)           # layer 3
    h = lin_relu(h, w4, b4)           # layer 4
    # skip connection: concat([h, x0], -1) @ W5 == h @ W5a + x0 @ W5b (exact)
    y5 = (jnp.dot(h.astype(jnp.bfloat16), w5a[...],
                  preferred_element_type=jnp.float32)
          + jnp.dot(x0, w5b[...], preferred_element_type=jnp.float32)
          + b5[...])
    h = jnp.maximum(y5, 0.0)          # layer 5
    h = lin_relu(h, w6, b6)           # layer 6
    h = lin_relu(h, w7, b7)           # layer 7
    out = jnp.dot(h.astype(jnp.bfloat16), wo[...],
                  preferred_element_type=jnp.float32) + bo[...]
    o_ref[...] = out.astype(o_ref.dtype)   # output layer (Identity activation)


def xavier_uniform(key, fan_in, fan_out):
    # matches torch.nn.init.xavier_uniform_ (gain=1) on a (out, in) weight,
    # stored here transposed as (in, out).
    bound = math.sqrt(6.0 / (fan_in + fan_out))
    return jax.random.uniform(key, (fan_in, fan_out), jnp.float32, -bound, bound)


def init_params(key):
    """Deterministic parameter init mirroring MLP.__init__/initialize()."""
    keys = jax.random.split(key, NET_DEPTH + 1)
    params = []
    in_features = INPUT_DIM
    for i in range(NET_DEPTH):
        w = xavier_uniform(keys[i], in_features, NET_WIDTH)   # (in, out)
        b = jnp.zeros((1, NET_WIDTH), jnp.float32)            # bias_init = zeros_
        params.append((w, b))
        if SKIP_LAYER is not None and i % SKIP_LAYER == 0 and i > 0:
            in_features = NET_WIDTH + INPUT_DIM
        else:
            in_features = NET_WIDTH
    wo = xavier_uniform(keys[NET_DEPTH], in_features, OUTPUT_DIM)
    bo = jnp.zeros((1, OUTPUT_DIM), jnp.float32)
    return params, (wo, bo)


def _flops_per_row():
    f = 0
    in_f = INPUT_DIM
    for i in range(NET_DEPTH):
        f += 2 * in_f * NET_WIDTH
        if SKIP_LAYER is not None and i % SKIP_LAYER == 0 and i > 0:
            in_f = NET_WIDTH + INPUT_DIM
        else:
            in_f = NET_WIDTH
    f += 2 * in_f * OUTPUT_DIM
    return f


def _nbytes(a):
    return int(a.size) * a.dtype.itemsize


def mlp_pallas(x, params, out_params, *, tb=512):
    N, d = x.shape
    assert d == INPUT_DIM
    (w0, b0), (w1, b1), (w2, b2), (w3, b3), (w4, b4), (w5, b5), (w6, b6), (w7, b7) = params
    wo, bo = out_params
    # split the layer-5 weight for the skip connection
    w5a = w5[:NET_WIDTH, :]            # (256, 256)
    w5b = w5[NET_WIDTH:, :]            # (INPUT_DIM, 256)

    bf16 = lambda a: a.astype(jnp.bfloat16)
    # weights in bf16 (MXU inputs); biases stay f32 (VPU adds).
    flat_params = [bf16(w0), b0, bf16(w1), b1, bf16(w2), b2, bf16(w3), b3,
                   bf16(w4), b4, bf16(w5a), bf16(w5b), b5, bf16(w6), b6,
                   bf16(w7), b7, bf16(wo), bo]

    # Batch tile: multiple of 8 (sublanes), ideally a multiple of 128 for the
    # MXU.  Sweep tb in {256, 512, 1024}; keep N/tb >= 2 so both v7x
    # TensorCores get work.  Clamp for tiny batches.
    if N < tb:
        tb = max(8, ((N + 7) // 8) * 8)

    grid = (pl.cdiv(N, tb),)
    x_spec = pl.BlockSpec((tb, INPUT_DIM), lambda i: (i, 0))
    out_spec = pl.BlockSpec((tb, OUTPUT_DIM), lambda i: (i, 0))
    # Grid-invariant params: whole array resident in VMEM, not pipelined
    # (no wasted double buffers; their index_map would be constant anyway).
    param_specs = [pl.BlockSpec(memory_space=pltpu.MemorySpace.VMEM)
                   for _ in flat_params]

    flops = N * _flops_per_row()
    bytes_accessed = (_nbytes(x) + N * OUTPUT_DIM * 4
                      + sum(_nbytes(p) for p in flat_params))
    cost = pl.CostEstimate(flops=flops, transcendentals=0,
                           bytes_accessed=bytes_accessed)

    return pl.pallas_call(
        mlp_kernel,
        out_shape=jax.ShapeDtypeStruct((N, OUTPUT_DIM), jnp.float32),
        grid_spec=pltpu.PrefetchScalarGridSpec(
            num_scalar_prefetch=0,
            grid=grid,
            in_specs=[x_spec] + param_specs,
            out_specs=out_spec,
        ),
        compiler_params=pltpu.CompilerParams(
            dimension_semantics=("parallel",),
            vmem_limit_bytes=32 * 1024 * 1024,
        ),
        cost_estimate=cost,
    )(x, *flat_params)


def mlp_reference(x, params, out_params):
    """Plain-JAX (f32) mirror of the PyTorch forward, for verification."""
    inputs = x
    h = x
    for i, (w, b) in enumerate(params):
        h = jnp.maximum(h @ w + b, 0.0)
        if SKIP_LAYER is not None and i % SKIP_LAYER == 0 and i > 0:
            h = jnp.concatenate([h, inputs], axis=-1)
    wo, bo = out_params
    return h @ wo + bo


if __name__ == "__main__":
    key = jax.random.PRNGKey(0)
    k_param, k_x = jax.random.split(key)
    params, out_params = init_params(k_param)

    N = 1024                                   # small smoke-test batch -> 2 grid steps
    x = jax.random.normal(k_x, (N, INPUT_DIM), jnp.float32)

    out = jax.block_until_ready(mlp_pallas(x, params, out_params, tb=512))

    ref = mlp_reference(x, params, out_params)
    assert out.shape == (N, OUTPUT_DIM)
    # bf16 matmul inputs (f32 accumulation) -> scale-aware tolerance vs. f32 ref.
    err = float(jnp.max(jnp.abs(out - ref)))
    scale = float(jnp.max(jnp.abs(ref)))
    assert err <= 0.08 * scale + 1e-3, f"mismatch: max|err|={err:.3e}, scale={scale:.3e}"

    print("KERNEL_OK")
</pallas_src>

<mosaic_0001>
module attributes {stable_mosaic.version = 11 : i64} {
  func.func @mlp_kernel(%arg0: i32, %arg1: memref<512x16xf32, #tpu.memory_space<vmem>>, %arg2: memref<16x256xbf16, #tpu.memory_space<vmem>>, %arg3: memref<1x256xf32, #tpu.memory_space<vmem>>, %arg4: memref<256x256xbf16, #tpu.memory_space<vmem>>, %arg5: memref<1x256xf32, #tpu.memory_space<vmem>>, %arg6: memref<256x256xbf16, #tpu.memory_space<vmem>>, %arg7: memref<1x256xf32, #tpu.memory_space<vmem>>, %arg8: memref<256x256xbf16, #tpu.memory_space<vmem>>, %arg9: memref<1x256xf32, #tpu.memory_space<vmem>>, %arg10: memref<256x256xbf16, #tpu.memory_space<vmem>>, %arg11: memref<1x256xf32, #tpu.memory_space<vmem>>, %arg12: memref<256x256xbf16, #tpu.memory_space<vmem>>, %arg13: memref<16x256xbf16, #tpu.memory_space<vmem>>, %arg14: memref<1x256xf32, #tpu.memory_space<vmem>>, %arg15: memref<256x256xbf16, #tpu.memory_space<vmem>>, %arg16: memref<1x256xf32, #tpu.memory_space<vmem>>, %arg17: memref<256x256xbf16, #tpu.memory_space<vmem>>, %arg18: memref<1x256xf32, #tpu.memory_space<vmem>>, %arg19: memref<256x8xbf16, #tpu.memory_space<vmem>>, %arg20: memref<1x8xf32, #tpu.memory_space<vmem>>, %arg21: memref<512x8xf32, #tpu.memory_space<vmem>>) attributes {dimension_semantics = [#tpu.dimension_semantics<parallel>], iteration_bounds = array<i64: 2>, scalar_prefetch = 0 : i64, scratch_operands = 0 : i64, tpu.core_type = #tpu.core_type<tc>, window_params = [{transform_indices = @transform_0, window_bounds = array<i64: 512, 16>}, {pipeline_mode = #tpu.pipeline_mode<synchronous>, transform_indices = @transform_1, window_bounds = array<i64: 16, 256>}, {pipeline_mode = #tpu.pipeline_mode<synchronous>, transform_indices = @transform_2, window_bounds = array<i64: 1, 256>}, {pipeline_mode = #tpu.pipeline_mode<synchronous>, transform_indices = @transform_3, window_bounds = array<i64: 256, 256>}, {pipeline_mode = #tpu.pipeline_mode<synchronous>, transform_indices = @transform_4, window_bounds = array<i64: 1, 256>}, {pipeline_mode = #tpu.pipeline_mode<synchronous>, transform_indices = @transform_5, window_bounds = array<i64: 256, 256>}, {pipeline_mode = #tpu.pipeline_mode<synchronous>, transform_indices = @transform_6, window_bounds = array<i64: 1, 256>}, {pipeline_mode = #tpu.pipeline_mode<synchronous>, transform_indices = @transform_7, window_bounds = array<i64: 256, 256>}, {pipeline_mode = #tpu.pipeline_mode<synchronous>, transform_indices = @transform_8, window_bounds = array<i64: 1, 256>}, {pipeline_mode = #tpu.pipeline_mode<synchronous>, transform_indices = @transform_9, window_bounds = array<i64: 256, 256>}, {pipeline_mode = #tpu.pipeline_mode<synchronous>, transform_indices = @transform_10, window_bounds = array<i64: 1, 256>}, {pipeline_mode = #tpu.pipeline_mode<synchronous>, transform_indices = @transform_11, window_bounds = array<i64: 256, 256>}, {pipeline_mode = #tpu.pipeline_mode<synchronous>, transform_indices = @transform_12, window_bounds = array<i64: 16, 256>}, {pipeline_mode = #tpu.pipeline_mode<synchronous>, transform_indices = @transform_13, window_bounds = array<i64: 1, 256>}, {pipeline_mode = #tpu.pipeline_mode<synchronous>, transform_indices = @transform_14, window_bounds = array<i64: 256, 256>}, {pipeline_mode = #tpu.pipeline_mode<synchronous>, transform_indices = @transform_15, window_bounds = array<i64: 1, 256>}, {pipeline_mode = #tpu.pipeline_mode<synchronous>, transform_indices = @transform_16, window_bounds = array<i64: 256, 256>}, {pipeline_mode = #tpu.pipeline_mode<synchronous>, transform_indices = @transform_17, window_bounds = array<i64: 1, 256>}, {pipeline_mode = #tpu.pipeline_mode<synchronous>, transform_indices = @transform_18, window_bounds = array<i64: 256, 8>}, {pipeline_mode = #tpu.pipeline_mode<synchronous>, transform_indices = @transform_19, window_bounds = array<i64: 1, 8>}, {transform_indices = @transform_20, window_bounds = array<i64: 512, 8>}]} {
    %c0 = arith.constant 0 : index
    %c0_0 = arith.constant 0 : index
    %0 = vector.load %arg1[%c0, %c0_0] : memref<512x16xf32, #tpu.memory_space<vmem>>, vector<512x16xf32>
    %1 = arith.truncf %0 : vector<512x16xf32> to vector<512x16xbf16>
    %c0_1 = arith.constant 0 : index
    %c0_2 = arith.constant 0 : index
    %2 = vector.load %arg2[%c0_1, %c0_2] : memref<16x256xbf16, #tpu.memory_space<vmem>>, vector<16x256xbf16>
    %cst = arith.constant dense<0.000000e+00> : vector<512x256xf32>
    %3 = tpu.matmul %1, %2, %cst {dimension_numbers = #tpu.dot_dimension_numbers<[1], [0], [0], [1], [0, 0, 1, 1], [], []>} : vector<512x16xbf16>, vector<16x256xbf16>, vector<512x256xf32> -> vector<512x256xf32>
    %c0_3 = arith.constant 0 : index
    %c0_4 = arith.constant 0 : index
    %4 = vector.load %arg3[%c0_3, %c0_4] : memref<1x256xf32, #tpu.memory_space<vmem>>, vector<1x256xf32>
    %5 = vector.broadcast %4 : vector<1x256xf32> to vector<512x256xf32>
    %6 = arith.addf %3, %5 : vector<512x256xf32>
    %cst_5 = arith.constant 0.000000e+00 : f32
    %7 = vector.broadcast %cst_5 : f32 to vector<512x256xf32>
    %8 = arith.maximumf %6, %7 : vector<512x256xf32>
    %9 = arith.truncf %8 : vector<512x256xf32> to vector<512x256xbf16>
    %c0_6 = arith.constant 0 : index
    %c0_7 = arith.constant 0 : index
    %10 = vector.load %arg4[%c0_6, %c0_7] : memref<256x256xbf16, #tpu.memory_space<vmem>>, vector<256x256xbf16>
    %cst_8 = arith.constant dense<0.000000e+00> : vector<512x256xf32>
    %11 = tpu.matmul %9, %10, %cst_8 {dimension_numbers = #tpu.dot_dimension_numbers<[1], [0], [0], [1], [0, 0, 1, 1], [], []>} : vector<512x256xbf16>, vector<256x256xbf16>, vector<512x256xf32> -> vector<512x256xf32>
    %c0_9 = arith.constant 0 : index
    %c0_10 = arith.constant 0 : index
    %12 = vector.load %arg5[%c0_9, %c0_10] : memref<1x256xf32, #tpu.memory_space<vmem>>, vector<1x256xf32>
    %13 = vector.broadcast %12 : vector<1x256xf32> to vector<512x256xf32>
    %14 = arith.addf %11, %13 : vector<512x256xf32>
    %cst_11 = arith.constant 0.000000e+00 : f32
    %15 = vector.broadcast %cst_11 : f32 to vector<512x256xf32>
    %16 = arith.maximumf %14, %15 : vector<512x256xf32>
    %17 = arith.truncf %16 : vector<512x256xf32> to vector<512x256xbf16>
    %c0_12 = arith.constant 0 : index
    %c0_13 = arith.constant 0 : index
    %18 = vector.load %arg6[%c0_12, %c0_13] : memref<256x256xbf16, #tpu.memory_space<vmem>>, vector<256x256xbf16>
    %cst_14 = arith.constant dense<0.000000e+00> : vector<512x256xf32>
    %19 = tpu.matmul %17, %18, %cst_14 {dimension_numbers = #tpu.dot_dimension_numbers<[1], [0], [0], [1], [0, 0, 1, 1], [], []>} : vector<512x256xbf16>, vector<256x256xbf16>, vector<512x256xf32> -> vector<512x256xf32>
    %c0_15 = arith.constant 0 : index
    %c0_16 = arith.constant 0 : index
    %20 = vector.load %arg7[%c0_15, %c0_16] : memref<1x256xf32, #tpu.memory_space<vmem>>, vector<1x256xf32>
    %21 = vector.broadcast %20 : vector<1x256xf32> to vector<512x256xf32>
    %22 = arith.addf %19, %21 : vector<512x256xf32>
    %cst_17 = arith.constant 0.000000e+00 : f32
    %23 = vector.broadcast %cst_17 : f32 to vector<512x256xf32>
    %24 = arith.maximumf %22, %23 : vector<512x256xf32>
    %25 = arith.truncf %24 : vector<512x256xf32> to vector<512x256xbf16>
    %c0_18 = arith.constant 0 : index
    %c0_19 = arith.constant 0 : index
    %26 = vector.load %arg8[%c0_18, %c0_19] : memref<256x256xbf16, #tpu.memory_space<vmem>>, vector<256x256xbf16>
    %cst_20 = arith.constant dense<0.000000e+00> : vector<512x256xf32>
    %27 = tpu.matmul %25, %26, %cst_20 {dimension_numbers = #tpu.dot_dimension_numbers<[1], [0], [0], [1], [0, 0, 1, 1], [], []>} : vector<512x256xbf16>, vector<256x256xbf16>, vector<512x256xf32> -> vector<512x256xf32>
    %c0_21 = arith.constant 0 : index
    %c0_22 = arith.constant 0 : index
    %28 = vector.load %arg9[%c0_21, %c0_22] : memref<1x256xf32, #tpu.memory_space<vmem>>, vector<1x256xf32>
    %29 = vector.broadcast %28 : vector<1x256xf32> to vector<512x256xf32>
    %30 = arith.addf %27, %29 : vector<512x256xf32>
    %cst_23 = arith.constant 0.000000e+00 : f32
    %31 = vector.broadcast %cst_23 : f32 to vector<512x256xf32>
    %32 = arith.maximumf %30, %31 : vector<512x256xf32>
    %33 = arith.truncf %32 : vector<512x256xf32> to vector<512x256xbf16>
    %c0_24 = arith.constant 0 : index
    %c0_25 = arith.constant 0 : index
    %34 = vector.load %arg10[%c0_24, %c0_25] : memref<256x256xbf16, #tpu.memory_space<vmem>>, vector<256x256xbf16>
    %cst_26 = arith.constant dense<0.000000e+00> : vector<512x256xf32>
    %35 = tpu.matmul %33, %34, %cst_26 {dimension_numbers = #tpu.dot_dimension_numbers<[1], [0], [0], [1], [0, 0, 1, 1], [], []>} : vector<512x256xbf16>, vector<256x256xbf16>, vector<512x256xf32> -> vector<512x256xf32>
    %c0_27 = arith.constant 0 : index
    %c0_28 = arith.constant 0 : index
    %36 = vector.load %arg11[%c0_27, %c0_28] : memref<1x256xf32, #tpu.memory_space<vmem>>, vector<1x256xf32>
    %37 = vector.broadcast %36 : vector<1x256xf32> to vector<512x256xf32>
    %38 = arith.addf %35, %37 : vector<512x256xf32>
    %cst_29 = arith.constant 0.000000e+00 : f32
    %39 = vector.broadcast %cst_29 : f32 to vector<512x256xf32>
    %40 = arith.maximumf %38, %39 : vector<512x256xf32>
    %41 = arith.truncf %40 : vector<512x256xf32> to vector<512x256xbf16>
    %c0_30 = arith.constant 0 : index
    %c0_31 = arith.constant 0 : index
    %42 = vector.load %arg12[%c0_30, %c0_31] : memref<256x256xbf16, #tpu.memory_space<vmem>>, vector<256x256xbf16>
    %cst_32 = arith.constant dense<0.000000e+00> : vector<512x256xf32>
    %43 = tpu.matmul %41, %42, %cst_32 {dimension_numbers = #tpu.dot_dimension_numbers<[1], [0], [0], [1], [0, 0, 1, 1], [], []>} : vector<512x256xbf16>, vector<256x256xbf16>, vector<512x256xf32> -> vector<512x256xf32>
    %c0_33 = arith.constant 0 : index
    %c0_34 = arith.constant 0 : index
    %44 = vector.load %arg13[%c0_33, %c0_34] : memref<16x256xbf16, #tpu.memory_space<vmem>>, vector<16x256xbf16>
    %cst_35 = arith.constant dense<0.000000e+00> : vector<512x256xf32>
    %45 = tpu.matmul %1, %44, %cst_35 {dimension_numbers = #tpu.dot_dimension_numbers<[1], [0], [0], [1], [0, 0, 1, 1], [], []>} : vector<512x16xbf16>, vector<16x256xbf16>, vector<512x256xf32> -> vector<512x256xf32>
    %46 = arith.addf %43, %45 : vector<512x256xf32>
    %c0_36 = arith.constant 0 : index
    %c0_37 = arith.constant 0 : index
    %47 = vector.load %arg14[%c0_36, %c0_37] : memref<1x256xf32, #tpu.memory_space<vmem>>, vector<1x256xf32>
    %48 = vector.broadcast %47 : vector<1x256xf32> to vector<512x256xf32>
    %49 = arith.addf %46, %48 : vector<512x256xf32>
    %cst_38 = arith.constant 0.000000e+00 : f32
    %50 = vector.broadcast %cst_38 : f32 to vector<512x256xf32>
    %51 = arith.maximumf %49, %50 : vector<512x256xf32>
    %52 = arith.truncf %51 : vector<512x256xf32> to vector<512x256xbf16>
    %c0_39 = arith.constant 0 : index
    %c0_40 = arith.constant 0 : index
    %53 = vector.load %arg15[%c0_39, %c0_40] : memref<256x256xbf16, #tpu.memory_space<vmem>>, vector<256x256xbf16>
    %cst_41 = arith.constant dense<0.000000e+00> : vector<512x256xf32>
    %54 = tpu.matmul %52, %53, %cst_41 {dimension_numbers = #tpu.dot_dimension_numbers<[1], [0], [0], [1], [0, 0, 1, 1], [], []>} : vector<512x256xbf16>, vector<256x256xbf16>, vector<512x256xf32> -> vector<512x256xf32>
    %c0_42 = arith.constant 0 : index
    %c0_43 = arith.constant 0 : index
    %55 = vector.load %arg16[%c0_42, %c0_43] : memref<1x256xf32, #tpu.memory_space<vmem>>, vector<1x256xf32>
    %56 = vector.broadcast %55 : vector<1x256xf32> to vector<512x256xf32>
    %57 = arith.addf %54, %56 : vector<512x256xf32>
    %cst_44 = arith.constant 0.000000e+00 : f32
    %58 = vector.broadcast %cst_44 : f32 to vector<512x256xf32>
    %59 = arith.maximumf %57, %58 : vector<512x256xf32>
    %60 = arith.truncf %59 : vector<512x256xf32> to vector<512x256xbf16>
    %c0_45 = arith.constant 0 : index
    %c0_46 = arith.constant 0 : index
    %61 = vector.load %arg17[%c0_45, %c0_46] : memref<256x256xbf16, #tpu.memory_space<vmem>>, vector<256x256xbf16>
    %cst_47 = arith.constant dense<0.000000e+00> : vector<512x256xf32>
    %62 = tpu.matmul %60, %61, %cst_47 {dimension_numbers = #tpu.dot_dimension_numbers<[1], [0], [0], [1], [0, 0, 1, 1], [], []>} : vector<512x256xbf16>, vector<256x256xbf16>, vector<512x256xf32> -> vector<512x256xf32>
    %c0_48 = arith.constant 0 : index
    %c0_49 = arith.constant 0 : index
    %63 = vector.load %arg18[%c0_48, %c0_49] : memref<1x256xf32, #tpu.memory_space<vmem>>, vector<1x256xf32>
    %64 = vector.broadcast %63 : vector<1x256xf32> to vector<512x256xf32>
    %65 = arith.addf %62, %64 : vector<512x256xf32>
    %cst_50 = arith.constant 0.000000e+00 : f32
    %66 = vector.broadcast %cst_50 : f32 to vector<512x256xf32>
    %67 = arith.maximumf %65, %66 : vector<512x256xf32>
    %68 = arith.truncf %67 : vector<512x256xf32> to vector<512x256xbf16>
    %c0_51 = arith.constant 0 : index
    %c0_52 = arith.constant 0 : index
    %69 = vector.load %arg19[%c0_51, %c0_52] : memref<256x8xbf16, #tpu.memory_space<vmem>>, vector<256x8xbf16>
    %cst_53 = arith.constant dense<0.000000e+00> : vector<512x8xf32>
    %70 = tpu.matmul %68, %69, %cst_53 {dimension_numbers = #tpu.dot_dimension_numbers<[1], [0], [0], [1], [0, 0, 1, 1], [], []>} : vector<512x256xbf16>, vector<256x8xbf16>, vector<512x8xf32> -> vector<512x8xf32>
    %c0_54 = arith.constant 0 : index
    %c0_55 = arith.constant 0 : index
    %71 = vector.load %arg20[%c0_54, %c0_55] : memref<1x8xf32, #tpu.memory_space<vmem>>, vector<1x8xf32>
    %72 = vector.broadcast %71 : vector<1x8xf32> to vector<512x8xf32>
    %73 = arith.addf %70, %72 : vector<512x8xf32>
    %c0_56 = arith.constant 0 : index
    %c0_57 = arith.constant 0 : index
    %74 = vector.load %arg21[%c0_56, %c0_57] : memref<512x8xf32, #tpu.memory_space<vmem>>, vector<512x8xf32>
    tpu.vector_store %arg21[%c0_56, %c0_57], %73 {strides = array<i32>} : memref<512x8xf32, #tpu.memory_space<vmem>>, vector<512x8xf32>,
    return
  }
  func.func @transform_0(%arg0: i32) -> (i32, i32) {
    %c0_i32 = arith.constant 0 : i32
    %c0_i32_0 = arith.constant 0 : i32
    return %arg0, %c0_i32 : i32, i32
  }
  func.func @transform_1(%arg0: i32) -> (i32, i32) {
    %c0_i32 = arith.constant 0 : i32
    %c0_i32_0 = arith.constant 0 : i32
    %c0_i32_1 = arith.constant 0 : i32
    return %c0_i32, %c0_i32_0 : i32, i32
  }
  func.func @transform_2(%arg0: i32) -> (i32, i32) {
    %c0_i32 = arith.constant 0 : i32
    %c0_i32_0 = arith.constant 0 : i32
    %c0_i32_1 = arith.constant 0 : i32
    return %c0_i32, %c0_i32_0 : i32, i32
  }
  func.func @transform_3(%arg0: i32) -> (i32, i32) {
    %c0_i32 = arith.constant 0 : i32
    %c0_i32_0 = arith.constant 0 : i32
    %c0_i32_1 = arith.constant 0 : i32
    return %c0_i32, %c0_i32_0 : i32, i32
  }
  func.func @transform_4(%arg0: i32) -> (i32, i32) {
    %c0_i32 = arith.constant 0 : i32
    %c0_i32_0 = arith.constant 0 : i32
    %c0_i32_1 = arith.constant 0 : i32
    return %c0_i32, %c0_i32_0 : i32, i32
  }
  func.func @transform_5(%arg0: i32) -> (i32, i32) {
    %c0_i32 = arith.constant 0 : i32
    %c0_i32_0 = arith.constant 0 : i32
    %c0_i32_1 = arith.constant 0 : i32
    return %c0_i32, %c0_i32_0 : i32, i32
  }
  func.func @transform_6(%arg0: i32) -> (i32, i32) {
    %c0_i32 = arith.constant 0 : i32
    %c0_i32_0 = arith.constant 0 : i32
    %c0_i32_1 = arith.constant 0 : i32
    return %c0_i32, %c0_i32_0 : i32, i32
  }
  func.func @transform_7(%arg0: i32) -> (i32, i32) {
    %c0_i32 = arith.constant 0 : i32
    %c0_i32_0 = arith.constant 0 : i32
    %c0_i32_1 = arith.constant 0 : i32
    return %c0_i32, %c0_i32_0 : i32, i32
  }
  func.func @transform_8(%arg0: i32) -> (i32, i32) {
    %c0_i32 = arith.constant 0 : i32
    %c0_i32_0 = arith.constant 0 : i32
    %c0_i32_1 = arith.constant 0 : i32
    return %c0_i32, %c0_i32_0 : i32, i32
  }
  func.func @transform_9(%arg0: i32) -> (i32, i32) {
    %c0_i32 = arith.constant 0 : i32
    %c0_i32_0 = arith.constant 0 : i32
    %c0_i32_1 = arith.constant 0 : i32
    return %c0_i32, %c0_i32_0 : i32, i32
  }
  func.func @transform_10(%arg0: i32) -> (i32, i32) {
    %c0_i32 = arith.constant 0 : i32
    %c0_i32_0 = arith.constant 0 : i32
    %c0_i32_1 = arith.constant 0 : i32
    return %c0_i32, %c0_i32_0 : i32, i32
  }
  func.func @transform_11(%arg0: i32) -> (i32, i32) {
    %c0_i32 = arith.constant 0 : i32
    %c0_i32_0 = arith.constant 0 : i32
    %c0_i32_1 = arith.constant 0 : i32
    return %c0_i32, %c0_i32_0 : i32, i32
  }
  func.func @transform_12(%arg0: i32) -> (i32, i32) {
    %c0_i32 = arith.constant 0 : i32
    %c0_i32_0 = arith.constant 0 : i32
    %c0_i32_1 = arith.constant 0 : i32
    return %c0_i32, %c0_i32_0 : i32, i32
  }
  func.func @transform_13(%arg0: i32) -> (i32, i32) {
    %c0_i32 = arith.constant 0 : i32
    %c0_i32_0 = arith.constant 0 : i32
    %c0_i32_1 = arith.constant 0 : i32
    return %c0_i32, %c0_i32_0 : i32, i32
  }
  func.func @transform_14(%arg0: i32) -> (i32, i32) {
    %c0_i32 = arith.constant 0 : i32
    %c0_i32_0 = arith.constant 0 : i32
    %c0_i32_1 = arith.constant 0 : i32
    return %c0_i32, %c0_i32_0 : i32, i32
  }
  func.func @transform_15(%arg0: i32) -> (i32, i32) {
    %c0_i32 = arith.constant 0 : i32
    %c0_i32_0 = arith.constant 0 : i32
    %c0_i32_1 = arith.constant 0 : i32
    return %c0_i32, %c0_i32_0 : i32, i32
  }
  func.func @transform_16(%arg0: i32) -> (i32, i32) {
    %c0_i32 = arith.constant 0 : i32
    %c0_i32_0 = arith.constant 0 : i32
    %c0_i32_1 = arith.constant 0 : i32
    return %c0_i32, %c0_i32_0 : i32, i32
  }
  func.func @transform_17(%arg0: i32) -> (i32, i32) {
    %c0_i32 = arith.constant 0 : i32
    %c0_i32_0 = arith.constant 0 : i32
    %c0_i32_1 = arith.constant 0 : i32
    return %c0_i32, %c0_i32_0 : i32, i32
  }
  func.func @transform_18(%arg0: i32) -> (i32, i32) {
    %c0_i32 = arith.constant 0 : i32
    %c0_i32_0 = arith.constant 0 : i32
    %c0_i32_1 = arith.constant 0 : i32
    return %c0_i32, %c0_i32_0 : i32, i32
  }
  func.func @transform_19(%arg0: i32) -> (i32, i32) {
    %c0_i32 = arith.constant 0 : i32
    %c0_i32_0 = arith.constant 0 : i32
    %c0_i32_1 = arith.constant 0 : i32
    return %c0_i32, %c0_i32_0 : i32, i32
  }
  func.func @transform_20(%arg0: i32) -> (i32, i32) {
    %c0_i32 = arith.constant 0 : i32
    %c0_i32_0 = arith.constant 0 : i32
    return %arg0, %c0_i32 : i32, i32
  }
}

</mosaic_0001>

<bundles_post_ra>
// kernel: tpu_custom_call.1
= control target key start
LH: loop header
LB: loop body
LE: loop exit
PB: predicated region body
PF: predicated region fallthrough
CT: control target
= control target key end

     0   :  { %s12342_s0 = inlined_call_operand.vmem [shape: f32[1024,16], index: 0, kind: input, shape index: {}]   ;;  %s12343_s1 = inlined_call_operand.hbm [shape: bf16[16,256], index: 1, kind: input, shape index: {}]   ;;  %s12344_s2 = inlined_call_operand.hbm [shape: f32[1,256], index: 2, kind: input, shape index: {}]   ;;  %s12345_s3 = inlined_call_operand.vmem [shape: bf16[256,256], index: 3, kind: input, shape index: {}]   ;;  %s12346_s4 = inlined_call_operand.hbm [shape: f32[1,256], index: 4, kind: input, shape index: {}]   ;;  %s12347_s5 = inlined_call_operand.vmem [shape: bf16[256,256], index: 5, kind: input, shape index: {}]   ;;  %s12348_s6 = inlined_call_operand.hbm [shape: f32[1,256], index: 6, kind: input, shape index: {}]   ;;  %s12349_s7 = inlined_call_operand.vmem [shape: bf16[256,256], index: 7, kind: input, shape index: {}]   ;;  %s12350_s8 = inlined_call_operand.hbm [shape: f32[1,256], index: 8, kind: input, shape index: {}]   ;;  %s12351_s9 = inlined_call_operand.vmem [shape: bf16[256,256], index: 9, kind: input, shape index: {}]   ;;  %s12352_s10 = inlined_call_operand.hbm [shape: f32[1,256], index: 10, kind: input, shape index: {}]   ;;  %s12353_s11 = inlined_call_operand.vmem [shape: bf16[256,256], index: 11, kind: input, shape index: {}]   ;;  %s12354_s12 = inlined_call_operand.vmem [shape: bf16[16,256], index: 12, kind: input, shape index: {}]   ;;  %s12355_s13 = inlined_call_operand.hbm [shape: f32[1,256], index: 13, kind: input, shape index: {}]   ;;  %s12356_s14 = inlined_call_operand.hbm [shape: bf16[256,256], index: 14, kind: input, shape index: {}]   ;;  %s12357_s15 = inlined_call_operand.hbm [shape: f32[1,256], index: 15, kind: input, shape index: {}]   ;;  %s12358_s16 = inlined_call_operand.hbm [shape: bf16[256,256], index: 16, kind: input, shape index: {}]   ;;  %s12359_s17 = inlined_call_operand.vmem [shape: f32[1,256], index: 17, kind: input, shape index: {}]   ;;  %s12360_s18 = inlined_call_operand.vmem [shape: bf16[256,8], index: 18, kind: input, shape index: {}]   ;;  %s12361_s19 = inlined_call_operand.vmem [shape: f32[1,8], index: 19, kind: input, shape index: {}]   ;;  %s12362_s20 = inlined_call_operand.vmem [shape: f32[1024,8], index: 20, kind: output, shape index: {}]  }
   0x1   :  { %12378 = sst [smem:[#allocation83_spill]] %s12342_s0 }
   0x2   :  { %12379 = sst [smem:[#allocation84_spill]] %s12343_s1 }
   0x3   :  { %12380 = sst [smem:[#allocation85_spill]] %s12344_s2 }
   0x4   :  { %12381 = sst [smem:[#allocation86_spill]] %s12345_s3 }
   0x5   :  { %12382 = sst [smem:[#allocation87_spill]] %s12346_s4 }
   0x6   :  { %12383 = sst [smem:[#allocation88_spill]] %s12348_s6 }
   0x7   :  { %25 = vsyncpa [#allocation3], 0 }
   0x8   :  { %26 = vsyncpa [#allocation5], 0 }
   0x9   :  { %27 = vsyncpa [#allocation8], 0 }
   0xa   :  { %28 = vsyncpa [#allocation11], 0 }
   0xb   :  { %29 = vsyncpa [#allocation14], 0 }
   0xc   :  { %30 = vsyncpa [#allocation17], 0  ;;  %s9159_s1 = smov 0  }
   0xd LB: > { %s9041_s22 = smov [#allocation4]   ;;  %s12367_s24 = sadd.s32 4294967295, %s9039_s1   ;;  %s9039_s1 = sphi %s9159_s1, %s36_s1  }
   0xe   : > { %s518_s23 = sshll.u32 %s9041_s22, 4  ;;  %p7909_p0 = scmp.ge.s32.totalorder %s9039_s1, 1  ;;  %s519_s23 = int_to_ptr.vmem [resolvable:$true] %s518_s23 }
   0xf   : > { %p492_p1 = scmp.lt.s32.totalorder %s9039_s1, 3  ;;  %p9169_p2 = scmp.eq.s32.totalorder %s12367_s24, 0 }
  0x10   : > { %s9042_s3 = smov [#allocation7]   ;;  %s9043_s27 = smov [#allocation10]  }
  0x11   : > { %s12384_s2 = scalar_select %p9169_p2, 1, 0 }
  0x12   : > { %p9173_p3 = pnand %p7909_p0, %p492_p1  ;;  %s546_s26 = sshll.u32 %s9042_s3, 4  ;;  %s547_s26 = int_to_ptr.vmem [resolvable:$true] %s546_s26 }
  0x13   : > { %s574_s28 = sshll.u32 %s9043_s27, 4  ;;  %s9044_s29 = smov [#allocation13]   ;;  %s9185_s28 = int_to_ptr.vmem [resolvable:$true] %s574_s28 }
  0x14   : > { %s12385_s25 = scalar_select %p9173_p3, 1, 0 }
  0x15   : > { %p8319_p4 = pneg %p9173_p3  ;;  %s9187_s30 = sshll.u32 %s9044_s29, 4  ;;  %s602_s30 = int_to_ptr.vmem [resolvable:$true] %s9187_s30 }
  0x16   : > { %s8760_s21 = scalar_lea.vmem %s519_s23, 32  ;;  %p8768_p10 = scmp.lt.s32.totalorder %s519_s23, %s519_s23 }
  0x17   : > { %p9181_p5 = pnand %p9169_p2, %p8319_p4  ;;  %p8761_p7 = scmp.ne.s32.totalorder %s519_s23, %s8760_s21 }
  0x18   : > { %p8769_p11 = scmp.lt.s32.totalorder %s8760_s21, %s8760_s21 }
  0x19   : > { %p9191_p6 = pneg %p9181_p5 }
  0x1a   : > { %p8770_p12 = por %p8769_p11, %p8768_p10 }
  0x1b   : > { %p8763_p8 = pnand %p8761_p7, %p9191_p6 }
  0x1d   : > { %p8764_p9 = pneg %p8763_p8 }
  0x1f   : > { %p8771_p13 = pnand %p8770_p12, %p8764_p9 }
  0x21   : > { %8774 = shalt.err (!%p8771_p13)
}
  0x22   : > { %s12388_s27 = sld [smem:[#allocation85_spill]]  ;;  %s8786_s29 = scalar_lea.vmem %s547_s26, 32 }
  0x23   : > { %p8787_p0 = scmp.ne.s32.totalorder %s547_s26, %s8786_s29  ;;  %p8794_p2 = scmp.lt.s32.totalorder %s547_s26, %s547_s26 }
  0x24   : > { %p8795_p7 = scmp.lt.s32.totalorder %s8786_s29, %s8786_s29 }
  0x25   : > { %p8789_p1 = pnand %p8787_p0, %p9191_p6 }
  0x26   : > { %p8796_p8 = por %p8795_p7, %p8794_p2 }
  0x27   : > { %p8790_p4 = pneg %p8789_p1 }
  0x28   : > { %8325 = dma.hbm_to_vmem [thread:$0]  (!%p9181_p5), %s12388_s27, 32, %s519_s23, [#allocation5]  }
  0x29   : > { %p8797_p3 = pnand %p8796_p8, %p8790_p4 }
  0x2b   : > { %8800 = shalt.err (!%p8797_p3)
}
  0x2c   : > { %s12389_s6 = sld [smem:[#allocation88_spill]]  ;;  %s8812_s23 = scalar_lea.vmem %s9185_s28, 32 }
  0x2d   : > { %p8813_p9 = scmp.ne.s32.totalorder %s9185_s28, %s8812_s23  ;;  %p8820_p12 = scmp.lt.s32.totalorder %s9185_s28, %s9185_s28 }
  0x2e   : > { %p8821_p2 = scmp.lt.s32.totalorder %s8812_s23, %s8812_s23 }
  0x2f   : > { %p8815_p10 = pnand %p8813_p9, %p9191_p6 }
  0x30   : > { %p8822_p13 = por %p8821_p2, %p8820_p12 }
  0x31   : > { %p8816_p11 = pneg %p8815_p10 }
  0x32   : > { %8331 = dma.hbm_to_vmem [thread:$0]  (!%p9181_p5), %s12389_s6, 32, %s547_s26, [#allocation8]  }
  0x33   : > { %p8823_p3 = pnand %p8822_p13, %p8816_p11 }
  0x35   : > { %8826 = shalt.err (!%p8823_p3)
}
  0x36   : > { %8337 = dma.hbm_to_vmem [thread:$0]  (!%p9181_p5), %s12352_s10, 32, %s9185_s28, [#allocation11]  }
  0x37   : > { %s8838_s26 = scalar_lea.vmem %s602_s30, 4096  ;;  %p8846_p7 = scmp.lt.s32.totalorder %s602_s30, %s602_s30 }
  0x38   : > { %p8839_p0 = scmp.ne.s32.totalorder %s602_s30, %s8838_s26  ;;  %p8847_p8 = scmp.lt.s32.totalorder %s8838_s26, %s8838_s26 }
  0x3a   : > { %p8841_p1 = pnand %p8839_p0, %p9191_p6  ;;  %p8848_p9 = por %p8847_p8, %p8846_p7 }
  0x3c   : > { %p8842_p4 = pneg %p8841_p1 }
  0x3e   : > { %p8849_p10 = pnand %p8848_p9, %p8842_p4 }
  0x40   : > { %8852 = shalt.err (!%p8849_p10)
}
  0x41   : > { %s12368_s3 = smov 128   ;;  %s9046_s27 = smov 8  }
  0x42   : > { %8343 = dma.hbm_to_vmem [thread:$0]  (!%p9181_p5), %s12356_s14, 4096, %s602_s30, [#allocation14], %s12368_s3, %s12368_s3, %s9046_s27  }
  0x43   : > { %s9047_s21 = smov [#allocation2]   ;;  %s9048_s24 = smov [#allocation6]  }
  0x44   : > { %s504_s23 = sshll.u32 %s9047_s21, 4  ;;  %s532_s22 = sshll.u32 %s9048_s24, 4  ;;  %s505_s23 = int_to_ptr.vmem [resolvable:$true] %s504_s23  ;;  %s533_s22 = int_to_ptr.vmem [resolvable:$true] %s532_s22 }
  0x45   : > { %s8864_s26 = scalar_lea.vmem %s505_s23, 256  ;;  %p8872_p13 = scmp.lt.s32.totalorder %s505_s23, %s505_s23 }
  0x46   : > { %p8865_p11 = scmp.ne.s32.totalorder %s505_s23, %s8864_s26  ;;  %p8873_p3 = scmp.lt.s32.totalorder %s8864_s26, %s8864_s26 }
  0x48   : > { %p8867_p12 = pnand %p8865_p11, %p9191_p6  ;;  %p8874_p0 = por %p8873_p3, %p8872_p13 }
  0x4a   : > { %p8868_p2 = pneg %p8867_p12 }
  0x4c   : > { %p8875_p1 = pnand %p8874_p0, %p8868_p2 }
  0x4e   : > { %8878 = shalt.err (!%p8875_p1)
}
  0x4f   : > { %s12390_s29 = sld [smem:[#allocation84_spill]]  ;;  %s8890_s21 = scalar_lea.vmem %s533_s22, 32 }
  0x50   : > { %p8891_p4 = scmp.ne.s32.totalorder %s533_s22, %s8890_s21  ;;  %p8898_p9 = scmp.lt.s32.totalorder %s533_s22, %s533_s22 }
  0x51   : > { %p8899_p10 = scmp.lt.s32.totalorder %s8890_s21, %s8890_s21 }
  0x52   : > { %p8893_p7 = pnand %p8891_p4, %p9191_p6 }
  0x53   : > { %p8900_p11 = por %p8899_p10, %p8898_p9 }
  0x54   : > { %p8894_p8 = pneg %p8893_p7 }
  0x55   : > { %8322 = dma.hbm_to_vmem [thread:$0]  (!%p9181_p5), %s12390_s29, 256, %s505_s23, [#allocation3], %s12368_s3, %s12368_s3, %s9046_s27  }
  0x56   : > { %p8901_p12 = pnand %p8900_p11, %p8894_p8 }
  0x58   : > { %8904 = shalt.err (!%p8901_p12)
}
  0x59   : > { %s12391_s6 = sld [smem:[#allocation87_spill]]  ;;  %s9049_s30 = smov [#allocation9]  }
  0x5a   : > { %s560_s23 = sshll.u32 %s9049_s30, 4  ;;  %s9050_s28 = smov [#allocation12]   ;;  %s561_s23 = int_to_ptr.vmem [resolvable:$true] %s560_s23 }
  0x5b   : > { %s591_s29 = sshll.u32 %s9050_s28, 4  ;;  %s8916_s3 = scalar_lea.vmem %s561_s23, 32  ;;  %s592_s29 = int_to_ptr.vmem [resolvable:$true] %s591_s29 }
  0x5c   : > { %p8917_p2 = scmp.ne.s32.totalorder %s561_s23, %s8916_s3  ;;  %p8924_p0 = scmp.lt.s32.totalorder %s561_s23, %s561_s23 }
  0x5d   : > { %p8925_p1 = scmp.lt.s32.totalorder %s8916_s3, %s8916_s3 }
  0x5e   : > { %p8919_p13 = pnand %p8917_p2, %p9191_p6 }
  0x5f   : > { %8328 = dma.hbm_to_vmem [thread:$0]  (!%p9181_p5), %s12391_s6, 32, %s533_s22, [#allocation5]  }
  0x60   : > { %p8920_p3 = pneg %p8919_p13  ;;  %p8926_p4 = por %p8925_p1, %p8924_p0 }
  0x62   : > { %p8927_p7 = pnand %p8926_p4, %p8920_p3 }
  0x64   : > { %8930 = shalt.err (!%p8927_p7)
}
  0x65   : > { %8334 = dma.hbm_to_vmem [thread:$0]  (!%p9181_p5), %s12350_s8, 32, %s561_s23, [#allocation8]  }
  0x66   : > { %s8942_s6 = scalar_lea.vmem %s592_s29, 32  ;;  %p8950_p11 = scmp.lt.s32.totalorder %s592_s29, %s592_s29 }
  0x67   : > { %p8943_p8 = scmp.ne.s32.totalorder %s592_s29, %s8942_s6  ;;  %p8951_p12 = scmp.lt.s32.totalorder %s8942_s6, %s8942_s6 }
  0x69   : > { %p8945_p9 = pnand %p8943_p8, %p9191_p6  ;;  %p8952_p2 = por %p8951_p12, %p8950_p11 }
  0x6b   : > { %p8946_p10 = pneg %p8945_p9 }
  0x6d   : > { %p8953_p13 = pnand %p8952_p2, %p8946_p10 }
  0x6f   : > { %8956 = shalt.err (!%p8953_p13)
}
  0x70   : > { %8340 = dma.hbm_to_vmem [thread:$0]  (!%p9181_p5), %s12355_s13, 32, %s592_s29, [#allocation11]  }
  0x71   : > { %s9051_s26 = smov [#allocation15]   ;;  %s9052_s23 = smov [#allocation16]  }
  0x72   : > { %s615_s30 = sshll.u32 %s9051_s26, 4  ;;  %s625_s28 = sshll.u32 %s9052_s23, 4  ;;  %s616_s30 = int_to_ptr.vmem [resolvable:$true] %s615_s30  ;;  %s626_s28 = int_to_ptr.vmem [resolvable:$true] %s625_s28 }
  0x73   : > { %s8968_s21 = scalar_lea.vmem %s616_s30, 32  ;;  %p8976_p4 = scmp.lt.s32.totalorder %s616_s30, %s616_s30 }
  0x74   : > { %p8969_p3 = scmp.ne.s32.totalorder %s616_s30, %s8968_s21  ;;  %p8977_p7 = scmp.lt.s32.totalorder %s8968_s21, %s8968_s21 }
  0x76   : > { %p8971_p0 = pnand %p8969_p3, %p9191_p6  ;;  %p8978_p8 = por %p8977_p7, %p8976_p4 }
  0x78   : > { %p8972_p1 = pneg %p8971_p0 }
  0x7a   : > { %p8979_p9 = pnand %p8978_p8, %p8972_p1 }
  0x7c   : > { %8982 = shalt.err (!%p8979_p9)
}
  0x7d   : > { %8346 = dma.hbm_to_vmem [thread:$0]  (!%p9181_p5), %s12357_s15, 32, %s616_s30, [#allocation14]  }
  0x7e   : > { %s8994_s29 = scalar_lea.vmem %s626_s28, 4096  ;;  %p9002_p2 = scmp.lt.s32.totalorder %s626_s28, %s626_s28 }
  0x7f   : > { %p8995_p10 = scmp.ne.s32.totalorder %s626_s28, %s8994_s29  ;;  %p9003_p13 = scmp.lt.s32.totalorder %s8994_s29, %s8994_s29 }
  0x81   : > { %p8997_p11 = pnand %p8995_p10, %p9191_p6  ;;  %p9004_p3 = por %p9003_p13, %p9002_p2 }
  0x83   : > { %p8998_p12 = pneg %p8997_p11 }
  0x85   : > { %p9005_p0 = pnand %p9004_p3, %p8998_p12 }
  0x87   : > { %9008 = shalt.err (!%p9005_p0)
}
  0x88   : > { %s12392_s3 = smov 128   ;;  %p12393_p1 = scmp.ne.s32.totalorder %s12385_s25, 0 }
  0x89   : > { %8349 = dma.hbm_to_vmem [thread:$0]  (!%p9181_p5), %s12358_s16, 4096, %s626_s28, [#allocation17], %s12392_s3, %s12392_s3, %s9046_s27  }
  0x8a   : > { %659 = sbr.rel (%p12393_p1) target bundleno = 2314 (0x90a), region = 100 }
  0x8f   : > { %p12394_p6 = scmp.ne.s32.totalorder %s12384_s2, 0 }
  0x91   : > { %9014 = dma.done.wait (%p12394_p6), [#allocation3], 256  }
  0x92   : > { %9016 = vsyncadd (%p12394_p6), [#allocation3], 4294967040 }
  0x93   : > { %9018 = dma.done.wait (%p12394_p6), [#allocation5], 64  }
  0x94   : > { %9020 = vsyncadd (%p12394_p6), [#allocation5], 4294967232 }
  0x95   : > { %9022 = dma.done.wait (%p12394_p6), [#allocation8], 64  }
  0x96   : > { %9024 = vsyncadd (%p12394_p6), [#allocation8], 4294967232 }
  0x97   : > { %9026 = dma.done.wait (%p12394_p6), [#allocation11], 64  }
  0x98   : > { %9028 = vsyncadd (%p12394_p6), [#allocation11], 4294967232 }
  0x99   : > { %9030 = dma.done.wait (%p12394_p6), [#allocation14], 4128  }
  0x9a   : > { %9032 = vsyncadd (%p12394_p6), [#allocation14], 4294963168 }
  0x9b   : > { %9034 = dma.done.wait (%p12394_p6), [#allocation17], 4096  }
  0x9c   : > { %9036 = vsyncadd (%p12394_p6), [#allocation17], 4294963200  ;;  %s12395_s25 = sadd.s32 4294967295, %s9039_s1   ;;  %v12369_v0 = vmov 0   ;;  %s12396_s23 = sld [smem:[#allocation83_spill]]  ;;  %vm886_vm0 = vcmask 130048  }
  0x9d   : > { %s7932_s4 = sshll.u32 %s12395_s25, 6  ;;  %1015 = vmatprep.mubr.bf16.mxu0 %v12369_v0  ;;  %v8391_v1 = vld [vmem:[#allocation2 + $0x4] ss:$8 sps:$4 sm:$0xff]   ;;  %v8393_v2 = vld [vmem:[#allocation2] ss:$8 sps:$4 sm:$0xff]   ;;  %s12397_s24 = sld [smem:[#allocation86_spill]] }
  0x9e   : > { %p754_p5 = scmp.lt.s32.totalorder %s7932_s4, 127  ;;  %997 = vmatprep.subr.bf16.mxu0 %v8391_v1  ;;  %v8406_v24 = vld [vmem:[%s12347_s5 + $0x70] ss:$8 sps:$4 sm:$0xff]   ;;  %v8408_v26 = vld [vmem:[%s12347_s5 + $0x74] ss:$8 sps:$4 sm:$0xff]   ;;  %vm7688_vm1 = vcmask 64512  }
  0x9f   : > { %998 = vmatpush1.bf16.msra.mxu0 %v8393_v2  ;;  %v8421_v40 = vld [vmem:[%s12347_s5 + $0x60] ss:$8 sps:$4 sm:$0xff]   ;;  %v8423_v42 = vld [vmem:[%s12347_s5 + $0x64] ss:$8 sps:$4 sm:$0xff]   ;;  %v8436_v56 = vld [vmem:[%s12347_s5 + $0x50] ss:$8 sps:$4 sm:$0xff]  }
  0xa0   : > { %s12529_s4 = smov (!%p754_p5, %s7932_s4), 127  ;;  %2481 = vmatprep.subr.bf16.mxu0 %v8408_v26  ;;  %v8438_v58 = vld [vmem:[%s12347_s5 + $0x54] ss:$8 sps:$4 sm:$0xff]  }
  0xa1   : > { %s7933_s0 = sshll.u32 %s12529_s4, 3 }
  0xa2   : > { %s9317_s28 = scalar_lea.vmem %s12396_s23, %s7933_s0  ;;  %s12132_s21 = scalar_lea.vmem %s12362_s20, %s7933_s0 }
  0xa3   : > { %v766_v3 = vld [vmem:[%s9317_s28] sm:$0xff]  ;;  %v767_v4 = vld [vmem:[%s9317_s28 + $0x8] sm:$0xff]  ;;  %v768_v6 = vld [vmem:[%s9317_s28 + $0x10] sm:$0xff] }
  0xa4   : > { %v9321_v5 = vpack.c.bf16 %v767_v4, %v766_v3  ;;  %v769_v7 = vld [vmem:[%s9317_s28 + $0x18] sm:$0xff]  ;;  %v770_v10 = vld [vmem:[%s9317_s28 + $0x20] sm:$0xff]  ;;  %v771_v11 = vld [vmem:[%s9317_s28 + $0x28] sm:$0xff] }
  0xa5   : > { %v9328_v8 = vpack.c.bf16 %v769_v7, %v768_v6  ;;  %v8394_v9 = vld [vmem:[%s12397_s24 + $0x74] ss:$8 sps:$4 sm:$0xff]   ;;  %v8396_v12 = vld [vmem:[%s12397_s24 + $0x70] ss:$8 sps:$4 sm:$0xff]   ;;  %v9341_v13 = vpack.c.bf16 %v771_v11, %v770_v10  ;;  %v8397_v14 = vld [vmem:[%s12397_s24 + $0x64] ss:$8 sps:$4 sm:$0xff]  }
  0xa6   : > { %7938 = vmatmul.mubr.msk.bf16.vlgmr.msra.gmra.mxu0 %vm886_vm0, %v9321_v5  ;;  %1732 = vmatprep.subr.bf16.mxu1 %v8394_v9  ;;  %v8399_v15 = vld [vmem:[%s12397_s24 + $0x60] ss:$8 sps:$4 sm:$0xff]   ;;  %v8400_v16 = vld [vmem:[%s12397_s24 + $0x54] ss:$8 sps:$4 sm:$0xff]   ;;  %v8402_v19 = vld [vmem:[%s12397_s24 + $0x50] ss:$8 sps:$4 sm:$0xff]  }
  0xa7   : > { %1025 = vmatprep.mubr.bf16.mxu0 %v12369_v0  ;;  %1733 = vmatpush1.bf16.msra.mxu1 %v8396_v12  ;;  %v772_v17 = vld [vmem:[%s9317_s28 + $0x30] sm:$0xff]  ;;  %v773_v18 = vld [vmem:[%s9317_s28 + $0x38] sm:$0xff]  ;;  %v774_v21 = vld [vmem:[%s9317_s28 + $0x40] sm:$0xff] }
  0xa8   : > { %1734 = vmatprep.subr.bf16.mxu1 %v8397_v14  ;;  %v9360_v20 = vpack.c.bf16 %v773_v18, %v772_v17  ;;  %v8403_v22 = vld [vmem:[%s12397_s24 + $0x44] ss:$8 sps:$4 sm:$0xff]   ;;  %v8405_v23 = vld [vmem:[%s12397_s24 + $0x40] ss:$8 sps:$4 sm:$0xff]   ;;  %v8409_v27 = vld [vmem:[%s12397_s24 + $0x34] ss:$8 sps:$4 sm:$0xff]   ;;  %2482 = vmatpush1.bf16.msra.mxu0 %v8406_v24 }
  0xa9   : > { %v775_v25 = vld [vmem:[%s9317_s28 + $0x48] sm:$0xff]  ;;  %v8411_v28 = vld [vmem:[%s12397_s24 + $0x30] ss:$8 sps:$4 sm:$0xff]   ;;  %v8415_v32 = vld [vmem:[%s12397_s24 + $0x14] ss:$8 sps:$4 sm:$0xff]   ;;  %2483 = vmatprep.subr.bf16.mxu0 %v8423_v42 }
  0xaa   : > { %v9385_v29 = vpack.c.bf16 %v775_v25, %v774_v21  ;;  %v8412_v30 = vld [vmem:[%s12397_s24 + $0x24] ss:$8 sps:$4 sm:$0xff]   ;;  %v8414_v31 = vld [vmem:[%s12397_s24 + $0x20] ss:$8 sps:$4 sm:$0xff]   ;;  %v776_v33 = vld [vmem:[%s9317_s28 + $0x50] sm:$0xff] }
  0xab   : > { %1735 = vmatpush1.bf16.msra.mxu1 %v8399_v15  ;;  %v777_v34 = vld [vmem:[%s9317_s28 + $0x58] sm:$0xff]  ;;  %v778_v37 = vld [vmem:[%s9317_s28 + $0x60] sm:$0xff]  ;;  %v779_v41 = vld [vmem:[%s9317_s28 + $0x68] sm:$0xff] }
  0xac   : > { %1736 = vmatprep.subr.bf16.mxu1 %v8400_v16  ;;  %v8417_v35 = vld [vmem:[%s12397_s24 + $0x10] ss:$8 sps:$4 sm:$0xff]   ;;  %v9404_v36 = vpack.c.bf16 %v777_v34, %v776_v33  ;;  %v8418_v38 = vld [vmem:[%s12397_s24 + $0x4] ss:$8 sps:$4 sm:$0xff]   ;;  %v8420_v39 = vld [vmem:[%s12397_s24] ss:$8 sps:$4 sm:$0xff]   ;;  %v9429_v45 = vpack.c.bf16 %v779_v41, %v778_v37  ;;  %2484 = vmatpush1.bf16.msra.mxu0 %v8421_v40 }
  0xad   : > { %v8424_v43 = vld [vmem:[%s12397_s24 + $0xf4] ss:$8 sps:$4 sm:$0xff]   ;;  %v8426_v44 = vld [vmem:[%s12397_s24 + $0xf0] ss:$8 sps:$4 sm:$0xff]   ;;  %v8427_v46 = vld [vmem:[%s12397_s24 + $0xe4] ss:$8 sps:$4 sm:$0xff]   ;;  %2485 = vmatprep.subr.bf16.mxu0 %v8438_v58 }
  0xae   : > { %7939 = vmatmul.mubr.msk.bf16.gmra.mxu0 %vm886_vm0, %v9328_v8  ;;  %v8429_v47 = vld [vmem:[%s12397_s24 + $0xe0] ss:$8 sps:$4 sm:$0xff]   ;;  %v8430_v48 = vld [vmem:[%s12397_s24 + $0xd4] ss:$8 sps:$4 sm:$0xff]   ;;  %v8432_v51 = vld [vmem:[%s12397_s24 + $0xd0] ss:$8 sps:$4 sm:$0xff]  }
  0xaf   : > { %1035 = vmatprep.mubr.bf16.mxu0 %v12369_v0  ;;  %1737 = vmatpush1.bf16.msra.mxu1 %v8402_v19  ;;  %v780_v49 = vld [vmem:[%s9317_s28 + $0x70] sm:$0xff]  ;;  %v781_v50 = vld [vmem:[%s9317_s28 + $0x78] sm:$0xff]  ;;  %v782_v53 = vld [vmem:[%s9317_s28 + $0x80] sm:$0xff] }
  0xb0   : > { %1738 = vmatprep.subr.bf16.mxu1 %v8403_v22  ;;  %v9448_v52 = vpack.c.bf16 %v781_v50, %v780_v49  ;;  %v8433_v54 = vld [vmem:[%s12397_s24 + $0xc4] ss:$8 sps:$4 sm:$0xff]   ;;  %v8435_v55 = vld [vmem:[%s12397_s24 + $0xc0] ss:$8 sps:$4 sm:$0xff]   ;;  %v8439_v59 = vld [vmem:[%s12397_s24 + $0xb4] ss:$8 sps:$4 sm:$0xff]   ;;  %2486 = vmatpush1.bf16.msra.mxu0 %v8436_v56 }
  0xb1   : > { %v783_v57 = vld [vmem:[%s9317_s28 + $0x88] sm:$0xff]  ;;  %v8441_v60 = vld [vmem:[%s12397_s24 + $0xb0] ss:$8 sps:$4 sm:$0xff]   ;;  %v8445_v4 = vld [vmem:[%s12397_s24 + $0x94] ss:$8 sps:$4 sm:$0xff]  }
  0xb2   : > { %v9473_v61 = vpack.c.bf16 %v783_v57, %v782_v53  ;;  %v784_v62 = vld [vmem:[%s9317_s28 + $0x90] sm:$0xff]  ;;  %v785_v63 = vld [vmem:[%s9317_s28 + $0x98] sm:$0xff]  ;;  %v8442_v1 = vld [vmem:[%s12397_s24 + $0xa4] ss:$8 sps:$4 sm:$0xff]  }
  0xb3   : > { %1739 = vmatpush1.bf16.msra.mxu1 %v8405_v23  ;;  %v8444_v2 = vld [vmem:[%s12397_s24 + $0xa0] ss:$8 sps:$4 sm:$0xff]   ;;  %v9486_v3 = vpack.c.bf16 %v785_v63, %v784_v62  ;;  %v8447_v6 = vld [vmem:[%s12397_s24 + $0x90] ss:$8 sps:$4 sm:$0xff]   ;;  %v8448_v10 = vld [vmem:[%s12397_s24 + $0x84] ss:$8 sps:$4 sm:$0xff]  }
  0xb4   : > { %1740 = vmatprep.subr.bf16.mxu1 %v8409_v27  ;;  %v786_v7 = vld [vmem:[%s9317_s28 + $0xa0] sm:$0xff]  ;;  %v787_v9 = vld [vmem:[%s9317_s28 + $0xa8] sm:$0xff]  ;;  %v788_v16 = vld [vmem:[%s9317_s28 + $0xb0] sm:$0xff] }
  0xb5   : > { %v8450_v11 = vld [vmem:[%s12397_s24 + $0x80] ss:$8 sps:$4 sm:$0xff]   ;;  %v9505_v12 = vpack.c.bf16 %v787_v9, %v786_v7  ;;  %v8453_v15 = vld [vmem:[%s12347_s5 + $0x44] ss:$8 sps:$4 sm:$0xff]   ;;  %v789_v17 = vld [vmem:[%s9317_s28 + $0xb8] sm:$0xff] }
  0xb6   : > { %7940 = vmatmul.mubr.msk.bf16.gmra.mxu0 %vm886_vm0, %v9341_v13  ;;  %v8451_v14 = vld [vmem:[%s12347_s5 + $0x40] ss:$8 sps:$4 sm:$0xff]   ;;  %2487 = vmatprep.subr.bf16.mxu0 %v8453_v15  ;;  %v9518_v18 = vpack.c.bf16 %v789_v17, %v788_v16  ;;  %v8454_v23 = vld [vmem:[%s12347_s5 + $0x30] ss:$8 sps:$4 sm:$0xff]   ;;  %v8456_v24 = vld [vmem:[%s12347_s5 + $0x34] ss:$8 sps:$4 sm:$0xff]   ;;  %v866_v15 = vlaneseq }
  0xb7   : > { %1045 = vmatprep.mubr.bf16.mxu0 %v12369_v0  ;;  %1741 = vmatpush1.bf16.msra.mxu1 %v8411_v28  ;;  %v790_v19 = vld [vmem:[%s9317_s28 + $0xc0] sm:$0xff]  ;;  %v791_v21 = vld [vmem:[%s9317_s28 + $0xc8] sm:$0xff]  ;;  %v792_v25 = vld [vmem:[%s9317_s28 + $0xd0] sm:$0xff] }
  0xb8   : > { %1742 = vmatprep.subr.bf16.mxu1 %v8412_v30  ;;  %2488 = vmatpush1.bf16.msra.mxu0 %v8451_v14  ;;  %v9525_v22 = vpack.c.bf16 %v791_v21, %v790_v19  ;;  %v793_v26 = vld [vmem:[%s9317_s28 + $0xd8] sm:$0xff]  ;;  %v794_v28 = vld [vmem:[%s9317_s28 + $0xe0] sm:$0xff]  ;;  %v795_v30 = vld [vmem:[%s9317_s28 + $0xe8] sm:$0xff]  ;;  %v867_v19 = vshrl.u32 %v866_v15, 7 }
  0xb9   : > { %2489 = vmatprep.subr.bf16.mxu0 %v8456_v24  ;;  %v9538_v27 = vpack.c.bf16 %v793_v26, %v792_v25  ;;  %v8459_v33 = vld [vmem:[%s12347_s5 + $0x24] ss:$8 sps:$4 sm:$0xff]   ;;  %v796_v34 = vld [vmem:[%s9317_s28 + $0xf0] sm:$0xff]  ;;  %v8463_v50 = vld [vmem:[%s12347_s5] ss:$8 sps:$4 sm:$0xff]  }
  0xba   : > { %v8460_v41 = vld [vmem:[%s12347_s5 + $0x10] ss:$8 sps:$4 sm:$0xff]   ;;  %v8462_v42 = vld [vmem:[%s12347_s5 + $0x14] ss:$8 sps:$4 sm:$0xff]   ;;  %v806_v56 = vld [vmem:[%s9317_s28 + $0x140] sm:$0xff]  ;;  %v9655_v26 = vsub.s32 0, %v867_v19 }
  0xbb   : > { %1743 = vmatpush1.bf16.msra.mxu1 %v8414_v31  ;;  %v9545_v31 = vpack.c.bf16 %v795_v30, %v794_v28  ;;  %v804_v53 = vld [vmem:[%s9317_s28 + $0x130] sm:$0xff]  ;;  %v807_v57 = vld [vmem:[%s9317_s28 + $0x148] sm:$0xff]  ;;  %v809_v63 = vld [vmem:[%s9317_s28 + $0x158] sm:$0xff] }
  0xbc   : > { %1744 = vmatprep.subr.bf16.mxu1 %v8415_v32  ;;  %2490 = vmatpush1.bf16.msra.mxu0 %v8454_v23  ;;  %v8457_v32 = vld [vmem:[%s12347_s5 + $0x20] ss:$8 sps:$4 sm:$0xff]   ;;  %v9605_v58 = vpack.c.bf16 %v807_v57, %v806_v56  ;;  %v808_v62 = vld [vmem:[%s9317_s28 + $0x150] sm:$0xff]  ;;  %v8471_v9 = vld [vmem:[%s12347_s5 + $0xe4] ss:$8 sps:$4 sm:$0xff]   ;;  %v9647_v23 = vsub.s32 1, %v867_v19 }
  0xbd   : > { %2491 = vmatprep.subr.bf16.mxu0 %v8459_v33  ;;  %v8469_v7 = vld [vmem:[%s12347_s5 + $0xe0] ss:$8 sps:$4 sm:$0xff]   ;;  %v8472_v24 = vld [vmem:[%s12347_s5 + $0xd0] ss:$8 sps:$4 sm:$0xff]   ;;  %v8474_v25 = vld [vmem:[%s12347_s5 + $0xd4] ss:$8 sps:$4 sm:$0xff]  }
  0xbe   : > { %7941 = vmatmul.mubr.msk.bf16.gmra.mxu0 %vm886_vm0, %v9360_v20  ;;  %v814_v16 = vld [vmem:[%s9317_s28 + $0x180] sm:$0xff]  ;;  %v815_v17 = vld [vmem:[%s9317_s28 + $0x188] sm:$0xff]  ;;  %12398 = vst [vmem:[#allocation24_spill] sm:$0xff] %v9647_v23  ;;  %v864_v28 = vld [vmem:[#allocation4] sm:$0x3] }
  0xbf   : > { %1055 = vmatprep.mubr.bf16.mxu0 %v12369_v0  ;;  %1745 = vmatpush1.bf16.msra.mxu1 %v8417_v35  ;;  %v797_v35 = vld [vmem:[%s9317_s28 + $0xf8] sm:$0xff]  ;;  %v9645_v21 = vpack.c.bf16 %v815_v17, %v814_v16  ;;  %v816_v33 = vld [vmem:[%s9317_s28 + $0x190] sm:$0xff]  ;;  %v818_v56 = vld [vmem:[%s9317_s28 + $0x1a0] sm:$0xff] }
  0xc0   : > { %1746 = vmatprep.subr.bf16.mxu1 %v8418_v38  ;;  %2492 = vmatpush1.bf16.msra.mxu0 %v8457_v32  ;;  %v9558_v37 = vpack.c.bf16 %v797_v35, %v796_v34  ;;  %v798_v38 = vld [vmem:[%s9317_s28 + $0x100] sm:$0xff]  ;;  %v9660_v32 = vrot.slane %v864_v28, %v9647_v23  ;;  %v817_v34 = vld [vmem:[%s9317_s28 + $0x198] sm:$0xff]  ;;  %v9666_v35 = vrot.slane %v864_v28, %v9655_v26  ;;  %v819_v57 = vld [vmem:[%s9317_s28 + $0x1a8] sm:$0xff] }
  0xc1   : > { %2493 = vmatprep.subr.bf16.mxu0 %v8462_v42 }
  0xc3   : > { %1747 = vmatpush1.bf16.msra.mxu1 %v8420_v39  ;;  %v799_v39 = vld [vmem:[%s9317_s28 + $0x108] sm:$0xff] }
  0xc4   : > { %1748 = vmatprep.subr.bf16.mxu1 %v8424_v43  ;;  %v9565_v40 = vpack.c.bf16 %v799_v39, %v798_v38  ;;  %v800_v43 = vld [vmem:[%s9317_s28 + $0x110] sm:$0xff]  ;;  %2494 = vmatpush1.bf16.msra.mxu0 %v8460_v41  ;;  %v9668_v41 = vpack.c.bf16 %v817_v34, %v816_v33  ;;  %v821_v33 = vld [vmem:[%s9317_s28 + $0x1b8] sm:$0xff] }
  0xc6   : > { %7942 = vmatmul.mubr.msk.bf16.gmra.mxu0 %vm886_vm0, %v9385_v29 }
  0xc7   : > { %1065 = vmatprep.mubr.bf16.mxu0 %v12369_v0  ;;  %1749 = vmatpush2.bf16.msra.mxu1 %v8426_v44  ;;  %v801_v44 = vld [vmem:[%s9317_s28 + $0x118] sm:$0xff] }
  0xc8   : > { %1750 = vmatprep.subr.bf16.mxu1 %v8427_v46  ;;  %v9578_v46 = vpack.c.bf16 %v801_v44, %v800_v43 }
  0xcb   : > { %1751 = vmatpush2.bf16.msra.mxu1 %v8429_v47  ;;  %v802_v47 = vld [vmem:[%s9317_s28 + $0x120] sm:$0xff] }
  0xcc   : > { %1752 = vmatprep.subr.bf16.mxu1 %v8430_v48  ;;  %v803_v48 = vld [vmem:[%s9317_s28 + $0x128] sm:$0xff] }
  0xcd   : > { %v9585_v49 = vpack.c.bf16 %v803_v48, %v802_v47 }
  0xce   : > { %7943 = vmatmul.mubr.msk.bf16.gmra.mxu0 %vm886_vm0, %v9404_v36 }
  0xcf   : > { %1075 = vmatprep.mubr.bf16.mxu0 %v12369_v0  ;;  %1753 = vmatpush2.bf16.msra.mxu1 %v8432_v51  ;;  %v8465_v51 = vld [vmem:[%s12347_s5 + $0x4] ss:$8 sps:$4 sm:$0xff]  }
  0xd0   : > { %1754 = vmatprep.subr.bf16.mxu1 %v8433_v54  ;;  %2495 = vmatprep.subr.bf16.mxu0 %v8465_v51  ;;  %v805_v54 = vld [vmem:[%s9317_s28 + $0x138] sm:$0xff] }
  0xd1   : > { %2496 = vmatpush1.bf16.msra.mxu0 %v8463_v50 }
  0xd3   : > { %1755 = vmatpush2.bf16.msra.mxu1 %v8435_v55  ;;  %v9598_v55 = vpack.c.bf16 %v805_v54, %v804_v53 }
  0xd4   : > { %1756 = vmatprep.subr.bf16.mxu1 %v8439_v59  ;;  %v8466_v59 = vld [vmem:[%s12347_s5 + $0xf0] ss:$8 sps:$4 sm:$0xff]  }
  0xd6   : > { %7944 = vmatmul.mubr.msk.bf16.gmra.mxu0 %vm886_vm0, %v9429_v45 }
  0xd7   : > { %1085 = vmatprep.mubr.bf16.mxu0 %v12369_v0  ;;  %1757 = vmatpush2.bf16.msra.mxu1 %v8441_v60  ;;  %v8468_v60 = vld [vmem:[%s12347_s5 + $0xf4] ss:$8 sps:$4 sm:$0xff]  }
  0xd8   : > { %1758 = vmatprep.subr.bf16.mxu1 %v8442_v1  ;;  %2497 = vmatprep.subr.bf16.mxu0 %v8468_v60  ;;  %v9618_v1 = vpack.c.bf16 %v809_v63, %v808_v62 }
  0xd9   : > { %2498 = vmatpush2.bf16.msra.mxu0 %v8466_v59 }
  0xda   : > { %2499 = vmatprep.subr.bf16.mxu0 %v8471_v9 }
  0xdb   : > { %1759 = vmatpush2.bf16.msra.mxu1 %v8444_v2  ;;  %v810_v2 = vld [vmem:[%s9317_s28 + $0x160] sm:$0xff] }
  0xdc   : > { %1760 = vmatprep.subr.bf16.mxu1 %v8445_v4  ;;  %v811_v4 = vld [vmem:[%s9317_s28 + $0x168] sm:$0xff] }
  0xdd   : > { %2500 = vmatpush2.bf16.msra.mxu0 %v8469_v7 }
  0xde   : > { %7945 = vmatmul.mubr.msk.bf16.gmra.mxu0 %vm886_vm0, %v9448_v52  ;;  %2501 = vmatprep.subr.bf16.mxu0 %v8474_v25 }
  0xdf   : > { %1095 = vmatprep.mubr.bf16.mxu0 %v12369_v0  ;;  %1761 = vmatpush2.bf16.msra.mxu1 %v8447_v6  ;;  %v9625_v6 = vpack.c.bf16 %v811_v4, %v810_v2  ;;  %v9679_v4 = vpack.c.bf16 %v819_v57, %v818_v56 }
  0xe0   : > { %1762 = vmatprep.subr.bf16.mxu1 %v8448_v10  ;;  %v812_v10 = vld [vmem:[%s9317_s28 + $0x170] sm:$0xff] }
  0xe1   : > { %2502 = vmatpush2.bf16.msra.mxu0 %v8472_v24 }
  0xe3   : > { %1763 = vmatpush2.bf16.msra.mxu1 %v8450_v11  ;;  %v813_v11 = vld [vmem:[%s9317_s28 + $0x178] sm:$0xff] }
  0xe4   : > { %v9638_v14 = vpack.c.bf16 %v813_v11, %v812_v10  ;;  %v8475_v10 = vld [vmem:[%s12347_s5 + $0xc0] ss:$8 sps:$4 sm:$0xff]   ;;  %v8477_v11 = vld [vmem:[%s12347_s5 + $0xc4] ss:$8 sps:$4 sm:$0xff]  }
  0xe5   : > { %2503 = vmatprep.subr.bf16.mxu0 %v8477_v11 }
  0xe6   : > { %7946 = vmatmul.mubr.msk.bf16.gmra.mxu0 %vm886_vm0, %v9473_v61 }
  0xe7   : > { %1105 = vmatprep.mubr.bf16.mxu0 %v12369_v0  ;;  %2504 = vmatpush2.bf16.msra.mxu0 %v8475_v10 }
  0xee   : > { %7947 = vmatmul.mubr.msk.bf16.gmra.mxu0 %vm886_vm0, %v9486_v3 }
  0xef   : > { %1115 = vmatprep.mubr.bf16.mxu0 %v12369_v0 }
  0xf6   : > { %7948 = vmatmul.mubr.msk.bf16.gmra.mxu0 %vm886_vm0, %v9505_v12 }
  0xf7   : > { %1125 = vmatprep.mubr.bf16.mxu0 %v12369_v0 }
  0xfe   : > { %7949 = vmatmul.mubr.msk.bf16.gmra.mxu0 %vm886_vm0, %v9518_v18 }
  0xff   : > { %1135 = vmatprep.mubr.bf16.mxu0 %v12369_v0 }
 0x106   : > { %7950 = vmatmul.mubr.msk.bf16.gmra.mxu0 %vm886_vm0, %v9525_v22 }
 0x107   : > { %1145 = vmatprep.mubr.bf16.mxu0 %v12369_v0 }
 0x10e   : > { %7951 = vmatmul.mubr.msk.bf16.gmra.mxu0 %vm886_vm0, %v9538_v27 }
 0x10f   : > { %1155 = vmatprep.mubr.bf16.mxu0 %v12369_v0 }
 0x116   : > { %7952 = vmatmul.mubr.msk.bf16.gmra.mxu0 %vm886_vm0, %v9545_v31 }
 0x117   : > { %1165 = vmatprep.mubr.bf16.mxu0 %v12369_v0 }
 0x11e   : > { %7953 = vmatmul.mubr.msk.bf16.gmra.mxu0 %vm886_vm0, %v9558_v37 }
 0x11f   : > { %1175 = vmatprep.mubr.bf16.mxu0 %v12369_v0 }
 0x126   : > { %7954 = vmatmul.mubr.msk.bf16.gmra.mxu0 %vm886_vm0, %v9565_v40 }
 0x127   : > { %1185 = vmatprep.mubr.bf16.mxu0 %v12369_v0 }
 0x12e   : > { %7955 = vmatmul.mubr.msk.bf16.gmra.mxu0 %vm886_vm0, %v9578_v46 }
 0x12f   : > { %1195 = vmatprep.mubr.bf16.mxu0 %v12369_v0 }
 0x136   : > { %7956 = vmatmul.mubr.msk.bf16.gmra.mxu0 %vm886_vm0, %v9585_v49 }
 0x137   : > { %1205 = vmatprep.mubr.bf16.mxu0 %v12369_v0 }
 0x13e   : > { %7957 = vmatmul.mubr.msk.bf16.gmra.mxu0 %vm886_vm0, %v9598_v55 }
 0x13f   : > { %1215 = vmatprep.mubr.bf16.mxu0 %v12369_v0 }
 0x146   : > { %7958 = vmatmul.mubr.msk.bf16.gmra.mxu0 %vm886_vm0, %v9605_v58 }
 0x147   : > { %1225 = vmatprep.mubr.bf16.mxu0 %v12369_v0 }
 0x14e   : > { %7959 = vmatmul.mubr.msk.bf16.gmra.mxu0 %vm886_vm0, %v9618_v1 }
 0x14f   : > { %1235 = vmatprep.mubr.bf16.mxu0 %v12369_v0 }
 0x156   : > { %7960 = vmatmul.mubr.msk.bf16.gmra.mxu0 %vm886_vm0, %v9625_v6 }
 0x157   : > { %1245 = vmatprep.mubr.bf16.mxu0 %v12369_v0 }
 0x15e   : > { %7961 = vmatmul.mubr.msk.bf16.gmra.mxu0 %vm886_vm0, %v9638_v14 }
 0x15f   : > { %1255 = vmatprep.mubr.bf16.mxu0 %v12369_v0 }
 0x166   : > { %v1017_v30 = vpop.f32.mrf.mxu0  ;;  %7962 = vmatmul.mubr.msk.bf16.gmra.mxu0 %vm886_vm0, %v9645_v21 }
 0x167   : > { %1265 = vmatprep.mubr.bf16.mxu0 %v12369_v0  ;;  %v1018_v44 = vadd.f32 %v1017_v30, %v9666_v35  ;;  %v820_v30 = vld [vmem:[%s9317_s28 + $0x1b0] sm:$0xff] }
 0x168   : > { %v1019_v38 = vpop.f32.mrf.mxu0 }
 0x169   : > { %v1020_v42 = vadd.f32 %v1019_v38, %v9660_v32  ;;  %v1336_v59 = vmax.f32 %v1018_v44, 0.0  ;;  %v9696_v44 = vpack.c.bf16 %v821_v33, %v820_v30 }
 0x16a   : > { %v1021_v39 = vpop.f32.mrf.mxu0 }
 0x16b   : > { %v1022_v43 = vadd.f32 %v1021_v39, %v9666_v35  ;;  %v1337_v53 = vmax.f32 %v1020_v42, 0.0 }
 0x16c   : > { %v1023_v47 = vpop.f32.mrf.mxu0 }
 0x16d   : > { %v1024_v48 = vadd.f32 %v1023_v47, %v9660_v32  ;;  %v1338_v50 = vmax.f32 %v1022_v43, 0.0 }
 0x16e   : > { %v1027_v51 = vpop.f32.mrf.mxu0  ;;  %7963 = vmatmul.mubr.msk.bf16.gmra.mxu0 %vm886_vm0, %v9668_v41 }
 0x16f   : > { %v1339_v54 = vmax.f32 %v1024_v48, 0.0  ;;  %1275 = vmatprep.mubr.bf16.mxu0 %v12369_v0  ;;  %v1464_v63 = vpack.c.bf16 %v1338_v50, %v1336_v59  ;;  %v1028_v15 = vadd.f32 %v1027_v51, %v9666_v35 }
 0x170   : > { %v1029_v60 = vpop.f32.mrf.mxu0 }
 0x171   : > { %v1465_v62 = vpack.c.bf16 %v1339_v54, %v1337_v53  ;;  %v1030_v7 = vadd.f32 %v1029_v60, %v9660_v32  ;;  %v1340_v34 = vmax.f32 %v1028_v15, 0.0  ;;  %v822_v60 = vld [vmem:[%s9317_s28 + $0x1c0] sm:$0xff] }
 0x172   : > { %v1031_v2 = vpop.f32.mrf.mxu0 }
 0x173   : > { %v1032_v9 = vadd.f32 %v1031_v2, %v9666_v35  ;;  %1764 = vmatprep.mubr.bf16.mxu1 %v1465_v62  ;;  %v1341_v25 = vmax.f32 %v1030_v7, 0.0  ;;  %v823_v62 = vld [vmem:[%s9317_s28 + $0x1c8] sm:$0xff] }
 0x174   : > { %v1033_v16 = vpop.f32.mrf.mxu0  ;;  %1765 = vmatmul.mubr.bf16.vlgmr.msra.gmra.mxu1 %v1464_v63  ;;  %v9707_v11 = vpack.c.bf16 %v823_v62, %v822_v60 }
 0x175   : > { %v1034_v17 = vadd.f32 %v1033_v16, %v9660_v32  ;;  %v1342_v19 = vmax.f32 %v1032_v9, 0.0 }
 0x176   : > { %v1037_v24 = vpop.f32.mrf.mxu0  ;;  %7964 = vmatmul.mubr.msk.bf16.gmra.mxu0 %vm886_vm0, %v9679_v4 }
 0x177   : > { %v1343_v28 = vmax.f32 %v1034_v17, 0.0  ;;  %1285 = vmatprep.mubr.bf16.mxu0 %v12369_v0  ;;  %v1466_v42 = vpack.c.bf16 %v1342_v19, %v1340_v34  ;;  %v1038_v50 = vadd.f32 %v1037_v24, %v9666_v35  ;;  %v8478_v17 = vld [vmem:[%s12347_s5 + $0xb0] ss:$8 sps:$4 sm:$0xff]   ;;  %v8480_v19 = vld [vmem:[%s12347_s5 + $0xb4] ss:$8 sps:$4 sm:$0xff]  }
 0x178   : > { %v1039_v38 = vpop.f32.mrf.mxu0  ;;  %2505 = vmatprep.subr.bf16.mxu0 %v8480_v19  ;;  %v8481_v19 = vld [vmem:[%s12349_s7 + $0x70] ss:$8 sps:$4 sm:$0xff]  }
 0x179   : > { %v1467_v39 = vpack.c.bf16 %v1343_v28, %v1341_v25  ;;  %v1040_v47 = vadd.f32 %v1039_v38, %v9660_v32  ;;  %v1344_v63 = vmax.f32 %v1038_v50, 0.0  ;;  %2506 = vmatpush2.bf16.msra.mxu0 %v8478_v17 }
 0x17a   : > { %v1041_v43 = vpop.f32.mrf.mxu0 }
 0x17b   : > { %v1042_v48 = vadd.f32 %v1041_v43, %v9666_v35  ;;  %1774 = vmatprep.mubr.bf16.mxu1 %v1467_v39  ;;  %v1345_v57 = vmax.f32 %v1040_v47, 0.0  ;;  %v824_v39 = vld [vmem:[%s9317_s28 + $0x1d0] sm:$0xff] }
 0x17c   : > { %v1043_v51 = vpop.f32.mrf.mxu0  ;;  %1775 = vmatmul.mubr.bf16.gmra.mxu1 %v1466_v42  ;;  %v825_v42 = vld [vmem:[%s9317_s28 + $0x1d8] sm:$0xff] }
 0x17d   : > { %v1044_v53 = vadd.f32 %v1043_v51, %v9660_v32  ;;  %v1346_v54 = vmax.f32 %v1042_v48, 0.0 }
 0x17e   : > { %v1047_v56 = vpop.f32.mrf.mxu0  ;;  %7965 = vmatmul.mubr.msk.bf16.gmra.mxu0 %vm886_vm0, %v9696_v44 }
 0x17f   : > { %v1347_v59 = vmax.f32 %v1044_v53, 0.0  ;;  %1295 = vmatprep.mubr.bf16.mxu0 %v12369_v0  ;;  %v1468_v9 = vpack.c.bf16 %v1346_v54, %v1344_v63  ;;  %v1048_v24 = vadd.f32 %v1047_v56, %v9666_v35  ;;  %v9724_v53 = vpack.c.bf16 %v825_v42, %v824_v39  ;;  %v8486_v39 = vld [vmem:[%s12347_s5 + $0xa4] ss:$8 sps:$4 sm:$0xff]  }
 0x180   : > { %v1049_v2 = vpop.f32.mrf.mxu0  ;;  %2507 = vmatprep.subr.bf16.mxu0 %v8486_v39  ;;  %v8487_v39 = vld [vmem:[%s12349_s7 + $0x60] ss:$8 sps:$4 sm:$0xff]  }
 0x181   : > { %v1469_v7 = vpack.c.bf16 %v1347_v59, %v1345_v57  ;;  %v1050_v15 = vadd.f32 %v1049_v2, %v9660_v32  ;;  %v1348_v43 = vmax.f32 %v1048_v24, 0.0  ;;  %v8483_v24 = vld [vmem:[%s12349_s7 + $0x74] ss:$8 sps:$4 sm:$0xff]  }
 0x182   : > { %v1051_v10 = vpop.f32.mrf.mxu0  ;;  %3230 = vmatprep.subr.bf16.mxu1 %v8483_v24 }
 0x183   : > { %v1052_v16 = vadd.f32 %v1051_v10, %v9666_v35  ;;  %1784 = vmatprep.mubr.bf16.mxu1 %v1469_v7  ;;  %v1349_v34 = vmax.f32 %v1050_v15, 0.0  ;;  %v827_v10 = vld [vmem:[%s9317_s28 + $0x1e8] sm:$0xff]  ;;  %3231 = vmatpush1.bf16.msra.mxu1 %v8481_v19 }
 0x184   : > { %v1053_v25 = vpop.f32.mrf.mxu0  ;;  %1785 = vmatmul.mubr.bf16.gmra.mxu1 %v1468_v9  ;;  %v826_v9 = vld [vmem:[%s9317_s28 + $0x1e0] sm:$0xff] }
 0x185   : > { %v1054_v28 = vadd.f32 %v1053_v25, %v9660_v32  ;;  %v1350_v30 = vmax.f32 %v1052_v16, 0.0 }
 0x186   : > { %v1057_v33 = vpop.f32.mrf.mxu0  ;;  %7966 = vmatmul.mubr.msk.bf16.gmra.mxu0 %vm886_vm0, %v9707_v11 }
 0x187   : > { %v1351_v38 = vmax.f32 %v1054_v28, 0.0  ;;  %1305 = vmatprep.mubr.bf16.mxu0 %v12369_v0  ;;  %v1470_v50 = vpack.c.bf16 %v1350_v30, %v1348_v43  ;;  %v1058_v57 = vadd.f32 %v1057_v33, %v9666_v35  ;;  %v9741_v30 = vpack.c.bf16 %v827_v10, %v826_v9 }
 0x188   : > { %v1059_v47 = vpop.f32.mrf.mxu0 }
 0x189   : > { %v1471_v48 = vpack.c.bf16 %v1351_v38, %v1349_v34  ;;  %v1060_v54 = vadd.f32 %v1059_v47, %v9660_v32  ;;  %v1352_v15 = vmax.f32 %v1058_v57, 0.0  ;;  %v8484_v38 = vld [vmem:[%s12347_s5 + $0xa0] ss:$8 sps:$4 sm:$0xff]   ;;  %v829_v57 = vld [vmem:[%s9317_s28 + $0x1f8] sm:$0xff] }
 0x18a   : > { %v1061_v51 = vpop.f32.mrf.mxu0  ;;  %2508 = vmatpush2.bf16.msra.mxu0 %v8484_v38 }
 0x18b   : > { %v1062_v56 = vadd.f32 %v1061_v51, %v9666_v35  ;;  %1794 = vmatprep.mubr.bf16.mxu1 %v1471_v48  ;;  %v1353_v2 = vmax.f32 %v1060_v54, 0.0 }
 0x18c   : > { %v1063_v59 = vpop.f32.mrf.mxu0  ;;  %1795 = vmatmul.mubr.bf16.gmra.mxu1 %v1470_v50 }
 0x18d   : > { %v1064_v60 = vadd.f32 %v1063_v59, %v9660_v32  ;;  %v1354_v62 = vmax.f32 %v1062_v56, 0.0  ;;  %v828_v56 = vld [vmem:[%s9317_s28 + $0x1f0] sm:$0xff] }
 0x18e   : > { %v1067_v63 = vpop.f32.mrf.mxu0  ;;  %7967 = vmatmul.mubr.msk.bf16.gmra.mxu0 %vm886_vm0, %v9724_v53 }
 0x18f   : > { %v1355_v7 = vmax.f32 %v1064_v60, 0.0  ;;  %1315 = vmatprep.mubr.bf16.mxu0 %v12369_v0  ;;  %v1472_v25 = vpack.c.bf16 %v1354_v62, %v1352_v15  ;;  %v1068_v42 = vadd.f32 %v1067_v63, %v9666_v35 }
 0x190   : > { %v1069_v16 = vpop.f32.mrf.mxu0 }
 0x191   : > { %v1473_v17 = vpack.c.bf16 %v1355_v7, %v1353_v2  ;;  %v1070_v33 = vadd.f32 %v1069_v16, %v9660_v32  ;;  %v1356_v59 = vmax.f32 %v1068_v42, 0.0  ;;  %v9758_v7 = vpack.c.bf16 %v829_v57, %v828_v56  ;;  %v8489_v42 = vld [vmem:[%s12349_s7 + $0x64] ss:$8 sps:$4 sm:$0xff]  }
 0x192   : > { %v1071_v28 = vpop.f32.mrf.mxu0  ;;  %3232 = vmatprep.subr.bf16.mxu1 %v8489_v42 }
 0x193   : > { %v1072_v34 = vadd.f32 %v1071_v28, %v9666_v35  ;;  %1804 = vmatprep.mubr.bf16.mxu1 %v1473_v17  ;;  %v1357_v51 = vmax.f32 %v1070_v33, 0.0  ;;  %12399 = vst [vmem:[#allocation25_spill] sm:$0xff] %v9758_v7  ;;  %3233 = vmatpush1.bf16.msra.mxu1 %v8487_v39 }
 0x194   : > { %v1073_v43 = vpop.f32.mrf.mxu0  ;;  %1805 = vmatmul.mubr.bf16.gmra.mxu1 %v1472_v25 }
 0x195   : > { %v1074_v47 = vadd.f32 %v1073_v43, %v9660_v32  ;;  %v1358_v48 = vmax.f32 %v1072_v34, 0.0 }
 0x196   : > { %v1077_v50 = vpop.f32.mrf.mxu0  ;;  %7968 = vmatmul.mubr.msk.bf16.gmra.mxu0 %vm886_vm0, %v9741_v30 }
 0x197   : > { %v1359_v54 = vmax.f32 %v1074_v47, 0.0  ;;  %1325 = vmatprep.mubr.bf16.mxu0 %v12369_v0  ;;  %v1474_v63 = vpack.c.bf16 %v1358_v48, %v1356_v59  ;;  %v1078_v15 = vadd.f32 %v1077_v50, %v9666_v35 }
 0x198   : > { %v1079_v60 = vpop.f32.mrf.mxu0 }
 0x199   : > { %v1475_v62 = vpack.c.bf16 %v1359_v54, %v1357_v51  ;;  %v1080_v9 = vadd.f32 %v1079_v60, %v9660_v32  ;;  %v1360_v33 = vmax.f32 %v1078_v15, 0.0  ;;  %v8490_v51 = vld [vmem:[%s12347_s5 + $0x90] ss:$8 sps:$4 sm:$0xff]   ;;  %v8492_v54 = vld [vmem:[%s12347_s5 + $0x94] ss:$8 sps:$4 sm:$0xff]  }
 0x19a   : > { %v1081_v2 = vpop.f32.mrf.mxu0  ;;  %2509 = vmatprep.subr.bf16.mxu0 %v8492_v54 }
 0x19b   : > { %v1082_v10 = vadd.f32 %v1081_v2, %v9666_v35  ;;  %1814 = vmatprep.mubr.bf16.mxu1 %v1475_v62  ;;  %v1361_v25 = vmax.f32 %v1080_v9, 0.0  ;;  %2510 = vmatpush2.bf16.msra.mxu0 %v8490_v51  ;;  %v8495_v51 = vld [vmem:[%s12349_s7 + $0x54] ss:$8 sps:$4 sm:$0xff]  }
 0x19c   : > { %v1083_v16 = vpop.f32.mrf.mxu0  ;;  %1815 = vmatmul.mubr.bf16.gmra.mxu1 %v1474_v63  ;;  %3234 = vmatprep.subr.bf16.mxu1 %v8495_v51 }
 0x19d   : > { %v1084_v17 = vadd.f32 %v1083_v16, %v9660_v32  ;;  %v1362_v19 = vmax.f32 %v1082_v10, 0.0 }
 0x19e   : > { %v1087_v24 = vpop.f32.mrf.mxu0  ;;  %7969 = vmatmul.mubr.msk.bf16.gmra.mxu0 %vm886_vm0, %v9758_v7 }
 0x19f   : > { %v1363_v28 = vmax.f32 %v1084_v17, 0.0  ;;  %v1476_v43 = vpack.c.bf16 %v1362_v19, %v1360_v33  ;;  %v1088_v56 = vadd.f32 %v1087_v24, %v9666_v35 }
 0x1a0   : > { %v1089_v34 = vpop.f32.mrf.mxu0 }
 0x1a1   : > { %v1477_v38 = vpack.c.bf16 %v1363_v28, %v1361_v25  ;;  %v1090_v48 = vadd.f32 %v1089_v34, %v9660_v32  ;;  %v1364_v9 = vmax.f32 %v1088_v56, 0.0 }
 0x1a2   : > { %v1091_v47 = vpop.f32.mrf.mxu0 }
 0x1a3   : > { %v1092_v50 = vadd.f32 %v1091_v47, %v9666_v35  ;;  %1824 = vmatprep.mubr.bf16.mxu1 %v1477_v38  ;;  %v1365_v63 = vmax.f32 %v1090_v48, 0.0 }
 0x1a4   : > { %v1093_v57 = vpop.f32.mrf.mxu0  ;;  %1825 = vmatmul.mubr.bf16.gmra.mxu1 %v1476_v43 }
 0x1a5   : > { %v1094_v59 = vadd.f32 %v1093_v57, %v9660_v32  ;;  %v1366_v60 = vmax.f32 %v1092_v50, 0.0  ;;  %v8493_v50 = vld [vmem:[%s12349_s7 + $0x50] ss:$8 sps:$4 sm:$0xff]  }
 0x1a6   : > { %v1097_v62 = vpop.f32.mrf.mxu0  ;;  %3235 = vmatpush1.bf16.msra.mxu1 %v8493_v50 }
 0x1a7   : > { %v1367_v2 = vmax.f32 %v1094_v59, 0.0  ;;  %v1478_v16 = vpack.c.bf16 %v1366_v60, %v1364_v9  ;;  %v1098_v25 = vadd.f32 %v1097_v62, %v9666_v35  ;;  %v8496_v60 = vld [vmem:[%s12347_s5 + $0x80] ss:$8 sps:$4 sm:$0xff]   ;;  %v8498_v62 = vld [vmem:[%s12347_s5 + $0x84] ss:$8 sps:$4 sm:$0xff]  }
 0x1a8   : > { %v1099_v10 = vpop.f32.mrf.mxu0  ;;  %2511 = vmatprep.subr.bf16.mxu0 %v8498_v62 }
 0x1a9   : > { %v1479_v15 = vpack.c.bf16 %v1367_v2, %v1365_v63  ;;  %v1100_v19 = vadd.f32 %v1099_v10, %v9660_v32  ;;  %v1368_v43 = vmax.f32 %v1098_v25, 0.0  ;;  %2512 = vmatpush2.bf16.msra.mxu0 %v8496_v60  ;;  %v8501_v60 = vld [vmem:[%s12349_s7 + $0x44] ss:$8 sps:$4 sm:$0xff]  }
 0x1aa   : > { %v1101_v17 = vpop.f32.mrf.mxu0  ;;  %3236 = vmatprep.subr.bf16.mxu1 %v8501_v60 }
 0x1ab   : > { %v1102_v24 = vadd.f32 %v1101_v17, %v9666_v35  ;;  %1834 = vmatprep.mubr.bf16.mxu1 %v1479_v15  ;;  %v1369_v39 = vmax.f32 %v1100_v19, 0.0 }
 0x1ac   : > { %v1103_v28 = vpop.f32.mrf.mxu0  ;;  %1835 = vmatmul.mubr.bf16.gmra.mxu1 %v1478_v16 }
 0x1ad   : > { %v1104_v33 = vadd.f32 %v1103_v28, %v9660_v32  ;;  %v1370_v34 = vmax.f32 %v1102_v24, 0.0 }
 0x1ae   : > { %v1107_v38 = vpop.f32.mrf.mxu0 }
 0x1af   : > { %v1371_v42 = vmax.f32 %v1104_v33, 0.0  ;;  %v1480_v54 = vpack.c.bf16 %v1370_v34, %v1368_v43  ;;  %v1108_v63 = vadd.f32 %v1107_v38, %v9666_v35 }
 0x1b0   : > { %v1109_v47 = vpop.f32.mrf.mxu0 }
 0x1b1   : > { %v1481_v48 = vpack.c.bf16 %v1371_v42, %v1369_v39  ;;  %v1110_v57 = vadd.f32 %v1109_v47, %v9660_v32  ;;  %v1372_v19 = vmax.f32 %v1108_v63, 0.0 }
 0x1b2   : > { %v1111_v56 = vpop.f32.mrf.mxu0 }
 0x1b3   : > { %v1112_v59 = vadd.f32 %v1111_v56, %v9666_v35  ;;  %1844 = vmatprep.mubr.bf16.mxu1 %v1481_v48  ;;  %v1373_v16 = vmax.f32 %v1110_v57, 0.0 }
 0x1b4   : > { %v1113_v2 = vpop.f32.mrf.mxu0  ;;  %1845 = vmatmul.mubr.bf16.gmra.mxu1 %v1480_v54 }
 0x1b5   : > { %v1114_v9 = vadd.f32 %v1113_v2, %v9660_v32  ;;  %v1374_v10 = vmax.f32 %v1112_v59, 0.0  ;;  %v8499_v59 = vld [vmem:[%s12349_s7 + $0x40] ss:$8 sps:$4 sm:$0xff]  }
 0x1b6   : > { %v1117_v15 = vpop.f32.mrf.mxu0  ;;  %3237 = vmatpush1.bf16.msra.mxu1 %v8499_v59 }
 0x1b7   : > { %v1375_v17 = vmax.f32 %v1114_v9, 0.0  ;;  %v1482_v28 = vpack.c.bf16 %v1374_v10, %v1372_v19  ;;  %v1118_v39 = vadd.f32 %v1117_v15, %v9666_v35 }
 0x1b8   : > { %v1119_v24 = vpop.f32.mrf.mxu0 }
 0x1b9   : > { %v1483_v25 = vpack.c.bf16 %v1375_v17, %v1373_v16  ;;  %v1120_v34 = vadd.f32 %v1119_v24, %v9660_v32  ;;  %v1376_v54 = vmax.f32 %v1118_v39, 0.0 }
 0x1ba   : > { %v1121_v33 = vpop.f32.mrf.mxu0 }
 0x1bb   : > { %v1122_v38 = vadd.f32 %v1121_v33, %v9666_v35  ;;  %1854 = vmatprep.mubr.bf16.mxu1 %v1483_v25  ;;  %v1377_v50 = vmax.f32 %v1120_v34, 0.0 }
 0x1bc   : > { %v1123_v42 = vpop.f32.mrf.mxu0  ;;  %1855 = vmatmul.mubr.bf16.gmra.mxu1 %v1482_v28 }
 0x1bd   : > { %v1124_v43 = vadd.f32 %v1123_v42, %v9660_v32  ;;  %v1378_v47 = vmax.f32 %v1122_v38, 0.0 }
 0x1be   : > { %v1127_v48 = vpop.f32.mrf.mxu0 }
 0x1bf   : > { %v1379_v51 = vmax.f32 %v1124_v43, 0.0  ;;  %v1484_v62 = vpack.c.bf16 %v1378_v47, %v1376_v54  ;;  %v1128_v10 = vadd.f32 %v1127_v48, %v9666_v35 }
 0x1c0   : > { %v1129_v56 = vpop.f32.mrf.mxu0 }
 0x1c1   : > { %v1485_v57 = vpack.c.bf16 %v1379_v51, %v1377_v50  ;;  %v1130_v2 = vadd.f32 %v1129_v56, %v9660_v32  ;;  %v1380_v28 = vmax.f32 %v1128_v10, 0.0 }
 0x1c2   : > { %v1131_v63 = vpop.f32.mrf.mxu0 }
 0x1c3   : > { %v1132_v9 = vadd.f32 %v1131_v63, %v9666_v35  ;;  %1864 = vmatprep.mubr.bf16.mxu1 %v1485_v57  ;;  %v1381_v24 = vmax.f32 %v1130_v2, 0.0  ;;  %v8502_v63 = vld [vmem:[%s12349_s7 + $0x30] ss:$8 sps:$4 sm:$0xff]   ;;  %v8504_v2 = vld [vmem:[%s12349_s7 + $0x34] ss:$8 sps:$4 sm:$0xff]  }
 0x1c4   : > { %v1133_v15 = vpop.f32.mrf.mxu0  ;;  %1865 = vmatmul.mubr.bf16.gmra.mxu1 %v1484_v62  ;;  %3238 = vmatprep.subr.bf16.mxu1 %v8504_v2 }
 0x1c5   : > { %v1134_v16 = vadd.f32 %v1133_v15, %v9660_v32  ;;  %v1382_v17 = vmax.f32 %v1132_v9, 0.0  ;;  %3239 = vmatpush1.bf16.msra.mxu1 %v8502_v63 }
 0x1c6   : > { %v1137_v19 = vpop.f32.mrf.mxu0 }
 0x1c7   : > { %v1383_v25 = vmax.f32 %v1134_v16, 0.0  ;;  %v1486_v38 = vpack.c.bf16 %v1382_v17, %v1380_v28  ;;  %v1138_v47 = vadd.f32 %v1137_v19, %v9666_v35 }
 0x1c8   : > { %v1139_v33 = vpop.f32.mrf.mxu0 }
 0x1c9   : > { %v1487_v34 = vpack.c.bf16 %v1383_v25, %v1381_v24  ;;  %v1140_v42 = vadd.f32 %v1139_v33, %v9660_v32  ;;  %v1384_v59 = vmax.f32 %v1138_v47, 0.0 }
 0x1ca   : > { %v1141_v39 = vpop.f32.mrf.mxu0 }
 0x1cb   : > { %v1142_v43 = vadd.f32 %v1141_v39, %v9666_v35  ;;  %1874 = vmatprep.mubr.bf16.mxu1 %v1487_v34  ;;  %v1385_v56 = vmax.f32 %v1140_v42, 0.0 }
 0x1cc   : > { %v1143_v48 = vpop.f32.mrf.mxu0  ;;  %1875 = vmatmul.mubr.bf16.gmra.mxu1 %v1486_v38 }
 0x1cd   : > { %v1144_v50 = vadd.f32 %v1143_v48, %v9660_v32  ;;  %v1386_v51 = vmax.f32 %v1142_v43, 0.0 }
 0x1ce   : > { %v1147_v54 = vpop.f32.mrf.mxu0 }
 0x1cf   : > { %v1387_v57 = vmax.f32 %v1144_v50, 0.0  ;;  %v1488_v9 = vpack.c.bf16 %v1386_v51, %v1384_v59  ;;  %v1148_v17 = vadd.f32 %v1147_v54, %v9666_v35 }
 0x1d0   : > { %v1149_v60 = vpop.f32.mrf.mxu0 }
 0x1d1   : > { %v1489_v62 = vpack.c.bf16 %v1387_v57, %v1385_v56  ;;  %v1150_v15 = vadd.f32 %v1149_v60, %v9660_v32  ;;  %v1388_v38 = vmax.f32 %v1148_v17, 0.0 }
 0x1d2   : > { %v1151_v10 = vpop.f32.mrf.mxu0 }
 0x1d3   : > { %v1152_v16 = vadd.f32 %v1151_v10, %v9666_v35  ;;  %1884 = vmatprep.mubr.bf16.mxu1 %v1489_v62  ;;  %v1389_v33 = vmax.f32 %v1150_v15, 0.0  ;;  %v8505_v10 = vld [vmem:[%s12349_s7 + $0x20] ss:$8 sps:$4 sm:$0xff]   ;;  %v8507_v15 = vld [vmem:[%s12349_s7 + $0x24] ss:$8 sps:$4 sm:$0xff]  }
 0x1d4   : > { %v1153_v19 = vpop.f32.mrf.mxu0  ;;  %1885 = vmatmul.mubr.bf16.gmra.mxu1 %v1488_v9  ;;  %3240 = vmatprep.subr.bf16.mxu1 %v8507_v15 }
 0x1d5   : > { %v1154_v24 = vadd.f32 %v1153_v19, %v9660_v32  ;;  %v1390_v25 = vmax.f32 %v1152_v16, 0.0  ;;  %3241 = vmatpush1.bf16.msra.mxu1 %v8505_v10 }
 0x1d6   : > { %v1157_v28 = vpop.f32.mrf.mxu0 }
 0x1d7   : > { %v1391_v34 = vmax.f32 %v1154_v24, 0.0  ;;  %v1490_v43 = vpack.c.bf16 %v1390_v25, %v1388_v38  ;;  %v1158_v51 = vadd.f32 %v1157_v28, %v9666_v35 }
 0x1d8   : > { %v1159_v39 = vpop.f32.mrf.mxu0 }
 0x1d9   : > { %v1491_v42 = vpack.c.bf16 %v1391_v34, %v1389_v33  ;;  %v1160_v48 = vadd.f32 %v1159_v39, %v9660_v32  ;;  %v1392_v63 = vmax.f32 %v1158_v51, 0.0 }
 0x1da   : > { %v1161_v47 = vpop.f32.mrf.mxu0 }
 0x1db   : > { %v1162_v50 = vadd.f32 %v1161_v47, %v9666_v35  ;;  %1894 = vmatprep.mubr.bf16.mxu1 %v1491_v42  ;;  %v1393_v60 = vmax.f32 %v1160_v48, 0.0 }
 0x1dc   : > { %v1163_v54 = vpop.f32.mrf.mxu0  ;;  %1895 = vmatmul.mubr.bf16.gmra.mxu1 %v1490_v43 }
 0x1dd   : > { %v1164_v56 = vadd.f32 %v1163_v54, %v9660_v32  ;;  %v1394_v57 = vmax.f32 %v1162_v50, 0.0 }
 0x1de   : > { %v1167_v59 = vpop.f32.mrf.mxu0 }
 0x1df   : > { %v1395_v62 = vmax.f32 %v1164_v56, 0.0  ;;  %v1492_v16 = vpack.c.bf16 %v1394_v57, %v1392_v63  ;;  %v1168_v25 = vadd.f32 %v1167_v59, %v9666_v35 }
 0x1e0   : > { %v1169_v2 = vpop.f32.mrf.mxu0 }
 0x1e1   : > { %v1493_v9 = vpack.c.bf16 %v1395_v62, %v1393_v60  ;;  %v1170_v19 = vadd.f32 %v1169_v2, %v9660_v32  ;;  %v1396_v43 = vmax.f32 %v1168_v25, 0.0 }
 0x1e2   : > { %v1171_v17 = vpop.f32.mrf.mxu0 }
 0x1e3   : > { %v1172_v24 = vadd.f32 %v1171_v17, %v9666_v35  ;;  %1904 = vmatprep.mubr.bf16.mxu1 %v1493_v9  ;;  %v1397_v39 = vmax.f32 %v1170_v19, 0.0  ;;  %v8508_v17 = vld [vmem:[%s12349_s7 + $0x10] ss:$8 sps:$4 sm:$0xff]   ;;  %v8510_v19 = vld [vmem:[%s12349_s7 + $0x14] ss:$8 sps:$4 sm:$0xff]  }
 0x1e4   : > { %v1173_v28 = vpop.f32.mrf.mxu0  ;;  %1905 = vmatmul.mubr.bf16.gmra.mxu1 %v1492_v16  ;;  %3242 = vmatprep.subr.bf16.mxu1 %v8510_v19 }
 0x1e5   : > { %v1174_v33 = vadd.f32 %v1173_v28, %v9660_v32  ;;  %v1398_v34 = vmax.f32 %v1172_v24, 0.0  ;;  %3243 = vmatpush1.bf16.msra.mxu1 %v8508_v17 }
 0x1e6   : > { %v1177_v38 = vpop.f32.mrf.mxu0 }
 0x1e7   : > { %v1399_v42 = vmax.f32 %v1174_v33, 0.0  ;;  %v1494_v50 = vpack.c.bf16 %v1398_v34, %v1396_v43  ;;  %v1178_v57 = vadd.f32 %v1177_v38, %v9666_v35 }
 0x1e8   : > { %v1179_v47 = vpop.f32.mrf.mxu0 }
 0x1e9   : > { %v1495_v48 = vpack.c.bf16 %v1399_v42, %v1397_v39  ;;  %v1180_v54 = vadd.f32 %v1179_v47, %v9660_v32  ;;  %v1400_v10 = vmax.f32 %v1178_v57, 0.0 }
 0x1ea   : > { %v1181_v51 = vpop.f32.mrf.mxu0 }
 0x1eb   : > { %v1182_v56 = vadd.f32 %v1181_v51, %v9666_v35  ;;  %1914 = vmatprep.mubr.bf16.mxu1 %v1495_v48  ;;  %v1401_v2 = vmax.f32 %v1180_v54, 0.0 }
 0x1ec   : > { %v1183_v59 = vpop.f32.mrf.mxu0  ;;  %1915 = vmatmul.mubr.bf16.gmra.mxu1 %v1494_v50 }
 0x1ed   : > { %v1184_v60 = vadd.f32 %v1183_v59, %v9660_v32  ;;  %v1402_v62 = vmax.f32 %v1182_v56, 0.0 }
 0x1ee   : > { %v1187_v63 = vpop.f32.mrf.mxu0 }
 0x1ef   : > { %v1403_v9 = vmax.f32 %v1184_v60, 0.0  ;;  %v1496_v24 = vpack.c.bf16 %v1402_v62, %v1400_v10  ;;  %v1188_v34 = vadd.f32 %v1187_v63, %v9666_v35 }
 0x1f0   : > { %v1189_v15 = vpop.f32.mrf.mxu0 }
 0x1f1   : > { %v1497_v16 = vpack.c.bf16 %v1403_v9, %v1401_v2  ;;  %v1190_v28 = vadd.f32 %v1189_v15, %v9660_v32  ;;  %v1404_v50 = vmax.f32 %v1188_v34, 0.0 }
 0x1f2   : > { %v1191_v25 = vpop.f32.mrf.mxu0 }
 0x1f3   : > { %v1192_v33 = vadd.f32 %v1191_v25, %v9666_v35  ;;  %1924 = vmatprep.mubr.bf16.mxu1 %v1497_v16  ;;  %v1405_v47 = vmax.f32 %v1190_v28, 0.0  ;;  %v8511_v25 = vld [vmem:[%s12349_s7] ss:$8 sps:$4 sm:$0xff]   ;;  %v8513_v28 = vld [vmem:[%s12349_s7 + $0x4] ss:$8 sps:$4 sm:$0xff]  }
 0x1f4   : > { %v1193_v38 = vpop.f32.mrf.mxu0  ;;  %1925 = vmatmul.mubr.bf16.gmra.mxu1 %v1496_v24  ;;  %3244 = vmatprep.subr.bf16.mxu1 %v8513_v28 }
 0x1f5   : > { %v1194_v39 = vadd.f32 %v1193_v38, %v9660_v32  ;;  %v1406_v42 = vmax.f32 %v1192_v33, 0.0  ;;  %3245 = vmatpush1.bf16.msra.mxu1 %v8511_v25 }
 0x1f6   : > { %v1197_v43 = vpop.f32.mrf.mxu0 }
 0x1f7   : > { %v1407_v48 = vmax.f32 %v1194_v39, 0.0  ;;  %v1498_v56 = vpack.c.bf16 %v1406_v42, %v1404_v50  ;;  %v1198_v62 = vadd.f32 %v1197_v43, %v9666_v35 }
 0x1f8   : > { %v1199_v51 = vpop.f32.mrf.mxu0 }
 0x1f9   : > { %v1499_v54 = vpack.c.bf16 %v1407_v48, %v1405_v47  ;;  %v1200_v59 = vadd.f32 %v1199_v51, %v9660_v32  ;;  %v1408_v17 = vmax.f32 %v1198_v62, 0.0 }
 0x1fa   : > { %v1201_v57 = vpop.f32.mrf.mxu0 }
 0x1fb   : > { %v1202_v60 = vadd.f32 %v1201_v57, %v9666_v35  ;;  %1934 = vmatprep.mubr.bf16.mxu1 %v1499_v54  ;;  %v1409_v15 = vmax.f32 %v1200_v59, 0.0 }
 0x1fc   : > { %v1203_v63 = vpop.f32.mrf.mxu0  ;;  %1935 = vmatmul.mubr.bf16.gmra.mxu1 %v1498_v56 }
 0x1fd   : > { %v1204_v2 = vadd.f32 %v1203_v63, %v9660_v32  ;;  %v1410_v9 = vmax.f32 %v1202_v60, 0.0 }
 0x1fe   : > { %v1207_v10 = vpop.f32.mrf.mxu0 }
 0x1ff   : > { %v1411_v16 = vmax.f32 %v1204_v2, 0.0  ;;  %v1500_v33 = vpack.c.bf16 %v1410_v9, %v1408_v17  ;;  %v1208_v42 = vadd.f32 %v1207_v10, %v9666_v35 }
 0x200   : > { %v1209_v19 = vpop.f32.mrf.mxu0 }
 0x201   : > { %v1501_v24 = vpack.c.bf16 %v1411_v16, %v1409_v15  ;;  %v1210_v38 = vadd.f32 %v1209_v19, %v9660_v32  ;;  %v1412_v56 = vmax.f32 %v1208_v42, 0.0 }
 0x202   : > { %v1211_v34 = vpop.f32.mrf.mxu0 }
 0x203   : > { %v1212_v39 = vadd.f32 %v1211_v34, %v9666_v35  ;;  %1944 = vmatprep.mubr.bf16.mxu1 %v1501_v24  ;;  %v1413_v51 = vmax.f32 %v1210_v38, 0.0  ;;  %v8514_v34 = vld [vmem:[%s12349_s7 + $0xf0] ss:$8 sps:$4 sm:$0xff]   ;;  %v8516_v38 = vld [vmem:[%s12349_s7 + $0xf4] ss:$8 sps:$4 sm:$0xff]  }
 0x204   : > { %v1213_v43 = vpop.f32.mrf.mxu0  ;;  %1945 = vmatmul.mubr.bf16.gmra.mxu1 %v1500_v33  ;;  %3246 = vmatprep.subr.bf16.mxu1 %v8516_v38 }
 0x205   : > { %v1214_v47 = vadd.f32 %v1213_v43, %v9660_v32  ;;  %v1414_v48 = vmax.f32 %v1212_v39, 0.0  ;;  %3247 = vmatpush2.bf16.msra.mxu1 %v8514_v34 }
 0x206   : > { %v1217_v50 = vpop.f32.mrf.mxu0 }
 0x207   : > { %v1415_v54 = vmax.f32 %v1214_v47, 0.0  ;;  %v1502_v60 = vpack.c.bf16 %v1414_v48, %v1412_v56  ;;  %v1218_v9 = vadd.f32 %v1217_v50, %v9666_v35 }
 0x208   : > { %v1219_v57 = vpop.f32.mrf.mxu0 }
 0x209   : > { %v1503_v59 = vpack.c.bf16 %v1415_v54, %v1413_v51  ;;  %v1220_v63 = vadd.f32 %v1219_v57, %v9660_v32  ;;  %v1416_v25 = vmax.f32 %v1218_v9, 0.0 }
 0x20a   : > { %v1221_v62 = vpop.f32.mrf.mxu0 }
 0x20b   : > { %v1222_v2 = vadd.f32 %v1221_v62, %v9666_v35  ;;  %1954 = vmatprep.mubr.bf16.mxu1 %v1503_v59  ;;  %v1417_v19 = vmax.f32 %v1220_v63, 0.0 }
 0x20c   : > { %v1223_v10 = vpop.f32.mrf.mxu0  ;;  %1955 = vmatmul.mubr.bf16.gmra.mxu1 %v1502_v60 }
 0x20d   : > { %v1224_v15 = vadd.f32 %v1223_v10, %v9660_v32  ;;  %v1418_v16 = vmax.f32 %v1222_v2, 0.0 }
 0x20e   : > { %v1227_v17 = vpop.f32.mrf.mxu0 }
 0x20f   : > { %v1419_v24 = vmax.f32 %v1224_v15, 0.0  ;;  %v1504_v39 = vpack.c.bf16 %v1418_v16, %v1416_v25  ;;  %v1228_v48 = vadd.f32 %v1227_v17, %v9666_v35 }
 0x210   : > { %v1229_v28 = vpop.f32.mrf.mxu0 }
 0x211   : > { %v1505_v33 = vpack.c.bf16 %v1419_v24, %v1417_v19  ;;  %v1230_v43 = vadd.f32 %v1229_v28, %v9660_v32  ;;  %v1420_v60 = vmax.f32 %v1228_v48, 0.0 }
 0x212   : > { %v1231_v42 = vpop.f32.mrf.mxu0 }
 0x213   : > { %v1232_v47 = vadd.f32 %v1231_v42, %v9666_v35  ;;  %1964 = vmatprep.mubr.bf16.mxu1 %v1505_v33  ;;  %v1421_v57 = vmax.f32 %v1230_v43, 0.0  ;;  %v8517_v42 = vld [vmem:[%s12349_s7 + $0xe0] ss:$8 sps:$4 sm:$0xff]   ;;  %v8519_v43 = vld [vmem:[%s12349_s7 + $0xe4] ss:$8 sps:$4 sm:$0xff]  }
 0x214   : > { %v1233_v50 = vpop.f32.mrf.mxu0  ;;  %1965 = vmatmul.mubr.bf16.gmra.mxu1 %v1504_v39  ;;  %3248 = vmatprep.subr.bf16.mxu1 %v8519_v43 }
 0x215   : > { %v1234_v51 = vadd.f32 %v1233_v50, %v9660_v32  ;;  %v1422_v54 = vmax.f32 %v1232_v47, 0.0  ;;  %3249 = vmatpush2.bf16.msra.mxu1 %v8517_v42 }
 0x216   : > { %v1237_v56 = vpop.f32.mrf.mxu0 }
 0x217   : > { %v1423_v59 = vmax.f32 %v1234_v51, 0.0  ;;  %v1506_v2 = vpack.c.bf16 %v1422_v54, %v1420_v60  ;;  %v1238_v16 = vadd.f32 %v1237_v56, %v9666_v35 }
 0x218   : > { %v1239_v62 = vpop.f32.mrf.mxu0 }
 0x219   : > { %v1507_v63 = vpack.c.bf16 %v1423_v59, %v1421_v57  ;;  %v1240_v10 = vadd.f32 %v1239_v62, %v9660_v32  ;;  %v1424_v34 = vmax.f32 %v1238_v16, 0.0 }
 0x21a   : > { %v1241_v9 = vpop.f32.mrf.mxu0 }
 0x21b   : > { %v1242_v15 = vadd.f32 %v1241_v9, %v9666_v35  ;;  %1974 = vmatprep.mubr.bf16.mxu1 %v1507_v63  ;;  %v1425_v28 = vmax.f32 %v1240_v10, 0.0 }
 0x21c   : > { %v1243_v17 = vpop.f32.mrf.mxu0  ;;  %1975 = vmatmul.mubr.bf16.gmra.mxu1 %v1506_v2 }
 0x21d   : > { %v1244_v19 = vadd.f32 %v1243_v17, %v9660_v32  ;;  %v1426_v24 = vmax.f32 %v1242_v15, 0.0 }
 0x21e   : > { %v1247_v25 = vpop.f32.mrf.mxu0 }
 0x21f   : > { %v1427_v33 = vmax.f32 %v1244_v19, 0.0  ;;  %v1508_v47 = vpack.c.bf16 %v1426_v24, %v1424_v34  ;;  %v1248_v54 = vadd.f32 %v1247_v25, %v9666_v35 }
 0x220   : > { %v1249_v38 = vpop.f32.mrf.mxu0 }
 0x221   : > { %v1509_v39 = vpack.c.bf16 %v1427_v33, %v1425_v28  ;;  %v1250_v50 = vadd.f32 %v1249_v38, %v9660_v32  ;;  %v1428_v2 = vmax.f32 %v1248_v54, 0.0 }
 0x222   : > { %v1251_v48 = vpop.f32.mrf.mxu0 }
 0x223   : > { %v1252_v51 = vadd.f32 %v1251_v48, %v9666_v35  ;;  %1984 = vmatprep.mubr.bf16.mxu1 %v1509_v39  ;;  %v1429_v62 = vmax.f32 %v1250_v50, 0.0  ;;  %v8520_v48 = vld [vmem:[%s12349_s7 + $0xd0] ss:$8 sps:$4 sm:$0xff]   ;;  %v8522_v50 = vld [vmem:[%s12349_s7 + $0xd4] ss:$8 sps:$4 sm:$0xff]  }
 0x224   : > { %v1253_v56 = vpop.f32.mrf.mxu0  ;;  %1985 = vmatmul.mubr.bf16.gmra.mxu1 %v1508_v47  ;;  %3250 = vmatprep.subr.bf16.mxu1 %v8522_v50 }
 0x225   : > { %v1254_v57 = vadd.f32 %v1253_v56, %v9660_v32  ;;  %v1430_v59 = vmax.f32 %v1252_v51, 0.0  ;;  %3251 = vmatpush2.bf16.msra.mxu1 %v8520_v48 }
 0x226   : > { %v1257_v60 = vpop.f32.mrf.mxu0 }
 0x227   : > { %v1431_v63 = vmax.f32 %v1254_v57, 0.0  ;;  %v1510_v15 = vpack.c.bf16 %v1430_v59, %v1428_v2  ;;  %v1258_v24 = vadd.f32 %v1257_v60, %v9666_v35 }
 0x228   : > { %v1259_v9 = vpop.f32.mrf.mxu0 }
 0x229   : > { %v1511_v10 = vpack.c.bf16 %v1431_v63, %v1429_v62  ;;  %v1260_v17 = vadd.f32 %v1259_v9, %v9660_v32  ;;  %v1432_v42 = vmax.f32 %v1258_v24, 0.0  ;;  %v1560_v62 = vld [vmem:[#allocation6] sm:$0x3] }
 0x22a   : > { %v1261_v16 = vpop.f32.mrf.mxu0  ;;  %v9918_v24 = vrot.slane %v1560_v62, %v9655_v26 }
 0x22b   : > { %v1262_v19 = vadd.f32 %v1261_v16, %v9666_v35  ;;  %1994 = vmatprep.mubr.bf16.mxu1 %v1511_v10  ;;  %v1433_v38 = vmax.f32 %v1260_v17, 0.0 }
 0x22c   : > { %v1263_v25 = vpop.f32.mrf.mxu0  ;;  %1995 = vmatmul.mubr.bf16.gmra.mxu1 %v1510_v15  ;;  %v9915_v15 = vrot.slane %v1560_v62, %v9647_v23 }
 0x22d   : > { %v1264_v28 = vadd.f32 %v1263_v25, %v9660_v32  ;;  %v1434_v33 = vmax.f32 %v1262_v19, 0.0 }
 0x22e   : > { %v1267_v34 = vpop.f32.mrf.mxu0 }
 0x22f   : > { %v1435_v39 = vmax.f32 %v1264_v28, 0.0  ;;  %v1512_v51 = vpack.c.bf16 %v1434_v33, %v1432_v42  ;;  %v1268_v59 = vadd.f32 %v1267_v34, %v9666_v35 }
 0x230   : > { %v1269_v43 = vpop.f32.mrf.mxu0 }
 0x231   : > { %v1513_v47 = vpack.c.bf16 %v1435_v39, %v1433_v38  ;;  %v1270_v56 = vadd.f32 %v1269_v43, %v9660_v32  ;;  %v1436_v25 = vmax.f32 %v1268_v59, 0.0 }
 0x232   : > { %v1271_v54 = vpop.f32.mrf.mxu0 }
 0x233   : > { %v1272_v57 = vadd.f32 %v1271_v54, %v9666_v35  ;;  %2004 = vmatprep.mubr.bf16.mxu1 %v1513_v47  ;;  %v1437_v17 = vmax.f32 %v1270_v56, 0.0 }
 0x234   : > { %v1273_v60 = vpop.f32.mrf.mxu0  ;;  %v1766_v63 = vpop.f32.mrf.mxu1  ;;  %2005 = vmatmul.mubr.bf16.gmra.mxu1 %v1512_v51 }
 0x235   : > { %v1274_v2 = vadd.f32 %v1273_v60, %v9660_v32  ;;  %v1438_v9 = vmax.f32 %v1272_v57, 0.0  ;;  %v1767_v48 = vadd.f32 %v1766_v63, %v9918_v24 }
 0x236   : > { %v1277_v10 = vpop.f32.mrf.mxu0  ;;  %v1768_v16 = vpop.f32.mrf.mxu1 }
 0x237   : > { %v1439_v19 = vmax.f32 %v1274_v2, 0.0  ;;  %v1514_v39 = vpack.c.bf16 %v1438_v9, %v1436_v25  ;;  %v1769_v42 = vadd.f32 %v1768_v16, %v9915_v15  ;;  %v1278_v59 = vadd.f32 %v1277_v10, %v9666_v35  ;;  %v8523_v10 = vld [vmem:[%s12349_s7 + $0xc0] ss:$8 sps:$4 sm:$0xff]  }
 0x238   : > { %v1279_v28 = vpop.f32.mrf.mxu0  ;;  %v1770_v33 = vpop.f32.mrf.mxu1  ;;  %v2085_v63 = vmax.f32 %v1767_v48, 0.0 }
 0x239   : > { %v1771_v34 = vadd.f32 %v1770_v33, %v9918_v24  ;;  %v1515_v38 = vpack.c.bf16 %v1439_v19, %v1437_v17  ;;  %v1280_v54 = vadd.f32 %v1279_v28, %v9660_v32  ;;  %v2086_v9 = vmax.f32 %v1769_v42, 0.0 }
 0x23a   : > { %v1281_v43 = vpop.f32.mrf.mxu0  ;;  %v1772_v47 = vpop.f32.mrf.mxu1  ;;  %v1440_v28 = vmax.f32 %v1278_v59, 0.0 }
 0x23b   : > { %v1282_v50 = vadd.f32 %v1281_v43, %v9666_v35  ;;  %v1773_v51 = vadd.f32 %v1772_v47, %v9915_v15  ;;  %2014 = vmatprep.mubr.bf16.mxu1 %v1515_v38  ;;  %v2087_v60 = vmax.f32 %v1771_v34, 0.0  ;;  %v1441_v33 = vmax.f32 %v1280_v54, 0.0  ;;  %v8525_v34 = vld [vmem:[%s12349_s7 + $0xc4] ss:$8 sps:$4 sm:$0xff]  }
 0x23c   : > { %v1283_v56 = vpop.f32.mrf.mxu0  ;;  %v1776_v57 = vpop.f32.mrf.mxu1  ;;  %2015 = vmatmul.mubr.bf16.gmra.mxu1 %v1514_v39  ;;  %3252 = vmatprep.subr.bf16.mxu1 %v8525_v34 }
 0x23d   : > { %v2088_v62 = vmax.f32 %v1773_v51, 0.0  ;;  %v1284_v2 = vadd.f32 %v1283_v56, %v9660_v32  ;;  %v1442_v19 = vmax.f32 %v1282_v50, 0.0  ;;  %v2213_v0 = vpack.c.bf16 %v2087_v60, %v2085_v63  ;;  %3253 = vmatpush2.bf16.msra.mxu1 %v8523_v10 }
 0x23e   : > { %v1287_v16 = vpop.f32.mrf.mxu0  ;;  %v1778_v17 = vpop.f32.mrf.mxu1  ;;  %v1777_v42 = vadd.f32 %v1776_v57, %v9918_v24 }
 0x23f   : > { %v1443_v25 = vmax.f32 %v1284_v2, 0.0  ;;  %v2214_v47 = vpack.c.bf16 %v2088_v62, %v2086_v9  ;;  %v1779_v48 = vadd.f32 %v1778_v17, %v9915_v15  ;;  %v1516_v56 = vpack.c.bf16 %v1442_v19, %v1440_v28 }
 0x240   : > { %v1289_v43 = vpop.f32.mrf.mxu0  ;;  %v1780_v38 = vpop.f32.mrf.mxu1  ;;  %v1288_v57 = vadd.f32 %v1287_v16, %v9666_v35 }
 0x241   : > { %v1781_v39 = vadd.f32 %v1780_v38, %v9918_v24  ;;  %2513 = vmatprep.mubr.bf16.mxu0 %v2214_v47  ;;  %v1517_v54 = vpack.c.bf16 %v1443_v25, %v1441_v33  ;;  %v1290_v62 = vadd.f32 %v1289_v43, %v9660_v32  ;;  %v2090_v19 = vmax.f32 %v1779_v48, 0.0 }
 0x242   : > { %v1291_v50 = vpop.f32.mrf.mxu0  ;;  %v1782_v51 = vpop.f32.mrf.mxu1  ;;  %2514 = vmatmul.mubr.bf16.vlgmr.msra.gmra.mxu0 %v2213_v0  ;;  %v2089_v47 = vmax.f32 %v1777_v42, 0.0 }
 0x243   : > { %v1292_v59 = vadd.f32 %v1291_v50, %v9666_v35  ;;  %v1783_v60 = vadd.f32 %v1782_v51, %v9915_v15  ;;  %2024 = vmatprep.mubr.bf16.mxu1 %v1517_v54  ;;  %v2091_v17 = vmax.f32 %v1781_v39, 0.0  ;;  %v1445_v34 = vmax.f32 %v1290_v62, 0.0 }
 0x244   : > { %v1293_v2 = vpop.f32.mrf.mxu0  ;;  %v1786_v9 = vpop.f32.mrf.mxu1  ;;  %2025 = vmatmul.mubr.bf16.gmra.mxu1 %v1516_v56  ;;  %v1444_v54 = vmax.f32 %v1288_v57, 0.0 }
 0x245   : > { %v2092_v63 = vmax.f32 %v1783_v60, 0.0  ;;  %v1294_v38 = vadd.f32 %v1293_v2, %v9660_v32  ;;  %v1446_v28 = vmax.f32 %v1292_v59, 0.0  ;;  %v2215_v7 = vpack.c.bf16 %v2091_v17, %v2089_v47 }
 0x246   : > { %v1297_v25 = vpop.f32.mrf.mxu0  ;;  %v1788_v33 = vpop.f32.mrf.mxu1  ;;  %v1787_v2 = vadd.f32 %v1786_v9, %v9918_v24 }
 0x247   : > { %v1447_v0 = vmax.f32 %v1294_v38, 0.0  ;;  %v2216_v51 = vpack.c.bf16 %v2092_v63, %v2090_v19  ;;  %v1789_v16 = vadd.f32 %v1788_v33, %v9915_v15  ;;  %v1518_v48 = vpack.c.bf16 %v1446_v28, %v1444_v54 }
 0x248   : > { %v1299_v50 = vpop.f32.mrf.mxu0  ;;  %v1790_v43 = vpop.f32.mrf.mxu1  ;;  %v1298_v63 = vadd.f32 %v1297_v25, %v9666_v35  ;;  %v8526_v25 = vld [vmem:[%s12349_s7 + $0xb0] ss:$8 sps:$4 sm:$0xff]  }
 0x249   : > { %v1791_v10 = vadd.f32 %v1790_v43, %v9918_v24  ;;  %2523 = vmatprep.mubr.bf16.mxu0 %v2216_v51  ;;  %v1519_v56 = vpack.c.bf16 %v1447_v0, %v1445_v34  ;;  %v1300_v62 = vadd.f32 %v1299_v50, %v9660_v32  ;;  %v2094_v47 = vmax.f32 %v1789_v16, 0.0 }
 0x24a   : > { %v1301_v39 = vpop.f32.mrf.mxu0  ;;  %v1792_v60 = vpop.f32.mrf.mxu1  ;;  %2524 = vmatmul.mubr.bf16.gmra.mxu0 %v2215_v7  ;;  %v2093_v0 = vmax.f32 %v1787_v2, 0.0 }
 0x24b   : > { %v1302_v42 = vadd.f32 %v1301_v39, %v9666_v35  ;;  %v1793_v59 = vadd.f32 %v1792_v60, %v9915_v15  ;;  %2034 = vmatprep.mubr.bf16.mxu1 %v1519_v56  ;;  %v2095_v38 = vmax.f32 %v1791_v10, 0.0  ;;  %v1449_v51 = vmax.f32 %v1300_v62, 0.0  ;;  %v8528_v10 = vld [vmem:[%s12349_s7 + $0xb4] ss:$8 sps:$4 sm:$0xff]  }
 0x24c   : > { %v1303_v57 = vpop.f32.mrf.mxu0  ;;  %v1796_v17 = vpop.f32.mrf.mxu1  ;;  %2035 = vmatmul.mubr.bf16.gmra.mxu1 %v1518_v48  ;;  %v1448_v39 = vmax.f32 %v1298_v63, 0.0  ;;  %3254 = vmatprep.subr.bf16.mxu1 %v8528_v10 }
 0x24d   : > { %v2096_v19 = vmax.f32 %v1793_v59, 0.0  ;;  %v1304_v33 = vadd.f32 %v1303_v57, %v9660_v32  ;;  %v1450_v34 = vmax.f32 %v1302_v42, 0.0  ;;  %v2217_v60 = vpack.c.bf16 %v2095_v38, %v2093_v0  ;;  %3255 = vmatpush2.bf16.msra.mxu1 %v8526_v25 }
 0x24e   : > { %v1307_v28 = vpop.f32.mrf.mxu0  ;;  %v1798_v9 = vpop.f32.mrf.mxu1  ;;  %v1797_v16 = vadd.f32 %v1796_v17, %v9918_v24 }
 0x24f   : > { %v1451_v43 = vmax.f32 %v1304_v33, 0.0  ;;  %v2218_v50 = vpack.c.bf16 %v2096_v19, %v2094_v47  ;;  %v1799_v48 = vadd.f32 %v1798_v9, %v9915_v15  ;;  %v1520_v62 = vpack.c.bf16 %v1450_v34, %v1448_v39 }
 0x250   : > { %v1309_v7 = vpop.f32.mrf.mxu0  ;;  %v1800_v54 = vpop.f32.mrf.mxu1  ;;  %v1308_v17 = vadd.f32 %v1307_v28, %v9666_v35 }
 0x251   : > { %v1801_v56 = vadd.f32 %v1800_v54, %v9918_v24  ;;  %2533 = vmatprep.mubr.bf16.mxu0 %v2218_v50  ;;  %v1521_v59 = vpack.c.bf16 %v1451_v43, %v1449_v51  ;;  %v1310_v38 = vadd.f32 %v1309_v7, %v9660_v32  ;;  %v2098_v34 = vmax.f32 %v1799_v48, 0.0 }
 0x252   : > { %v1311_v2 = vpop.f32.mrf.mxu0  ;;  %v1802_v42 = vpop.f32.mrf.mxu1  ;;  %2534 = vmatmul.mubr.bf16.gmra.mxu0 %v2217_v60  ;;  %v2097_v54 = vmax.f32 %v1797_v16, 0.0 }
 0x253   : > { %v1312_v57 = vadd.f32 %v1311_v2, %v9666_v35  ;;  %v1803_v63 = vadd.f32 %v1802_v42, %v9915_v15  ;;  %2044 = vmatprep.mubr.bf16.mxu1 %v1521_v59  ;;  %v2099_v47 = vmax.f32 %v1801_v56, 0.0  ;;  %v1453_v60 = vmax.f32 %v1310_v38, 0.0 }
 0x254   : > { %v1313_v19 = vpop.f32.mrf.mxu0  ;;  %v1806_v33 = vpop.f32.mrf.mxu1  ;;  %2045 = vmatmul.mubr.bf16.gmra.mxu1 %v1520_v62  ;;  %v1452_v42 = vmax.f32 %v1308_v17, 0.0 }
 0x255   : > { %v2100_v9 = vmax.f32 %v1803_v63, 0.0  ;;  %v1314_v0 = vadd.f32 %v1313_v19, %v9660_v32  ;;  %v1454_v50 = vmax.f32 %v1312_v57, 0.0  ;;  %v2219_v59 = vpack.c.bf16 %v2099_v47, %v2097_v54 }
 0x256   : > { %v1317_v43 = vpop.f32.mrf.mxu0  ;;  %v1808_v51 = vpop.f32.mrf.mxu1  ;;  %v1807_v19 = vadd.f32 %v1806_v33, %v9918_v24 }
 0x257   : > { %v1455_v39 = vmax.f32 %v1314_v0, 0.0  ;;  %v2220_v2 = vpack.c.bf16 %v2100_v9, %v2098_v34  ;;  %v1809_v28 = vadd.f32 %v1808_v51, %v9915_v15  ;;  %v1522_v48 = vpack.c.bf16 %v1454_v50, %v1452_v42 }
 0x258   : > { %v1319_v10 = vpop.f32.mrf.mxu0  ;;  %v1810_v7 = vpop.f32.mrf.mxu1  ;;  %v1318_v38 = vadd.f32 %v1317_v43, %v9666_v35  ;;  %v8529_v43 = vld [vmem:[%s12351_s9 + $0x70] ss:$8 sps:$4 sm:$0xff]  }
 0x259   : > { %v1811_v25 = vadd.f32 %v1810_v7, %v9918_v24  ;;  %2543 = vmatprep.mubr.bf16.mxu0 %v2220_v2  ;;  %v1523_v62 = vpack.c.bf16 %v1455_v39, %v1453_v60  ;;  %v1320_v17 = vadd.f32 %v1319_v10, %v9660_v32  ;;  %v2102_v54 = vmax.f32 %v1809_v28, 0.0  ;;  %v8531_v10 = vld [vmem:[%s12351_s9 + $0x74] ss:$8 sps:$4 sm:$0xff]  }
 0x25a   : > { %v1321_v56 = vpop.f32.mrf.mxu0  ;;  %v1812_v63 = vpop.f32.mrf.mxu1  ;;  %2544 = vmatmul.mubr.bf16.gmra.mxu0 %v2219_v59  ;;  %v2101_v60 = vmax.f32 %v1807_v19, 0.0  ;;  %v1456_v2 = vmax.f32 %v1318_v38, 0.0  ;;  %3979 = vmatprep.subr.bf16.mxu0 %v8531_v10  ;;  %v8534_v19 = vld [vmem:[%s12349_s7 + $0xa4] ss:$8 sps:$4 sm:$0xff]  }
 0x25b   : > { %v1322_v16 = vadd.f32 %v1321_v56, %v9666_v35  ;;  %v1813_v57 = vadd.f32 %v1812_v63, %v9915_v15  ;;  %2054 = vmatprep.mubr.bf16.mxu1 %v1523_v62  ;;  %v2103_v0 = vmax.f32 %v1811_v25, 0.0  ;;  %v1457_v42 = vmax.f32 %v1320_v17, 0.0  ;;  %3980 = vmatpush1.bf16.msra.mxu0 %v8529_v43 }
 0x25c   : > { %v1323_v47 = vpop.f32.mrf.mxu0  ;;  %v1816_v9 = vpop.f32.mrf.mxu1  ;;  %2055 = vmatmul.mubr.bf16.gmra.mxu1 %v1522_v48  ;;  %v8532_v48 = vld [vmem:[%s12349_s7 + $0xa0] ss:$8 sps:$4 sm:$0xff]   ;;  %3256 = vmatprep.subr.bf16.mxu1 %v8534_v19 }
 0x25d   : > { %v2104_v34 = vmax.f32 %v1813_v57, 0.0  ;;  %v1324_v51 = vadd.f32 %v1323_v47, %v9660_v32  ;;  %v1458_v50 = vmax.f32 %v1322_v16, 0.0  ;;  %v2221_v63 = vpack.c.bf16 %v2103_v0, %v2101_v60  ;;  %3257 = vmatpush2.bf16.msra.mxu1 %v8532_v48 }
 0x25e   : > { %v1327_v33 = vpop.f32.mrf.mxu0  ;;  %v1818_v39 = vpop.f32.mrf.mxu1  ;;  %v1817_v57 = vadd.f32 %v1816_v9, %v9918_v24 }
 0x25f   : > { %v1459_v7 = vmax.f32 %v1324_v51, 0.0  ;;  %v2222_v56 = vpack.c.bf16 %v2104_v34, %v2102_v54  ;;  %v1819_v28 = vadd.f32 %v1818_v39, %v9915_v15  ;;  %v1524_v16 = vpack.c.bf16 %v1458_v50, %v1456_v2 }
 0x260   : > { %v1329_v59 = vpop.f32.mrf.mxu0  ;;  %v1820_v25 = vpop.f32.mrf.mxu1  ;;  %v1328_v54 = vadd.f32 %v1327_v33, %v9666_v35  ;;  %v2105_v43 = vmax.f32 %v1817_v57, 0.0 }
 0x261   : > { %v1821_v62 = vadd.f32 %v1820_v25, %v9918_v24  ;;  %2553 = vmatprep.mubr.bf16.mxu0 %v2222_v56  ;;  %v1525_v47 = vpack.c.bf16 %v1459_v7, %v1457_v42  ;;  %v1330_v0 = vadd.f32 %v1329_v59, %v9660_v32  ;;  %v2106_v9 = vmax.f32 %v1819_v28, 0.0 }
 0x262   : > { %v1331_v38 = vpop.f32.mrf.mxu0  ;;  %v1822_v17 = vpop.f32.mrf.mxu1  ;;  %2554 = vmatmul.mubr.bf16.gmra.mxu0 %v2221_v63  ;;  %v1460_v63 = vmax.f32 %v1328_v54, 0.0 }
 0x263   : > { %v1332_v34 = vadd.f32 %v1331_v38, %v9666_v35  ;;  %v1823_v51 = vadd.f32 %v1822_v17, %v9915_v15  ;;  %2064 = vmatprep.mubr.bf16.mxu1 %v1525_v47  ;;  %v2107_v60 = vmax.f32 %v1821_v62, 0.0  ;;  %v1461_v42 = vmax.f32 %v1330_v0, 0.0 }
 0x264   : > { %v1333_v39 = vpop.f32.mrf.mxu0  ;;  %v1826_v50 = vpop.f32.mrf.mxu1  ;;  %2065 = vmatmul.mubr.bf16.gmra.mxu1 %v1524_v16 }
 0x265   : > { %v2108_v10 = vmax.f32 %v1823_v51, 0.0  ;;  %v1334_v7 = vadd.f32 %v1333_v39, %v9660_v32  ;;  %v1462_v59 = vmax.f32 %v1332_v34, 0.0  ;;  %v2223_v38 = vpack.c.bf16 %v2107_v60, %v2105_v43  ;;  %v8535_v39 = vld [vmem:[%s12351_s9 + $0x60] ss:$8 sps:$4 sm:$0xff]   ;;  %v8538_v43 = vld [vmem:[%s12349_s7 + $0x90] ss:$8 sps:$4 sm:$0xff]  }
 0x266   : > { %v1828_v2 = vpop.f32.mrf.mxu1  ;;  %v1827_v32 = vadd.f32 %v1826_v50, %v9918_v24  ;;  %v8537_v50 = vld [vmem:[%s12351_s9 + $0x64] ss:$8 sps:$4 sm:$0xff]  }
 0x267   : > { %v1463_v25 = vmax.f32 %v1334_v7, 0.0  ;;  %v2224_v56 = vpack.c.bf16 %v2108_v10, %v2106_v9  ;;  %v1829_v35 = vadd.f32 %v1828_v2, %v9915_v15  ;;  %v1526_v48 = vpack.c.bf16 %v1462_v59, %v1460_v63  ;;  %3981 = vmatprep.subr.bf16.mxu0 %v8537_v50  ;;  %v8540_v2 = vld [vmem:[%s12349_s7 + $0x94] ss:$8 sps:$4 sm:$0xff]  }
 0x268   : > { %v1830_v19 = vpop.f32.mrf.mxu1  ;;  %v2109_v51 = vmax.f32 %v1827_v32, 0.0  ;;  %3982 = vmatpush1.bf16.msra.mxu0 %v8535_v39  ;;  %3258 = vmatprep.subr.bf16.mxu1 %v8540_v2 }
 0x269   : > { %v1831_v33 = vadd.f32 %v1830_v19, %v9918_v24  ;;  %2563 = vmatprep.mubr.bf16.mxu0 %v2224_v56  ;;  %v1527_v28 = vpack.c.bf16 %v1463_v25, %v1461_v42  ;;  %v2110_v17 = vmax.f32 %v1829_v35, 0.0  ;;  %3259 = vmatpush2.bf16.msra.mxu1 %v8538_v43 }
 0x26a   : > { %v1832_v62 = vpop.f32.mrf.mxu1  ;;  %2564 = vmatmul.mubr.bf16.gmra.mxu0 %v2223_v38 }
 0x26b   : > { %v1833_v16 = vadd.f32 %v1832_v62, %v9915_v15  ;;  %2074 = vmatprep.mubr.bf16.mxu1 %v1527_v28  ;;  %v2111_v47 = vmax.f32 %v1831_v33, 0.0 }
 0x26c   : > { %v1836_v57 = vpop.f32.mrf.mxu1  ;;  %2075 = vmatmul.mubr.bf16.gmra.mxu1 %v1526_v48 }
 0x26d   : > { %v2112_v0 = vmax.f32 %v1833_v16, 0.0  ;;  %v2225_v60 = vpack.c.bf16 %v2111_v47, %v2109_v51  ;;  %v1837_v59 = vadd.f32 %v1836_v57, %v9918_v24 }
 0x26e   : > { %v1838_v34 = vpop.f32.mrf.mxu1 }
 0x26f   : > { %v2226_v54 = vpack.c.bf16 %v2112_v0, %v2110_v17  ;;  %v1839_v10 = vadd.f32 %v1838_v34, %v9915_v15  ;;  %v2113_v33 = vmax.f32 %v1837_v59, 0.0  ;;  %v8544_v59 = vld [vmem:[%s12349_s7 + $0x80] ss:$8 sps:$4 sm:$0xff]  }
 0x270   : > { %v1840_v9 = vpop.f32.mrf.mxu1 }
 0x271   : > { %v1841_v7 = vadd.f32 %v1840_v9, %v9918_v24  ;;  %2573 = vmatprep.mubr.bf16.mxu0 %v2226_v54  ;;  %v2114_v63 = vmax.f32 %v1839_v10, 0.0  ;;  %v8543_v10 = vld [vmem:[%s12351_s9 + $0x54] ss:$8 sps:$4 sm:$0xff]  }
 0x272   : > { %v1842_v42 = vpop.f32.mrf.mxu1  ;;  %2574 = vmatmul.mubr.bf16.gmra.mxu0 %v2225_v60  ;;  %v8541_v60 = vld [vmem:[%s12351_s9 + $0x50] ss:$8 sps:$4 sm:$0xff]   ;;  %3983 = vmatprep.subr.bf16.mxu0 %v8543_v10 }
 0x273   : > { %v1843_v25 = vadd.f32 %v1842_v42, %v9915_v15  ;;  %v2115_v19 = vmax.f32 %v1841_v7, 0.0  ;;  %3984 = vmatpush1.bf16.msra.mxu0 %v8541_v60 }
 0x274   : > { %v1846_v56 = vpop.f32.mrf.mxu1 }
 0x275   : > { %v2116_v38 = vmax.f32 %v1843_v25, 0.0  ;;  %v2227_v48 = vpack.c.bf16 %v2115_v19, %v2113_v33  ;;  %v1847_v17 = vadd.f32 %v1846_v56, %v9918_v24  ;;  %v8546_v25 = vld [vmem:[%s12349_s7 + $0x84] ss:$8 sps:$4 sm:$0xff]  }
 0x276   : > { %v1848_v35 = vpop.f32.mrf.mxu1  ;;  %3260 = vmatprep.subr.bf16.mxu1 %v8546_v25 }
 0x277   : > { %v2228_v28 = vpack.c.bf16 %v2116_v38, %v2114_v63  ;;  %v1849_v32 = vadd.f32 %v1848_v35, %v9915_v15  ;;  %v2117_v50 = vmax.f32 %v1847_v17, 0.0  ;;  %3261 = vmatpush2.bf16.msra.mxu1 %v8544_v59 }
 0x278   : > { %v1850_v62 = vpop.f32.mrf.mxu1 }
 0x279   : > { %v1851_v16 = vadd.f32 %v1850_v62, %v9918_v24  ;;  %2583 = vmatprep.mubr.bf16.mxu0 %v2228_v28  ;;  %v2118_v34 = vmax.f32 %v1849_v32, 0.0 }
 0x27a   : > { %v1852_v57 = vpop.f32.mrf.mxu1  ;;  %2584 = vmatmul.mubr.bf16.gmra.mxu0 %v2227_v48 }
 0x27b   : > { %v1853_v47 = vadd.f32 %v1852_v57, %v9915_v15  ;;  %v2119_v51 = vmax.f32 %v1851_v16, 0.0 }
 0x27c   : > { %v1856_v0 = vpop.f32.mrf.mxu1 }
 0x27d   : > { %v2120_v54 = vmax.f32 %v1853_v47, 0.0  ;;  %v2229_v43 = vpack.c.bf16 %v2119_v51, %v2117_v50  ;;  %v1857_v63 = vadd.f32 %v1856_v0, %v9918_v24 }
 0x27e   : > { %v1858_v39 = vpop.f32.mrf.mxu1 }
 0x27f   : > { %v2230_v9 = vpack.c.bf16 %v2120_v54, %v2118_v34  ;;  %v1859_v2 = vadd.f32 %v1858_v39, %v9915_v15  ;;  %v2121_v48 = vmax.f32 %v1857_v63, 0.0 }
 0x280   : > { %v1860_v7 = vpop.f32.mrf.mxu1 }
 0x281   : > { %v1861_v42 = vadd.f32 %v1860_v7, %v9918_v24  ;;  %2593 = vmatprep.mubr.bf16.mxu0 %v2230_v9  ;;  %v2122_v35 = vmax.f32 %v1859_v2, 0.0  ;;  %v8547_v2 = vld [vmem:[%s12351_s9 + $0x40] ss:$8 sps:$4 sm:$0xff]  }
 0x282   : > { %v1862_v56 = vpop.f32.mrf.mxu1  ;;  %2594 = vmatmul.mubr.bf16.gmra.mxu0 %v2229_v43 }
 0x283   : > { %v1863_v19 = vadd.f32 %v1862_v56, %v9915_v15  ;;  %v2123_v33 = vmax.f32 %v1861_v42, 0.0  ;;  %v8549_v42 = vld [vmem:[%s12351_s9 + $0x44] ss:$8 sps:$4 sm:$0xff]  }
 0x284   : > { %v1866_v38 = vpop.f32.mrf.mxu1  ;;  %3985 = vmatprep.subr.bf16.mxu0 %v8549_v42  ;;  %v8550_v42 = vld [vmem:[%s12351_s9 + $0x30] ss:$8 sps:$4 sm:$0xff]  }
 0x285   : > { %v2124_v28 = vmax.f32 %v1863_v19, 0.0  ;;  %v2231_v57 = vpack.c.bf16 %v2123_v33, %v2121_v48  ;;  %v1867_v34 = vadd.f32 %v1866_v38, %v9918_v24  ;;  %3986 = vmatpush1.bf16.msra.mxu0 %v8547_v2 }
 0x286   : > { %v1868_v62 = vpop.f32.mrf.mxu1 }
 0x287   : > { %v2232_v32 = vpack.c.bf16 %v2124_v28, %v2122_v35  ;;  %v1869_v17 = vadd.f32 %v1868_v62, %v9915_v15  ;;  %v2125_v10 = vmax.f32 %v1867_v34, 0.0 }
 0x288   : > { %v1870_v16 = vpop.f32.mrf.mxu1 }
 0x289   : > { %v1871_v47 = vadd.f32 %v1870_v16, %v9918_v24  ;;  %2603 = vmatprep.mubr.bf16.mxu0 %v2232_v32  ;;  %v2126_v39 = vmax.f32 %v1869_v17, 0.0 }
 0x28a   : > { %v1872_v0 = vpop.f32.mrf.mxu1  ;;  %2604 = vmatmul.mubr.bf16.gmra.mxu0 %v2231_v57 }
 0x28b   : > { %v1873_v51 = vadd.f32 %v1872_v0, %v9915_v15  ;;  %v2127_v50 = vmax.f32 %v1871_v47, 0.0 }
 0x28c   : > { %v1876_v54 = vpop.f32.mrf.mxu1 }
 0x28d   : > { %v2128_v9 = vmax.f32 %v1873_v51, 0.0  ;;  %v2233_v59 = vpack.c.bf16 %v2127_v50, %v2125_v10  ;;  %v1877_v19 = vadd.f32 %v1876_v54, %v9918_v24 }
 0x28e   : > { %v1878_v60 = vpop.f32.mrf.mxu1 }
 0x28f   : > { %v2234_v7 = vpack.c.bf16 %v2128_v9, %v2126_v39  ;;  %v1879_v25 = vadd.f32 %v1878_v60, %v9915_v15  ;;  %v2129_v32 = vmax.f32 %v1877_v19, 0.0 }
 0x290   : > { %v1880_v43 = vpop.f32.mrf.mxu1 }
 0x291   : > { %v1881_v56 = vadd.f32 %v1880_v43, %v9918_v24  ;;  %2613 = vmatprep.mubr.bf16.mxu0 %v2234_v7  ;;  %v2130_v33 = vmax.f32 %v1879_v25, 0.0 }
 0x292   : > { %v1882_v63 = vpop.f32.mrf.mxu1  ;;  %2614 = vmatmul.mubr.bf16.gmra.mxu0 %v2233_v59  ;;  %v8552_v59 = vld [vmem:[%s12351_s9 + $0x34] ss:$8 sps:$4 sm:$0xff]  }
 0x293   : > { %v1883_v38 = vadd.f32 %v1882_v63, %v9915_v15  ;;  %v2131_v28 = vmax.f32 %v1881_v56, 0.0  ;;  %3987 = vmatprep.subr.bf16.mxu0 %v8552_v59  ;;  %v8553_v59 = vld [vmem:[%s12351_s9 + $0x20] ss:$8 sps:$4 sm:$0xff]  }
 0x294   : > { %v1886_v35 = vpop.f32.mrf.mxu1  ;;  %3988 = vmatpush1.bf16.msra.mxu0 %v8550_v42 }
 0x295   : > { %v2132_v62 = vmax.f32 %v1883_v38, 0.0  ;;  %v2235_v17 = vpack.c.bf16 %v2131_v28, %v2129_v32  ;;  %v1887_v51 = vadd.f32 %v1886_v35, %v9918_v24 }
 0x296   : > { %v1888_v48 = vpop.f32.mrf.mxu1 }
 0x297   : > { %v2236_v16 = vpack.c.bf16 %v2132_v62, %v2130_v33  ;;  %v1889_v47 = vadd.f32 %v1888_v48, %v9915_v15  ;;  %v2133_v7 = vmax.f32 %v1887_v51, 0.0 }
 0x298   : > { %v1890_v57 = vpop.f32.mrf.mxu1 }
 0x299   : > { %v1891_v0 = vadd.f32 %v1890_v57, %v9918_v24  ;;  %2623 = vmatprep.mubr.bf16.mxu0 %v2236_v16  ;;  %v2134_v50 = vmax.f32 %v1889_v47, 0.0 }
 0x29a   : > { %v1892_v34 = vpop.f32.mrf.mxu1  ;;  %2624 = vmatmul.mubr.bf16.gmra.mxu0 %v2235_v17 }
 0x29b   : > { %v1893_v54 = vadd.f32 %v1892_v34, %v9915_v15  ;;  %v2135_v9 = vmax.f32 %v1891_v0, 0.0 }
 0x29c   : > { %v1896_v39 = vpop.f32.mrf.mxu1 }
 0x29d   : > { %v2136_v60 = vmax.f32 %v1893_v54, 0.0  ;;  %v2237_v25 = vpack.c.bf16 %v2135_v9, %v2133_v7  ;;  %v1897_v38 = vadd.f32 %v1896_v39, %v9918_v24 }
 0x29e   : > { %v1898_v10 = vpop.f32.mrf.mxu1 }
 0x29f   : > { %v2238_v43 = vpack.c.bf16 %v2136_v60, %v2134_v50  ;;  %v1899_v56 = vadd.f32 %v1898_v10, %v9915_v15  ;;  %v2137_v16 = vmax.f32 %v1897_v38, 0.0 }
 0x2a0   : > { %v1900_v2 = vpop.f32.mrf.mxu1 }
 0x2a1   : > { %v1901_v63 = vadd.f32 %v1900_v2, %v9918_v24  ;;  %2633 = vmatprep.mubr.bf16.mxu0 %v2238_v43  ;;  %v2138_v28 = vmax.f32 %v1899_v56, 0.0 }
 0x2a2   : > { %v1902_v19 = vpop.f32.mrf.mxu1  ;;  %2634 = vmatmul.mubr.bf16.gmra.mxu0 %v2237_v25  ;;  %v8555_v25 = vld [vmem:[%s12351_s9 + $0x24] ss:$8 sps:$4 sm:$0xff]  }
 0x2a3   : > { %v1903_v35 = vadd.f32 %v1902_v19, %v9915_v15  ;;  %v2139_v62 = vmax.f32 %v1901_v63, 0.0  ;;  %3989 = vmatprep.subr.bf16.mxu0 %v8555_v25  ;;  %v8556_v25 = vld [vmem:[%s12351_s9 + $0x10] ss:$8 sps:$4 sm:$0xff]  }
 0x2a4   : > { %v1906_v33 = vpop.f32.mrf.mxu1  ;;  %3990 = vmatpush1.bf16.msra.mxu0 %v8553_v59 }
 0x2a5   : > { %v2140_v48 = vmax.f32 %v1903_v35, 0.0  ;;  %v2239_v47 = vpack.c.bf16 %v2139_v62, %v2137_v16  ;;  %v1907_v54 = vadd.f32 %v1906_v33, %v9918_v24 }
 0x2a6   : > { %v1908_v32 = vpop.f32.mrf.mxu1 }
 0x2a7   : > { %v2240_v57 = vpack.c.bf16 %v2140_v48, %v2138_v28  ;;  %v1909_v0 = vadd.f32 %v1908_v32, %v9915_v15  ;;  %v2141_v43 = vmax.f32 %v1907_v54, 0.0 }
 0x2a8   : > { %v1910_v17 = vpop.f32.mrf.mxu1 }
 0x2a9   : > { %v1911_v34 = vadd.f32 %v1910_v17, %v9918_v24  ;;  %2643 = vmatprep.mubr.bf16.mxu0 %v2240_v57  ;;  %v2142_v9 = vmax.f32 %v1909_v0, 0.0 }
 0x2aa   : > { %v1912_v51 = vpop.f32.mrf.mxu1  ;;  %2644 = vmatmul.mubr.bf16.gmra.mxu0 %v2239_v47 }
 0x2ab   : > { %v1913_v39 = vadd.f32 %v1912_v51, %v9915_v15  ;;  %v2143_v60 = vmax.f32 %v1911_v34, 0.0 }
 0x2ac   : > { %v1916_v50 = vpop.f32.mrf.mxu1 }
 0x2ad   : > { %v2144_v10 = vmax.f32 %v1913_v39, 0.0  ;;  %v2241_v56 = vpack.c.bf16 %v2143_v60, %v2141_v43  ;;  %v1917_v35 = vadd.f32 %v1916_v50, %v9918_v24 }
 0x2ae   : > { %v1918_v7 = vpop.f32.mrf.mxu1 }
 0x2af   : > { %v2242_v2 = vpack.c.bf16 %v2144_v10, %v2142_v9  ;;  %v1919_v63 = vadd.f32 %v1918_v7, %v9915_v15  ;;  %v2145_v57 = vmax.f32 %v1917_v35, 0.0 }
 0x2b0   : > { %v1920_v42 = vpop.f32.mrf.mxu1 }
 0x2b1   : > { %v1921_v19 = vadd.f32 %v1920_v42, %v9918_v24  ;;  %2653 = vmatprep.mubr.bf16.mxu0 %v2242_v2  ;;  %v2146_v62 = vmax.f32 %v1919_v63, 0.0 }
 0x2b2   : > { %v1922_v38 = vpop.f32.mrf.mxu1  ;;  %2654 = vmatmul.mubr.bf16.gmra.mxu0 %v2241_v56  ;;  %v8558_v56 = vld [vmem:[%s12351_s9 + $0x14] ss:$8 sps:$4 sm:$0xff]  }
 0x2b3   : > { %v1923_v33 = vadd.f32 %v1922_v38, %v9915_v15  ;;  %v2147_v48 = vmax.f32 %v1921_v19, 0.0  ;;  %3991 = vmatprep.subr.bf16.mxu0 %v8558_v56  ;;  %v8559_v56 = vld [vmem:[%s12351_s9] ss:$8 sps:$4 sm:$0xff]  }
 0x2b4   : > { %v1926_v28 = vpop.f32.mrf.mxu1  ;;  %3992 = vmatpush1.bf16.msra.mxu0 %v8556_v25 }
 0x2b5   : > { %v2148_v32 = vmax.f32 %v1923_v33, 0.0  ;;  %v2243_v0 = vpack.c.bf16 %v2147_v48, %v2145_v57  ;;  %v1927_v39 = vadd.f32 %v1926_v28, %v9918_v24 }
 0x2b6   : > { %v1928_v16 = vpop.f32.mrf.mxu1 }
 0x2b7   : > { %v2244_v17 = vpack.c.bf16 %v2148_v32, %v2146_v62  ;;  %v1929_v34 = vadd.f32 %v1928_v16, %v9915_v15  ;;  %v2149_v2 = vmax.f32 %v1927_v39, 0.0 }
 0x2b8   : > { %v1930_v47 = vpop.f32.mrf.mxu1 }
 0x2b9   : > { %v1931_v51 = vadd.f32 %v1930_v47, %v9918_v24  ;;  %2663 = vmatprep.mubr.bf16.mxu0 %v2244_v17  ;;  %v2150_v60 = vmax.f32 %v1929_v34, 0.0 }
 0x2ba   : > { %v1932_v54 = vpop.f32.mrf.mxu1  ;;  %2664 = vmatmul.mubr.bf16.gmra.mxu0 %v2243_v0 }
 0x2bb   : > { %v1933_v50 = vadd.f32 %v1932_v54, %v9915_v15  ;;  %v2151_v10 = vmax.f32 %v1931_v51, 0.0 }
 0x2bc   : > { %v1936_v9 = vpop.f32.mrf.mxu1 }
 0x2bd   : > { %v2152_v7 = vmax.f32 %v1933_v50, 0.0  ;;  %v2245_v63 = vpack.c.bf16 %v2151_v10, %v2149_v2  ;;  %v1937_v33 = vadd.f32 %v1936_v9, %v9918_v24 }
 0x2be   : > { %v1938_v43 = vpop.f32.mrf.mxu1 }
 0x2bf   : > { %v2246_v42 = vpack.c.bf16 %v2152_v7, %v2150_v60  ;;  %v1939_v19 = vadd.f32 %v1938_v43, %v9915_v15  ;;  %v2153_v17 = vmax.f32 %v1937_v33, 0.0 }
 0x2c0   : > { %v1940_v59 = vpop.f32.mrf.mxu1 }
 0x2c1   : > { %v1941_v38 = vadd.f32 %v1940_v59, %v9918_v24  ;;  %2673 = vmatprep.mubr.bf16.mxu0 %v2246_v42  ;;  %v2154_v48 = vmax.f32 %v1939_v19, 0.0 }
 0x2c2   : > { %v1942_v35 = vpop.f32.mrf.mxu1  ;;  %2674 = vmatmul.mubr.bf16.gmra.mxu0 %v2245_v63  ;;  %v8561_v63 = vld [vmem:[%s12351_s9 + $0x4] ss:$8 sps:$4 sm:$0xff]  }
 0x2c3   : > { %v1943_v28 = vadd.f32 %v1942_v35, %v9915_v15  ;;  %v2155_v32 = vmax.f32 %v1941_v38, 0.0  ;;  %3993 = vmatprep.subr.bf16.mxu0 %v8561_v63  ;;  %v8562_v63 = vld [vmem:[%s12351_s9 + $0xf0] ss:$8 sps:$4 sm:$0xff]  }
 0x2c4   : > { %v1946_v62 = vpop.f32.mrf.mxu1  ;;  %3994 = vmatpush1.bf16.msra.mxu0 %v8559_v56 }
 0x2c5   : > { %v2156_v16 = vmax.f32 %v1943_v28, 0.0  ;;  %v2247_v34 = vpack.c.bf16 %v2155_v32, %v2153_v17  ;;  %v1947_v50 = vadd.f32 %v1946_v62, %v9918_v24 }
 0x2c6   : > { %v1948_v57 = vpop.f32.mrf.mxu1 }
 0x2c7   : > { %v2248_v47 = vpack.c.bf16 %v2156_v16, %v2154_v48  ;;  %v1949_v51 = vadd.f32 %v1948_v57, %v9915_v15  ;;  %v2157_v42 = vmax.f32 %v1947_v50, 0.0 }
 0x2c8   : > { %v1950_v0 = vpop.f32.mrf.mxu1 }
 0x2c9   : > { %v1951_v54 = vadd.f32 %v1950_v0, %v9918_v24  ;;  %2683 = vmatprep.mubr.bf16.mxu0 %v2248_v47  ;;  %v2158_v10 = vmax.f32 %v1949_v51, 0.0 }
 0x2ca   : > { %v1952_v39 = vpop.f32.mrf.mxu1  ;;  %2684 = vmatmul.mubr.bf16.gmra.mxu0 %v2247_v34 }
 0x2cb   : > { %v1953_v9 = vadd.f32 %v1952_v39, %v9915_v15  ;;  %v2159_v7 = vmax.f32 %v1951_v54, 0.0 }
 0x2cc   : > { %v1956_v60 = vpop.f32.mrf.mxu1 }
 0x2cd   : > { %v2160_v43 = vmax.f32 %v1953_v9, 0.0  ;;  %v2249_v19 = vpack.c.bf16 %v2159_v7, %v2157_v42  ;;  %v1957_v28 = vadd.f32 %v1956_v60, %v9918_v24 }
 0x2ce   : > { %v1958_v2 = vpop.f32.mrf.mxu1 }
 0x2cf   : > { %v2250_v59 = vpack.c.bf16 %v2160_v43, %v2158_v10  ;;  %v1959_v38 = vadd.f32 %v1958_v2, %v9915_v15  ;;  %v2161_v47 = vmax.f32 %v1957_v28, 0.0 }
 0x2d0   : > { %v1960_v25 = vpop.f32.mrf.mxu1 }
 0x2d1   : > { %v1961_v35 = vadd.f32 %v1960_v25, %v9918_v24  ;;  %2693 = vmatprep.mubr.bf16.mxu0 %v2250_v59  ;;  %v2162_v32 = vmax.f32 %v1959_v38, 0.0 }
 0x2d2   : > { %v1962_v33 = vpop.f32.mrf.mxu1  ;;  %2694 = vmatmul.mubr.bf16.gmra.mxu0 %v2249_v19  ;;  %v8564_v19 = vld [vmem:[%s12351_s9 + $0xf4] ss:$8 sps:$4 sm:$0xff]  }
 0x2d3   : > { %v1963_v62 = vadd.f32 %v1962_v33, %v9915_v15  ;;  %v2163_v16 = vmax.f32 %v1961_v35, 0.0  ;;  %3995 = vmatprep.subr.bf16.mxu0 %v8564_v19  ;;  %v8565_v19 = vld [vmem:[%s12351_s9 + $0xe0] ss:$8 sps:$4 sm:$0xff]  }
 0x2d4   : > { %v1966_v48 = vpop.f32.mrf.mxu1  ;;  %3996 = vmatpush2.bf16.msra.mxu0 %v8562_v63 }
 0x2d5   : > { %v2164_v57 = vmax.f32 %v1963_v62, 0.0  ;;  %v2251_v51 = vpack.c.bf16 %v2163_v16, %v2161_v47  ;;  %v1967_v9 = vadd.f32 %v1966_v48, %v9918_v24 }
 0x2d6   : > { %v1968_v17 = vpop.f32.mrf.mxu1 }
 0x2d7   : > { %v2252_v0 = vpack.c.bf16 %v2164_v57, %v2162_v32  ;;  %v1969_v54 = vadd.f32 %v1968_v17, %v9915_v15  ;;  %v2165_v59 = vmax.f32 %v1967_v9, 0.0 }
 0x2d8   : > { %v1970_v34 = vpop.f32.mrf.mxu1 }
 0x2d9   : > { %v1971_v39 = vadd.f32 %v1970_v34, %v9918_v24  ;;  %2703 = vmatprep.mubr.bf16.mxu0 %v2252_v0  ;;  %v2166_v7 = vmax.f32 %v1969_v54, 0.0 }
 0x2da   : > { %v1972_v50 = vpop.f32.mrf.mxu1  ;;  %2704 = vmatmul.mubr.bf16.gmra.mxu0 %v2251_v51 }
 0x2db   : > { %v1973_v60 = vadd.f32 %v1972_v50, %v9915_v15  ;;  %v2167_v43 = vmax.f32 %v1971_v39, 0.0 }
 0x2dc   : > { %v1976_v10 = vpop.f32.mrf.mxu1 }
 0x2dd   : > { %v2168_v2 = vmax.f32 %v1973_v60, 0.0  ;;  %v2253_v38 = vpack.c.bf16 %v2167_v43, %v2165_v59  ;;  %v1977_v62 = vadd.f32 %v1976_v10, %v9918_v24 }
 0x2de   : > { %v1978_v42 = vpop.f32.mrf.mxu1 }
 0x2df   : > { %v2254_v25 = vpack.c.bf16 %v2168_v2, %v2166_v7  ;;  %v1979_v35 = vadd.f32 %v1978_v42, %v9915_v15  ;;  %v2169_v0 = vmax.f32 %v1977_v62, 0.0 }
 0x2e0   : > { %v1980_v56 = vpop.f32.mrf.mxu1 }
 0x2e1   : > { %v1981_v33 = vadd.f32 %v1980_v56, %v9918_v24  ;;  %2713 = vmatprep.mubr.bf16.mxu0 %v2254_v25  ;;  %v2170_v16 = vmax.f32 %v1979_v35, 0.0 }
 0x2e2   : > { %v1982_v28 = vpop.f32.mrf.mxu1  ;;  %2714 = vmatmul.mubr.bf16.gmra.mxu0 %v2253_v38  ;;  %v8567_v38 = vld [vmem:[%s12351_s9 + $0xe4] ss:$8 sps:$4 sm:$0xff]  }
 0x2e3   : > { %v1983_v48 = vadd.f32 %v1982_v28, %v9915_v15  ;;  %v2171_v57 = vmax.f32 %v1981_v33, 0.0  ;;  %3997 = vmatprep.subr.bf16.mxu0 %v8567_v38  ;;  %v8568_v38 = vld [vmem:[%s12351_s9 + $0xd0] ss:$8 sps:$4 sm:$0xff]  }
 0x2e4   : > { %v1986_v32 = vpop.f32.mrf.mxu1  ;;  %3998 = vmatpush2.bf16.msra.mxu0 %v8565_v19 }
 0x2e5   : > { %v2172_v17 = vmax.f32 %v1983_v48, 0.0  ;;  %v2255_v54 = vpack.c.bf16 %v2171_v57, %v2169_v0  ;;  %v1987_v60 = vadd.f32 %v1986_v32, %v9918_v24 }
 0x2e6   : > { %v1988_v47 = vpop.f32.mrf.mxu1 }
 0x2e7   : > { %v2256_v34 = vpack.c.bf16 %v2172_v17, %v2170_v16  ;;  %v1989_v39 = vadd.f32 %v1988_v47, %v9915_v15  ;;  %v2173_v25 = vmax.f32 %v1987_v60, 0.0 }
 0x2e8   : > { %v1990_v51 = vpop.f32.mrf.mxu1 }
 0x2e9   : > { %v1991_v50 = vadd.f32 %v1990_v51, %v9918_v24  ;;  %2723 = vmatprep.mubr.bf16.mxu0 %v2256_v34  ;;  %v2174_v43 = vmax.f32 %v1989_v39, 0.0 }
 0x2ea   : > { %v1992_v9 = vpop.f32.mrf.mxu1  ;;  %2724 = vmatmul.mubr.bf16.gmra.mxu0 %v2255_v54 }
 0x2eb   : > { %v1993_v10 = vadd.f32 %v1992_v9, %v9915_v15  ;;  %v2175_v2 = vmax.f32 %v1991_v50, 0.0 }
 0x2ec   : > { %v1996_v7 = vpop.f32.mrf.mxu1 }
 0x2ed   : > { %v2176_v42 = vmax.f32 %v1993_v10, 0.0  ;;  %v2257_v35 = vpack.c.bf16 %v2175_v2, %v2173_v25  ;;  %v1997_v48 = vadd.f32 %v1996_v7, %v9918_v24 }
 0x2ee   : > { %v1998_v59 = vpop.f32.mrf.mxu1 }
 0x2ef   : > { %v2258_v56 = vpack.c.bf16 %v2176_v42, %v2174_v43  ;;  %v1999_v33 = vadd.f32 %v1998_v59, %v9915_v15  ;;  %v2177_v34 = vmax.f32 %v1997_v48, 0.0 }
 0x2f0   : > { %v2000_v63 = vpop.f32.mrf.mxu1 }
 0x2f1   : > { %v2001_v28 = vadd.f32 %v2000_v63, %v9918_v24  ;;  %2733 = vmatprep.mubr.bf16.mxu0 %v2258_v56  ;;  %v2178_v57 = vmax.f32 %v1999_v33, 0.0 }
 0x2f2   : > { %v2002_v62 = vpop.f32.mrf.mxu1  ;;  %2734 = vmatmul.mubr.bf16.gmra.mxu0 %v2257_v35  ;;  %v8570_v35 = vld [vmem:[%s12351_s9 + $0xd4] ss:$8 sps:$4 sm:$0xff]  }
 0x2f3   : > { %v2003_v32 = vadd.f32 %v2002_v62, %v9915_v15  ;;  %v2179_v17 = vmax.f32 %v2001_v28, 0.0  ;;  %3999 = vmatprep.subr.bf16.mxu0 %v8570_v35 }
 0x2f4   : > { %v2006_v16 = vpop.f32.mrf.mxu1  ;;  %4000 = vmatpush2.bf16.msra.mxu0 %v8568_v38 }
 0x2f5   : > { %v2180_v47 = vmax.f32 %v2003_v32, 0.0  ;;  %v2259_v39 = vpack.c.bf16 %v2179_v17, %v2177_v34  ;;  %v2007_v10 = vadd.f32 %v2006_v16, %v9918_v24 }
 0x2f6   : > { %v2008_v0 = vpop.f32.mrf.mxu1 }
 0x2f7   : > { %v2260_v51 = vpack.c.bf16 %v2180_v47, %v2178_v57  ;;  %v2009_v50 = vadd.f32 %v2008_v0, %v9915_v15  ;;  %v2181_v56 = vmax.f32 %v2007_v10, 0.0  ;;  %v2309_v57 = vld [vmem:[#allocation7] sm:$0x3] }
 0x2f8   : > { %v2010_v54 = vpop.f32.mrf.mxu1 }
 0x2f9   : > { %v2011_v9 = vadd.f32 %v2010_v54, %v9918_v24  ;;  %2743 = vmatprep.mubr.bf16.mxu0 %v2260_v51  ;;  %v2182_v2 = vmax.f32 %v2009_v50, 0.0  ;;  %v10145_v54 = vrot.slane %v2309_v57, %v9647_v23  ;;  %v10148_v50 = vrot.slane %v2309_v57, %v9655_v26 }
 0x2fa   : > { %v2012_v60 = vpop.f32.mrf.mxu1  ;;  %2744 = vmatmul.mubr.bf16.gmra.mxu0 %v2259_v39 }
 0x2fb   : > { %v2013_v7 = vadd.f32 %v2012_v60, %v9915_v15  ;;  %v2183_v42 = vmax.f32 %v2011_v9, 0.0 }
 0x2fc   : > { %v2016_v43 = vpop.f32.mrf.mxu1 }
 0x2fd   : > { %v2184_v59 = vmax.f32 %v2013_v7, 0.0  ;;  %v2261_v33 = vpack.c.bf16 %v2183_v42, %v2181_v56  ;;  %v2017_v32 = vadd.f32 %v2016_v43, %v9918_v24 }
 0x2fe   : > { %v2018_v25 = vpop.f32.mrf.mxu1 }
 0x2ff   : > { %v2262_v63 = vpack.c.bf16 %v2184_v59, %v2182_v2  ;;  %v2019_v28 = vadd.f32 %v2018_v25, %v9915_v15  ;;  %v2185_v9 = vmax.f32 %v2017_v32, 0.0 }
 0x300   : > { %v2020_v19 = vpop.f32.mrf.mxu1 }
 0x301   : > { %v2021_v62 = vadd.f32 %v2020_v19, %v9918_v24  ;;  %2753 = vmatprep.mubr.bf16.mxu0 %v2262_v63  ;;  %v2186_v47 = vmax.f32 %v2019_v28, 0.0 }
 0x302   : > { %v2022_v48 = vpop.f32.mrf.mxu1  ;;  %v2515_v17 = vpop.f32.mrf.mxu0  ;;  %2754 = vmatmul.mubr.bf16.gmra.mxu0 %v2261_v33 }
 0x303   : > { %v2023_v16 = vadd.f32 %v2022_v48, %v9915_v15  ;;  %v2187_v0 = vmax.f32 %v2021_v62, 0.0  ;;  %v2516_v56 = vadd.f32 %v2515_v17, %v10148_v50 }
 0x304   : > { %v2026_v51 = vpop.f32.mrf.mxu1  ;;  %v2517_v39 = vpop.f32.mrf.mxu0 }
 0x305   : > { %v2188_v34 = vmax.f32 %v2023_v16, 0.0  ;;  %v2263_v2 = vpack.c.bf16 %v2187_v0, %v2185_v9  ;;  %v2518_v42 = vadd.f32 %v2517_v39, %v10145_v54  ;;  %v2027_v28 = vadd.f32 %v2026_v51, %v9918_v24  ;;  %v8571_v51 = vld [vmem:[%s12351_s9 + $0xc0] ss:$8 sps:$4 sm:$0xff]  }
 0x306   : > { %v2028_v60 = vpop.f32.mrf.mxu1  ;;  %v2519_v10 = vpop.f32.mrf.mxu0  ;;  %v2834_v0 = vmax.f32 %v2516_v56, 0.0 }
 0x307   : > { %v2264_v7 = vpack.c.bf16 %v2188_v34, %v2186_v47  ;;  %v2520_v43 = vadd.f32 %v2519_v10, %v10148_v50  ;;  %v2029_v38 = vadd.f32 %v2028_v60, %v9915_v15  ;;  %v2835_v16 = vmax.f32 %v2518_v42, 0.0 }
 0x308   : > { %v2030_v59 = vpop.f32.mrf.mxu1  ;;  %v2521_v25 = vpop.f32.mrf.mxu0  ;;  %v2189_v60 = vmax.f32 %v2027_v28, 0.0 }
 0x309   : > { %2763 = vmatprep.mubr.bf16.mxu0 %v2264_v7  ;;  %v2031_v63 = vadd.f32 %v2030_v59, %v9918_v24  ;;  %v2522_v19 = vadd.f32 %v2521_v25, %v10145_v54  ;;  %v2836_v62 = vmax.f32 %v2520_v43, 0.0  ;;  %v2190_v39 = vmax.f32 %v2029_v38, 0.0  ;;  %v8573_v43 = vld [vmem:[%s12351_s9 + $0xc4] ss:$8 sps:$4 sm:$0xff]  }
 0x30a   : > { %v2032_v35 = vpop.f32.mrf.mxu1  ;;  %v2525_v33 = vpop.f32.mrf.mxu0  ;;  %2764 = vmatmul.mubr.bf16.gmra.mxu0 %v2263_v2  ;;  %4001 = vmatprep.subr.bf16.mxu0 %v8573_v43 }
 0x30b   : > { %v2837_v48 = vmax.f32 %v2522_v19, 0.0  ;;  %v2033_v32 = vadd.f32 %v2032_v35, %v9915_v15  ;;  %v2191_v17 = vmax.f32 %v2031_v63, 0.0  ;;  %v2962_v59 = vpack.c.bf16 %v2836_v62, %v2834_v0  ;;  %4002 = vmatpush2.bf16.msra.mxu0 %v8571_v51 }
 0x30c   : > { %v2036_v57 = vpop.f32.mrf.mxu1  ;;  %v2527_v47 = vpop.f32.mrf.mxu0  ;;  %v2526_v42 = vadd.f32 %v2525_v33, %v10148_v50 }
 0x30d   : > { %v2192_v34 = vmax.f32 %v2033_v32, 0.0  ;;  %v2963_v7 = vpack.c.bf16 %v2837_v48, %v2835_v16  ;;  %v2528_v25 = vadd.f32 %v2527_v47, %v10145_v54  ;;  %v2265_v38 = vpack.c.bf16 %v2191_v17, %v2189_v60 }
 0x30e   : > { %v2038_v9 = vpop.f32.mrf.mxu1  ;;  %v2529_v10 = vpop.f32.mrf.mxu0  ;;  %v2037_v33 = vadd.f32 %v2036_v57, %v9918_v24 }
 0x30f   : > { %v2530_v2 = vadd.f32 %v2529_v10, %v10148_v50  ;;  %3262 = vmatprep.mubr.bf16.mxu1 %v2963_v7  ;;  %v2266_v19 = vpack.c.bf16 %v2192_v34, %v2190_v39  ;;  %v2039_v62 = vadd.f32 %v2038_v9, %v9915_v15  ;;  %v2839_v17 = vmax.f32 %v2528_v25, 0.0 }
 0x310   : > { %v2040_v56 = vpop.f32.mrf.mxu1  ;;  %v2531_v63 = vpop.f32.mrf.mxu0  ;;  %3263 = vmatmul.mubr.bf16.vlgmr.msra.gmra.mxu1 %v2962_v59  ;;  %v2838_v10 = vmax.f32 %v2526_v42, 0.0 }
 0x311   : > { %v2041_v35 = vadd.f32 %v2040_v56, %v9918_v24  ;;  %v2532_v28 = vadd.f32 %v2531_v63, %v10145_v54  ;;  %2773 = vmatprep.mubr.bf16.mxu0 %v2266_v19  ;;  %v2840_v16 = vmax.f32 %v2530_v2, 0.0  ;;  %v2194_v59 = vmax.f32 %v2039_v62, 0.0 }
 0x312   : > { %v2042_v48 = vpop.f32.mrf.mxu1  ;;  %v2535_v32 = vpop.f32.mrf.mxu0  ;;  %2774 = vmatmul.mubr.bf16.gmra.mxu0 %v2265_v38  ;;  %v2193_v63 = vmax.f32 %v2037_v33, 0.0 }
 0x313   : > { %v2841_v47 = vmax.f32 %v2532_v28, 0.0  ;;  %v2043_v0 = vadd.f32 %v2042_v48, %v9915_v15  ;;  %v2195_v7 = vmax.f32 %v2041_v35, 0.0  ;;  %v2964_v19 = vpack.c.bf16 %v2840_v16, %v2838_v10 }
 0x314   : > { %v2046_v34 = vpop.f32.mrf.mxu1  ;;  %v2537_v39 = vpop.f32.mrf.mxu0  ;;  %v2536_v48 = vadd.f32 %v2535_v32, %v10148_v50 }
 0x315   : > { %v2196_v60 = vmax.f32 %v2043_v0, 0.0  ;;  %v2965_v56 = vpack.c.bf16 %v2841_v47, %v2839_v17  ;;  %v2538_v57 = vadd.f32 %v2537_v39, %v10145_v54  ;;  %v2267_v25 = vpack.c.bf16 %v2195_v7, %v2193_v63 }
 0x316   : > { %v2048_v43 = vpop.f32.mrf.mxu1  ;;  %v2539_v9 = vpop.f32.mrf.mxu0  ;;  %v2047_v47 = vadd.f32 %v2046_v34, %v9918_v24  ;;  %v8574_v34 = vld [vmem:[%s12351_s9 + $0xb0] ss:$8 sps:$4 sm:$0xff]  }
 0x317   : > { %v2540_v51 = vadd.f32 %v2539_v9, %v10148_v50  ;;  %3272 = vmatprep.mubr.bf16.mxu1 %v2965_v56  ;;  %v2268_v38 = vpack.c.bf16 %v2196_v60, %v2194_v59  ;;  %v2049_v62 = vadd.f32 %v2048_v43, %v9915_v15  ;;  %v2843_v10 = vmax.f32 %v2538_v57, 0.0 }
 0x318   : > { %v2050_v2 = vpop.f32.mrf.mxu1  ;;  %v2541_v28 = vpop.f32.mrf.mxu0  ;;  %3273 = vmatmul.mubr.bf16.gmra.mxu1 %v2964_v19  ;;  %v2842_v60 = vmax.f32 %v2536_v48, 0.0 }
 0x319   : > { %v2051_v42 = vadd.f32 %v2050_v2, %v9918_v24  ;;  %v2542_v35 = vadd.f32 %v2541_v28, %v10145_v54  ;;  %2783 = vmatprep.mubr.bf16.mxu0 %v2268_v38  ;;  %v2844_v0 = vmax.f32 %v2540_v51, 0.0  ;;  %v2198_v56 = vmax.f32 %v2049_v62, 0.0  ;;  %v8576_v51 = vld [vmem:[%s12351_s9 + $0xb4] ss:$8 sps:$4 sm:$0xff]  }
 0x31a   : > { %v2052_v33 = vpop.f32.mrf.mxu1  ;;  %v2545_v16 = vpop.f32.mrf.mxu0  ;;  %2784 = vmatmul.mubr.bf16.gmra.mxu0 %v2267_v25  ;;  %v2197_v2 = vmax.f32 %v2047_v47, 0.0  ;;  %4003 = vmatprep.subr.bf16.mxu0 %v8576_v51 }
 0x31b   : > { %v2845_v17 = vmax.f32 %v2542_v35, 0.0  ;;  %v2053_v39 = vadd.f32 %v2052_v33, %v9915_v15  ;;  %v2199_v59 = vmax.f32 %v2051_v42, 0.0  ;;  %v2966_v28 = vpack.c.bf16 %v2844_v0, %v2842_v60  ;;  %4004 = vmatpush2.bf16.msra.mxu0 %v8574_v34 }
 0x31c   : > { %v2056_v7 = vpop.f32.mrf.mxu1  ;;  %v2547_v32 = vpop.f32.mrf.mxu0  ;;  %v2546_v57 = vadd.f32 %v2545_v16, %v10148_v50 }
 0x31d   : > { %v2200_v9 = vmax.f32 %v2053_v39, 0.0  ;;  %v2967_v43 = vpack.c.bf16 %v2845_v17, %v2843_v10  ;;  %v2548_v25 = vadd.f32 %v2547_v32, %v10145_v54  ;;  %v2269_v62 = vpack.c.bf16 %v2199_v59, %v2197_v2 }
 0x31e   : > { %v2058_v63 = vpop.f32.mrf.mxu1  ;;  %v2549_v19 = vpop.f32.mrf.mxu0  ;;  %v2057_v16 = vadd.f32 %v2056_v7, %v9918_v24 }
 0x31f   : > { %v2550_v38 = vadd.f32 %v2549_v19, %v10148_v50  ;;  %3282 = vmatprep.mubr.bf16.mxu1 %v2967_v43  ;;  %v2270_v35 = vpack.c.bf16 %v2200_v9, %v2198_v56  ;;  %v2059_v0 = vadd.f32 %v2058_v63, %v9915_v15  ;;  %v2847_v59 = vmax.f32 %v2548_v25, 0.0 }
 0x320   : > { %v2060_v48 = vpop.f32.mrf.mxu1  ;;  %v2551_v42 = vpop.f32.mrf.mxu0  ;;  %3283 = vmatmul.mubr.bf16.gmra.mxu1 %v2966_v28  ;;  %v2846_v19 = vmax.f32 %v2546_v57, 0.0 }
 0x321   : > { %v2061_v33 = vadd.f32 %v2060_v48, %v9918_v24  ;;  %v2552_v47 = vadd.f32 %v2551_v42, %v10145_v54  ;;  %2793 = vmatprep.mubr.bf16.mxu0 %v2270_v35  ;;  %v2848_v10 = vmax.f32 %v2550_v38, 0.0  ;;  %v2202_v28 = vmax.f32 %v2059_v0, 0.0 }
 0x322   : > { %v2062_v17 = vpop.f32.mrf.mxu1  ;;  %v2555_v39 = vpop.f32.mrf.mxu0  ;;  %2794 = vmatmul.mubr.bf16.gmra.mxu0 %v2269_v62  ;;  %v2201_v42 = vmax.f32 %v2057_v16, 0.0 }
 0x323   : > { %v2849_v32 = vmax.f32 %v2552_v47, 0.0  ;;  %v2063_v60 = vadd.f32 %v2062_v17, %v9915_v15  ;;  %v2203_v43 = vmax.f32 %v2061_v33, 0.0  ;;  %v2968_v35 = vpack.c.bf16 %v2848_v10, %v2846_v19 }
 0x324   : > { %v2066_v9 = vpop.f32.mrf.mxu1  ;;  %v2557_v56 = vpop.f32.mrf.mxu0  ;;  %v2556_v17 = vadd.f32 %v2555_v39, %v10148_v50 }
 0x325   : > { %v2204_v2 = vmax.f32 %v2063_v60, 0.0  ;;  %v2969_v48 = vpack.c.bf16 %v2849_v32, %v2847_v59  ;;  %v2558_v7 = vadd.f32 %v2557_v56, %v10145_v54  ;;  %v2271_v25 = vpack.c.bf16 %v2203_v43, %v2201_v42 }
 0x326   : > { %v2068_v51 = vpop.f32.mrf.mxu1  ;;  %v2559_v63 = vpop.f32.mrf.mxu0  ;;  %v2067_v0 = vadd.f32 %v2066_v9, %v9918_v24 }
 0x327   : > { %v2560_v34 = vadd.f32 %v2559_v63, %v10148_v50  ;;  %3292 = vmatprep.mubr.bf16.mxu1 %v2969_v48  ;;  %v2272_v62 = vpack.c.bf16 %v2204_v2, %v2202_v28  ;;  %v2069_v16 = vadd.f32 %v2068_v51, %v9915_v15  ;;  %v2851_v19 = vmax.f32 %v2558_v7, 0.0 }
 0x328   : > { %v2070_v38 = vpop.f32.mrf.mxu1  ;;  %v2561_v47 = vpop.f32.mrf.mxu0  ;;  %3293 = vmatmul.mubr.bf16.gmra.mxu1 %v2968_v35  ;;  %v2850_v28 = vmax.f32 %v2556_v17, 0.0  ;;  %v2205_v48 = vmax.f32 %v2067_v0, 0.0  ;;  %v8577_v0 = vld [vmem:[%s12351_s9 + $0xa0] ss:$8 sps:$4 sm:$0xff]  }
 0x329   : > { %v2071_v57 = vadd.f32 %v2070_v38, %v9918_v24  ;;  %v2562_v33 = vadd.f32 %v2561_v47, %v10145_v54  ;;  %2803 = vmatprep.mubr.bf16.mxu0 %v2272_v62  ;;  %v2852_v60 = vmax.f32 %v2560_v34, 0.0  ;;  %v2206_v42 = vmax.f32 %v2069_v16, 0.0  ;;  %v8579_v62 = vld [vmem:[%s12351_s9 + $0xa4] ss:$8 sps:$4 sm:$0xff]   ;;  %v8580_v16 = vld [vmem:[%s12354_s12] ss:$8 sps:$4 sm:$0xff]  }
 0x32a   : > { %v2072_v10 = vpop.f32.mrf.mxu1  ;;  %v2565_v32 = vpop.f32.mrf.mxu0  ;;  %2804 = vmatmul.mubr.bf16.gmra.mxu0 %v2271_v25  ;;  %4005 = vmatprep.subr.bf16.mxu0 %v8579_v62 }
 0x32b   : > { %v2853_v59 = vmax.f32 %v2562_v33, 0.0  ;;  %v2073_v56 = vadd.f32 %v2072_v10, %v9915_v15  ;;  %v2207_v43 = vmax.f32 %v2071_v57, 0.0  ;;  %v2970_v51 = vpack.c.bf16 %v2852_v60, %v2850_v28  ;;  %v8582_v10 = vld [vmem:[%s12354_s12 + $0x4] ss:$8 sps:$4 sm:$0xff]   ;;  %4006 = vmatpush2.bf16.msra.mxu0 %v8577_v0 }
 0x32c   : > { %v2076_v39 = vpop.f32.mrf.mxu1  ;;  %v2567_v2 = vpop.f32.mrf.mxu0  ;;  %v2566_v25 = vadd.f32 %v2565_v32, %v10148_v50  ;;  %4582 = vmatprep.subr.bf16.mxu1 %v8582_v10 }
 0x32d   : > { %v2208_v63 = vmax.f32 %v2073_v56, 0.0  ;;  %v2971_v38 = vpack.c.bf16 %v2853_v59, %v2851_v19  ;;  %v2568_v47 = vadd.f32 %v2567_v2, %v10145_v54  ;;  %v2273_v7 = vpack.c.bf16 %v2207_v43, %v2205_v48  ;;  %4583 = vmatpush1.bf16.msra.mxu1 %v8580_v16 }
 0x32e   : > { %v2078_v35 = vpop.f32.mrf.mxu1  ;;  %v2569_v9 = vpop.f32.mrf.mxu0  ;;  %v2077_v56 = vadd.f32 %v2076_v39, %v9918_v24 }
 0x32f   : > { %v2570_v34 = vadd.f32 %v2569_v9, %v10148_v50  ;;  %3302 = vmatprep.mubr.bf16.mxu1 %v2971_v38  ;;  %v2274_v33 = vpack.c.bf16 %v2208_v63, %v2206_v42  ;;  %v2079_v60 = vadd.f32 %v2078_v35, %v9915_v15  ;;  %v2855_v2 = vmax.f32 %v2568_v47, 0.0 }
 0x330   : > { %v2080_v17 = vpop.f32.mrf.mxu1  ;;  %v2571_v57 = vpop.f32.mrf.mxu0  ;;  %3303 = vmatmul.mubr.bf16.gmra.mxu1 %v2970_v51  ;;  %v2854_v42 = vmax.f32 %v2566_v25, 0.0 }
 0x331   : > { %v2081_v32 = vadd.f32 %v2080_v17, %v9918_v24  ;;  %v2572_v59 = vadd.f32 %v2571_v57, %v10145_v54  ;;  %2813 = vmatprep.mubr.bf16.mxu0 %v2274_v33  ;;  %v2856_v28 = vmax.f32 %v2570_v34, 0.0  ;;  %v2210_v9 = vmax.f32 %v2079_v60, 0.0 }
 0x332   : > { %v2082_v19 = vpop.f32.mrf.mxu1  ;;  %v2575_v43 = vpop.f32.mrf.mxu0  ;;  %2814 = vmatmul.mubr.bf16.gmra.mxu0 %v2273_v7  ;;  %v2209_v17 = vmax.f32 %v2077_v56, 0.0 }
 0x333   : > { %v2857_v63 = vmax.f32 %v2572_v59, 0.0  ;;  %v2083_v48 = vadd.f32 %v2082_v19, %v9915_v15  ;;  %v2211_v38 = vmax.f32 %v2081_v32, 0.0  ;;  %v2972_v39 = vpack.c.bf16 %v2856_v28, %v2854_v42 }
 0x334   : > { %v2577_v35 = vpop.f32.mrf.mxu0  ;;  %v2576_v7 = vadd.f32 %v2575_v43, %v10148_v50  ;;  %v8583_v43 = vld [vmem:[%s12351_s9 + $0x90] ss:$8 sps:$4 sm:$0xff]  }
 0x335   : > { %v2212_v51 = vmax.f32 %v2083_v48, 0.0  ;;  %v2973_v62 = vpack.c.bf16 %v2857_v63, %v2855_v2  ;;  %v2578_v57 = vadd.f32 %v2577_v35, %v10145_v54  ;;  %v2275_v15 = vpack.c.bf16 %v2211_v38, %v2209_v17  ;;  %v8585_v48 = vld [vmem:[%s12351_s9 + $0x94] ss:$8 sps:$4 sm:$0xff]  }
 0x336   : > { %v2579_v24 = vpop.f32.mrf.mxu0  ;;  %v2858_v59 = vmax.f32 %v2576_v7, 0.0  ;;  %4007 = vmatprep.subr.bf16.mxu0 %v8585_v48  ;;  %v8586_v48 = vld [vmem:[%s12351_s9 + $0x80] ss:$8 sps:$4 sm:$0xff]  }
 0x337   : > { %v2580_v47 = vadd.f32 %v2579_v24, %v10148_v50  ;;  %3312 = vmatprep.mubr.bf16.mxu1 %v2973_v62  ;;  %v2276_v34 = vpack.c.bf16 %v2212_v51, %v2210_v9  ;;  %v2859_v16 = vmax.f32 %v2578_v57, 0.0  ;;  %4008 = vmatpush2.bf16.msra.mxu0 %v8583_v43 }
 0x338   : > { %v2581_v33 = vpop.f32.mrf.mxu0  ;;  %3313 = vmatmul.mubr.bf16.gmra.mxu1 %v2972_v39 }
 0x339   : > { %v2582_v25 = vadd.f32 %v2581_v33, %v10145_v54  ;;  %2823 = vmatprep.mubr.bf16.mxu0 %v2276_v34  ;;  %v2860_v10 = vmax.f32 %v2580_v47, 0.0 }
 0x33a   : > { %v2585_v0 = vpop.f32.mrf.mxu0  ;;  %2824 = vmatmul.mubr.bf16.gmra.mxu0 %v2275_v15 }
 0x33b   : > { %v2861_v60 = vmax.f32 %v2582_v25, 0.0  ;;  %v2974_v2 = vpack.c.bf16 %v2860_v10, %v2858_v59  ;;  %v2586_v35 = vadd.f32 %v2585_v0, %v10148_v50 }
 0x33c   : > { %v2587_v32 = vpop.f32.mrf.mxu0 }
 0x33d   : > { %v2975_v56 = vpack.c.bf16 %v2861_v60, %v2859_v16  ;;  %v2588_v28 = vadd.f32 %v2587_v32, %v10145_v54  ;;  %v2862_v39 = vmax.f32 %v2586_v35, 0.0 }
 0x33e   : > { %v2589_v19 = vpop.f32.mrf.mxu0 }
 0x33f   : > { %v2590_v63 = vadd.f32 %v2589_v19, %v10148_v50  ;;  %3322 = vmatprep.mubr.bf16.mxu1 %v2975_v56  ;;  %v2863_v51 = vmax.f32 %v2588_v28, 0.0 }
 0x340   : > { %v2591_v42 = vpop.f32.mrf.mxu0  ;;  %3323 = vmatmul.mubr.bf16.gmra.mxu1 %v2974_v2 }
 0x341   : > { %v2592_v9 = vadd.f32 %v2591_v42, %v10145_v54  ;;  %v2864_v62 = vmax.f32 %v2590_v63, 0.0  ;;  %v8588_v42 = vld [vmem:[%s12351_s9 + $0x84] ss:$8 sps:$4 sm:$0xff]  }
 0x342   : > { %v2595_v38 = vpop.f32.mrf.mxu0  ;;  %4009 = vmatprep.subr.bf16.mxu0 %v8588_v42 }
 0x343   : > { %v2865_v17 = vmax.f32 %v2592_v9, 0.0  ;;  %v2976_v34 = vpack.c.bf16 %v2864_v62, %v2862_v39  ;;  %v2596_v25 = vadd.f32 %v2595_v38, %v10148_v50  ;;  %4010 = vmatpush2.bf16.msra.mxu0 %v8586_v48 }
 0x344   : > { %v2597_v24 = vpop.f32.mrf.mxu0 }
 0x345   : > { %v2977_v57 = vpack.c.bf16 %v2865_v17, %v2863_v51  ;;  %v2598_v33 = vadd.f32 %v2597_v24, %v10145_v54  ;;  %v2866_v56 = vmax.f32 %v2596_v25, 0.0 }
 0x346   : > { %v2599_v47 = vpop.f32.mrf.mxu0 }
 0x347   : > { %v2600_v15 = vadd.f32 %v2599_v47, %v10148_v50  ;;  %3332 = vmatprep.mubr.bf16.mxu1 %v2977_v57  ;;  %v2867_v10 = vmax.f32 %v2598_v33, 0.0 }
 0x348   : > { %v2601_v7 = vpop.f32.mrf.mxu0  ;;  %3333 = vmatmul.mubr.bf16.gmra.mxu1 %v2976_v34 }
 0x349   : > { %v2602_v0 = vadd.f32 %v2601_v7, %v10145_v54  ;;  %v2868_v60 = vmax.f32 %v2600_v15, 0.0 }
 0x34a   : > { %v2605_v16 = vpop.f32.mrf.mxu0 }
 0x34b   : > { %v2869_v32 = vmax.f32 %v2602_v0, 0.0  ;;  %v2978_v28 = vpack.c.bf16 %v2868_v60, %v2866_v56  ;;  %v2606_v9 = vadd.f32 %v2605_v16, %v10148_v50 }
 0x34c   : > { %v2607_v59 = vpop.f32.mrf.mxu0 }
 0x34d   : > { %v2979_v19 = vpack.c.bf16 %v2869_v32, %v2867_v10  ;;  %v2608_v63 = vadd.f32 %v2607_v59, %v10145_v54  ;;  %v2870_v57 = vmax.f32 %v2606_v9, 0.0 }
 0x34e   : > { %v2609_v2 = vpop.f32.mrf.mxu0 }
 0x34f   : > { %v2610_v43 = vadd.f32 %v2609_v2, %v10148_v50  ;;  %3342 = vmatprep.mubr.bf16.mxu1 %v2979_v19  ;;  %v2871_v62 = vmax.f32 %v2608_v63, 0.0 }
 0x350   : > { %v2611_v35 = vpop.f32.mrf.mxu0  ;;  %3343 = vmatmul.mubr.bf16.gmra.mxu1 %v2978_v28 }
 0x351   : > { %v2612_v38 = vadd.f32 %v2611_v35, %v10145_v54  ;;  %v2872_v17 = vmax.f32 %v2610_v43, 0.0 }
 0x352   : > { %v2615_v51 = vpop.f32.mrf.mxu0 }
 0x353   : > { %v2873_v24 = vmax.f32 %v2612_v38, 0.0  ;;  %v2980_v33 = vpack.c.bf16 %v2872_v17, %v2870_v57  ;;  %v2616_v0 = vadd.f32 %v2615_v51, %v10148_v50  ;;  %v8591_v51 = vld [vmem:[%s12353_s11 + $0x74] ss:$8 sps:$4 sm:$0xff]  }
 0x354   : > { %v2617_v39 = vpop.f32.mrf.mxu0  ;;  %5081 = vmatprep.subr.bf16.mxu0 %v8591_v51 }
 0x355   : > { %v2981_v47 = vpack.c.bf16 %v2873_v24, %v2871_v62  ;;  %v2618_v15 = vadd.f32 %v2617_v39, %v10145_v54  ;;  %v2874_v19 = vmax.f32 %v2616_v0, 0.0 }
 0x356   : > { %v2619_v34 = vpop.f32.mrf.mxu0 }
 0x357   : > { %v2620_v7 = vadd.f32 %v2619_v34, %v10148_v50  ;;  %3352 = vmatprep.mubr.bf16.mxu1 %v2981_v47  ;;  %v2875_v60 = vmax.f32 %v2618_v15, 0.0 }
 0x358   : > { %v2621_v25 = vpop.f32.mrf.mxu0  ;;  %3353 = vmatmul.mubr.bf16.gmra.mxu1 %v2980_v33 }
 0x359   : > { %v2622_v16 = vadd.f32 %v2621_v25, %v10145_v54  ;;  %v2876_v32 = vmax.f32 %v2620_v7, 0.0 }
 0x35a   : > { %v2625_v10 = vpop.f32.mrf.mxu0 }
 0x35b   : > { %v2877_v59 = vmax.f32 %v2622_v16, 0.0  ;;  %v2982_v63 = vpack.c.bf16 %v2876_v32, %v2874_v19  ;;  %v2626_v35 = vadd.f32 %v2625_v10, %v10148_v50 }
 0x35c   : > { %v2627_v56 = vpop.f32.mrf.mxu0 }
 0x35d   : > { %v2983_v2 = vpack.c.bf16 %v2877_v59, %v2875_v60  ;;  %v2628_v43 = vadd.f32 %v2627_v56, %v10145_v54  ;;  %v2878_v57 = vmax.f32 %v2626_v35, 0.0 }
 0x35e   : > { %v2629_v28 = vpop.f32.mrf.mxu0 }
 0x35f   : > { %v2630_v48 = vadd.f32 %v2629_v28, %v10148_v50  ;;  %3362 = vmatprep.mubr.bf16.mxu1 %v2983_v2  ;;  %v2879_v62 = vmax.f32 %v2628_v43, 0.0 }
 0x360   : > { %v2631_v42 = vpop.f32.mrf.mxu0  ;;  %3363 = vmatmul.mubr.bf16.gmra.mxu1 %v2982_v63 }
 0x361   : > { %v2632_v9 = vadd.f32 %v2631_v42, %v10145_v54  ;;  %v2880_v17 = vmax.f32 %v2630_v48, 0.0 }
 0x362   : > { %v2635_v38 = vpop.f32.mrf.mxu0 }
 0x363   : > { %v2881_v24 = vmax.f32 %v2632_v9, 0.0  ;;  %v2984_v33 = vpack.c.bf16 %v2880_v17, %v2878_v57  ;;  %v2636_v0 = vadd.f32 %v2635_v38, %v10148_v50 }
 0x364   : > { %v2637_v39 = vpop.f32.mrf.mxu0 }
 0x365   : > { %v2985_v47 = vpack.c.bf16 %v2881_v24, %v2879_v62  ;;  %v2638_v15 = vadd.f32 %v2637_v39, %v10145_v54  ;;  %v2882_v19 = vmax.f32 %v2636_v0, 0.0 }
 0x366   : > { %v2639_v34 = vpop.f32.mrf.mxu0 }
 0x367   : > { %v2640_v7 = vadd.f32 %v2639_v34, %v10148_v50  ;;  %3372 = vmatprep.mubr.bf16.mxu1 %v2985_v47  ;;  %v2883_v60 = vmax.f32 %v2638_v15, 0.0 }
 0x368   : > { %v2641_v25 = vpop.f32.mrf.mxu0  ;;  %3373 = vmatmul.mubr.bf16.gmra.mxu1 %v2984_v33 }
 0x369   : > { %v2642_v16 = vadd.f32 %v2641_v25, %v10145_v54  ;;  %v2884_v32 = vmax.f32 %v2640_v7, 0.0 }
 0x36a   : > { %v2645_v10 = vpop.f32.mrf.mxu0 }
 0x36b   : > { %v2885_v59 = vmax.f32 %v2642_v16, 0.0  ;;  %v2986_v63 = vpack.c.bf16 %v2884_v32, %v2882_v19  ;;  %v2646_v35 = vadd.f32 %v2645_v10, %v10148_v50 }
 0x36c   : > { %v2647_v56 = vpop.f32.mrf.mxu0 }
 0x36d   : > { %v2987_v2 = vpack.c.bf16 %v2885_v59, %v2883_v60  ;;  %v2648_v43 = vadd.f32 %v2647_v56, %v10145_v54  ;;  %v2886_v39 = vmax.f32 %v2646_v35, 0.0 }
 0x36e   : > { %v2649_v28 = vpop.f32.mrf.mxu0 }
 0x36f   : > { %v2650_v48 = vadd.f32 %v2649_v28, %v10148_v50  ;;  %3382 = vmatprep.mubr.bf16.mxu1 %v2987_v2  ;;  %v2887_v51 = vmax.f32 %v2648_v43, 0.0 }
 0x370   : > { %v2651_v42 = vpop.f32.mrf.mxu0  ;;  %3383 = vmatmul.mubr.bf16.gmra.mxu1 %v2986_v63 }
 0x371   : > { %v2652_v9 = vadd.f32 %v2651_v42, %v10145_v54  ;;  %v2888_v62 = vmax.f32 %v2650_v48, 0.0 }
 0x372   : > { %v2655_v38 = vpop.f32.mrf.mxu0 }
 0x373   : > { %v2889_v17 = vmax.f32 %v2652_v9, 0.0  ;;  %v2988_v34 = vpack.c.bf16 %v2888_v62, %v2886_v39  ;;  %v2656_v25 = vadd.f32 %v2655_v38, %v10148_v50 }
 0x374   : > { %v2657_v24 = vpop.f32.mrf.mxu0 }
 0x375   : > { %v2989_v57 = vpack.c.bf16 %v2889_v17, %v2887_v51  ;;  %v2658_v33 = vadd.f32 %v2657_v24, %v10145_v54  ;;  %v2890_v56 = vmax.f32 %v2656_v25, 0.0 }
 0x376   : > { %v2659_v47 = vpop.f32.mrf.mxu0 }
 0x377   : > { %v2660_v15 = vadd.f32 %v2659_v47, %v10148_v50  ;;  %3392 = vmatprep.mubr.bf16.mxu1 %v2989_v57  ;;  %v2891_v10 = vmax.f32 %v2658_v33, 0.0 }
 0x378   : > { %v2661_v7 = vpop.f32.mrf.mxu0  ;;  %3393 = vmatmul.mubr.bf16.gmra.mxu1 %v2988_v34 }
 0x379   : > { %v2662_v0 = vadd.f32 %v2661_v7, %v10145_v54  ;;  %v2892_v60 = vmax.f32 %v2660_v15, 0.0 }
 0x37a   : > { %v2665_v16 = vpop.f32.mrf.mxu0 }
 0x37b   : > { %v2893_v32 = vmax.f32 %v2662_v0, 0.0  ;;  %v2990_v28 = vpack.c.bf16 %v2892_v60, %v2890_v56  ;;  %v2666_v42 = vadd.f32 %v2665_v16, %v10148_v50 }
 0x37c   : > { %v2667_v59 = vpop.f32.mrf.mxu0 }
 0x37d   : > { %v2991_v19 = vpack.c.bf16 %v2893_v32, %v2891_v10  ;;  %v2668_v63 = vadd.f32 %v2667_v59, %v10145_v54  ;;  %v2894_v24 = vmax.f32 %v2666_v42, 0.0 }
 0x37e   : > { %v2669_v2 = vpop.f32.mrf.mxu0 }
 0x37f   : > { %v2670_v43 = vadd.f32 %v2669_v2, %v10148_v50  ;;  %3402 = vmatprep.mubr.bf16.mxu1 %v2991_v19  ;;  %v2895_v38 = vmax.f32 %v2668_v63, 0.0 }
 0x380   : > { %v2671_v48 = vpop.f32.mrf.mxu0  ;;  %3403 = vmatmul.mubr.bf16.gmra.mxu1 %v2990_v28 }
 0x381   : > { %v2672_v35 = vadd.f32 %v2671_v48, %v10145_v54  ;;  %v2896_v51 = vmax.f32 %v2670_v43, 0.0 }
 0x382   : > { %v2675_v9 = vpop.f32.mrf.mxu0 }
 0x383   : > { %v2897_v62 = vmax.f32 %v2672_v35, 0.0  ;;  %v2992_v47 = vpack.c.bf16 %v2896_v51, %v2894_v24  ;;  %v2676_v7 = vadd.f32 %v2675_v9, %v10148_v50 }
 0x384   : > { %v2677_v17 = vpop.f32.mrf.mxu0 }
 0x385   : > { %v2993_v39 = vpack.c.bf16 %v2897_v62, %v2895_v38  ;;  %v2678_v34 = vadd.f32 %v2677_v17, %v10145_v54  ;;  %v2898_v59 = vmax.f32 %v2676_v7, 0.0 }
 0x386   : > { %v2679_v57 = vpop.f32.mrf.mxu0 }
 0x387   : > { %v2680_v33 = vadd.f32 %v2679_v57, %v10148_v50  ;;  %3412 = vmatprep.mubr.bf16.mxu1 %v2993_v39  ;;  %v2899_v16 = vmax.f32 %v2678_v34, 0.0 }
 0x388   : > { %v2681_v15 = vpop.f32.mrf.mxu0  ;;  %3413 = vmatmul.mubr.bf16.gmra.mxu1 %v2992_v47 }
 0x389   : > { %v2682_v25 = vadd.f32 %v2681_v15, %v10145_v54  ;;  %v2900_v10 = vmax.f32 %v2680_v33, 0.0 }
 0x38a   : > { %v2685_v0 = vpop.f32.mrf.mxu0 }
 0x38b   : > { %v2901_v60 = vmax.f32 %v2682_v25, 0.0  ;;  %v2994_v2 = vpack.c.bf16 %v2900_v10, %v2898_v59  ;;  %v2686_v48 = vadd.f32 %v2685_v0, %v10148_v50 }
 0x38c   : > { %v2687_v32 = vpop.f32.mrf.mxu0 }
 0x38d   : > { %v2995_v56 = vpack.c.bf16 %v2901_v60, %v2899_v16  ;;  %v2688_v28 = vadd.f32 %v2687_v32, %v10145_v54  ;;  %v2902_v17 = vmax.f32 %v2686_v48, 0.0 }
 0x38e   : > { %v2689_v19 = vpop.f32.mrf.mxu0 }
 0x38f   : > { %v2690_v63 = vadd.f32 %v2689_v19, %v10148_v50  ;;  %3422 = vmatprep.mubr.bf16.mxu1 %v2995_v56  ;;  %v2903_v9 = vmax.f32 %v2688_v28, 0.0 }
 0x390   : > { %v2691_v43 = vpop.f32.mrf.mxu0  ;;  %3423 = vmatmul.mubr.bf16.gmra.mxu1 %v2994_v2 }
 0x391   : > { %v2692_v42 = vadd.f32 %v2691_v43, %v10145_v54  ;;  %v2904_v38 = vmax.f32 %v2690_v63, 0.0 }
 0x392   : > { %v2695_v35 = vpop.f32.mrf.mxu0 }
 0x393   : > { %v2905_v51 = vmax.f32 %v2692_v42, 0.0  ;;  %v2996_v57 = vpack.c.bf16 %v2904_v38, %v2902_v17  ;;  %v2696_v15 = vadd.f32 %v2695_v35, %v10148_v50 }
 0x394   : > { %v2697_v62 = vpop.f32.mrf.mxu0 }
 0x395   : > { %v2997_v24 = vpack.c.bf16 %v2905_v51, %v2903_v9  ;;  %v2698_v47 = vadd.f32 %v2697_v62, %v10145_v54  ;;  %v2906_v32 = vmax.f32 %v2696_v15, 0.0 }
 0x396   : > { %v2699_v39 = vpop.f32.mrf.mxu0 }
 0x397   : > { %v2700_v34 = vadd.f32 %v2699_v39, %v10148_v50  ;;  %3432 = vmatprep.mubr.bf16.mxu1 %v2997_v24  ;;  %v2907_v0 = vmax.f32 %v2698_v47, 0.0 }
 0x398   : > { %v2701_v33 = vpop.f32.mrf.mxu0  ;;  %3433 = vmatmul.mubr.bf16.gmra.mxu1 %v2996_v57 }
 0x399   : > { %v2702_v7 = vadd.f32 %v2701_v33, %v10145_v54  ;;  %v2908_v16 = vmax.f32 %v2700_v34, 0.0 }
 0x39a   : > { %v2705_v25 = vpop.f32.mrf.mxu0 }
 0x39b   : > { %v2909_v10 = vmax.f32 %v2702_v7, 0.0  ;;  %v2998_v19 = vpack.c.bf16 %v2908_v16, %v2906_v32  ;;  %v2706_v43 = vadd.f32 %v2705_v25, %v10148_v50 }
 0x39c   : > { %v2707_v60 = vpop.f32.mrf.mxu0 }
 0x39d   : > { %v2999_v59 = vpack.c.bf16 %v2909_v10, %v2907_v0  ;;  %v2708_v2 = vadd.f32 %v2707_v60, %v10145_v54  ;;  %v2910_v62 = vmax.f32 %v2706_v43, 0.0 }
 0x39e   : > { %v2709_v56 = vpop.f32.mrf.mxu0 }
 0x39f   : > { %v2710_v28 = vadd.f32 %v2709_v56, %v10148_v50  ;;  %3442 = vmatprep.mubr.bf16.mxu1 %v2999_v59  ;;  %v2911_v35 = vmax.f32 %v2708_v2, 0.0 }
 0x3a0   : > { %v2711_v63 = vpop.f32.mrf.mxu0  ;;  %3443 = vmatmul.mubr.bf16.gmra.mxu1 %v2998_v19 }
 0x3a1   : > { %v2712_v48 = vadd.f32 %v2711_v63, %v10145_v54  ;;  %v2912_v9 = vmax.f32 %v2710_v28, 0.0 }
 0x3a2   : > { %v2715_v42 = vpop.f32.mrf.mxu0 }
 0x3a3   : > { %v2913_v38 = vmax.f32 %v2712_v48, 0.0  ;;  %v3000_v39 = vpack.c.bf16 %v2912_v9, %v2910_v62  ;;  %v2716_v33 = vadd.f32 %v2715_v42, %v10148_v50 }
 0x3a4   : > { %v2717_v51 = vpop.f32.mrf.mxu0 }
 0x3a5   : > { %v3001_v17 = vpack.c.bf16 %v2913_v38, %v2911_v35  ;;  %v2718_v57 = vadd.f32 %v2717_v51, %v10145_v54  ;;  %v2914_v60 = vmax.f32 %v2716_v33, 0.0 }
 0x3a6   : > { %v2719_v24 = vpop.f32.mrf.mxu0 }
 0x3a7   : > { %v2720_v47 = vadd.f32 %v2719_v24, %v10148_v50  ;;  %3452 = vmatprep.mubr.bf16.mxu1 %v3001_v17  ;;  %v2915_v25 = vmax.f32 %v2718_v57, 0.0 }
 0x3a8   : > { %v2721_v34 = vpop.f32.mrf.mxu0  ;;  %3453 = vmatmul.mubr.bf16.gmra.mxu1 %v3000_v39 }
 0x3a9   : > { %v2722_v15 = vadd.f32 %v2721_v34, %v10145_v54  ;;  %v2916_v0 = vmax.f32 %v2720_v47, 0.0 }
 0x3aa   : > { %v2725_v7 = vpop.f32.mrf.mxu0 }
 0x3ab   : > { %v2917_v16 = vmax.f32 %v2722_v15, 0.0  ;;  %v3002_v56 = vpack.c.bf16 %v2916_v0, %v2914_v60  ;;  %v2726_v63 = vadd.f32 %v2725_v7, %v10148_v50 }
 0x3ac   : > { %v2727_v10 = vpop.f32.mrf.mxu0 }
 0x3ad   : > { %v3003_v32 = vpack.c.bf16 %v2917_v16, %v2915_v25  ;;  %v2728_v19 = vadd.f32 %v2727_v10, %v10145_v54  ;;  %v2918_v51 = vmax.f32 %v2726_v63, 0.0 }
 0x3ae   : > { %v2729_v59 = vpop.f32.mrf.mxu0 }
 0x3af   : > { %v2730_v2 = vadd.f32 %v2729_v59, %v10148_v50  ;;  %3462 = vmatprep.mubr.bf16.mxu1 %v3003_v32  ;;  %v2919_v42 = vmax.f32 %v2728_v19, 0.0 }
 0x3b0   : > { %v2731_v28 = vpop.f32.mrf.mxu0  ;;  %3463 = vmatmul.mubr.bf16.gmra.mxu1 %v3002_v56 }
 0x3b1   : > { %v2732_v43 = vadd.f32 %v2731_v28, %v10145_v54  ;;  %v2920_v35 = vmax.f32 %v2730_v2, 0.0 }
 0x3b2   : > { %v2735_v48 = vpop.f32.mrf.mxu0 }
 0x3b3   : > { %v2921_v9 = vmax.f32 %v2732_v43, 0.0  ;;  %v3004_v24 = vpack.c.bf16 %v2920_v35, %v2918_v51  ;;  %v2736_v34 = vadd.f32 %v2735_v48, %v10148_v50 }
 0x3b4   : > { %v2737_v38 = vpop.f32.mrf.mxu0 }
 0x3b5   : > { %v3005_v62 = vpack.c.bf16 %v2921_v9, %v2919_v42  ;;  %v2738_v39 = vadd.f32 %v2737_v38, %v10145_v54  ;;  %v2922_v10 = vmax.f32 %v2736_v34, 0.0 }
 0x3b6   : > { %v2739_v17 = vpop.f32.mrf.mxu0 }
 0x3b7   : > { %v2740_v57 = vadd.f32 %v2739_v17, %v10148_v50  ;;  %3472 = vmatprep.mubr.bf16.mxu1 %v3005_v62  ;;  %v2923_v7 = vmax.f32 %v2738_v39, 0.0 }
 0x3b8   : > { %v2741_v47 = vpop.f32.mrf.mxu0  ;;  %3473 = vmatmul.mubr.bf16.gmra.mxu1 %v3004_v24 }
 0x3b9   : > { %v2742_v33 = vadd.f32 %v2741_v47, %v10145_v54  ;;  %v2924_v25 = vmax.f32 %v2740_v57, 0.0 }
 0x3ba   : > { %v2745_v15 = vpop.f32.mrf.mxu0 }
 0x3bb   : > { %v2925_v0 = vmax.f32 %v2742_v33, 0.0  ;;  %v3006_v59 = vpack.c.bf16 %v2924_v25, %v2922_v10  ;;  %v2746_v28 = vadd.f32 %v2745_v15, %v10148_v50 }
 0x3bc   : > { %v2747_v16 = vpop.f32.mrf.mxu0 }
 0x3bd   : > { %v3007_v60 = vpack.c.bf16 %v2925_v0, %v2923_v7  ;;  %v2748_v56 = vadd.f32 %v2747_v16, %v10145_v54  ;;  %v2926_v38 = vmax.f32 %v2746_v28, 0.0 }
 0x3be   : > { %v2749_v32 = vpop.f32.mrf.mxu0 }
 0x3bf   : > { %v2750_v19 = vadd.f32 %v2749_v32, %v10148_v50  ;;  %3482 = vmatprep.mubr.bf16.mxu1 %v3007_v60  ;;  %v2927_v48 = vmax.f32 %v2748_v56, 0.0 }
 0x3c0   : > { %v2751_v2 = vpop.f32.mrf.mxu0  ;;  %3483 = vmatmul.mubr.bf16.gmra.mxu1 %v3006_v59 }
 0x3c1   : > { %v2752_v63 = vadd.f32 %v2751_v2, %v10145_v54  ;;  %v2928_v42 = vmax.f32 %v2750_v19, 0.0 }
 0x3c2   : > { %v2755_v43 = vpop.f32.mrf.mxu0 }
 0x3c3   : > { %v2929_v35 = vmax.f32 %v2752_v63, 0.0  ;;  %v3008_v17 = vpack.c.bf16 %v2928_v42, %v2926_v38  ;;  %v2756_v47 = vadd.f32 %v2755_v43, %v10148_v50  ;;  %v3058_v63 = vld [vmem:[#allocation9] sm:$0x3] }
 0x3c4   : > { %v2757_v9 = vpop.f32.mrf.mxu0  ;;  %v10318_v38 = vrot.slane %v3058_v63, %v9647_v23 }
 0x3c5   : > { %v3009_v51 = vpack.c.bf16 %v2929_v35, %v2927_v48  ;;  %v2758_v24 = vadd.f32 %v2757_v9, %v10145_v54  ;;  %v2930_v16 = vmax.f32 %v2756_v47, 0.0 }
 0x3c6   : > { %v2759_v62 = vpop.f32.mrf.mxu0 }
 0x3c7   : > { %v2760_v39 = vadd.f32 %v2759_v62, %v10148_v50  ;;  %3492 = vmatprep.mubr.bf16.mxu1 %v3009_v51  ;;  %v2931_v15 = vmax.f32 %v2758_v24, 0.0  ;;  %v10321_v62 = vrot.slane %v3058_v63, %v9655_v26 }
 0x3c8   : > { %v2761_v57 = vpop.f32.mrf.mxu0  ;;  %3493 = vmatmul.mubr.bf16.gmra.mxu1 %v3008_v17 }
 0x3c9   : > { %v2762_v34 = vadd.f32 %v2761_v57, %v10145_v54  ;;  %v2932_v7 = vmax.f32 %v2760_v39, 0.0 }
 0x3ca   : > { %v2765_v33 = vpop.f32.mrf.mxu0 }
 0x3cb   : > { %v2933_v25 = vmax.f32 %v2762_v34, 0.0  ;;  %v3010_v32 = vpack.c.bf16 %v2932_v7, %v2930_v16  ;;  %v2766_v2 = vadd.f32 %v2765_v33, %v10148_v50 }
 0x3cc   : > { %v2767_v0 = vpop.f32.mrf.mxu0 }
 0x3cd   : > { %v3011_v10 = vpack.c.bf16 %v2933_v25, %v2931_v15  ;;  %v2768_v59 = vadd.f32 %v2767_v0, %v10145_v54  ;;  %v2934_v17 = vmax.f32 %v2766_v2, 0.0 }
 0x3ce   : > { %v2769_v60 = vpop.f32.mrf.mxu0 }
 0x3cf   : > { %v2770_v56 = vadd.f32 %v2769_v60, %v10148_v50  ;;  %3502 = vmatprep.mubr.bf16.mxu1 %v3011_v10  ;;  %v2935_v48 = vmax.f32 %v2768_v59, 0.0 }
 0x3d0   : > { %v2771_v19 = vpop.f32.mrf.mxu0  ;;  %v3264_v43 = vpop.f32.mrf.mxu1  ;;  %3503 = vmatmul.mubr.bf16.gmra.mxu1 %v3010_v32 }
 0x3d1   : > { %v2772_v28 = vadd.f32 %v2771_v19, %v10145_v54  ;;  %v2936_v42 = vmax.f32 %v2770_v56, 0.0  ;;  %v3265_v25 = vadd.f32 %v3264_v43, %v10321_v62 }
 0x3d2   : > { %v2775_v9 = vpop.f32.mrf.mxu0  ;;  %v3266_v51 = vpop.f32.mrf.mxu1 }
 0x3d3   : > { %v2937_v35 = vmax.f32 %v2772_v28, 0.0  ;;  %v3012_v34 = vpack.c.bf16 %v2936_v42, %v2934_v17  ;;  %v3267_v33 = vadd.f32 %v3266_v51, %v10318_v38  ;;  %v2776_v59 = vadd.f32 %v2775_v9, %v10148_v50 }
 0x3d4   : > { %v2777_v24 = vpop.f32.mrf.mxu0  ;;  %v3268_v39 = vpop.f32.mrf.mxu1  ;;  %v3583_v42 = vmax.f32 %v3265_v25, 0.0 }
 0x3d5   : > { %v3013_v57 = vpack.c.bf16 %v2937_v35, %v2935_v48  ;;  %v3269_v47 = vadd.f32 %v3268_v39, %v10321_v62  ;;  %v2778_v10 = vadd.f32 %v2777_v24, %v10145_v54  ;;  %v3584_v28 = vmax.f32 %v3267_v33, 0.0  ;;  %v8589_v24 = vld [vmem:[%s12353_s11 + $0x70] ss:$8 sps:$4 sm:$0xff]   ;;  %v8594_v33 = vld [vmem:[%s12353_s11 + $0x64] ss:$8 sps:$4 sm:$0xff]  }
 0x3d6   : > { %v2779_v15 = vpop.f32.mrf.mxu0  ;;  %v3270_v7 = vpop.f32.mrf.mxu1 }
 0x3d7   : > { %3512 = vmatprep.mubr.bf16.mxu1 %v3013_v57  ;;  %v2780_v0 = vadd.f32 %v2779_v15, %v10148_v50  ;;  %v3271_v16 = vadd.f32 %v3270_v7, %v10318_v38  ;;  %v3585_v56 = vmax.f32 %v3269_v47, 0.0  ;;  %v2939_v51 = vmax.f32 %v2778_v10, 0.0 }
 0x3d8   : > { %v2781_v60 = vpop.f32.mrf.mxu0  ;;  %v3274_v32 = vpop.f32.mrf.mxu1  ;;  %3513 = vmatmul.mubr.bf16.gmra.mxu1 %v3012_v34  ;;  %v2938_v34 = vmax.f32 %v2776_v59, 0.0 }
 0x3d9   : > { %v3586_v19 = vmax.f32 %v3271_v16, 0.0  ;;  %v2782_v2 = vadd.f32 %v2781_v60, %v10145_v54  ;;  %v2940_v43 = vmax.f32 %v2780_v0, 0.0  ;;  %v3711_v9 = vpack.c.bf16 %v3585_v56, %v3583_v42 }
 0x3da   : > { %v2785_v63 = vpop.f32.mrf.mxu0  ;;  %v3276_v48 = vpop.f32.mrf.mxu1  ;;  %v3275_v10 = vadd.f32 %v3274_v32, %v10321_v62 }
 0x3db   : > { %v2941_v35 = vmax.f32 %v2782_v2, 0.0  ;;  %v3712_v57 = vpack.c.bf16 %v3586_v19, %v3584_v28  ;;  %v3277_v15 = vadd.f32 %v3276_v48, %v10318_v38  ;;  %v3014_v16 = vpack.c.bf16 %v2940_v43, %v2938_v34  ;;  %v8592_v28 = vld [vmem:[%s12353_s11 + $0x60] ss:$8 sps:$4 sm:$0xff]  }
 0x3dc   : > { %v2787_v17 = vpop.f32.mrf.mxu0  ;;  %v3278_v39 = vpop.f32.mrf.mxu1  ;;  %v2786_v48 = vadd.f32 %v2785_v63, %v10148_v50 }
 0x3dd   : > { %v3279_v47 = vadd.f32 %v3278_v39, %v10321_v62  ;;  %4011 = vmatprep.mubr.bf16.mxu0 %v3712_v57  ;;  %v3015_v0 = vpack.c.bf16 %v2941_v35, %v2939_v51  ;;  %v2788_v56 = vadd.f32 %v2787_v17, %v10145_v54  ;;  %v8597_v35 = vld [vmem:[%s12353_s11 + $0x54] ss:$8 sps:$4 sm:$0xff]   ;;  %v3588_v51 = vmax.f32 %v3277_v15, 0.0  ;;  %v8600_v15 = vld [vmem:[%s12353_s11 + $0x44] ss:$8 sps:$4 sm:$0xff]  }
 0x3de   : > { %v2789_v7 = vpop.f32.mrf.mxu0  ;;  %v3280_v25 = vpop.f32.mrf.mxu1  ;;  %4012 = vmatmul.mubr.bf16.vlgmr.msra.gmra.mxu0 %v3711_v9  ;;  %v3587_v57 = vmax.f32 %v3275_v10, 0.0 }
 0x3df   : > { %v2790_v60 = vadd.f32 %v2789_v7, %v10148_v50  ;;  %v3281_v59 = vadd.f32 %v3280_v25, %v10318_v38  ;;  %5082 = vmatpush1.bf16.msra.mxu0 %v8589_v24  ;;  %3522 = vmatprep.mubr.bf16.mxu1 %v3015_v0  ;;  %v3589_v42 = vmax.f32 %v3279_v47, 0.0  ;;  %v2943_v9 = vmax.f32 %v2788_v56, 0.0  ;;  %v8595_v47 = vld [vmem:[%s12353_s11 + $0x50] ss:$8 sps:$4 sm:$0xff]  }
 0x3e0   : > { %v2791_v19 = vpop.f32.mrf.mxu0  ;;  %v3284_v2 = vpop.f32.mrf.mxu1  ;;  %3523 = vmatmul.mubr.bf16.gmra.mxu1 %v3014_v16  ;;  %5083 = vmatprep.subr.bf16.mxu0 %v8594_v33  ;;  %v2942_v33 = vmax.f32 %v2786_v48, 0.0 }
 0x3e1   : > { %v3590_v43 = vmax.f32 %v3281_v59, 0.0  ;;  %v2792_v32 = vadd.f32 %v2791_v19, %v10145_v54  ;;  %v2944_v24 = vmax.f32 %v2790_v60, 0.0  ;;  %v3713_v0 = vpack.c.bf16 %v3589_v42, %v3587_v57 }
 0x3e2   : > { %v2795_v17 = vpop.f32.mrf.mxu0  ;;  %v3286_v39 = vpop.f32.mrf.mxu1 }
 0x3e3   : > { %v2945_v34 = vmax.f32 %v2792_v32, 0.0  ;;  %v3714_v63 = vpack.c.bf16 %v3590_v43, %v3588_v51  ;;  %5084 = vmatpush1.bf16.msra.mxu0 %v8592_v28  ;;  %v3287_v10 = vadd.f32 %v3286_v39, %v10318_v38  ;;  %v3016_v19 = vpack.c.bf16 %v2944_v24, %v2942_v33  ;;  %v8598_v51 = vld [vmem:[%s12353_s11 + $0x40] ss:$8 sps:$4 sm:$0xff]  }
 0x3e4   : > { %v2797_v7 = vpop.f32.mrf.mxu0  ;;  %v3288_v25 = vpop.f32.mrf.mxu1  ;;  %5085 = vmatprep.subr.bf16.mxu0 %v8597_v35  ;;  %v3285_v28 = vadd.f32 %v3284_v2, %v10321_v62  ;;  %v2796_v39 = vadd.f32 %v2795_v17, %v10148_v50 }
 0x3e5   : > { %v3289_v16 = vadd.f32 %v3288_v25, %v10321_v62  ;;  %4021 = vmatprep.mubr.bf16.mxu0 %v3714_v63  ;;  %v3017_v56 = vpack.c.bf16 %v2945_v34, %v2943_v9  ;;  %v2798_v42 = vadd.f32 %v2797_v7, %v10145_v54  ;;  %v8603_v34 = vld [vmem:[%s12353_s11 + $0x34] ss:$8 sps:$4 sm:$0xff]   ;;  %v3592_v9 = vmax.f32 %v3287_v10, 0.0  ;;  %v8606_v10 = vld [vmem:[%s12353_s11 + $0x24] ss:$8 sps:$4 sm:$0xff]  }
 0x3e6   : > { %v2799_v60 = vpop.f32.mrf.mxu0  ;;  %v3290_v59 = vpop.f32.mrf.mxu1  ;;  %4022 = vmatmul.mubr.bf16.gmra.mxu0 %v3713_v0  ;;  %v3591_v63 = vmax.f32 %v3285_v28, 0.0 }
 0x3e7   : > { %v2800_v43 = vadd.f32 %v2799_v60, %v10148_v50  ;;  %v3291_v48 = vadd.f32 %v3290_v59, %v10318_v38  ;;  %3532 = vmatprep.mubr.bf16.mxu1 %v3017_v56  ;;  %5086 = vmatpush1.bf16.msra.mxu0 %v8595_v47  ;;  %v3593_v57 = vmax.f32 %v3289_v16, 0.0  ;;  %v2947_v0 = vmax.f32 %v2798_v42, 0.0  ;;  %v8601_v16 = vld [vmem:[%s12353_s11 + $0x30] ss:$8 sps:$4 sm:$0xff]  }
 0x3e8   : > { %v2801_v32 = vpop.f32.mrf.mxu0  ;;  %v3294_v35 = vpop.f32.mrf.mxu1  ;;  %3533 = vmatmul.mubr.bf16.gmra.mxu1 %v3016_v19  ;;  %5087 = vmatprep.subr.bf16.mxu0 %v8600_v15  ;;  %v2946_v15 = vmax.f32 %v2796_v39, 0.0 }
 0x3e9   : > { %v3594_v24 = vmax.f32 %v3291_v48, 0.0  ;;  %v2802_v2 = vadd.f32 %v2801_v32, %v10145_v54  ;;  %v2948_v47 = vmax.f32 %v2800_v43, 0.0  ;;  %v3715_v56 = vpack.c.bf16 %v3593_v57, %v3591_v63 }
 0x3ea   : > { %v2805_v7 = vpop.f32.mrf.mxu0  ;;  %v3296_v25 = vpop.f32.mrf.mxu1 }
 0x3eb   : > { %v2949_v33 = vmax.f32 %v2802_v2, 0.0  ;;  %v3716_v17 = vpack.c.bf16 %v3594_v24, %v3592_v9  ;;  %5088 = vmatpush1.bf16.msra.mxu0 %v8598_v51  ;;  %v3297_v28 = vadd.f32 %v3296_v25, %v10318_v38  ;;  %v3018_v32 = vpack.c.bf16 %v2948_v47, %v2946_v15  ;;  %v8604_v9 = vld [vmem:[%s12353_s11 + $0x20] ss:$8 sps:$4 sm:$0xff]  }
 0x3ec   : > { %v2807_v60 = vpop.f32.mrf.mxu0  ;;  %v3298_v59 = vpop.f32.mrf.mxu1  ;;  %5089 = vmatprep.subr.bf16.mxu0 %v8603_v34  ;;  %v3295_v51 = vadd.f32 %v3294_v35, %v10321_v62  ;;  %v2806_v25 = vadd.f32 %v2805_v7, %v10148_v50 }
 0x3ed   : > { %v3299_v19 = vadd.f32 %v3298_v59, %v10321_v62  ;;  %4031 = vmatprep.mubr.bf16.mxu0 %v3716_v17  ;;  %v3019_v42 = vpack.c.bf16 %v2949_v33, %v2947_v0  ;;  %v2808_v57 = vadd.f32 %v2807_v60, %v10145_v54  ;;  %v8609_v33 = vld [vmem:[%s12353_s11 + $0x14] ss:$8 sps:$4 sm:$0xff]   ;;  %v3596_v0 = vmax.f32 %v3297_v28, 0.0  ;;  %v8612_v28 = vld [vmem:[%s12353_s11 + $0x4] ss:$8 sps:$4 sm:$0xff]  }
 0x3ee   : > { %v2809_v43 = vpop.f32.mrf.mxu0  ;;  %v3300_v48 = vpop.f32.mrf.mxu1  ;;  %4032 = vmatmul.mubr.bf16.gmra.mxu0 %v3715_v56  ;;  %v3595_v17 = vmax.f32 %v3295_v51, 0.0 }
 0x3ef   : > { %v2810_v24 = vadd.f32 %v2809_v43, %v10148_v50  ;;  %v3301_v39 = vadd.f32 %v3300_v48, %v10318_v38  ;;  %3542 = vmatprep.mubr.bf16.mxu1 %v3019_v42  ;;  %5090 = vmatpush1.bf16.msra.mxu0 %v8601_v16  ;;  %v3597_v63 = vmax.f32 %v3299_v19, 0.0  ;;  %v2951_v56 = vmax.f32 %v2808_v57, 0.0  ;;  %v8607_v19 = vld [vmem:[%s12353_s11 + $0x10] ss:$8 sps:$4 sm:$0xff]  }
 0x3f0   : > { %v2811_v2 = vpop.f32.mrf.mxu0  ;;  %v3304_v34 = vpop.f32.mrf.mxu1  ;;  %3543 = vmatmul.mubr.bf16.gmra.mxu1 %v3018_v32  ;;  %5091 = vmatprep.subr.bf16.mxu0 %v8606_v10  ;;  %v2950_v10 = vmax.f32 %v2806_v25, 0.0 }
 0x3f1   : > { %v3598_v47 = vmax.f32 %v3301_v39, 0.0  ;;  %v2812_v35 = vadd.f32 %v2811_v2, %v10145_v54  ;;  %v2952_v16 = vmax.f32 %v2810_v24, 0.0  ;;  %v3717_v42 = vpack.c.bf16 %v3597_v63, %v3595_v17 }
 0x3f2   : > { %v2815_v60 = vpop.f32.mrf.mxu0  ;;  %v3306_v59 = vpop.f32.mrf.mxu1 }
 0x3f3   : > { %v2953_v15 = vmax.f32 %v2812_v35, 0.0  ;;  %v3718_v7 = vpack.c.bf16 %v3598_v47, %v3596_v0  ;;  %5092 = vmatpush1.bf16.msra.mxu0 %v8604_v9  ;;  %v3307_v51 = vadd.f32 %v3306_v59, %v10318_v38  ;;  %v3020_v2 = vpack.c.bf16 %v2952_v16, %v2950_v10  ;;  %v8610_v0 = vld [vmem:[%s12353_s11] ss:$8 sps:$4 sm:$0xff]  }
 0x3f4   : > { %v2817_v43 = vpop.f32.mrf.mxu0  ;;  %v3308_v48 = vpop.f32.mrf.mxu1  ;;  %5093 = vmatprep.subr.bf16.mxu0 %v8609_v33  ;;  %v3305_v9 = vadd.f32 %v3304_v34, %v10321_v62  ;;  %v2816_v59 = vadd.f32 %v2815_v60, %v10148_v50 }
 0x3f5   : > { %v3309_v32 = vadd.f32 %v3308_v48, %v10321_v62  ;;  %4041 = vmatprep.mubr.bf16.mxu0 %v3718_v7  ;;  %v3021_v57 = vpack.c.bf16 %v2953_v15, %v2951_v56  ;;  %v2818_v63 = vadd.f32 %v2817_v43, %v10145_v54  ;;  %v8615_v15 = vld [vmem:[%s12353_s11 + $0xf4] ss:$8 sps:$4 sm:$0xff]   ;;  %v3600_v56 = vmax.f32 %v3307_v51, 0.0 }
 0x3f6   : > { %v2819_v24 = vpop.f32.mrf.mxu0  ;;  %v3310_v39 = vpop.f32.mrf.mxu1  ;;  %4042 = vmatmul.mubr.bf16.gmra.mxu0 %v3717_v42  ;;  %v3599_v7 = vmax.f32 %v3305_v9, 0.0  ;;  %v8618_v9 = vld [vmem:[%s12353_s11 + $0xe4] ss:$8 sps:$4 sm:$0xff]  }
 0x3f7   : > { %v2820_v47 = vadd.f32 %v2819_v24, %v10148_v50  ;;  %v3311_v25 = vadd.f32 %v3310_v39, %v10318_v38  ;;  %3552 = vmatprep.mubr.bf16.mxu1 %v3021_v57  ;;  %5094 = vmatpush1.bf16.msra.mxu0 %v8607_v19  ;;  %v3601_v17 = vmax.f32 %v3309_v32, 0.0  ;;  %v2955_v42 = vmax.f32 %v2818_v63, 0.0  ;;  %v8613_v32 = vld [vmem:[%s12353_s11 + $0xf0] ss:$8 sps:$4 sm:$0xff]  }
 0x3f8   : > { %v2821_v35 = vpop.f32.mrf.mxu0  ;;  %v3314_v33 = vpop.f32.mrf.mxu1  ;;  %3553 = vmatmul.mubr.bf16.gmra.mxu1 %v3020_v2  ;;  %5095 = vmatprep.subr.bf16.mxu0 %v8612_v28  ;;  %v2954_v28 = vmax.f32 %v2816_v59, 0.0 }
 0x3f9   : > { %v3602_v16 = vmax.f32 %v3311_v25, 0.0  ;;  %v2822_v34 = vadd.f32 %v2821_v35, %v10145_v54  ;;  %v2956_v19 = vmax.f32 %v2820_v47, 0.0  ;;  %v3719_v57 = vpack.c.bf16 %v3601_v17, %v3599_v7 }
 0x3fa   : > { %v2825_v43 = vpop.f32.mrf.mxu0  ;;  %v3316_v48 = vpop.f32.mrf.mxu1  ;;  %v3315_v47 = vadd.f32 %v3314_v33, %v10321_v62  ;;  %v8616_v33 = vld [vmem:[%s12353_s11 + $0xe0] ss:$8 sps:$4 sm:$0xff]  }
 0x3fb   : > { %v2957_v10 = vmax.f32 %v2822_v34, 0.0  ;;  %v3720_v60 = vpack.c.bf16 %v3602_v16, %v3600_v56  ;;  %5096 = vmatpush1.bf16.msra.mxu0 %v8610_v0  ;;  %v3317_v2 = vadd.f32 %v3316_v48, %v10318_v38  ;;  %v3022_v0 = vpack.c.bf16 %v2956_v19, %v2954_v28 }
 0x3fc   : > { %v2827_v24 = vpop.f32.mrf.mxu0  ;;  %v3318_v39 = vpop.f32.mrf.mxu1  ;;  %5097 = vmatprep.subr.bf16.mxu0 %v8615_v15  ;;  %v2826_v48 = vadd.f32 %v2825_v43, %v10148_v50 }
 0x3fd   : > { %v3319_v51 = vadd.f32 %v3318_v39, %v10321_v62  ;;  %4051 = vmatprep.mubr.bf16.mxu0 %v3720_v60  ;;  %v3023_v35 = vpack.c.bf16 %v2957_v10, %v2955_v42  ;;  %v2828_v16 = vadd.f32 %v2827_v24, %v10145_v54  ;;  %v3604_v7 = vmax.f32 %v3317_v2, 0.0  ;;  %v8621_v42 = vld [vmem:[%s12353_s11 + $0xd4] ss:$8 sps:$4 sm:$0xff]  }
 0x3fe   : > { %v2829_v25 = vpop.f32.mrf.mxu0  ;;  %v3320_v63 = vpop.f32.mrf.mxu1  ;;  %4052 = vmatmul.mubr.bf16.gmra.mxu0 %v3719_v57  ;;  %v3603_v24 = vmax.f32 %v3315_v47, 0.0 }
 0x3ff   : > { %v2830_v59 = vadd.f32 %v2829_v25, %v10148_v50  ;;  %v3321_v17 = vadd.f32 %v3320_v63, %v10318_v38  ;;  %v3605_v34 = vmax.f32 %v3319_v51, 0.0  ;;  %3562 = vmatprep.mubr.bf16.mxu1 %v3023_v35  ;;  %5098 = vmatpush2.bf16.msra.mxu0 %v8613_v32  ;;  %v2959_v60 = vmax.f32 %v2828_v16, 0.0  ;;  %v8619_v50 = vld [vmem:[%s12353_s11 + $0xd0] ss:$8 sps:$4 sm:$0xff]  }
 0x400   : > { %v2831_v15 = vpop.f32.mrf.mxu0  ;;  %v3324_v56 = vpop.f32.mrf.mxu1  ;;  %3563 = vmatmul.mubr.bf16.gmra.mxu1 %v3022_v0  ;;  %5099 = vmatprep.subr.bf16.mxu0 %v8618_v9 }
 0x401   : > { %v3606_v19 = vmax.f32 %v3321_v17, 0.0  ;;  %v2832_v10 = vadd.f32 %v2831_v15, %v10145_v54  ;;  %v2960_v32 = vmax.f32 %v2830_v59, 0.0  ;;  %v3721_v51 = vpack.c.bf16 %v3605_v34, %v3603_v24 }
 0x402   : > { %v3326_v39 = vpop.f32.mrf.mxu1  ;;  %v2958_v54 = vmax.f32 %v2826_v48, 0.0  ;;  %v3325_v35 = vadd.f32 %v3324_v56, %v10321_v62 }
 0x403   : > { %v2961_v28 = vmax.f32 %v2832_v10, 0.0  ;;  %v3722_v57 = vpack.c.bf16 %v3606_v19, %v3604_v7  ;;  %5100 = vmatpush2.bf16.msra.mxu0 %v8616_v33  ;;  %v3327_v43 = vadd.f32 %v3326_v39, %v10318_v38  ;;  %v12400_v33 = vmov 0  }
 0x404   : > { %v3328_v25 = vpop.f32.mrf.mxu1  ;;  %5101 = vmatprep.subr.bf16.mxu0 %v8621_v42  ;;  %v3024_v63 = vpack.c.bf16 %v2960_v32, %v2958_v54  ;;  %v3607_v48 = vmax.f32 %v3325_v35, 0.0 }
 0x405   : > { %v3329_v2 = vadd.f32 %v3328_v25, %v10321_v62  ;;  %4061 = vmatprep.mubr.bf16.mxu0 %v3722_v57  ;;  %v3025_v9 = vpack.c.bf16 %v2961_v28, %v2959_v60  ;;  %v3608_v59 = vmax.f32 %v3327_v43, 0.0  ;;  %v8622_v25 = vld [vmem:[%s12353_s11 + $0xc0] ss:$8 sps:$4 sm:$0xff]  }
 0x406   : > { %v3330_v47 = vpop.f32.mrf.mxu1  ;;  %4062 = vmatmul.mubr.bf16.gmra.mxu0 %v3721_v51 }
 0x407   : > { %v3331_v0 = vadd.f32 %v3330_v47, %v10318_v38  ;;  %3572 = vmatprep.mubr.bf16.mxu1 %v3025_v9  ;;  %5102 = vmatpush2.bf16.msra.mxu0 %v8619_v50  ;;  %v3609_v17 = vmax.f32 %v3329_v2, 0.0  ;;  %v8624_v50 = vld [vmem:[%s12353_s11 + $0xc4] ss:$8 sps:$4 sm:$0xff]  }
 0x408   : > { %v3334_v16 = vpop.f32.mrf.mxu1  ;;  %3573 = vmatmul.mubr.bf16.gmra.mxu1 %v3024_v63  ;;  %5103 = vmatprep.subr.bf16.mxu0 %v8624_v50  ;;  %v8627_v50 = vld [vmem:[%s12353_s11 + $0xb4] ss:$8 sps:$4 sm:$0xff]  }
 0x409   : > { %v3610_v34 = vmax.f32 %v3331_v0, 0.0  ;;  %4600 = vmatprep.mubr.bf16.mxu1 %v12400_v33  ;;  %v3723_v42 = vpack.c.bf16 %v3609_v17, %v3607_v48  ;;  %v3335_v39 = vadd.f32 %v3334_v16, %v10321_v62 }
 0x40a   : > { %v3336_v15 = vpop.f32.mrf.mxu1 }
 0x40b   : > { %v3724_v7 = vpack.c.bf16 %v3610_v34, %v3608_v59  ;;  %v3337_v19 = vadd.f32 %v3336_v15, %v10318_v38  ;;  %v3611_v43 = vmax.f32 %v3335_v39, 0.0  ;;  %5104 = vmatpush2.bf16.msra.mxu0 %v8622_v25  ;;  %v8625_v25 = vld [vmem:[%s12353_s11 + $0xb0] ss:$8 sps:$4 sm:$0xff]  }
 0x40c   : > { %v3338_v10 = vpop.f32.mrf.mxu1  ;;  %5105 = vmatprep.subr.bf16.mxu0 %v8627_v50  ;;  %v8631_v50 = vld [vmem:[#allocation13 + $0x70] ss:$8 sps:$4 sm:$0xff]  }
 0x40d   : > { %v3339_v56 = vadd.f32 %v3338_v10, %v10321_v62  ;;  %4071 = vmatprep.mubr.bf16.mxu0 %v3724_v7  ;;  %v3612_v32 = vmax.f32 %v3337_v19, 0.0 }
 0x40e   : > { %v3340_v24 = vpop.f32.mrf.mxu1  ;;  %4072 = vmatmul.mubr.bf16.gmra.mxu0 %v3723_v42 }
 0x40f   : > { %v3341_v60 = vadd.f32 %v3340_v24, %v10318_v38  ;;  %v3613_v57 = vmax.f32 %v3339_v56, 0.0  ;;  %5106 = vmatpush2.bf16.msra.mxu0 %v8625_v25  ;;  %v8630_v25 = vld [vmem:[%s12353_s11 + $0xa4] ss:$8 sps:$4 sm:$0xff]  }
 0x410   : > { %v3344_v28 = vpop.f32.mrf.mxu1  ;;  %8100 = vmatmul.mubr.msk.bf16.vlgmr.msra.gmra.mxu1 %vm886_vm0, %v9321_v5  ;;  %5107 = vmatprep.subr.bf16.mxu0 %v8630_v25 }
 0x411   : > { %v3614_v51 = vmax.f32 %v3341_v60, 0.0  ;;  %4610 = vmatprep.mubr.bf16.mxu1 %v12400_v33  ;;  %v3725_v47 = vpack.c.bf16 %v3613_v57, %v3611_v43  ;;  %v3345_v16 = vadd.f32 %v3344_v28, %v10321_v62 }
 0x412   : > { %v3346_v54 = vpop.f32.mrf.mxu1 }
 0x413   : > { %v3726_v2 = vpack.c.bf16 %v3614_v51, %v3612_v32  ;;  %v3347_v63 = vadd.f32 %v3346_v54, %v10318_v38  ;;  %v3615_v7 = vmax.f32 %v3345_v16, 0.0 }
 0x414   : > { %v3348_v9 = vpop.f32.mrf.mxu1 }
 0x415   : > { %v3349_v35 = vadd.f32 %v3348_v9, %v10321_v62  ;;  %4081 = vmatprep.mubr.bf16.mxu0 %v3726_v2  ;;  %v3616_v17 = vmax.f32 %v3347_v63, 0.0 }
 0x416   : > { %v3350_v0 = vpop.f32.mrf.mxu1  ;;  %4082 = vmatmul.mubr.bf16.gmra.mxu0 %v3725_v47 }
 0x417   : > { %v3351_v59 = vadd.f32 %v3350_v0, %v10318_v38  ;;  %v3617_v34 = vmax.f32 %v3349_v35, 0.0 }
 0x418   : > { %v3354_v5 = vpop.f32.mrf.mxu1  ;;  %8101 = vmatmul.mubr.msk.bf16.gmra.mxu1 %vm886_vm0, %v9328_v8 }
 0x419   : > { %v3618_v15 = vmax.f32 %v3351_v59, 0.0  ;;  %4620 = vmatprep.mubr.bf16.mxu1 %v12400_v33  ;;  %v3727_v56 = vpack.c.bf16 %v3617_v34, %v3615_v7  ;;  %v3355_v60 = vadd.f32 %v3354_v5, %v10321_v62 }
 0x41a   : > { %v3356_v48 = vpop.f32.mrf.mxu1 }
 0x41b   : > { %v3728_v19 = vpack.c.bf16 %v3618_v15, %v3616_v17  ;;  %v3357_v10 = vadd.f32 %v3356_v48, %v10318_v38  ;;  %v3619_v43 = vmax.f32 %v3355_v60, 0.0 }
 0x41c   : > { %v3358_v42 = vpop.f32.mrf.mxu1 }
 0x41d   : > { %v3359_v24 = vadd.f32 %v3358_v42, %v10321_v62  ;;  %4091 = vmatprep.mubr.bf16.mxu0 %v3728_v19  ;;  %v3620_v28 = vmax.f32 %v3357_v10, 0.0 }
 0x41e   : > { %v3360_v39 = vpop.f32.mrf.mxu1  ;;  %4092 = vmatmul.mubr.bf16.gmra.mxu0 %v3727_v56 }
 0x41f   : > { %v3361_v32 = vadd.f32 %v3360_v39, %v10318_v38  ;;  %v3621_v57 = vmax.f32 %v3359_v24, 0.0 }
 0x420   : > { %v3364_v8 = vpop.f32.mrf.mxu1  ;;  %8102 = vmatmul.mubr.msk.bf16.gmra.mxu1 %vm886_vm0, %v9341_v13 }
 0x421   : > { %v3622_v51 = vmax.f32 %v3361_v32, 0.0  ;;  %4630 = vmatprep.mubr.bf16.mxu1 %v12400_v33  ;;  %v3729_v47 = vpack.c.bf16 %v3621_v57, %v3619_v43  ;;  %v3365_v16 = vadd.f32 %v3364_v8, %v10321_v62 }
 0x422   : > { %v3366_v54 = vpop.f32.mrf.mxu1 }
 0x423   : > { %v3730_v2 = vpack.c.bf16 %v3622_v51, %v3620_v28  ;;  %v3367_v63 = vadd.f32 %v3366_v54, %v10318_v38  ;;  %v3623_v48 = vmax.f32 %v3365_v16, 0.0  ;;  %v8628_v51 = vld [vmem:[%s12353_s11 + $0xa0] ss:$8 sps:$4 sm:$0xff]  }
 0x424   : > { %v3368_v9 = vpop.f32.mrf.mxu1  ;;  %5108 = vmatpush2.bf16.msra.mxu0 %v8628_v51  ;;  %v8637_v51 = vld [vmem:[#allocation13 + $0x60] ss:$8 sps:$4 sm:$0xff]  }
 0x425   : > { %v3369_v35 = vadd.f32 %v3368_v9, %v10321_v62  ;;  %4101 = vmatprep.mubr.bf16.mxu0 %v3730_v2  ;;  %v3624_v5 = vmax.f32 %v3367_v63, 0.0  ;;  %v8633_v2 = vld [vmem:[#allocation13 + $0x74] ss:$8 sps:$4 sm:$0xff]  }
 0x426   : > { %v3370_v0 = vpop.f32.mrf.mxu1  ;;  %4102 = vmatmul.mubr.bf16.gmra.mxu0 %v3729_v47  ;;  %5970 = vmatprep.subr.bf16.mxu1 %v8633_v2 }
 0x427   : > { %v3371_v59 = vadd.f32 %v3370_v0, %v10318_v38  ;;  %v3625_v17 = vmax.f32 %v3369_v35, 0.0  ;;  %5971 = vmatpush1.bf16.msra.mxu1 %v8631_v50 }
 0x428   : > { %v3374_v13 = vpop.f32.mrf.mxu1  ;;  %8103 = vmatmul.mubr.msk.bf16.gmra.mxu1 %vm886_vm0, %v9360_v20 }
 0x429   : > { %v3626_v34 = vmax.f32 %v3371_v59, 0.0  ;;  %4640 = vmatprep.mubr.bf16.mxu1 %v12400_v33  ;;  %v3731_v10 = vpack.c.bf16 %v3625_v17, %v3623_v48  ;;  %v3375_v39 = vadd.f32 %v3374_v13, %v10321_v62 }
 0x42a   : > { %v3376_v15 = vpop.f32.mrf.mxu1 }
 0x42b   : > { %v3732_v7 = vpack.c.bf16 %v3626_v34, %v3624_v5  ;;  %v3377_v42 = vadd.f32 %v3376_v15, %v10318_v38  ;;  %v3627_v54 = vmax.f32 %v3375_v39, 0.0 }
 0x42c   : > { %v3378_v19 = vpop.f32.mrf.mxu1 }
 0x42d   : > { %v3379_v56 = vadd.f32 %v3378_v19, %v10321_v62  ;;  %4111 = vmatprep.mubr.bf16.mxu0 %v3732_v7  ;;  %v3628_v20 = vmax.f32 %v3377_v42, 0.0 }
 0x42e   : > { %v3380_v24 = vpop.f32.mrf.mxu1  ;;  %4112 = vmatmul.mubr.bf16.gmra.mxu0 %v3731_v10 }
 0x42f   : > { %v3381_v60 = vadd.f32 %v3380_v24, %v10318_v38  ;;  %v3629_v28 = vmax.f32 %v3379_v56, 0.0 }
 0x430   : > { %v3384_v32 = vpop.f32.mrf.mxu1  ;;  %8104 = vmatmul.mubr.msk.bf16.gmra.mxu1 %vm886_vm0, %v9385_v29 }
 0x431   : > { %v3630_v8 = vmax.f32 %v3381_v60, 0.0  ;;  %4650 = vmatprep.mubr.bf16.mxu1 %v12400_v33  ;;  %v3733_v47 = vpack.c.bf16 %v3629_v28, %v3627_v54  ;;  %v3385_v0 = vadd.f32 %v3384_v32, %v10321_v62  ;;  %v8639_v54 = vld [vmem:[#allocation13 + $0x64] ss:$8 sps:$4 sm:$0xff]  }
 0x432   : > { %v3386_v57 = vpop.f32.mrf.mxu1  ;;  %5972 = vmatprep.subr.bf16.mxu1 %v8639_v54 }
 0x433   : > { %v3734_v43 = vpack.c.bf16 %v3630_v8, %v3628_v20  ;;  %v3387_v29 = vadd.f32 %v3386_v57, %v10318_v38  ;;  %v3631_v15 = vmax.f32 %v3385_v0, 0.0  ;;  %v8634_v8 = vld [vmem:[%s12353_s11 + $0x90] ss:$8 sps:$4 sm:$0xff]   ;;  %v8636_v57 = vld [vmem:[%s12353_s11 + $0x94] ss:$8 sps:$4 sm:$0xff]   ;;  %5973 = vmatpush1.bf16.msra.mxu1 %v8637_v51 }
 0x434   : > { %v3388_v9 = vpop.f32.mrf.mxu1  ;;  %5109 = vmatprep.subr.bf16.mxu0 %v8636_v57  ;;  %v8645_v57 = vld [vmem:[#allocation13 + $0x54] ss:$8 sps:$4 sm:$0xff]  }
 0x435   : > { %v3389_v63 = vadd.f32 %v3388_v9, %v10321_v62  ;;  %4121 = vmatprep.mubr.bf16.mxu0 %v3734_v43  ;;  %v3632_v13 = vmax.f32 %v3387_v29, 0.0  ;;  %5110 = vmatpush2.bf16.msra.mxu0 %v8634_v8 }
 0x436   : > { %v3390_v35 = vpop.f32.mrf.mxu1  ;;  %4122 = vmatmul.mubr.bf16.gmra.mxu0 %v3733_v47  ;;  %5974 = vmatprep.subr.bf16.mxu1 %v8645_v57 }
 0x437   : > { %v3391_v16 = vadd.f32 %v3390_v35, %v10318_v38  ;;  %v3633_v5 = vmax.f32 %v3389_v63, 0.0 }
 0x438   : > { %v3394_v59 = vpop.f32.mrf.mxu1  ;;  %8105 = vmatmul.mubr.msk.bf16.gmra.mxu1 %vm886_vm0, %v9404_v36 }
 0x439   : > { %v3634_v17 = vmax.f32 %v3391_v16, 0.0  ;;  %4660 = vmatprep.mubr.bf16.mxu1 %v12400_v33  ;;  %v3735_v19 = vpack.c.bf16 %v3633_v5, %v3631_v15  ;;  %v3395_v24 = vadd.f32 %v3394_v59, %v10321_v62 }
 0x43a   : > { %v3396_v34 = vpop.f32.mrf.mxu1 }
 0x43b   : > { %v3736_v48 = vpack.c.bf16 %v3634_v17, %v3632_v13  ;;  %v3397_v10 = vadd.f32 %v3396_v34, %v10318_v38  ;;  %v3635_v25 = vmax.f32 %v3395_v24, 0.0 }
 0x43c   : > { %v3398_v7 = vpop.f32.mrf.mxu1 }
 0x43d   : > { %v3399_v42 = vadd.f32 %v3398_v7, %v10321_v62  ;;  %4131 = vmatprep.mubr.bf16.mxu0 %v3736_v48  ;;  %v3636_v36 = vmax.f32 %v3397_v10, 0.0 }
 0x43e   : > { %v3400_v56 = vpop.f32.mrf.mxu1  ;;  %4132 = vmatmul.mubr.bf16.gmra.mxu0 %v3735_v19 }
 0x43f   : > { %v3401_v39 = vadd.f32 %v3400_v56, %v10318_v38  ;;  %v3637_v32 = vmax.f32 %v3399_v42, 0.0 }
 0x440   : > { %v3404_v60 = vpop.f32.mrf.mxu1  ;;  %8106 = vmatmul.mubr.msk.bf16.gmra.mxu1 %vm886_vm0, %v9429_v45 }
 0x441   : > { %v3638_v20 = vmax.f32 %v3401_v39, 0.0  ;;  %4670 = vmatprep.mubr.bf16.mxu1 %v12400_v33  ;;  %v3737_v2 = vpack.c.bf16 %v3637_v32, %v3635_v25  ;;  %v3405_v29 = vadd.f32 %v3404_v60, %v10321_v62  ;;  %v8642_v32 = vld [vmem:[%s12353_s11 + $0x84] ss:$8 sps:$4 sm:$0xff]  }
 0x442   : > { %v3406_v28 = vpop.f32.mrf.mxu1  ;;  %5111 = vmatprep.subr.bf16.mxu0 %v8642_v32 }
 0x443   : > { %v3738_v50 = vpack.c.bf16 %v3638_v20, %v3636_v36  ;;  %v3407_v45 = vadd.f32 %v3406_v28, %v10318_v38  ;;  %v3639_v5 = vmax.f32 %v3405_v29, 0.0  ;;  %v8640_v36 = vld [vmem:[%s12353_s11 + $0x80] ss:$8 sps:$4 sm:$0xff]   ;;  %v8643_v20 = vld [vmem:[#allocation13 + $0x50] ss:$8 sps:$4 sm:$0xff]  }
 0x444   : > { %v3408_v43 = vpop.f32.mrf.mxu1  ;;  %5112 = vmatpush2.bf16.msra.mxu0 %v8640_v36  ;;  %5975 = vmatpush1.bf16.msra.mxu1 %v8643_v20 }
 0x445   : > { %v3409_v9 = vadd.f32 %v3408_v43, %v10321_v62  ;;  %4141 = vmatprep.mubr.bf16.mxu0 %v3738_v50  ;;  %v3640_v0 = vmax.f32 %v3407_v45, 0.0 }
 0x446   : > { %v3410_v47 = vpop.f32.mrf.mxu1  ;;  %4142 = vmatmul.mubr.bf16.gmra.mxu0 %v3737_v2 }
 0x447   : > { %v3411_v63 = vadd.f32 %v3410_v47, %v10318_v38  ;;  %v3641_v16 = vmax.f32 %v3409_v9, 0.0 }
 0x448   : > { %v3414_v35 = vpop.f32.mrf.mxu1  ;;  %8107 = vmatmul.mubr.msk.bf16.gmra.mxu1 %vm886_vm0, %v9448_v52 }
 0x449   : > { %v3642_v59 = vmax.f32 %v3411_v63, 0.0  ;;  %4680 = vmatprep.mubr.bf16.mxu1 %v12400_v33  ;;  %v3739_v15 = vpack.c.bf16 %v3641_v16, %v3639_v5  ;;  %v3415_v10 = vadd.f32 %v3414_v35, %v10321_v62 }
 0x44a   : > { %v3416_v13 = vpop.f32.mrf.mxu1 }
 0x44b   : > { %v3740_v17 = vpack.c.bf16 %v3642_v59, %v3640_v0  ;;  %v3417_v48 = vadd.f32 %v3416_v13, %v10318_v38  ;;  %v3643_v28 = vmax.f32 %v3415_v10, 0.0 }
 0x44c   : > { %v3418_v34 = vpop.f32.mrf.mxu1 }
 0x44d   : > { %v3419_v7 = vadd.f32 %v3418_v34, %v10321_v62  ;;  %4151 = vmatprep.mubr.bf16.mxu0 %v3740_v17  ;;  %v3644_v52 = vmax.f32 %v3417_v48, 0.0 }
 0x44e   : > { %v3420_v19 = vpop.f32.mrf.mxu1  ;;  %4152 = vmatmul.mubr.bf16.gmra.mxu0 %v3739_v15 }
 0x44f   : > { %v3421_v42 = vadd.f32 %v3420_v19, %v10318_v38  ;;  %v3645_v24 = vmax.f32 %v3419_v7, 0.0  ;;  %v8648_v7 = vld [vmem:[#allocation13 + $0x44] ss:$8 sps:$4 sm:$0xff]  }
 0x450   : > { %v3424_v56 = vpop.f32.mrf.mxu1  ;;  %8108 = vmatmul.mubr.msk.bf16.gmra.mxu1 %vm886_vm0, %v9473_v61  ;;  %5976 = vmatprep.subr.bf16.mxu1 %v8648_v7 }
 0x451   : > { %v3646_v39 = vmax.f32 %v3421_v42, 0.0  ;;  %4690 = vmatprep.mubr.bf16.mxu1 %v12400_v33  ;;  %v3741_v25 = vpack.c.bf16 %v3645_v24, %v3643_v28  ;;  %v3425_v43 = vadd.f32 %v3424_v56, %v10321_v62 }
 0x452   : > { %v3426_v60 = vpop.f32.mrf.mxu1 }
 0x453   : > { %v3742_v8 = vpack.c.bf16 %v3646_v39, %v3644_v52  ;;  %v3427_v61 = vadd.f32 %v3426_v60, %v10318_v38  ;;  %v3647_v35 = vmax.f32 %v3425_v43, 0.0 }
 0x454   : > { %v3428_v51 = vpop.f32.mrf.mxu1 }
 0x455   : > { %v3429_v50 = vadd.f32 %v3428_v51, %v10321_v62  ;;  %4161 = vmatprep.mubr.bf16.mxu0 %v3742_v8  ;;  %v3648_v9 = vmax.f32 %v3427_v61, 0.0 }
 0x456   : > { %v3430_v54 = vpop.f32.mrf.mxu1  ;;  %4162 = vmatmul.mubr.bf16.gmra.mxu0 %v3741_v25 }
 0x457   : > { %v3431_v2 = vadd.f32 %v3430_v54, %v10318_v38  ;;  %v3649_v47 = vmax.f32 %v3429_v50, 0.0 }
 0x458   : > { %v3434_v45 = vpop.f32.mrf.mxu1  ;;  %8109 = vmatmul.mubr.msk.bf16.gmra.mxu1 %vm886_vm0, %v9486_v3  ;;  %v8646_v3 = vld [vmem:[#allocation13 + $0x40] ss:$8 sps:$4 sm:$0xff]  }
 0x459   : > { %v3650_v29 = vmax.f32 %v3431_v2, 0.0  ;;  %4700 = vmatprep.mubr.bf16.mxu1 %v12400_v33  ;;  %v3743_v59 = vpack.c.bf16 %v3649_v47, %v3647_v35  ;;  %v3435_v34 = vadd.f32 %v3434_v45, %v10321_v62  ;;  %5977 = vmatpush1.bf16.msra.mxu1 %v8646_v3 }
 0x45a   : > { %v3436_v63 = vpop.f32.mrf.mxu1 }
 0x45b   : > { %v3744_v0 = vpack.c.bf16 %v3650_v29, %v3648_v9  ;;  %v3437_v13 = vadd.f32 %v3436_v63, %v10318_v38  ;;  %v3651_v52 = vmax.f32 %v3435_v34, 0.0 }
 0x45c   : > { %v3438_v16 = vpop.f32.mrf.mxu1 }
 0x45d   : > { %v3439_v5 = vadd.f32 %v3438_v16, %v10321_v62  ;;  %4171 = vmatprep.mubr.bf16.mxu0 %v3744_v0  ;;  %v3652_v19 = vmax.f32 %v3437_v13, 0.0  ;;  %v8651_v0 = vld [vmem:[#allocation13 + $0x34] ss:$8 sps:$4 sm:$0xff]  }
 0x45e   : > { %v3440_v17 = vpop.f32.mrf.mxu1  ;;  %4172 = vmatmul.mubr.bf16.gmra.mxu0 %v3743_v59  ;;  %5978 = vmatprep.subr.bf16.mxu1 %v8651_v0 }
 0x45f   : > { %v3441_v15 = vadd.f32 %v3440_v17, %v10318_v38  ;;  %v3653_v10 = vmax.f32 %v3439_v5, 0.0 }
 0x460   : > { %v3444_v48 = vpop.f32.mrf.mxu1  ;;  %8110 = vmatmul.mubr.msk.bf16.gmra.mxu1 %vm886_vm0, %v9505_v12 }
 0x461   : > { %v3654_v42 = vmax.f32 %v3441_v15, 0.0  ;;  %4710 = vmatprep.mubr.bf16.mxu1 %v12400_v33  ;;  %v3745_v60 = vpack.c.bf16 %v3653_v10, %v3651_v52  ;;  %v3445_v28 = vadd.f32 %v3444_v48, %v10321_v62 }
 0x462   : > { %v3446_v56 = vpop.f32.mrf.mxu1 }
 0x463   : > { %v3746_v24 = vpack.c.bf16 %v3654_v42, %v3652_v19  ;;  %v3447_v36 = vadd.f32 %v3446_v56, %v10318_v38  ;;  %v3655_v50 = vmax.f32 %v3445_v28, 0.0 }
 0x464   : > { %v3448_v39 = vpop.f32.mrf.mxu1 }
 0x465   : > { %v3449_v32 = vadd.f32 %v3448_v39, %v10321_v62  ;;  %4181 = vmatprep.mubr.bf16.mxu0 %v3746_v24  ;;  %v3656_v57 = vmax.f32 %v3447_v36, 0.0 }
 0x466   : > { %v3450_v20 = vpop.f32.mrf.mxu1  ;;  %4182 = vmatmul.mubr.bf16.gmra.mxu0 %v3745_v60 }
 0x467   : > { %v3451_v8 = vadd.f32 %v3450_v20, %v10318_v38  ;;  %v3657_v51 = vmax.f32 %v3449_v32, 0.0 }
 0x468   : > { %v3454_v12 = vpop.f32.mrf.mxu1  ;;  %8111 = vmatmul.mubr.msk.bf16.gmra.mxu1 %vm886_vm0, %v9518_v18  ;;  %v8649_v18 = vld [vmem:[#allocation13 + $0x30] ss:$8 sps:$4 sm:$0xff]  }
 0x469   : > { %v3658_v25 = vmax.f32 %v3451_v8, 0.0  ;;  %4720 = vmatprep.mubr.bf16.mxu1 %v12400_v33  ;;  %v3747_v2 = vpack.c.bf16 %v3657_v51, %v3655_v50  ;;  %v3455_v29 = vadd.f32 %v3454_v12, %v10321_v62  ;;  %5979 = vmatpush1.bf16.msra.mxu1 %v8649_v18 }
 0x46a   : > { %v3456_v61 = vpop.f32.mrf.mxu1 }
 0x46b   : > { %v3748_v54 = vpack.c.bf16 %v3658_v25, %v3656_v57  ;;  %v3457_v45 = vadd.f32 %v3456_v61, %v10318_v38  ;;  %v3659_v17 = vmax.f32 %v3455_v29, 0.0  ;;  %v8654_v61 = vld [vmem:[#allocation13 + $0x24] ss:$8 sps:$4 sm:$0xff]  }
 0x46c   : > { %v3458_v43 = vpop.f32.mrf.mxu1  ;;  %5980 = vmatprep.subr.bf16.mxu1 %v8654_v61 }
 0x46d   : > { %v3459_v9 = vadd.f32 %v3458_v43, %v10321_v62  ;;  %4191 = vmatprep.mubr.bf16.mxu0 %v3748_v54  ;;  %v3660_v16 = vmax.f32 %v3457_v45, 0.0 }
 0x46e   : > { %v3460_v47 = vpop.f32.mrf.mxu1  ;;  %4192 = vmatmul.mubr.bf16.gmra.mxu0 %v3747_v2 }
 0x46f   : > { %v3461_v63 = vadd.f32 %v3460_v47, %v10318_v38  ;;  %v3661_v59 = vmax.f32 %v3459_v9, 0.0 }
 0x470   : > { %v3464_v35 = vpop.f32.mrf.mxu1  ;;  %8112 = vmatmul.mubr.msk.bf16.gmra.mxu1 %vm886_vm0, %v9525_v22 }
 0x471   : > { %v3662_v13 = vmax.f32 %v3461_v63, 0.0  ;;  %4730 = vmatprep.mubr.bf16.mxu1 %v12400_v33  ;;  %v3749_v48 = vpack.c.bf16 %v3661_v59, %v3659_v17  ;;  %v3465_v10 = vadd.f32 %v3464_v35, %v10321_v62 }
 0x472   : > { %v3466_v5 = vpop.f32.mrf.mxu1 }
 0x473   : > { %v3750_v34 = vpack.c.bf16 %v3662_v13, %v3660_v16  ;;  %v3467_v3 = vadd.f32 %v3466_v5, %v10318_v38  ;;  %v3663_v60 = vmax.f32 %v3465_v10, 0.0 }
 0x474   : > { %v3468_v15 = vpop.f32.mrf.mxu1 }
 0x475   : > { %v3469_v7 = vadd.f32 %v3468_v15, %v10321_v62  ;;  %4201 = vmatprep.mubr.bf16.mxu0 %v3750_v34  ;;  %v3664_v56 = vmax.f32 %v3467_v3, 0.0 }
 0x476   : > { %v3470_v19 = vpop.f32.mrf.mxu1  ;;  %4202 = vmatmul.mubr.bf16.gmra.mxu0 %v3749_v48 }
 0x477   : > { %v3471_v42 = vadd.f32 %v3470_v19, %v10318_v38  ;;  %v3665_v52 = vmax.f32 %v3469_v7, 0.0 }
 0x478   : > { %v3474_v22 = vpop.f32.mrf.mxu1  ;;  %8113 = vmatmul.mubr.msk.bf16.gmra.mxu1 %vm886_vm0, %v9538_v27  ;;  %v8652_v27 = vld [vmem:[#allocation13 + $0x20] ss:$8 sps:$4 sm:$0xff]  }
 0x479   : > { %v3666_v24 = vmax.f32 %v3471_v42, 0.0  ;;  %4740 = vmatprep.mubr.bf16.mxu1 %v12400_v33  ;;  %v3751_v20 = vpack.c.bf16 %v3665_v52, %v3663_v60  ;;  %v3475_v57 = vadd.f32 %v3474_v22, %v10321_v62  ;;  %5981 = vmatpush1.bf16.msra.mxu1 %v8652_v27  ;;  %v8657_v52 = vld [vmem:[#allocation13 + $0x14] ss:$8 sps:$4 sm:$0xff]  }
 0x47a   : > { %v3476_v39 = vpop.f32.mrf.mxu1  ;;  %5982 = vmatprep.subr.bf16.mxu1 %v8657_v52 }
 0x47b   : > { %v3752_v36 = vpack.c.bf16 %v3666_v24, %v3664_v56  ;;  %v3477_v28 = vadd.f32 %v3476_v39, %v10318_v38  ;;  %v3667_v45 = vmax.f32 %v3475_v57, 0.0 }
 0x47c   : > { %v3478_v32 = vpop.f32.mrf.mxu1 }
 0x47d   : > { %v3479_v8 = vadd.f32 %v3478_v32, %v10321_v62  ;;  %4211 = vmatprep.mubr.bf16.mxu0 %v3752_v36  ;;  %v3668_v50 = vmax.f32 %v3477_v28, 0.0 }
 0x47e   : > { %v3480_v12 = vpop.f32.mrf.mxu1  ;;  %4212 = vmatmul.mubr.bf16.gmra.mxu0 %v3751_v20 }
 0x47f   : > { %v3481_v51 = vadd.f32 %v3480_v12, %v10318_v38  ;;  %v3669_v54 = vmax.f32 %v3479_v8, 0.0 }
 0x480   : > { %v3484_v25 = vpop.f32.mrf.mxu1  ;;  %8114 = vmatmul.mubr.msk.bf16.gmra.mxu1 %vm886_vm0, %v9545_v31 }
 0x481   : > { %v3670_v43 = vmax.f32 %v3481_v51, 0.0  ;;  %4750 = vmatprep.mubr.bf16.mxu1 %v12400_v33  ;;  %v3753_v29 = vpack.c.bf16 %v3669_v54, %v3667_v45  ;;  %v3485_v0 = vadd.f32 %v3484_v25, %v10321_v62 }
 0x482   : > { %v3486_v2 = vpop.f32.mrf.mxu1 }
 0x483   : > { %v3754_v9 = vpack.c.bf16 %v3670_v43, %v3668_v50  ;;  %v3487_v63 = vadd.f32 %v3486_v2, %v10318_v38  ;;  %v3671_v34 = vmax.f32 %v3485_v0, 0.0 }
 0x484   : > { %v3488_v47 = vpop.f32.mrf.mxu1 }
 0x485   : > { %v3489_v35 = vadd.f32 %v3488_v47, %v10321_v62  ;;  %4221 = vmatprep.mubr.bf16.mxu0 %v3754_v9  ;;  %v3672_v59 = vmax.f32 %v3487_v63, 0.0 }
 0x486   : > { %v3490_v18 = vpop.f32.mrf.mxu1  ;;  %4222 = vmatmul.mubr.bf16.gmra.mxu0 %v3753_v29 }
 0x487   : > { %v3491_v16 = vadd.f32 %v3490_v18, %v10318_v38  ;;  %v3673_v13 = vmax.f32 %v3489_v35, 0.0 }
 0x488   : > { %v3494_v31 = vpop.f32.mrf.mxu1  ;;  %8115 = vmatmul.mubr.msk.bf16.gmra.mxu1 %vm886_vm0, %v9558_v37  ;;  %v8655_v37 = vld [vmem:[#allocation13 + $0x10] ss:$8 sps:$4 sm:$0xff]  }
 0x489   : > { %v3674_v5 = vmax.f32 %v3491_v16, 0.0  ;;  %4760 = vmatprep.mubr.bf16.mxu1 %v12400_v33  ;;  %v3755_v3 = vpack.c.bf16 %v3673_v13, %v3671_v34  ;;  %v3495_v42 = vadd.f32 %v3494_v31, %v10321_v62  ;;  %5983 = vmatpush1.bf16.msra.mxu1 %v8655_v37  ;;  %v8660_v31 = vld [vmem:[#allocation13 + $0x4] ss:$8 sps:$4 sm:$0xff]  }
 0x48a   : > { %v3496_v17 = vpop.f32.mrf.mxu1  ;;  %5984 = vmatprep.subr.bf16.mxu1 %v8660_v31 }
 0x48b   : > { %v3756_v15 = vpack.c.bf16 %v3674_v5, %v3672_v59  ;;  %v3497_v7 = vadd.f32 %v3496_v17, %v10318_v38  ;;  %v3675_v32 = vmax.f32 %v3495_v42, 0.0 }
 0x48c   : > { %v3498_v48 = vpop.f32.mrf.mxu1 }
 0x48d   : > { %v3499_v19 = vadd.f32 %v3498_v48, %v10321_v62  ;;  %4231 = vmatprep.mubr.bf16.mxu0 %v3756_v15  ;;  %v3676_v24 = vmax.f32 %v3497_v7, 0.0 }
 0x48e   : > { %v3500_v10 = vpop.f32.mrf.mxu1  ;;  %4232 = vmatmul.mubr.bf16.gmra.mxu0 %v3755_v3 }
 0x48f   : > { %v3501_v22 = vadd.f32 %v3500_v10, %v10318_v38  ;;  %v3677_v39 = vmax.f32 %v3499_v19, 0.0 }
 0x490   : > { %v3504_v56 = vpop.f32.mrf.mxu1  ;;  %8116 = vmatmul.mubr.msk.bf16.gmra.mxu1 %vm886_vm0, %v9565_v40 }
 0x491   : > { %v3678_v60 = vmax.f32 %v3501_v22, 0.0  ;;  %4770 = vmatprep.mubr.bf16.mxu1 %v12400_v33  ;;  %v3757_v8 = vpack.c.bf16 %v3677_v39, %v3675_v32  ;;  %v3505_v25 = vadd.f32 %v3504_v56, %v10321_v62 }
 0x492   : > { %v3506_v36 = vpop.f32.mrf.mxu1 }
 0x493   : > { %v3758_v20 = vpack.c.bf16 %v3678_v60, %v3676_v24  ;;  %v3507_v12 = vadd.f32 %v3506_v36, %v10318_v38  ;;  %v3679_v2 = vmax.f32 %v3505_v25, 0.0 }
 0x494   : > { %v3508_v28 = vpop.f32.mrf.mxu1 }
 0x495   : > { %v3509_v57 = vadd.f32 %v3508_v28, %v10321_v62  ;;  %4241 = vmatprep.mubr.bf16.mxu0 %v3758_v20  ;;  %v3680_v61 = vmax.f32 %v3507_v12, 0.0 }
 0x496   : > { %v3510_v51 = vpop.f32.mrf.mxu1  ;;  %4242 = vmatmul.mubr.bf16.gmra.mxu0 %v3757_v8 }
 0x497   : > { %v3511_v27 = vadd.f32 %v3510_v51, %v10318_v38  ;;  %v3681_v50 = vmax.f32 %v3509_v57, 0.0 }
 0x498   : > { %v3514_v40 = vpop.f32.mrf.mxu1  ;;  %8117 = vmatmul.mubr.msk.bf16.gmra.mxu1 %vm886_vm0, %v9578_v46  ;;  %v8658_v46 = vld [vmem:[#allocation13] ss:$8 sps:$4 sm:$0xff]  }
 0x499   : > { %v3682_v54 = vmax.f32 %v3511_v27, 0.0  ;;  %4780 = vmatprep.mubr.bf16.mxu1 %v12400_v33  ;;  %v3759_v47 = vpack.c.bf16 %v3681_v50, %v3679_v2  ;;  %v3515_v18 = vadd.f32 %v3514_v40, %v10321_v62  ;;  %5985 = vmatpush1.bf16.msra.mxu1 %v8658_v46  ;;  %v8661_v2 = vld [vmem:[#allocation13 + $0xf0] ss:$8 sps:$4 sm:$0xff]  }
 0x49a   : > { %v3516_v43 = vpop.f32.mrf.mxu1 }
 0x49b   : > { %v3760_v45 = vpack.c.bf16 %v3682_v54, %v3680_v61  ;;  %v3517_v29 = vadd.f32 %v3516_v43, %v10318_v38  ;;  %v3683_v15 = vmax.f32 %v3515_v18, 0.0 }
 0x49c   : > { %v3518_v9 = vpop.f32.mrf.mxu1 }
 0x49d   : > { %v3519_v63 = vadd.f32 %v3518_v9, %v10321_v62  ;;  %4251 = vmatprep.mubr.bf16.mxu0 %v3760_v45  ;;  %v3684_v59 = vmax.f32 %v3517_v29, 0.0  ;;  %v8663_v45 = vld [vmem:[#allocation13 + $0xf4] ss:$8 sps:$4 sm:$0xff]  }
 0x49e   : > { %v3520_v35 = vpop.f32.mrf.mxu1  ;;  %v10599_v16 = vpop.f32.mrf.mxu0  ;;  %4252 = vmatmul.mubr.bf16.gmra.mxu0 %v3759_v47  ;;  %5986 = vmatprep.subr.bf16.mxu1 %v8663_v45 }
 0x49f   : > { %v3521_v0 = vadd.f32 %v3520_v35, %v10318_v38  ;;  %v3685_v13 = vmax.f32 %v3519_v63, 0.0  ;;  %5987 = vmatpush2.bf16.msra.mxu1 %v8661_v2 }
 0x4a0   : > { %v3524_v17 = vpop.f32.mrf.mxu1  ;;  %v10601_v34 = vpop.f32.mrf.mxu0  ;;  %8118 = vmatmul.mubr.msk.bf16.gmra.mxu1 %vm886_vm0, %v9585_v49 }
 0x4a1   : > { %v3686_v5 = vmax.f32 %v3521_v0, 0.0  ;;  %4790 = vmatprep.mubr.bf16.mxu1 %v12400_v33  ;;  %v3761_v19 = vpack.c.bf16 %v3685_v13, %v3683_v15  ;;  %v3525_v52 = vadd.f32 %v3524_v17, %v10321_v62 }
 0x4a2   : > { %v3526_v48 = vpop.f32.mrf.mxu1  ;;  %v10606_v3 = vpop.f32.mrf.mxu0 }
 0x4a3   : > { %v3762_v7 = vpack.c.bf16 %v3686_v5, %v3684_v59  ;;  %v3527_v56 = vadd.f32 %v3526_v48, %v10318_v38  ;;  %v3687_v12 = vmax.f32 %v3525_v52, 0.0 }
 0x4a4   : > { %v3528_v10 = vpop.f32.mrf.mxu1  ;;  %v10608_v42 = vpop.f32.mrf.mxu0 }
 0x4a5   : > { %4261 = vmatprep.mubr.bf16.mxu0 %v3762_v7  ;;  %v3529_v22 = vadd.f32 %v3528_v10, %v10321_v62  ;;  %v3688_v20 = vmax.f32 %v3527_v56, 0.0 }
 0x4a6   : > { %v3530_v37 = vpop.f32.mrf.mxu1  ;;  %v10612_v49 = vpop.f32.mrf.mxu0  ;;  %4262 = vmatmul.mubr.bf16.gmra.mxu0 %v3761_v19 }
 0x4a7   : > { %v3531_v24 = vadd.f32 %v3530_v37, %v10318_v38  ;;  %v3689_v36 = vmax.f32 %v3529_v22, 0.0 }
 0x4a8   : > { %v3534_v39 = vpop.f32.mrf.mxu1  ;;  %v10616_v60 = vpop.f32.mrf.mxu0  ;;  %8119 = vmatmul.mubr.msk.bf16.gmra.mxu1 %vm886_vm0, %v9598_v55 }
 0x4a9   : > { %v3690_v32 = vmax.f32 %v3531_v24, 0.0  ;;  %4800 = vmatprep.mubr.bf16.mxu1 %v12400_v33  ;;  %v3763_v27 = vpack.c.bf16 %v3689_v36, %v3687_v12  ;;  %v3535_v54 = vadd.f32 %v3534_v39, %v10321_v62 }
 0x4aa   : > { %v3536_v28 = vpop.f32.mrf.mxu1  ;;  %v10621_v8 = vpop.f32.mrf.mxu0 }
 0x4ab   : > { %v3764_v25 = vpack.c.bf16 %v3690_v32, %v3688_v20  ;;  %v3537_v61 = vadd.f32 %v3536_v28, %v10318_v38  ;;  %v3691_v46 = vmax.f32 %v3535_v54, 0.0  ;;  %v8666_v54 = vld [vmem:[#allocation13 + $0xe4] ss:$8 sps:$4 sm:$0xff]  }
 0x4ac   : > { %v3538_v57 = vpop.f32.mrf.mxu1  ;;  %v10623_v51 = vpop.f32.mrf.mxu0  ;;  %5988 = vmatprep.subr.bf16.mxu1 %v8666_v54 }
 0x4ad   : > { %v3539_v40 = vadd.f32 %v3538_v57, %v10321_v62  ;;  %4271 = vmatprep.mubr.bf16.mxu0 %v3764_v25  ;;  %v3692_v35 = vmax.f32 %v3537_v61, 0.0 }
 0x4ae   : > { %v3540_v55 = vpop.f32.mrf.mxu1  ;;  %v10627_v50 = vpop.f32.mrf.mxu0  ;;  %4272 = vmatmul.mubr.bf16.gmra.mxu0 %v3763_v27 }
 0x4af   : > { %v3541_v43 = vadd.f32 %v3540_v55, %v10318_v38  ;;  %v3693_v29 = vmax.f32 %v3539_v40, 0.0  ;;  %v8664_v55 = vld [vmem:[#allocation13 + $0xe0] ss:$8 sps:$4 sm:$0xff]  }
 0x4b0   : > { %v3544_v9 = vpop.f32.mrf.mxu1  ;;  %v10631_v47 = vpop.f32.mrf.mxu0  ;;  %8120 = vmatmul.mubr.msk.bf16.gmra.mxu1 %vm886_vm0, %v9605_v58 }
 0x4b1   : > { %v3694_v63 = vmax.f32 %v3541_v43, 0.0  ;;  %4810 = vmatprep.mubr.bf16.mxu1 %v12400_v33  ;;  %v3765_v5 = vpack.c.bf16 %v3693_v29, %v3691_v46  ;;  %v3545_v7 = vadd.f32 %v3544_v9, %v10321_v62  ;;  %5989 = vmatpush2.bf16.msra.mxu1 %v8664_v55 }
 0x4b2   : > { %v3546_v18 = vpop.f32.mrf.mxu1  ;;  %v10636_v0 = vpop.f32.mrf.mxu0 }
 0x4b3   : > { %v3766_v13 = vpack.c.bf16 %v3694_v63, %v3692_v35  ;;  %v3547_v58 = vadd.f32 %v3546_v18, %v10318_v38  ;;  %v3695_v36 = vmax.f32 %v3545_v7, 0.0 }
 0x4b4   : > { %v3548_v31 = vpop.f32.mrf.mxu1  ;;  %v10638_v59 = vpop.f32.mrf.mxu0 }
 0x4b5   : > { %v3549_v17 = vadd.f32 %v3548_v31, %v10321_v62  ;;  %4281 = vmatprep.mubr.bf16.mxu0 %v3766_v13  ;;  %v3696_v52 = vmax.f32 %v3547_v58, 0.0 }
 0x4b6   : > { %v3550_v15 = vpop.f32.mrf.mxu1  ;;  %v10642_v48 = vpop.f32.mrf.mxu0  ;;  %4282 = vmatmul.mubr.bf16.gmra.mxu0 %v3765_v5 }
 0x4b7   : > { %v3551_v19 = vadd.f32 %v3550_v15, %v10318_v38  ;;  %v3697_v56 = vmax.f32 %v3549_v17, 0.0 }
 0x4b8   : > { %v3554_v10 = vpop.f32.mrf.mxu1  ;;  %v10646_v22 = vpop.f32.mrf.mxu0  ;;  %8121 = vmatmul.mubr.msk.bf16.gmra.mxu1 %vm886_vm0, %v9618_v1 }
 0x4b9   : > { %v3698_v37 = vmax.f32 %v3551_v19, 0.0  ;;  %4820 = vmatprep.mubr.bf16.mxu1 %v12400_v33  ;;  %v3767_v12 = vpack.c.bf16 %v3697_v56, %v3695_v36  ;;  %v3555_v40 = vadd.f32 %v3554_v10, %v10321_v62 }
 0x4ba   : > { %v3556_v24 = vpop.f32.mrf.mxu1  ;;  %v10651_v39 = vpop.f32.mrf.mxu0 }
 0x4bb   : > { %v3768_v28 = vpack.c.bf16 %v3698_v37, %v3696_v52  ;;  %v3557_v25 = vadd.f32 %v3556_v24, %v10318_v38  ;;  %v3699_v18 = vmax.f32 %v3555_v40, 0.0 }
 0x4bc   : > { %v3558_v32 = vpop.f32.mrf.mxu1  ;;  %v10653_v20 = vpop.f32.mrf.mxu0 }
 0x4bd   : > { %v3559_v57 = vadd.f32 %v3558_v32, %v10321_v62  ;;  %4291 = vmatprep.mubr.bf16.mxu0 %v3768_v28  ;;  %v3700_v29 = vmax.f32 %v3557_v25, 0.0  ;;  %v3807_v28 = vld [vmem:[#allocation10] sm:$0x3] }
 0x4be   : > { %v3560_v1 = vpop.f32.mrf.mxu1  ;;  %v10657_v27 = vpop.f32.mrf.mxu0  ;;  %4292 = vmatmul.mubr.bf16.gmra.mxu0 %v3767_v12 }
 0x4bf   : > { %v3561_v61 = vadd.f32 %v3560_v1, %v10318_v38  ;;  %v3701_v45 = vmax.f32 %v3559_v57, 0.0  ;;  %v10684_v57 = vrot.slane %v3807_v28, %v9647_v23 }
 0x4c0   : > { %v3564_v43 = vpop.f32.mrf.mxu1  ;;  %v10661_v2 = vpop.f32.mrf.mxu0  ;;  %8122 = vmatmul.mubr.msk.bf16.gmra.mxu1 %vm886_vm0, %v9625_v6 }
 0x4c1   : > { %v3702_v9 = vmax.f32 %v3561_v61, 0.0  ;;  %4830 = vmatprep.mubr.bf16.mxu1 %v12400_v33  ;;  %v3769_v5 = vpack.c.bf16 %v3701_v45, %v3699_v18  ;;  %v3565_v7 = vadd.f32 %v3564_v43, %v10321_v62  ;;  %v4020_v54 = vadd.f32 %v10608_v42, %v10684_v57  ;;  %v8669_v18 = vld [vmem:[#allocation13 + $0xd4] ss:$8 sps:$4 sm:$0xff]  }
 0x4c2   : > { %v3566_v63 = vpop.f32.mrf.mxu1  ;;  %v10666_v35 = vpop.f32.mrf.mxu0  ;;  %5990 = vmatprep.subr.bf16.mxu1 %v8669_v18 }
 0x4c3   : > { %v3770_v13 = vpack.c.bf16 %v3702_v9, %v3700_v29  ;;  %v3567_v6 = vadd.f32 %v3566_v63, %v10318_v38  ;;  %v3703_v12 = vmax.f32 %v3565_v7, 0.0  ;;  %v8667_v63 = vld [vmem:[#allocation13 + $0xd0] ss:$8 sps:$4 sm:$0xff]  }
 0x4c4   : > { %v3568_v46 = vpop.f32.mrf.mxu1  ;;  %v10668_v31 = vpop.f32.mrf.mxu0  ;;  %5991 = vmatpush2.bf16.msra.mxu1 %v8667_v63  ;;  %v4036_v63 = vadd.f32 %v10631_v47, %v10684_v57 }
 0x4c5   : > { %v3569_v17 = vadd.f32 %v3568_v46, %v10321_v62  ;;  %4301 = vmatprep.mubr.bf16.mxu0 %v3770_v13  ;;  %v3704_v24 = vmax.f32 %v3567_v6, 0.0  ;;  %v4016_v46 = vadd.f32 %v10601_v34, %v10684_v57 }
 0x4c6   : > { %v3570_v58 = vpop.f32.mrf.mxu1  ;;  %v10672_v15 = vpop.f32.mrf.mxu0  ;;  %4302 = vmatmul.mubr.bf16.gmra.mxu0 %v3769_v5 }
 0x4c7   : > { %v3571_v19 = vadd.f32 %v3570_v58, %v10318_v38  ;;  %v3705_v37 = vmax.f32 %v3569_v17, 0.0  ;;  %v4333_v7 = vmax.f32 %v4016_v46, 0.0 }
 0x4c8   : > { %v3574_v10 = vpop.f32.mrf.mxu1  ;;  %v10676_v56 = vpop.f32.mrf.mxu0  ;;  %8123 = vmatmul.mubr.msk.bf16.gmra.mxu1 %vm886_vm0, %v9638_v14 }
 0x4c9   : > { %v3706_v52 = vmax.f32 %v3571_v19, 0.0  ;;  %4840 = vmatprep.mubr.bf16.mxu1 %v12400_v33  ;;  %v3771_v61 = vpack.c.bf16 %v3705_v37, %v3703_v12  ;;  %v3575_v9 = vadd.f32 %v3574_v10, %v10321_v62  ;;  %v4030_v37 = vadd.f32 %v10623_v51, %v10684_v57 }
 0x4ca   : > { %v3576_v36 = vpop.f32.mrf.mxu1  ;;  %v10681_v32 = vpop.f32.mrf.mxu0 }
 0x4cb   : > { %v3772_v40 = vpack.c.bf16 %v3706_v52, %v3704_v24  ;;  %v3577_v14 = vadd.f32 %v3576_v36, %v10318_v38  ;;  %v3707_v58 = vmax.f32 %v3575_v9, 0.0  ;;  %v4339_v51 = vmax.f32 %v4030_v37, 0.0  ;;  %v8670_v9 = vld [vmem:[#allocation13 + $0xc0] ss:$8 sps:$4 sm:$0xff]  }
 0x4cc   : > { %v3578_v25 = vpop.f32.mrf.mxu1  ;;  %v10686_v1 = vpop.f32.mrf.mxu0 }
 0x4cd   : > { %v3579_v55 = vadd.f32 %v3578_v25, %v10321_v62  ;;  %4311 = vmatprep.mubr.bf16.mxu0 %v3772_v40  ;;  %v3708_v42 = vmax.f32 %v3577_v14, 0.0  ;;  %v4335_v62 = vmax.f32 %v4020_v54, 0.0 }
 0x4ce   : > { %v3580_v43 = vpop.f32.mrf.mxu1  ;;  %v10692_v45 = vpop.f32.mrf.mxu0  ;;  %4312 = vmatmul.mubr.bf16.gmra.mxu0 %v3771_v61 }
 0x4cf   : > { %v3581_v29 = vadd.f32 %v3580_v43, %v10318_v38  ;;  %v3709_v5 = vmax.f32 %v3579_v55, 0.0  ;;  %v10706_v38 = vrot.slane %v3807_v28, %v9655_v26  ;;  %v4461_v24 = vpack.c.bf16 %v4335_v62, %v4333_v7 }
 0x4d0   : > { %v10698_v13 = vpop.f32.mrf.mxu0  ;;  %8124 = vmatmul.mubr.msk.bf16.gmra.mxu1 %vm886_vm0, %v9645_v21  ;;  %v4026_v28 = vadd.f32 %v10616_v60, %v10684_v57  ;;  %v4040_v55 = vadd.f32 %v10638_v59, %v10684_v57  ;;  %v4050_v62 = vadd.f32 %v10653_v20, %v10684_v57  ;;  %v4046_v7 = vadd.f32 %v10646_v22, %v10684_v57 }
 0x4d1   : > { %v3710_v17 = vmax.f32 %v3581_v29, 0.0  ;;  %4850 = vmatprep.mubr.bf16.mxu1 %v12400_v33  ;;  %v4018_v21 = vadd.f32 %v10606_v3, %v10706_v38  ;;  %v3773_v10 = vpack.c.bf16 %v3709_v5, %v3707_v58  ;;  %v4014_v36 = vadd.f32 %v10599_v16, %v10706_v38  ;;  %v8672_v29 = vld [vmem:[#allocation13 + $0xc4] ss:$8 sps:$4 sm:$0xff]  }
 0x4d2   : > { %v10703_v6 = vpop.f32.mrf.mxu0  ;;  %v4337_v61 = vmax.f32 %v4026_v28, 0.0  ;;  %v4028_v60 = vadd.f32 %v10621_v8, %v10706_v38  ;;  %v4024_v43 = vadd.f32 %v10612_v49, %v10706_v38  ;;  %5992 = vmatprep.subr.bf16.mxu1 %v8672_v29  ;;  %v4343_v59 = vmax.f32 %v4040_v55, 0.0  ;;  %v8675_v55 = vld [vmem:[#allocation13 + $0xb4] ss:$8 sps:$4 sm:$0xff]  }
 0x4d3   : > { %v3774_v34 = vpack.c.bf16 %v3710_v17, %v3708_v42  ;;  %v4334_v3 = vmax.f32 %v4018_v21, 0.0  ;;  %v4332_v40 = vmax.f32 %v4014_v36, 0.0  ;;  %5993 = vmatpush2.bf16.msra.mxu1 %v8670_v9  ;;  %v4341_v42 = vmax.f32 %v4036_v63, 0.0 }
 0x4d4   : > { %v10708_v19 = vpop.f32.mrf.mxu0  ;;  %v4338_v8 = vmax.f32 %v4028_v60, 0.0  ;;  %v4336_v49 = vmax.f32 %v4024_v43, 0.0  ;;  %v4038_v47 = vadd.f32 %v10636_v0, %v10706_v38  ;;  %v4347_v20 = vmax.f32 %v4050_v62, 0.0  ;;  %v8673_v60 = vld [vmem:[#allocation13 + $0xb0] ss:$8 sps:$4 sm:$0xff]   ;;  %5994 = vmatprep.subr.bf16.mxu1 %v8675_v55 }
 0x4d5   : > { %4321 = vmatprep.mubr.bf16.mxu0 %v3774_v34  ;;  %v4460_v16 = vpack.c.bf16 %v4334_v3, %v4332_v40  ;;  %v4465_v58 = vpack.c.bf16 %v4343_v59, %v4341_v42  ;;  %v4034_v34 = vadd.f32 %v10627_v50, %v10706_v38  ;;  %v4345_v36 = vmax.f32 %v4046_v7, 0.0 }
 0x4d6   : > { %v10714_v52 = vpop.f32.mrf.mxu0  ;;  %4322 = vmatmul.mubr.bf16.gmra.mxu0 %v3773_v10  ;;  %v4462_v17 = vpack.c.bf16 %v4338_v8, %v4336_v49  ;;  %v4342_v0 = vmax.f32 %v4038_v47, 0.0  ;;  %v10762_v10 = vpop.f32.mrf.mxu1  ;;  %v4048_v3 = vadd.f32 %v10651_v39, %v10706_v38  ;;  %v4056_v43 = vadd.f32 %v10661_v2, %v10684_v57 }
 0x4d7   : > { %5113 = vmatprep.mubr.bf16.mxu0 %v4461_v24  ;;  %v4340_v24 = vmax.f32 %v4034_v34, 0.0  ;;  %5995 = vmatpush2.bf16.msra.mxu1 %v8673_v60  ;;  %v4066_v7 = vadd.f32 %v10676_v56, %v10684_v57  ;;  %v4064_v55 = vadd.f32 %v10672_v15, %v10706_v38 }
 0x4d8   : > { %v10720_v12 = vpop.f32.mrf.mxu0  ;;  %8125 = vmatmul.mubr.msk.bf16.gmra.mxu1 %vm886_vm0, %v9668_v41  ;;  %v4463_v41 = vpack.c.bf16 %v4339_v51, %v4337_v61  ;;  %v10767_v50 = vpop.f32.mrf.mxu1  ;;  %v4467_v61 = vpack.c.bf16 %v4347_v20, %v4345_v36  ;;  %v4349_v2 = vmax.f32 %v4056_v43, 0.0 }
 0x4d9   : > { %4860 = vmatprep.mubr.bf16.mxu1 %v12400_v33  ;;  %v4464_v22 = vpack.c.bf16 %v4342_v0, %v4340_v24 }
 0x4da   : > { %v10725_v25 = vpop.f32.mrf.mxu0  ;;  %v10773_v51 = vpop.f32.mrf.mxu1 }
 0x4dc   : > { %v10727_v14 = vpop.f32.mrf.mxu0 }
 0x4de   : > { %v10733_v54 = vpop.f32.mrf.mxu0  ;;  %5114 = vmatmul.mubr.bf16.vlgmr.msra.gmra.mxu0 %v4460_v16  ;;  %v4044_v16 = vadd.f32 %v10642_v48, %v10706_v38 }
 0x4df   : > { %5123 = vmatprep.mubr.bf16.mxu0 %v4463_v41  ;;  %v10781_v41 = vpop.f32.mrf.mxu1 }
 0x4e0   : > { %v10739_v18 = vpop.f32.mrf.mxu0  ;;  %8126 = vmatmul.mubr.msk.bf16.gmra.mxu1 %vm886_vm0, %v9679_v4  ;;  %v4344_v63 = vmax.f32 %v4044_v16, 0.0 }
 0x4e1   : > { %4870 = vmatprep.mubr.bf16.mxu1 %v12400_v33  ;;  %v10789_v9 = vpop.f32.mrf.mxu1 }
 0x4e2   : > { %v10744_v46 = vpop.f32.mrf.mxu0 }
 0x4e3   : > { %v10794_v8 = vpop.f32.mrf.mxu1 }
 0x4e4   : > { %v10746_v5 = vpop.f32.mrf.mxu0 }
 0x4e5   : > { %v10800_v42 = vpop.f32.mrf.mxu1 }
 0x4e6   : > { %v10752_v4 = vpop.f32.mrf.mxu0  ;;  %5124 = vmatmul.mubr.bf16.gmra.mxu0 %v4462_v17  ;;  %v4070_v17 = vadd.f32 %v10686_v1, %v10684_v57 }
 0x4e7   : > { %5133 = vmatprep.mubr.bf16.mxu0 %v4465_v58  ;;  %v4054_v58 = vadd.f32 %v10657_v27, %v10706_v38  ;;  %v10808_v34 = vpop.f32.mrf.mxu1 }
 0x4e8   : > { %v10758_v21 = vpop.f32.mrf.mxu0  ;;  %8127 = vmatmul.mubr.msk.bf16.gmra.mxu1 %vm886_vm0, %v9696_v44  ;;  %v4060_v44 = vadd.f32 %v10668_v31, %v10684_v57  ;;  %v4346_v31 = vmax.f32 %v4048_v3, 0.0  ;;  %v4355_v20 = vmax.f32 %v4070_v17, 0.0 }
 0x4e9   : > { %4880 = vmatprep.mubr.bf16.mxu1 %v12400_v33  ;;  %v10816_v1 = vpop.f32.mrf.mxu1  ;;  %v4348_v27 = vmax.f32 %v4054_v58, 0.0 }
 0x4ea   : > { %v10765_v37 = vpop.f32.mrf.mxu0  ;;  %v4351_v48 = vmax.f32 %v4060_v44, 0.0  ;;  %v4466_v49 = vpack.c.bf16 %v4346_v31, %v4344_v63  ;;  %v4068_v44 = vadd.f32 %v10681_v32, %v10706_v38  ;;  %v4076_v31 = vadd.f32 %v10698_v13, %v10684_v57  ;;  %v8676_v32 = vld [vmem:[#allocation16 + $0x70] ss:$8 sps:$4 sm:$0xff]   ;;  %v8678_v63 = vld [vmem:[#allocation16 + $0x74] ss:$8 sps:$4 sm:$0xff]  }
 0x4eb   : > { %v10821_v36 = vpop.f32.mrf.mxu1  ;;  %6719 = vmatprep.subr.bf16.mxu0 %v8678_v63  ;;  %v4352_v13 = vmax.f32 %v4064_v55, 0.0 }
 0x4ec   : > { %v10769_v28 = vpop.f32.mrf.mxu0  ;;  %v4469_v62 = vpack.c.bf16 %v4351_v48, %v4349_v2  ;;  %v8679_v2 = vld [vmem:[#allocation13 + $0xa0] ss:$8 sps:$4 sm:$0xff]   ;;  %6720 = vmatpush1.bf16.msra.mxu0 %v8676_v32  ;;  %v4357_v58 = vmax.f32 %v4076_v31, 0.0 }
 0x4ee   : > { %v10777_v40 = vpop.f32.mrf.mxu0  ;;  %5134 = vmatmul.mubr.bf16.gmra.mxu0 %v4464_v22  ;;  %v4353_v22 = vmax.f32 %v4066_v7, 0.0 }
 0x4ef   : > { %5143 = vmatprep.mubr.bf16.mxu0 %v4467_v61  ;;  %v10827_v61 = vpop.f32.mrf.mxu1 }
 0x4f0   : > { %v10785_v39 = vpop.f32.mrf.mxu0  ;;  %8128 = vmatmul.mubr.msk.bf16.gmra.mxu1 %vm886_vm0, %v9707_v11  ;;  %v4058_v11 = vadd.f32 %v10666_v35, %v10706_v38  ;;  %v4471_v60 = vpack.c.bf16 %v4355_v20, %v4353_v22 }
 0x4f1   : > { %4890 = vmatprep.mubr.bf16.mxu1 %v12400_v33  ;;  %v10835_v43 = vpop.f32.mrf.mxu1 }
 0x4f2   : > { %v10792_v29 = vpop.f32.mrf.mxu0  ;;  %v4350_v35 = vmax.f32 %v4058_v11, 0.0 }
 0x4f3   : > { %v10843_v11 = vpop.f32.mrf.mxu1 }
 0x4f4   : > { %v10796_v59 = vpop.f32.mrf.mxu0  ;;  %v4468_v56 = vpack.c.bf16 %v4350_v35, %v4348_v27  ;;  %v4078_v35 = vadd.f32 %v10703_v6, %v10706_v38  ;;  %v4090_v27 = vadd.f32 %v10727_v14, %v10684_v57  ;;  %v12401_v6 = vld [vmem:[#allocation25_spill] sm:$0xff] }
 0x4f6   : > { %v10804_v47 = vpop.f32.mrf.mxu0  ;;  %5144 = vmatmul.mubr.bf16.gmra.mxu0 %v4466_v49  ;;  %v8681_v49 = vld [vmem:[#allocation13 + $0xa4] ss:$8 sps:$4 sm:$0xff]   ;;  %v4358_v31 = vmax.f32 %v4078_v35, 0.0  ;;  %v4363_v32 = vmax.f32 %v4090_v27, 0.0  ;;  %v4084_v27 = vadd.f32 %v10714_v52, %v10706_v38 }
 0x4f7   : > { %5153 = vmatprep.mubr.bf16.mxu0 %v4469_v62  ;;  %5996 = vmatprep.subr.bf16.mxu1 %v8681_v49  ;;  %v10848_v62 = vpop.f32.mrf.mxu1 }
 0x4f8   : > { %v10812_v0 = vpop.f32.mrf.mxu0  ;;  %8129 = vmatmul.mubr.msk.bf16.gmra.mxu1 %vm886_vm0, %v9724_v53  ;;  %v4080_v53 = vadd.f32 %v10708_v19, %v10684_v57  ;;  %v4354_v19 = vmax.f32 %v4068_v44, 0.0  ;;  %v4074_v44 = vadd.f32 %v10692_v45, %v10706_v38  ;;  %v4360_v52 = vmax.f32 %v4084_v27, 0.0 }
 0x4f9   : > { %4900 = vmatprep.mubr.bf16.mxu1 %v12400_v33  ;;  %5997 = vmatpush2.bf16.msra.mxu1 %v8679_v2  ;;  %v10854_v20 = vpop.f32.mrf.mxu1 }
 0x4fa   : > { %v10819_v24 = vpop.f32.mrf.mxu0  ;;  %v4359_v15 = vmax.f32 %v4080_v53, 0.0  ;;  %v4356_v2 = vmax.f32 %v4074_v44, 0.0  ;;  %v4096_v44 = vadd.f32 %v10739_v18, %v10684_v57 }
 0x4fb   : > { %v10862_v53 = vpop.f32.mrf.mxu1 }
 0x4fc   : > { %v10823_v3 = vpop.f32.mrf.mxu0  ;;  %v4365_v18 = vmax.f32 %v4096_v44, 0.0 }
 0x4fd   : > { %v10870_v14 = vpop.f32.mrf.mxu1 }
 0x4fe   : > { %v10831_v16 = vpop.f32.mrf.mxu0  ;;  %5154 = vmatmul.mubr.bf16.gmra.mxu0 %v4468_v56  ;;  %v4473_v56 = vpack.c.bf16 %v4359_v15, %v4357_v58  ;;  %12402 = vst [vmem:[#allocation25_spill] sm:$0xff] %v10870_v14  ;;  %v4472_v15 = vpack.c.bf16 %v4358_v31, %v4356_v2  ;;  %v4100_v58 = vadd.f32 %v10746_v5, %v10684_v57  ;;  %v8685_v31 = vld [vmem:[#allocation13 + $0x90] ss:$8 sps:$4 sm:$0xff]   ;;  %v8687_v5 = vld [vmem:[#allocation13 + $0x94] ss:$8 sps:$4 sm:$0xff]  }
 0x4ff   : > { %5163 = vmatprep.mubr.bf16.mxu0 %v4471_v60  ;;  %v4086_v60 = vadd.f32 %v10720_v12, %v10684_v57  ;;  %v10874_v45 = vpop.f32.mrf.mxu1  ;;  %v4088_v12 = vadd.f32 %v10725_v25, %v10706_v38  ;;  %v8682_v25 = vld [vmem:[#allocation16 + $0x60] ss:$8 sps:$4 sm:$0xff]   ;;  %5998 = vmatprep.subr.bf16.mxu1 %v8687_v5 }
 0x500   : > { %v10839_v48 = vpop.f32.mrf.mxu0  ;;  %8130 = vmatmul.mubr.msk.bf16.gmra.mxu1 %vm886_vm0, %v9741_v30  ;;  %v4470_v30 = vpack.c.bf16 %v4354_v19, %v4352_v13 }
 0x501   : > { %4910 = vmatprep.mubr.bf16.mxu1 %v12400_v33  ;;  %v4361_v19 = vmax.f32 %v4086_v60, 0.0  ;;  %v10880_v13 = vpop.f32.mrf.mxu1  ;;  %v4362_v2 = vmax.f32 %v4088_v12, 0.0  ;;  %5999 = vmatpush2.bf16.msra.mxu1 %v8685_v31  ;;  %v4098_v12 = vadd.f32 %v10744_v46, %v10706_v38 }
 0x502   : > { %v10846_v17 = vpop.f32.mrf.mxu0  ;;  %12403 = vst [vmem:[#allocation26_spill] sm:$0xff] %v10880_v13 }
 0x503   : > { %v4475_v35 = vpack.c.bf16 %v4363_v32, %v4361_v19  ;;  %v4367_v32 = vmax.f32 %v4100_v58, 0.0  ;;  %v4110_v58 = vadd.f32 %v10769_v28, %v10684_v57  ;;  %v4366_v46 = vmax.f32 %v4098_v12, 0.0 }
 0x504   : > { %v10850_v7 = vpop.f32.mrf.mxu0  ;;  %v4120_v12 = vadd.f32 %v10796_v59, %v10684_v57  ;;  %v8693_v59 = vld [vmem:[#allocation13 + $0x84] ss:$8 sps:$4 sm:$0xff]  }
 0x505   : > { %v4477_v27 = vpack.c.bf16 %v4367_v32, %v4365_v18  ;;  %v4371_v5 = vmax.f32 %v4110_v58, 0.0  ;;  %6000 = vmatprep.subr.bf16.mxu1 %v8693_v59 }
 0x506   : > { %v10858_v22 = vpop.f32.mrf.mxu0  ;;  %5164 = vmatmul.mubr.bf16.gmra.mxu0 %v4470_v30 }
 0x507   : > { %5173 = vmatprep.mubr.bf16.mxu0 %v4473_v56  ;;  %v10888_v56 = vpop.f32.mrf.mxu1 }
 0x508   : > { %v10866_v55 = vpop.f32.mrf.mxu0  ;;  %8131 = vmatmul.mubr.msk.bf16.gmra.mxu1 %vm886_vm0, %v12401_v6  ;;  %12404 = vst [vmem:[#allocation27_spill] sm:$0xff] %v10888_v56  ;;  %v8684_v6 = vld [vmem:[#allocation16 + $0x64] ss:$8 sps:$4 sm:$0xff]   ;;  %v4474_v56 = vpack.c.bf16 %v4362_v2, %v4360_v52 }
 0x509   : > { %v10894_v13 = vpop.f32.mrf.mxu1  ;;  %6721 = vmatprep.subr.bf16.mxu0 %v8684_v6  ;;  %v4106_v6 = vadd.f32 %v10758_v21, %v10684_v57 }
 0x50a   : > { %v10872_v63 = vpop.f32.mrf.mxu0  ;;  %12405 = vst [vmem:[#allocation28_spill] sm:$0xff] %v10894_v13  ;;  %6722 = vmatpush1.bf16.msra.mxu0 %v8682_v25  ;;  %v4094_v25 = vadd.f32 %v10733_v54, %v10706_v38 }
 0x50b   : > { %v4369_v18 = vmax.f32 %v4106_v6, 0.0  ;;  %v4116_v6 = vadd.f32 %v10785_v39, %v10684_v57 }
 0x50c   : > { %v10876_v49 = vpop.f32.mrf.mxu0  ;;  %v4364_v52 = vmax.f32 %v4094_v25, 0.0  ;;  %v4104_v25 = vadd.f32 %v10752_v4, %v10706_v38 }
 0x50d   : > { %v4479_v58 = vpack.c.bf16 %v4371_v5, %v4369_v18  ;;  %v4375_v5 = vmax.f32 %v4120_v12, 0.0  ;;  %v4373_v39 = vmax.f32 %v4116_v6, 0.0  ;;  %v4130_v12 = vadd.f32 %v10823_v3, %v10684_v57 }
 0x50e   : > { %v10884_v30 = vpop.f32.mrf.mxu0  ;;  %5174 = vmatmul.mubr.bf16.gmra.mxu0 %v4472_v15  ;;  %v10898_v15 = vpop.f32.mrf.mxu1  ;;  %v4368_v4 = vmax.f32 %v4104_v25, 0.0  ;;  %v4114_v6 = vadd.f32 %v10777_v40, %v10706_v38 }
 0x50f   : > { %5183 = vmatprep.mubr.bf16.mxu0 %v4475_v35  ;;  %12406 = vst [vmem:[#allocation29_spill] sm:$0xff] %v10898_v15 }
 0x510   : > { %v10892_v60 = vpop.f32.mrf.mxu0  ;;  %v10904_v14 = vpop.f32.mrf.mxu1 }
 0x511   : > { %12407 = vst [vmem:[#allocation30_spill] sm:$0xff] %v10904_v14 }
 0x512   : > { %v10896_v19 = vpop.f32.mrf.mxu0  ;;  %v10912_v44 = vpop.f32.mrf.mxu1 }
 0x513   : > { %12408 = vst [vmem:[#allocation31_spill] sm:$0xff] %v10912_v44  ;;  %v4108_v44 = vadd.f32 %v10765_v37, %v10706_v38  ;;  %v8688_v37 = vld [vmem:[#allocation16 + $0x50] ss:$8 sps:$4 sm:$0xff]  }
 0x514   : > { %v10900_v35 = vpop.f32.mrf.mxu0  ;;  %v10918_v2 = vpop.f32.mrf.mxu1 }
 0x515   : > { %12409 = vst [vmem:[#allocation32_spill] sm:$0xff] %v10918_v2 }
 0x516   : > { %v10908_v13 = vpop.f32.mrf.mxu0  ;;  %5184 = vmatmul.mubr.bf16.gmra.mxu0 %v4474_v56  ;;  %v10922_v32 = vpop.f32.mrf.mxu1  ;;  %v4476_v56 = vpack.c.bf16 %v4366_v46, %v4364_v52  ;;  %v8690_v52 = vld [vmem:[#allocation16 + $0x54] ss:$8 sps:$4 sm:$0xff]  }
 0x517   : > { %5193 = vmatprep.mubr.bf16.mxu0 %v4477_v27  ;;  %12410 = vst [vmem:[#allocation33_spill] sm:$0xff] %v10922_v32  ;;  %v4370_v32 = vmax.f32 %v4108_v44, 0.0  ;;  %6723 = vmatprep.subr.bf16.mxu0 %v8690_v52  ;;  %v4118_v44 = vadd.f32 %v10792_v29, %v10706_v38 }
 0x518   : > { %v10916_v31 = vpop.f32.mrf.mxu0  ;;  %v10928_v21 = vpop.f32.mrf.mxu1  ;;  %6724 = vmatpush1.bf16.msra.mxu0 %v8688_v37  ;;  %v4481_v37 = vpack.c.bf16 %v4375_v5, %v4373_v39 }
 0x519   : > { %12411 = vst [vmem:[#allocation34_spill] sm:$0xff] %v10928_v21  ;;  %v8691_v21 = vld [vmem:[#allocation13 + $0x80] ss:$8 sps:$4 sm:$0xff]  }
 0x51a   : > { %v10920_v28 = vpop.f32.mrf.mxu0  ;;  %v10936_v2 = vpop.f32.mrf.mxu1  ;;  %6001 = vmatpush2.bf16.msra.mxu1 %v8691_v21  ;;  %v4374_v21 = vmax.f32 %v4118_v44, 0.0  ;;  %v4140_v44 = vadd.f32 %v10850_v7, %v10684_v57 }
 0x51b   : > { %12412 = vst [vmem:[#allocation35_spill] sm:$0xff] %v10936_v2  ;;  %v4478_v2 = vpack.c.bf16 %v4370_v32, %v4368_v4  ;;  %8247 = vmatprep.subr.bf16.mxu1 %v12400_v33  ;;  %v4126_v32 = vadd.f32 %v10812_v0, %v10684_v57  ;;  %v4379_v4 = vmax.f32 %v4130_v12, 0.0  ;;  %v4372_v33 = vmax.f32 %v4114_v6, 0.0 }
 0x51c   : > { %v10924_v54 = vpop.f32.mrf.mxu0  ;;  %v10942_v14 = vpop.f32.mrf.mxu1  ;;  %v4124_v6 = vadd.f32 %v10804_v47, %v10706_v38 }
 0x51d   : > { %v4377_v39 = vmax.f32 %v4126_v32, 0.0 }
 0x51e   : > { %v10932_v27 = vpop.f32.mrf.mxu0  ;;  %5194 = vmatmul.mubr.bf16.gmra.mxu0 %v4476_v56  ;;  %v10946_v56 = vpop.f32.mrf.mxu1 }
 0x51f   : > { %5203 = vmatprep.mubr.bf16.mxu0 %v4479_v58  ;;  %v4483_v12 = vpack.c.bf16 %v4379_v4, %v4377_v39  ;;  %v8696_v4 = vld [vmem:[#allocation16 + $0x44] ss:$8 sps:$4 sm:$0xff]   ;;  %v4376_v39 = vmax.f32 %v4124_v6, 0.0  ;;  %v4134_v6 = vadd.f32 %v10831_v16, %v10706_v38 }
 0x520   : > { %v10940_v46 = vpop.f32.mrf.mxu0  ;;  %v10952_v15 = vpop.f32.mrf.mxu1  ;;  %6725 = vmatprep.subr.bf16.mxu0 %v8696_v4 }
 0x521   : > { %12413 = vst [vmem:[#allocation36_spill] sm:$0xff] %v10952_v15 }
 0x522   : > { %v10944_v18 = vpop.f32.mrf.mxu0  ;;  %v10961_v52 = vpop.f32.mrf.mxu1 }
 0x523   : > { %12414 = vst [vmem:[#allocation37_spill] sm:$0xff] %v10961_v52  ;;  %v4128_v52 = vadd.f32 %v10819_v24, %v10706_v38 }
 0x524   : > { %v10948_v58 = vpop.f32.mrf.mxu0  ;;  %v10967_v59 = vpop.f32.mrf.mxu1 }
 0x525   : > { %12415 = vst [vmem:[#allocation38_spill] sm:$0xff] %v10967_v59  ;;  %v4378_v24 = vmax.f32 %v4128_v52, 0.0 }
 0x526   : > { %v10957_v25 = vpop.f32.mrf.mxu0  ;;  %5204 = vmatmul.mubr.bf16.gmra.mxu0 %v4478_v2  ;;  %v10971_v5 = vpop.f32.mrf.mxu1  ;;  %v4480_v2 = vpack.c.bf16 %v4374_v21, %v4372_v33  ;;  %v4136_v33 = vadd.f32 %v10839_v48, %v10684_v57  ;;  %v4138_v48 = vadd.f32 %v10846_v17, %v10706_v38 }
 0x527   : > { %5213 = vmatprep.mubr.bf16.mxu0 %v4481_v37  ;;  %12416 = vst [vmem:[#allocation39_spill] sm:$0xff] %v10971_v5  ;;  %v8694_v5 = vld [vmem:[#allocation16 + $0x40] ss:$8 sps:$4 sm:$0xff]  }
 0x528   : > { %v10965_v29 = vpop.f32.mrf.mxu0  ;;  %v10977_v0 = vpop.f32.mrf.mxu1  ;;  %v4381_v47 = vmax.f32 %v4136_v33, 0.0  ;;  %6726 = vmatpush1.bf16.msra.mxu0 %v8694_v5  ;;  %v4382_v5 = vmax.f32 %v4138_v48, 0.0 }
 0x529   : > { %12417 = vst [vmem:[#allocation40_spill] sm:$0xff] %v10977_v0  ;;  %v4383_v0 = vmax.f32 %v4140_v44, 0.0  ;;  %v4150_v44 = vadd.f32 %v10876_v49, %v10684_v57 }
 0x52a   : > { %v10969_v3 = vpop.f32.mrf.mxu0  ;;  %v10985_v59 = vpop.f32.mrf.mxu1 }
 0x52b   : > { %12418 = vst [vmem:[#allocation41_spill] sm:$0xff] %v10985_v59  ;;  %v4482_v59 = vpack.c.bf16 %v4378_v24, %v4376_v39  ;;  %v4146_v24 = vadd.f32 %v10866_v55, %v10684_v57  ;;  %v4387_v39 = vmax.f32 %v4150_v44, 0.0 }
 0x52c   : > { %v10973_v40 = vpop.f32.mrf.mxu0  ;;  %v10991_v21 = vpop.f32.mrf.mxu1 }
 0x52d   : > { %12419 = vst [vmem:[#allocation42_spill] sm:$0xff] %v10991_v21  ;;  %v4485_v21 = vpack.c.bf16 %v4383_v0, %v4381_v47  ;;  %v4385_v47 = vmax.f32 %v4146_v24, 0.0 }
 0x52e   : > { %v10981_v37 = vpop.f32.mrf.mxu0  ;;  %5214 = vmatmul.mubr.bf16.gmra.mxu0 %v4480_v2  ;;  %v10995_v15 = vpop.f32.mrf.mxu1 }
 0x52f   : > { %5223 = vmatprep.mubr.bf16.mxu0 %v4483_v12  ;;  %12420 = vst [vmem:[#allocation43_spill] sm:$0xff] %v10995_v15  ;;  %v4487_v44 = vpack.c.bf16 %v4387_v39, %v4385_v47  ;;  %v8699_v39 = vld [vmem:[#allocation16 + $0x34] ss:$8 sps:$4 sm:$0xff]  }
 0x530   : > { %v10989_v32 = vpop.f32.mrf.mxu0  ;;  %v11001_v52 = vpop.f32.mrf.mxu1  ;;  %6727 = vmatprep.subr.bf16.mxu0 %v8699_v39 }
 0x531   : > { %12421 = vst [vmem:[#allocation44_spill] sm:$0xff] %v11001_v52  ;;  %v4380_v52 = vmax.f32 %v4134_v6, 0.0  ;;  %v4144_v6 = vadd.f32 %v10858_v22, %v10706_v38 }
 0x532   : > { %v10993_v7 = vpop.f32.mrf.mxu0  ;;  %v11009_v33 = vpop.f32.mrf.mxu1 }
 0x533   : > { %12422 = vst [vmem:[#allocation45_spill] sm:$0xff] %v11009_v33  ;;  %v4148_v33 = vadd.f32 %v10872_v63, %v10706_v38  ;;  %v4384_v47 = vmax.f32 %v4144_v6, 0.0  ;;  %v4154_v6 = vadd.f32 %v10884_v30, %v10706_v38 }
 0x534   : > { %v10997_v2 = vpop.f32.mrf.mxu0  ;;  %v11015_v4 = vpop.f32.mrf.mxu1 }
 0x535   : > { %12423 = vst [vmem:[#allocation46_spill] sm:$0xff] %v11015_v4  ;;  %v4386_v63 = vmax.f32 %v4148_v33, 0.0 }
 0x536   : > { %v11005_v12 = vpop.f32.mrf.mxu0  ;;  %5224 = vmatmul.mubr.bf16.gmra.mxu0 %v4482_v59  ;;  %v11019_v0 = vpop.f32.mrf.mxu1  ;;  %v4484_v59 = vpack.c.bf16 %v4382_v5, %v4380_v52  ;;  %v4156_v52 = vadd.f32 %v10892_v60, %v10684_v57  ;;  %v4158_v60 = vadd.f32 %v10896_v19, %v10706_v38 }
 0x537   : > { %5233 = vmatprep.mubr.bf16.mxu0 %v4485_v21  ;;  %12424 = vst [vmem:[#allocation47_spill] sm:$0xff] %v11019_v0  ;;  %v4160_v21 = vadd.f32 %v10900_v35, %v10684_v57  ;;  %v8697_v0 = vld [vmem:[#allocation16 + $0x30] ss:$8 sps:$4 sm:$0xff]  }
 0x538   : > { %v11013_v17 = vpop.f32.mrf.mxu0  ;;  %v11025_v55 = vpop.f32.mrf.mxu1  ;;  %v4389_v22 = vmax.f32 %v4156_v52, 0.0  ;;  %6728 = vmatpush1.bf16.msra.mxu0 %v8697_v0  ;;  %v4390_v0 = vmax.f32 %v4158_v60, 0.0 }
 0x539   : > { %12425 = vst [vmem:[#allocation48_spill] sm:$0xff] %v11025_v55  ;;  %v4391_v55 = vmax.f32 %v4160_v21, 0.0  ;;  %v4170_v21 = vadd.f32 %v10924_v54, %v10684_v57 }
 0x53a   : > { %v11017_v49 = vpop.f32.mrf.mxu0  ;;  %v11033_v4 = vpop.f32.mrf.mxu1 }
 0x53b   : > { %12426 = vst [vmem:[#allocation49_spill] sm:$0xff] %v11033_v4  ;;  %v4486_v4 = vpack.c.bf16 %v4386_v63, %v4384_v47  ;;  %v4166_v63 = vadd.f32 %v10916_v31, %v10684_v57  ;;  %v4395_v47 = vmax.f32 %v4170_v21, 0.0 }
 0x53c   : > { %v11021_v16 = vpop.f32.mrf.mxu0  ;;  %v11039_v5 = vpop.f32.mrf.mxu1 }
 0x53d   : > { %12427 = vst [vmem:[#allocation50_spill] sm:$0xff] %v11039_v5  ;;  %v4489_v5 = vpack.c.bf16 %v4391_v55, %v4389_v22  ;;  %v4393_v22 = vmax.f32 %v4166_v63, 0.0 }
 0x53e   : > { %v11029_v48 = vpop.f32.mrf.mxu0  ;;  %5234 = vmatmul.mubr.bf16.gmra.mxu0 %v4484_v59  ;;  %v11043_v15 = vpop.f32.mrf.mxu1 }
 0x53f   : > { %5243 = vmatprep.mubr.bf16.mxu0 %v4487_v44  ;;  %12428 = vst [vmem:[#allocation51_spill] sm:$0xff] %v11043_v15  ;;  %v4491_v21 = vpack.c.bf16 %v4395_v47, %v4393_v22  ;;  %v8702_v47 = vld [vmem:[#allocation16 + $0x24] ss:$8 sps:$4 sm:$0xff]  }
 0x540   : > { %v11037_v24 = vpop.f32.mrf.mxu0  ;;  %v11049_v33 = vpop.f32.mrf.mxu1  ;;  %6729 = vmatprep.subr.bf16.mxu0 %v8702_v47 }
 0x541   : > { %12429 = vst [vmem:[#allocation52_spill] sm:$0xff] %v11049_v33  ;;  %v4388_v33 = vmax.f32 %v4154_v6, 0.0  ;;  %v4164_v6 = vadd.f32 %v10908_v13, %v10706_v38 }
 0x542   : > { %v11041_v35 = vpop.f32.mrf.mxu0  ;;  %v11057_v52 = vpop.f32.mrf.mxu1 }
 0x543   : > { %12430 = vst [vmem:[#allocation53_spill] sm:$0xff] %v11057_v52  ;;  %v4168_v52 = vadd.f32 %v10920_v28, %v10706_v38  ;;  %v4392_v22 = vmax.f32 %v4164_v6, 0.0  ;;  %v4174_v6 = vadd.f32 %v10932_v27, %v10706_v38 }
 0x544   : > { %v11045_v59 = vpop.f32.mrf.mxu0  ;;  %v11063_v39 = vpop.f32.mrf.mxu1 }
 0x545   : > { %12431 = vst [vmem:[#allocation54_spill] sm:$0xff] %v11063_v39  ;;  %v4394_v28 = vmax.f32 %v4168_v52, 0.0 }
 0x546   : > { %v11053_v44 = vpop.f32.mrf.mxu0  ;;  %5244 = vmatmul.mubr.bf16.gmra.mxu0 %v4486_v4  ;;  %v11067_v55 = vpop.f32.mrf.mxu1  ;;  %v4488_v4 = vpack.c.bf16 %v4390_v0, %v4388_v33  ;;  %v4176_v33 = vadd.f32 %v10940_v46, %v10684_v57  ;;  %v4178_v46 = vadd.f32 %v10944_v18, %v10706_v38 }
 0x547   : > { %5253 = vmatprep.mubr.bf16.mxu0 %v4489_v5  ;;  %12432 = vst [vmem:[#allocation55_spill] sm:$0xff] %v11067_v55  ;;  %v4180_v5 = vadd.f32 %v10948_v58, %v10684_v57  ;;  %v8700_v55 = vld [vmem:[#allocation16 + $0x20] ss:$8 sps:$4 sm:$0xff]  }
 0x548   : > { %v11061_v19 = vpop.f32.mrf.mxu0  ;;  %v11073_v31 = vpop.f32.mrf.mxu1  ;;  %v4397_v13 = vmax.f32 %v4176_v33, 0.0  ;;  %6730 = vmatpush1.bf16.msra.mxu0 %v8700_v55  ;;  %v4398_v55 = vmax.f32 %v4178_v46, 0.0 }
 0x549   : > { %12433 = vst [vmem:[#allocation56_spill] sm:$0xff] %v11073_v31  ;;  %v4399_v31 = vmax.f32 %v4180_v5, 0.0  ;;  %v4190_v5 = vadd.f32 %v10973_v40, %v10684_v57 }
 0x54a   : > { %v11065_v54 = vpop.f32.mrf.mxu0  ;;  %v11081_v39 = vpop.f32.mrf.mxu1 }
 0x54b   : > { %12434 = vst [vmem:[#allocation57_spill] sm:$0xff] %v11081_v39  ;;  %v4490_v39 = vpack.c.bf16 %v4394_v28, %v4392_v22  ;;  %v4186_v28 = vadd.f32 %v10965_v29, %v10684_v57  ;;  %v4403_v22 = vmax.f32 %v4190_v5, 0.0 }
 0x54c   : > { %v11069_v30 = vpop.f32.mrf.mxu0  ;;  %v11087_v0 = vpop.f32.mrf.mxu1 }
 0x54d   : > { %12435 = vst [vmem:[#allocation58_spill] sm:$0xff] %v11087_v0  ;;  %v4493_v0 = vpack.c.bf16 %v4399_v31, %v4397_v13  ;;  %v4401_v13 = vmax.f32 %v4186_v28, 0.0 }
 0x54e   : > { %v11077_v60 = vpop.f32.mrf.mxu0  ;;  %5254 = vmatmul.mubr.bf16.gmra.mxu0 %v4488_v4  ;;  %v11091_v15 = vpop.f32.mrf.mxu1 }
 0x54f   : > { %5263 = vmatprep.mubr.bf16.mxu0 %v4491_v21  ;;  %12436 = vst [vmem:[#allocation59_spill] sm:$0xff] %v11091_v15  ;;  %v4495_v5 = vpack.c.bf16 %v4403_v22, %v4401_v13  ;;  %v8705_v22 = vld [vmem:[#allocation16 + $0x14] ss:$8 sps:$4 sm:$0xff]  }
 0x550   : > { %v11085_v63 = vpop.f32.mrf.mxu0  ;;  %v11097_v52 = vpop.f32.mrf.mxu1  ;;  %6731 = vmatprep.subr.bf16.mxu0 %v8705_v22 }
 0x551   : > { %12437 = vst [vmem:[#allocation60_spill] sm:$0xff] %v11097_v52  ;;  %v4396_v52 = vmax.f32 %v4174_v6, 0.0  ;;  %v4184_v6 = vadd.f32 %v10957_v25, %v10706_v38 }
 0x552   : > { %v11089_v58 = vpop.f32.mrf.mxu0  ;;  %v11105_v33 = vpop.f32.mrf.mxu1 }
 0x553   : > { %12438 = vst [vmem:[#allocation61_spill] sm:$0xff] %v11105_v33  ;;  %v4188_v33 = vadd.f32 %v10969_v3, %v10706_v38  ;;  %v4400_v13 = vmax.f32 %v4184_v6, 0.0  ;;  %v4194_v6 = vadd.f32 %v10981_v37, %v10706_v38  ;;  %v4208_v37 = vadd.f32 %v11017_v49, %v10706_v38 }
 0x554   : > { %v11093_v4 = vpop.f32.mrf.mxu0  ;;  %v11111_v47 = vpop.f32.mrf.mxu1 }
 0x555   : > { %12439 = vst [vmem:[#allocation62_spill] sm:$0xff] %v11111_v47  ;;  %v4402_v3 = vmax.f32 %v4188_v33, 0.0  ;;  %v4210_v33 = vadd.f32 %v11021_v16, %v10684_v57  ;;  %v4404_v16 = vmax.f32 %v4194_v6, 0.0  ;;  %v4410_v6 = vmax.f32 %v4208_v37, 0.0 }
 0x556   : > { %v11101_v21 = vpop.f32.mrf.mxu0  ;;  %5264 = vmatmul.mubr.bf16.gmra.mxu0 %v4490_v39  ;;  %v11115_v31 = vpop.f32.mrf.mxu1  ;;  %v4492_v39 = vpack.c.bf16 %v4398_v55, %v4396_v52  ;;  %v4196_v52 = vadd.f32 %v10989_v32, %v10684_v57  ;;  %v4198_v32 = vadd.f32 %v10993_v7, %v10706_v38  ;;  %v4230_v37 = vadd.f32 %v11069_v30, %v10684_v57 }
 0x557   : > { %5273 = vmatprep.mubr.bf16.mxu0 %v4493_v0  ;;  %12440 = vst [vmem:[#allocation63_spill] sm:$0xff] %v11115_v31  ;;  %v4200_v0 = vadd.f32 %v10997_v2, %v10684_v57  ;;  %v8703_v31 = vld [vmem:[#allocation16 + $0x10] ss:$8 sps:$4 sm:$0xff]   ;;  %v4411_v22 = vmax.f32 %v4210_v33, 0.0  ;;  %v4216_v33 = vadd.f32 %v11037_v24, %v10684_v57 }
 0x558   : > { %v11109_v18 = vpop.f32.mrf.mxu0  ;;  %v11121_v29 = vpop.f32.mrf.mxu1  ;;  %v4405_v15 = vmax.f32 %v4196_v52, 0.0  ;;  %6732 = vmatpush1.bf16.msra.mxu0 %v8703_v31  ;;  %v4206_v52 = vadd.f32 %v11013_v17, %v10684_v57  ;;  %v4406_v7 = vmax.f32 %v4198_v32, 0.0  ;;  %v4220_v17 = vadd.f32 %v11045_v59, %v10684_v57 }
 0x559   : > { %12441 = vst [vmem:[#allocation64_spill] sm:$0xff] %v11121_v29  ;;  %v4407_v29 = vmax.f32 %v4200_v0, 0.0 }
 0x55a   : > { %v11113_v40 = vpop.f32.mrf.mxu0  ;;  %v11129_v47 = vpop.f32.mrf.mxu1 }
 0x55b   : > { %12442 = vst [vmem:[#allocation65_spill] sm:$0xff] %v11129_v47 }
 0x55c   : > { %v11117_v27 = vpop.f32.mrf.mxu0  ;;  %v11135_v55 = vpop.f32.mrf.mxu1 }
 0x55d   : > { %12443 = vst [vmem:[#allocation66_spill] sm:$0xff] %v11135_v55  ;;  %v4497_v55 = vpack.c.bf16 %v4407_v29, %v4405_v15  ;;  %v4496_v15 = vpack.c.bf16 %v4406_v7, %v4404_v16  ;;  %v4415_v7 = vmax.f32 %v4220_v17, 0.0  ;;  %v8706_v16 = vld [vmem:[#allocation16] ss:$8 sps:$4 sm:$0xff]  }
 0x55e   : > { %v11125_v46 = vpop.f32.mrf.mxu0  ;;  %5274 = vmatmul.mubr.bf16.gmra.mxu0 %v4492_v39  ;;  %v4494_v39 = vpack.c.bf16 %v4402_v3, %v4400_v13 }
 0x55f   : > { %5283 = vmatprep.mubr.bf16.mxu0 %v4495_v5  ;;  %v11143_v5 = vpop.f32.mrf.mxu1 }
 0x560   : > { %v11133_v28 = vpop.f32.mrf.mxu0  ;;  %12444 = vst [vmem:[#allocation67_spill] sm:$0xff] %v11143_v5  ;;  %v4409_v5 = vmax.f32 %v4206_v52, 0.0 }
 0x561   : > { %v11155_v31 = vpop.f32.mrf.mxu1 }
 0x562   : > { %v11137_v2 = vpop.f32.mrf.mxu0  ;;  %12445 = vst [vmem:[#allocation68_spill] sm:$0xff] %v11155_v31 }
 0x563   : > { %v11163_v29 = vpop.f32.mrf.mxu1 }
 0x564   : > { %v11139_v25 = vpop.f32.mrf.mxu0  ;;  %12446 = vst [vmem:[#allocation69_spill] sm:$0xff] %v11163_v29  ;;  %v8708_v29 = vld [vmem:[#allocation16 + $0x4] ss:$8 sps:$4 sm:$0xff]  }
 0x565   : > { %v11175_v49 = vpop.f32.mrf.mxu1  ;;  %6733 = vmatprep.subr.bf16.mxu0 %v8708_v29  ;;  %v4226_v29 = vadd.f32 %v11061_v19, %v10684_v57  ;;  %v4240_v19 = vadd.f32 %v11093_v4, %v10684_v57 }
 0x566   : > { %v11147_v0 = vpop.f32.mrf.mxu0  ;;  %5284 = vmatmul.mubr.bf16.gmra.mxu0 %v4494_v39  ;;  %v4204_v39 = vadd.f32 %v11005_v12, %v10706_v38  ;;  %12447 = vst [vmem:[#allocation70_spill] sm:$0xff] %v11175_v49 }
 0x567   : > { %5293 = vmatprep.mubr.bf16.mxu0 %v4497_v55  ;;  %v4499_v55 = vpack.c.bf16 %v4411_v22, %v4409_v5  ;;  %v4413_v22 = vmax.f32 %v4216_v33, 0.0  ;;  %v11183_v24 = vpop.f32.mrf.mxu1  ;;  %6734 = vmatpush1.bf16.msra.mxu0 %v8706_v16  ;;  %v4419_v16 = vmax.f32 %v4230_v37, 0.0  ;;  %v4417_v30 = vmax.f32 %v4226_v29, 0.0 }
 0x568   : > { %v11153_v3 = vpop.f32.mrf.mxu0  ;;  %v4408_v59 = vmax.f32 %v4204_v39, 0.0  ;;  %12448 = vst [vmem:[#allocation71_spill] sm:$0xff] %v11183_v24 }
 0x569   : > { %v4501_v17 = vpack.c.bf16 %v4415_v7, %v4413_v22 }
 0x56a   : > { %v11157_v13 = vpop.f32.mrf.mxu0  ;;  %v4498_v12 = vpack.c.bf16 %v4410_v6, %v4408_v59  ;;  %v11195_v6 = vpop.f32.mrf.mxu1 }
 0x56b   : > { %12449 = vst [vmem:[#allocation72_spill] sm:$0xff] %v11195_v6  ;;  %v8711_v6 = vld [vmem:[#allocation16 + $0xf4] ss:$8 sps:$4 sm:$0xff]  }
 0x56c   : > { %v11159_v47 = vpop.f32.mrf.mxu0  ;;  %6735 = vmatprep.subr.bf16.mxu0 %v8711_v6  ;;  %v4246_v6 = vadd.f32 %v11109_v18, %v10684_v57  ;;  %v4260_v18 = vadd.f32 %v11139_v25, %v10684_v57 }
 0x56e   : > { %v11169_v32 = vpop.f32.mrf.mxu0  ;;  %5294 = vmatmul.mubr.bf16.gmra.mxu0 %v4496_v15  ;;  %v4218_v15 = vadd.f32 %v11041_v35, %v10706_v38 }
 0x56f   : > { %5303 = vmatprep.mubr.bf16.mxu0 %v4499_v55  ;;  %v4214_v55 = vadd.f32 %v11029_v48, %v10706_v38  ;;  %v4228_v48 = vadd.f32 %v11065_v54, %v10706_v38 }
 0x570   : > { %v11173_v52 = vpop.f32.mrf.mxu0  ;;  %v4414_v35 = vmax.f32 %v4218_v15, 0.0  ;;  %v4503_v15 = vpack.c.bf16 %v4419_v16, %v4417_v30 }
 0x571   : > { %v4412_v59 = vmax.f32 %v4214_v55, 0.0  ;;  %v4236_v55 = vadd.f32 %v11085_v63, %v10684_v57  ;;  %v4418_v29 = vmax.f32 %v4228_v48, 0.0  ;;  %v4250_v48 = vadd.f32 %v11117_v27, %v10684_v57 }
 0x572   : > { %v11177_v5 = vpop.f32.mrf.mxu0  ;;  %v4425_v27 = vmax.f32 %v4246_v6, 0.0 }
 0x573   : > { %v4500_v7 = vpack.c.bf16 %v4414_v35, %v4412_v59  ;;  %v4423_v59 = vmax.f32 %v4240_v19, 0.0  ;;  %v4421_v30 = vmax.f32 %v4236_v55, 0.0 }
 0x574   : > { %v11181_v31 = vpop.f32.mrf.mxu0 }
 0x575   : > { %v4505_v19 = vpack.c.bf16 %v4423_v59, %v4421_v30 }
 0x576   : > { %v11189_v39 = vpop.f32.mrf.mxu0  ;;  %5304 = vmatmul.mubr.bf16.gmra.mxu0 %v4498_v12  ;;  %v11203_v12 = vpop.f32.mrf.mxu1 }
 0x577   : > { %5313 = vmatprep.mubr.bf16.mxu0 %v4501_v17  ;;  %12450 = vst [vmem:[#allocation73_spill] sm:$0xff] %v11203_v12  ;;  %v4224_v17 = vadd.f32 %v11053_v44, %v10706_v38  ;;  %v8709_v12 = vld [vmem:[#allocation16 + $0xf0] ss:$8 sps:$4 sm:$0xff]  }
 0x578   : > { %v11193_v33 = vpop.f32.mrf.mxu0  ;;  %v11215_v35 = vpop.f32.mrf.mxu1  ;;  %6736 = vmatpush2.bf16.msra.mxu0 %v8709_v12  ;;  %v4427_v12 = vmax.f32 %v4250_v48, 0.0 }
 0x579   : > { %12451 = vst [vmem:[#allocation74_spill] sm:$0xff] %v11215_v35  ;;  %v4416_v4 = vmax.f32 %v4224_v17, 0.0 }
 0x57a   : > { %v11197_v49 = vpop.f32.mrf.mxu0  ;;  %v11223_v63 = vpop.f32.mrf.mxu1 }
 0x57b   : > { %v4502_v44 = vpack.c.bf16 %v4418_v29, %v4416_v4  ;;  %12452 = vst [vmem:[#allocation75_spill] sm:$0xff] %v11223_v63 }
 0x57c   : > { %v11201_v22 = vpop.f32.mrf.mxu0  ;;  %v11235_v29 = vpop.f32.mrf.mxu1 }
 0x57d   : > { %12453 = vst [vmem:[#allocation76_spill] sm:$0xff] %v11235_v29  ;;  %v8714_v29 = vld [vmem:[#allocation16 + $0xe4] ss:$8 sps:$4 sm:$0xff]  }
 0x57e   : > { %v11209_v37 = vpop.f32.mrf.mxu0  ;;  %5314 = vmatmul.mubr.bf16.gmra.mxu0 %v4500_v7  ;;  %v4238_v7 = vadd.f32 %v11089_v58, %v10706_v38  ;;  %6737 = vmatprep.subr.bf16.mxu0 %v8714_v29  ;;  %v4266_v29 = vadd.f32 %v11153_v3, %v10684_v57 }
 0x57f   : > { %5323 = vmatprep.mubr.bf16.mxu0 %v4503_v15  ;;  %v4234_v15 = vadd.f32 %v11077_v60, %v10706_v38  ;;  %v4248_v60 = vadd.f32 %v11113_v40, %v10706_v38 }
 0x580   : > { %v11213_v54 = vpop.f32.mrf.mxu0  ;;  %v4422_v58 = vmax.f32 %v4238_v7, 0.0  ;;  %v4507_v7 = vpack.c.bf16 %v4427_v12, %v4425_v27 }
 0x581   : > { %v4420_v4 = vmax.f32 %v4234_v15, 0.0  ;;  %v4256_v15 = vadd.f32 %v11133_v28, %v10684_v57  ;;  %v4426_v6 = vmax.f32 %v4248_v60, 0.0  ;;  %v4270_v60 = vadd.f32 %v11159_v47, %v10684_v57 }
 0x582   : > { %v11217_v16 = vpop.f32.mrf.mxu0  ;;  %v4433_v47 = vmax.f32 %v4266_v29, 0.0  ;;  %v5434_v29 = vld [vmem:[#allocation12] sm:$0x3] }
 0x583   : > { %v4504_v59 = vpack.c.bf16 %v4422_v58, %v4420_v4  ;;  %v4431_v4 = vmax.f32 %v4260_v18, 0.0  ;;  %v4429_v27 = vmax.f32 %v4256_v15, 0.0 }
 0x584   : > { %v11221_v24 = vpop.f32.mrf.mxu0 }
 0x585   : > { %v4509_v18 = vpack.c.bf16 %v4431_v4, %v4429_v27  ;;  %v4280_v27 = vadd.f32 %v11181_v31, %v10684_v57 }
 0x586   : > { %v11229_v17 = vpop.f32.mrf.mxu0  ;;  %5324 = vmatmul.mubr.bf16.gmra.mxu0 %v4502_v44  ;;  %v11243_v44 = vpop.f32.mrf.mxu1 }
 0x587   : > { %5333 = vmatprep.mubr.bf16.mxu0 %v4505_v19  ;;  %12454 = vst [vmem:[#allocation77_spill] sm:$0xff] %v11243_v44  ;;  %v4244_v19 = vadd.f32 %v11101_v21, %v10706_v38  ;;  %v8712_v44 = vld [vmem:[#allocation16 + $0xe0] ss:$8 sps:$4 sm:$0xff]  }
 0x588   : > { %v11233_v55 = vpop.f32.mrf.mxu0  ;;  %v11255_v58 = vpop.f32.mrf.mxu1  ;;  %6738 = vmatpush2.bf16.msra.mxu0 %v8712_v44  ;;  %v4435_v44 = vmax.f32 %v4270_v60, 0.0  ;;  %v4276_v60 = vadd.f32 %v11173_v52, %v10684_v57 }
 0x589   : > { %12455 = vst [vmem:[#allocation78_spill] sm:$0xff] %v11255_v58  ;;  %v4424_v25 = vmax.f32 %v4244_v19, 0.0 }
 0x58a   : > { %v11237_v35 = vpop.f32.mrf.mxu0  ;;  %v11263_v28 = vpop.f32.mrf.mxu1 }
 0x58b   : > { %v4506_v21 = vpack.c.bf16 %v4426_v6, %v4424_v25  ;;  %12456 = vst [vmem:[#allocation79_spill] sm:$0xff] %v11263_v28  ;;  %v4437_v28 = vmax.f32 %v4276_v60, 0.0 }
 0x58c   : > { %v11241_v30 = vpop.f32.mrf.mxu0  ;;  %v11275_v6 = vpop.f32.mrf.mxu1 }
 0x58d   : > { %12457 = vst [vmem:[#allocation80_spill] sm:$0xff] %v11275_v6 }
 0x58e   : > { %v11249_v48 = vpop.f32.mrf.mxu0  ;;  %5334 = vmatmul.mubr.bf16.gmra.mxu0 %v4504_v59  ;;  %v4258_v59 = vadd.f32 %v11137_v2, %v10706_v38  ;;  %v11285_v3 = vpop.f32.mrf.mxu1 }
 0x58f   : > { %5343 = vmatprep.mubr.bf16.mxu0 %v4507_v7  ;;  %v4254_v7 = vadd.f32 %v11125_v46, %v10706_v38  ;;  %v4268_v46 = vadd.f32 %v11157_v13, %v10706_v38  ;;  %12458 = vst [vmem:[#allocation81_spill] sm:$0xff] %v11285_v3  ;;  %v4439_v13 = vmax.f32 %v4280_v27, 0.0  ;;  %v11295_v3 = vrot.slane %v5434_v29, %v9647_v23 }
 0x590   : > { %v11253_v40 = vpop.f32.mrf.mxu0  ;;  %v4430_v2 = vmax.f32 %v4258_v59, 0.0  ;;  %v4511_v59 = vpack.c.bf16 %v4435_v44, %v4433_v47  ;;  %v11291_v6 = vpop.f32.mrf.mxu1  ;;  %v8715_v44 = vld [vmem:[#allocation16 + $0xd0] ss:$8 sps:$4 sm:$0xff]   ;;  %v8717_v47 = vld [vmem:[#allocation16 + $0xd4] ss:$8 sps:$4 sm:$0xff]  }
 0x591   : > { %v4428_v25 = vmax.f32 %v4254_v7, 0.0  ;;  %12459 = vst [vmem:[#allocation82_spill] sm:$0xff] %v11291_v6  ;;  %6739 = vmatprep.subr.bf16.mxu0 %v8717_v47  ;;  %v4513_v23 = vpack.c.bf16 %v4439_v13, %v4437_v28  ;;  %v4286_v28 = vadd.f32 %v11193_v33, %v10684_v57 }
 0x592   : > { %v11257_v12 = vpop.f32.mrf.mxu0  ;;  %v11304_v6 = vpop.f32.mrf.mxu1  ;;  %6740 = vmatpush2.bf16.msra.mxu0 %v8715_v44 }
 0x593   : > { %v4508_v4 = vpack.c.bf16 %v4430_v2, %v4428_v25  ;;  %v4434_v2 = vmax.f32 %v4268_v46, 0.0 }
 0x594   : > { %v11261_v63 = vpop.f32.mrf.mxu0  ;;  %v11317_v44 = vpop.f32.mrf.mxu1 }
 0x596   : > { %v11269_v19 = vpop.f32.mrf.mxu0  ;;  %5344 = vmatmul.mubr.bf16.gmra.mxu0 %v4506_v21 }
 0x597   : > { %5353 = vmatprep.mubr.bf16.mxu0 %v4509_v18  ;;  %v4264_v18 = vadd.f32 %v11147_v0, %v10706_v38 }
 0x598   : > { %v11273_v15 = vpop.f32.mrf.mxu0 }
 0x599   : > { %v4432_v0 = vmax.f32 %v4264_v18, 0.0  ;;  %v4290_v18 = vadd.f32 %v11201_v22, %v10684_v57 }
 0x59a   : > { %v11277_v58 = vpop.f32.mrf.mxu0 }
 0x59b   : > { %v4510_v27 = vpack.c.bf16 %v4434_v2, %v4432_v0  ;;  %v4443_v47 = vmax.f32 %v4290_v18, 0.0  ;;  %v4300_v18 = vadd.f32 %v11221_v24, %v10684_v57 }
 0x59c   : > { %v11283_v21 = vpop.f32.mrf.mxu0 }
 0x59e   : > { %v5115_v7 = vpop.f32.mrf.mxu0  ;;  %5354 = vmatmul.mubr.bf16.gmra.mxu0 %v4508_v4  ;;  %v11299_v4 = vrot.slane %v5434_v29, %v9655_v26 }
 0x59f   : > { %5363 = vmatprep.mubr.bf16.mxu0 %v4511_v59  ;;  %v5116_v52 = vadd.f32 %v5115_v7, %v10762_v10 }
 0x5a0   : > { %v5117_v25 = vpop.f32.mrf.mxu0 }
 0x5a1   : > { %v5118_v31 = vadd.f32 %v5117_v25, %v10767_v50  ;;  %v4278_v50 = vadd.f32 %v11177_v5, %v10706_v38  ;;  %v5446_v29 = vadd.f32 %v11299_v4, %v5116_v52 }
 0x5a2   : > { %v5119_v59 = vpop.f32.mrf.mxu0 }
 0x5a3   : > { %v5120_v46 = vadd.f32 %v5119_v59, %v10773_v51  ;;  %v5447_v10 = vadd.f32 %v11295_v3, %v5118_v31  ;;  %v4274_v51 = vadd.f32 %v11169_v32, %v10706_v38  ;;  %v4438_v22 = vmax.f32 %v4278_v50, 0.0 }
 0x5a4   : > { %v5121_v25 = vpop.f32.mrf.mxu0  ;;  %v5574_v52 = vmax.f32 %v5446_v29, 0.0  ;;  %v4288_v50 = vadd.f32 %v11197_v49, %v10706_v38  ;;  %v4284_v29 = vadd.f32 %v11189_v39, %v10706_v38  ;;  %v4296_v49 = vadd.f32 %v11213_v54, %v10684_v57  ;;  %v8720_v54 = vld [vmem:[#allocation16 + $0xc4] ss:$8 sps:$4 sm:$0xff]  }
 0x5a5   : > { %v5448_v60 = vadd.f32 %v11299_v4, %v5120_v46  ;;  %v5122_v7 = vadd.f32 %v5121_v25, %v10781_v41  ;;  %v5575_v41 = vmax.f32 %v5447_v10, 0.0  ;;  %v4436_v59 = vmax.f32 %v4274_v51, 0.0  ;;  %6741 = vmatprep.subr.bf16.mxu0 %v8720_v54 }
 0x5a6   : > { %v5125_v5 = vpop.f32.mrf.mxu0  ;;  %5364 = vmatmul.mubr.bf16.gmra.mxu0 %v4510_v27  ;;  %v4441_v25 = vmax.f32 %v4286_v28, 0.0 }
 0x5a7   : > { %v5449_v2 = vadd.f32 %v11295_v3, %v5122_v7  ;;  %5373 = vmatprep.mubr.bf16.mxu0 %v4513_v23  ;;  %v5576_v13 = vmax.f32 %v5448_v60, 0.0  ;;  %v5126_v46 = vadd.f32 %v5125_v5, %v10789_v9  ;;  %v4512_v23 = vpack.c.bf16 %v4438_v22, %v4436_v59 }
 0x5a8   : > { %v5127_v31 = vpop.f32.mrf.mxu0  ;;  %v4442_v22 = vmax.f32 %v4288_v50, 0.0  ;;  %v4440_v59 = vmax.f32 %v4284_v29, 0.0  ;;  %v4298_v50 = vadd.f32 %v11217_v16, %v10706_v38  ;;  %v4306_v29 = vadd.f32 %v11233_v55, %v10684_v57 }
 0x5a9   : > { %v5577_v0 = vmax.f32 %v5449_v2, 0.0  ;;  %v5128_v32 = vadd.f32 %v5127_v31, %v10794_v8  ;;  %v5702_v10 = vpack.c.bf16 %v5576_v13, %v5574_v52  ;;  %v11326_v2 = vpop.f32.mrf.mxu1  ;;  %v5450_v24 = vadd.f32 %v11299_v4, %v5126_v46 }
 0x5aa   : > { %v5129_v27 = vpop.f32.mrf.mxu0  ;;  %v4447_v13 = vmax.f32 %v4300_v18, 0.0  ;;  %v4445_v52 = vmax.f32 %v4296_v49, 0.0  ;;  %v4446_v49 = vmax.f32 %v4298_v50, 0.0 }
 0x5ab   : > { %v5130_v33 = vadd.f32 %v5129_v27, %v10800_v42  ;;  %v5703_v7 = vpack.c.bf16 %v5577_v0, %v5575_v41  ;;  %v5451_v8 = vadd.f32 %v11295_v3, %v5128_v32  ;;  %v4515_v42 = vpack.c.bf16 %v4443_v47, %v4441_v25  ;;  %v11337_v41 = vpop.f32.mrf.mxu1  ;;  %v8718_v32 = vld [vmem:[#allocation16 + $0xc0] ss:$8 sps:$4 sm:$0xff]  }
 0x5ac   : > { %v5131_v60 = vpop.f32.mrf.mxu0  ;;  %v5578_v46 = vmax.f32 %v5450_v24, 0.0  ;;  %6742 = vmatpush2.bf16.msra.mxu0 %v8718_v32 }
 0x5ad   : > { %v5452_v9 = vadd.f32 %v11299_v4, %v5130_v33  ;;  %v5132_v51 = vadd.f32 %v5131_v60, %v10808_v34  ;;  %6002 = vmatprep.mubr.bf16.mxu1 %v5703_v7  ;;  %v5579_v47 = vmax.f32 %v5451_v8, 0.0  ;;  %v4517_v60 = vpack.c.bf16 %v4447_v13, %v4445_v52 }
 0x5ae   : > { %v5135_v5 = vpop.f32.mrf.mxu0  ;;  %5374 = vmatmul.mubr.bf16.gmra.mxu0 %v4512_v23  ;;  %6003 = vmatmul.mubr.bf16.vlgmr.msra.gmra.mxu1 %v5702_v10  ;;  %v4514_v23 = vpack.c.bf16 %v4442_v22, %v4440_v59  ;;  %v4310_v8 = vadd.f32 %v11241_v30, %v10684_v57  ;;  %v4308_v59 = vadd.f32 %v11237_v35, %v10706_v38 }
 0x5af   : > { %v5453_v28 = vadd.f32 %v11295_v3, %v5132_v51  ;;  %5383 = vmatprep.mubr.bf16.mxu0 %v4515_v42  ;;  %v5580_v31 = vmax.f32 %v5452_v9, 0.0  ;;  %v5136_v27 = vadd.f32 %v5135_v5, %v10816_v1  ;;  %v4294_v51 = vadd.f32 %v11209_v37, %v10706_v38 }
 0x5b0   : > { %v5137_v34 = vpop.f32.mrf.mxu0  ;;  %v4320_v52 = vadd.f32 %v11261_v63, %v10684_v57  ;;  %v4316_v35 = vadd.f32 %v11253_v40, %v10684_v57  ;;  %v8723_v40 = vld [vmem:[#allocation16 + $0xb4] ss:$8 sps:$4 sm:$0xff]  }
 0x5b1   : > { %v5581_v0 = vmax.f32 %v5453_v28, 0.0  ;;  %v5138_v39 = vadd.f32 %v5137_v34, %v10821_v36  ;;  %v5704_v18 = vpack.c.bf16 %v5580_v31, %v5578_v46  ;;  %v11344_v36 = vpop.f32.mrf.mxu1  ;;  %v5454_v16 = vadd.f32 %v11299_v4, %v5136_v27  ;;  %6743 = vmatprep.subr.bf16.mxu0 %v8723_v40 }
 0x5b2   : > { %v5139_v25 = vpop.f32.mrf.mxu0  ;;  %v4444_v31 = vmax.f32 %v4294_v51, 0.0 }
 0x5b3   : > { %v5140_v33 = vadd.f32 %v5139_v25, %v10827_v61  ;;  %v5705_v7 = vpack.c.bf16 %v5581_v0, %v5579_v47  ;;  %v5455_v1 = vadd.f32 %v11295_v3, %v5138_v39  ;;  %v11357_v28 = vpop.f32.mrf.mxu1  ;;  %v5582_v34 = vmax.f32 %v5454_v16, 0.0 }
 0x5b4   : > { %v5141_v10 = vpop.f32.mrf.mxu0  ;;  %v4449_v39 = vmax.f32 %v4306_v29, 0.0  ;;  %v4516_v54 = vpack.c.bf16 %v4446_v49, %v4444_v31  ;;  %v4453_v16 = vmax.f32 %v4316_v35, 0.0  ;;  %v12460_v29 = vld [vmem:[#allocation25_spill] sm:$0xff] }
 0x5b5   : > { %v5456_v9 = vadd.f32 %v11299_v4, %v5140_v33  ;;  %v5142_v61 = vadd.f32 %v5141_v10, %v10835_v43  ;;  %6012 = vmatprep.mubr.bf16.mxu1 %v5705_v7  ;;  %v4451_v43 = vmax.f32 %v4310_v8, 0.0  ;;  %v5583_v22 = vmax.f32 %v5455_v1, 0.0  ;;  %v11366_v25 = vpop.f32.mrf.mxu1 }
 0x5b6   : > { %v5145_v42 = vpop.f32.mrf.mxu0  ;;  %5384 = vmatmul.mubr.bf16.gmra.mxu0 %v4514_v23  ;;  %6013 = vmatmul.mubr.bf16.gmra.mxu1 %v5704_v18  ;;  %v4304_v7 = vadd.f32 %v11229_v17, %v10706_v38  ;;  %v4450_v18 = vmax.f32 %v4308_v59, 0.0  ;;  %v4455_v10 = vmax.f32 %v4320_v52, 0.0  ;;  %v4326_v52 = vadd.f32 %v11273_v15, %v10684_v57 }
 0x5b7   : > { %v5457_v30 = vadd.f32 %v11295_v3, %v5142_v61  ;;  %5393 = vmatprep.mubr.bf16.mxu0 %v4517_v60  ;;  %v5584_v24 = vmax.f32 %v5456_v9, 0.0  ;;  %v5146_v47 = vadd.f32 %v5145_v42, %v10843_v11  ;;  %v11377_v8 = vpop.f32.mrf.mxu1  ;;  %v8721_v61 = vld [vmem:[#allocation16 + $0xb0] ss:$8 sps:$4 sm:$0xff]  }
 0x5b8   : > { %v5147_v5 = vpop.f32.mrf.mxu0  ;;  %v4448_v51 = vmax.f32 %v4304_v7, 0.0  ;;  %6744 = vmatpush2.bf16.msra.mxu0 %v8721_v61 }
 0x5b9   : > { %v5585_v13 = vmax.f32 %v5457_v30, 0.0  ;;  %v5148_v37 = vadd.f32 %v5147_v5, %v10848_v62  ;;  %v5706_v46 = vpack.c.bf16 %v5584_v24, %v5582_v34  ;;  %v5458_v63 = vadd.f32 %v11299_v4, %v5146_v47  ;;  %v12461_v24 = vld [vmem:[#allocation26_spill] sm:$0xff] }
 0x5ba   : > { %v5149_v0 = vpop.f32.mrf.mxu0  ;;  %v4521_v34 = vpack.c.bf16 %v4455_v10, %v4453_v16  ;;  %v4330_v47 = vadd.f32 %v11283_v21, %v10684_v57  ;;  %v12465_v57 = vld [vmem:[#allocation30_spill] sm:$0xff] }
 0x5bb   : > { %v5150_v55 = vadd.f32 %v5149_v0, %v10854_v20  ;;  %v5707_v32 = vpack.c.bf16 %v5585_v13, %v5583_v22  ;;  %v5459_v62 = vadd.f32 %v11295_v3, %v5148_v37  ;;  %v4519_v20 = vpack.c.bf16 %v4451_v43, %v4449_v39 }
 0x5bc   : > { %v5151_v27 = vpop.f32.mrf.mxu0  ;;  %v5586_v42 = vmax.f32 %v5458_v63, 0.0  ;;  %v4518_v22 = vpack.c.bf16 %v4450_v18, %v4448_v51  ;;  %v4318_v13 = vadd.f32 %v11257_v12, %v10706_v38 }
 0x5bd   : > { %v5460_v11 = vadd.f32 %v11299_v4, %v5150_v55  ;;  %v5152_v33 = vadd.f32 %v5151_v27, %v10862_v53  ;;  %6022 = vmatprep.mubr.bf16.mxu1 %v5707_v32  ;;  %v5587_v1 = vmax.f32 %v5459_v62, 0.0  ;;  %v12462_v55 = vld [vmem:[#allocation27_spill] sm:$0xff] }
 0x5be   : > { %v5155_v23 = vpop.f32.mrf.mxu0  ;;  %5394 = vmatmul.mubr.bf16.gmra.mxu0 %v4516_v54  ;;  %6023 = vmatmul.mubr.bf16.gmra.mxu1 %v5706_v46  ;;  %v4314_v54 = vadd.f32 %v11249_v48, %v10706_v38  ;;  %v4454_v46 = vmax.f32 %v4318_v13, 0.0  ;;  %v12463_v48 = vld [vmem:[#allocation29_spill] sm:$0xff] }
 0x5bf   : > { %v5461_v50 = vadd.f32 %v11295_v3, %v5152_v33  ;;  %5403 = vmatprep.mubr.bf16.mxu0 %v4519_v20  ;;  %v5588_v60 = vmax.f32 %v5460_v11, 0.0  ;;  %v5156_v30 = vadd.f32 %v5155_v23, %v12460_v29  ;;  %v4459_v33 = vmax.f32 %v4330_v47, 0.0  ;;  %v12467_v47 = vld [vmem:[#allocation33_spill] sm:$0xff] }
 0x5c0   : > { %v5157_v53 = vpop.f32.mrf.mxu0  ;;  %v4452_v63 = vmax.f32 %v4314_v54, 0.0 }
 0x5c1   : > { %v5589_v9 = vmax.f32 %v5461_v50, 0.0  ;;  %v5158_v17 = vadd.f32 %v5157_v53, %v10874_v45  ;;  %v5708_v37 = vpack.c.bf16 %v5588_v60, %v5586_v42  ;;  %v11384_v45 = vpop.f32.mrf.mxu1  ;;  %v5462_v12 = vadd.f32 %v11299_v4, %v5156_v30  ;;  %v12464_v50 = vld [vmem:[#allocation28_spill] sm:$0xff]  ;;  %v12466_v42 = vld [vmem:[#allocation31_spill] sm:$0xff] }
 0x5c2   : > { %v5159_v49 = vpop.f32.mrf.mxu0  ;;  %v4457_v60 = vmax.f32 %v4326_v52, 0.0 }
 0x5c3   : > { %v5160_v5 = vadd.f32 %v5159_v49, %v12461_v24  ;;  %v5709_v43 = vpack.c.bf16 %v5589_v9, %v5587_v1  ;;  %v5463_v0 = vadd.f32 %v11295_v3, %v5158_v17  ;;  %v11397_v11 = vpop.f32.mrf.mxu1  ;;  %v5590_v23 = vmax.f32 %v5462_v12, 0.0 }
 0x5c4   : > { %v5161_v31 = vpop.f32.mrf.mxu0  ;;  %v4520_v1 = vpack.c.bf16 %v4454_v46, %v4452_v63  ;;  %v4328_v9 = vadd.f32 %v11277_v58, %v10706_v38  ;;  %v4523_v30 = vpack.c.bf16 %v4459_v33, %v4457_v60  ;;  %v4324_v49 = vadd.f32 %v11269_v19, %v10706_v38 }
 0x5c5   : > { %v5464_v39 = vadd.f32 %v11299_v4, %v5160_v5  ;;  %v5162_v32 = vadd.f32 %v5161_v31, %v12462_v55  ;;  %6032 = vmatprep.mubr.bf16.mxu1 %v5709_v43  ;;  %v5591_v20 = vmax.f32 %v5463_v0, 0.0  ;;  %v11404_v40 = vpop.f32.mrf.mxu1  ;;  %v8726_v55 = vld [vmem:[#allocation16 + $0xa4] ss:$8 sps:$4 sm:$0xff]  }
 0x5c6   : > { %v5165_v59 = vpop.f32.mrf.mxu0  ;;  %5404 = vmatmul.mubr.bf16.gmra.mxu0 %v4518_v22  ;;  %6033 = vmatmul.mubr.bf16.gmra.mxu1 %v5708_v37  ;;  %v4458_v43 = vmax.f32 %v4328_v9, 0.0  ;;  %v4456_v38 = vmax.f32 %v4324_v49, 0.0 }
 0x5c7   : > { %v5465_v21 = vadd.f32 %v11295_v3, %v5162_v32  ;;  %5413 = vmatprep.mubr.bf16.mxu0 %v4521_v34  ;;  %v5592_v27 = vmax.f32 %v5464_v39, 0.0  ;;  %v5166_v18 = vadd.f32 %v5165_v59, %v12464_v50  ;;  %v11413_v37 = vpop.f32.mrf.mxu1  ;;  %v8724_v39 = vld [vmem:[#allocation16 + $0xa0] ss:$8 sps:$4 sm:$0xff]   ;;  %v12469_v59 = vld [vmem:[#allocation34_spill] sm:$0xff]  ;;  %6745 = vmatprep.subr.bf16.mxu0 %v8726_v55 }
 0x5c8   : > { %v5167_v62 = vpop.f32.mrf.mxu0  ;;  %v12468_v32 = vld [vmem:[#allocation32_spill] sm:$0xff]  ;;  %v4522_v46 = vpack.c.bf16 %v4458_v43, %v4456_v38  ;;  %6746 = vmatpush2.bf16.msra.mxu0 %v8724_v39  ;;  %v8727_v55 = vld [vmem:[#allocation16 + $0x90] ss:$8 sps:$4 sm:$0xff]   ;;  %v8729_v38 = vld [vmem:[#allocation16 + $0x94] ss:$8 sps:$4 sm:$0xff]  }
 0x5c9   : > { %v5593_v7 = vmax.f32 %v5465_v21, 0.0  ;;  %v5168_v35 = vadd.f32 %v5167_v62, %v12463_v48  ;;  %v5710_v17 = vpack.c.bf16 %v5592_v27, %v5590_v23  ;;  %v5466_v24 = vadd.f32 %v11299_v4, %v5166_v18  ;;  %v11418_v33 = vpop.f32.mrf.mxu1  ;;  %v12470_v48 = vld [vmem:[#allocation35_spill] sm:$0xff]  ;;  %6747 = vmatprep.subr.bf16.mxu0 %v8729_v38 }
 0x5ca   : > { %v5169_v10 = vpop.f32.mrf.mxu0 }
 0x5cb   : > { %v5170_v15 = vadd.f32 %v5169_v10, %v12465_v57  ;;  %v5711_v53 = vpack.c.bf16 %v5593_v7, %v5591_v20  ;;  %v5467_v51 = vadd.f32 %v11295_v3, %v5168_v35  ;;  %v5594_v19 = vmax.f32 %v5466_v24, 0.0  ;;  %v11425_v60 = vpop.f32.mrf.mxu1 }
 0x5cc   : > { %v5171_v61 = vpop.f32.mrf.mxu0  ;;  %6748 = vmatpush2.bf16.msra.mxu0 %v8727_v55 }
 0x5cd   : > { %v5468_v16 = vadd.f32 %v11299_v4, %v5170_v15  ;;  %v5172_v29 = vadd.f32 %v5171_v61, %v12466_v42  ;;  %6042 = vmatprep.mubr.bf16.mxu1 %v5711_v53  ;;  %v5595_v31 = vmax.f32 %v5467_v51, 0.0  ;;  %v12471_v61 = vld [vmem:[#allocation36_spill] sm:$0xff] }
 0x5ce   : > { %v5175_v5 = vpop.f32.mrf.mxu0  ;;  %5414 = vmatmul.mubr.bf16.gmra.mxu0 %v4520_v1  ;;  %6043 = vmatmul.mubr.bf16.gmra.mxu1 %v5710_v17 }
 0x5cf   : > { %v5469_v58 = vadd.f32 %v11295_v3, %v5172_v29  ;;  %5423 = vmatprep.mubr.bf16.mxu0 %v4523_v30  ;;  %v5596_v22 = vmax.f32 %v5468_v16, 0.0  ;;  %v5176_v54 = vadd.f32 %v5175_v5, %v12468_v32  ;;  %v11430_v30 = vpop.f32.mrf.mxu1  ;;  %v12472_v5 = vld [vmem:[#allocation37_spill] sm:$0xff]  ;;  %v12474_v32 = vld [vmem:[#allocation38_spill] sm:$0xff] }
 0x5d0   : > { %v5177_v13 = vpop.f32.mrf.mxu0 }
 0x5d1   : > { %v5597_v34 = vmax.f32 %v5469_v58, 0.0  ;;  %v5178_v0 = vadd.f32 %v5177_v13, %v12467_v47  ;;  %v5712_v27 = vpack.c.bf16 %v5596_v22, %v5594_v19  ;;  %v5470_v63 = vadd.f32 %v11299_v4, %v5176_v54 }
 0x5d2   : > { %v5179_v12 = vpop.f32.mrf.mxu0 }
 0x5d3   : > { %v5180_v52 = vadd.f32 %v5179_v12, %v12469_v59  ;;  %v5713_v21 = vpack.c.bf16 %v5597_v34, %v5595_v31  ;;  %v5471_v20 = vadd.f32 %v11295_v3, %v5178_v0  ;;  %v5598_v1 = vmax.f32 %v5470_v63, 0.0  ;;  %v11437_v31 = vpop.f32.mrf.mxu1  ;;  %v12473_v0 = vld [vmem:[#allocation39_spill] sm:$0xff]  ;;  %v12475_v59 = vld [vmem:[#allocation40_spill] sm:$0xff] }
 0x5d4   : > { %v5181_v62 = vpop.f32.mrf.mxu0 }
 0x5d5   : > { %v5472_v7 = vadd.f32 %v11299_v4, %v5180_v52  ;;  %v5182_v35 = vadd.f32 %v5181_v62, %v12470_v48  ;;  %6052 = vmatprep.mubr.bf16.mxu1 %v5713_v21  ;;  %v5599_v57 = vmax.f32 %v5471_v20, 0.0  ;;  %v11442_v62 = vpop.f32.mrf.mxu1  ;;  %v12476_v48 = vld [vmem:[#allocation41_spill] sm:$0xff] }
 0x5d6   : > { %v5185_v23 = vpop.f32.mrf.mxu0  ;;  %5424 = vmatmul.mubr.bf16.gmra.mxu0 %v4522_v46  ;;  %6053 = vmatmul.mubr.bf16.gmra.mxu1 %v5712_v27 }
 0x5d7   : > { %v5473_v50 = vadd.f32 %v11295_v3, %v5182_v35  ;;  %v5600_v18 = vmax.f32 %v5472_v7, 0.0  ;;  %v5186_v9 = vadd.f32 %v5185_v23, %v10942_v14 }
 0x5d8   : > { %v5187_v10 = vpop.f32.mrf.mxu0 }
 0x5d9   : > { %v5601_v15 = vmax.f32 %v5473_v50, 0.0  ;;  %v5188_v53 = vadd.f32 %v5187_v10, %v10946_v56  ;;  %v5714_v42 = vpack.c.bf16 %v5600_v18, %v5598_v1  ;;  %v5474_v56 = vadd.f32 %v11299_v4, %v5186_v9  ;;  %v12477_v1 = vld [vmem:[#allocation43_spill] sm:$0xff] }
 0x5da   : > { %v5189_v17 = vpop.f32.mrf.mxu0 }
 0x5db   : > { %v5190_v51 = vadd.f32 %v5189_v17, %v12471_v61  ;;  %v5715_v16 = vpack.c.bf16 %v5601_v15, %v5599_v57  ;;  %v5475_v49 = vadd.f32 %v11295_v3, %v5188_v53  ;;  %v5602_v19 = vmax.f32 %v5474_v56, 0.0  ;;  %v11449_v57 = vpop.f32.mrf.mxu1  ;;  %v11455_v17 = vld [vmem:[%s12360_s18 + $0x38] sm:$0xff]  }
 0x5dc   : > { %v5191_v29 = vpop.f32.mrf.mxu0  ;;  %8263 = vmatpush1.bf16.msra.mxu1 %v11455_v17 }
 0x5dd   : > { %v5476_v24 = vadd.f32 %v11299_v4, %v5190_v51  ;;  %v5192_v58 = vadd.f32 %v5191_v29, %v12472_v5  ;;  %6062 = vmatprep.mubr.bf16.mxu1 %v5715_v16  ;;  %v5603_v34 = vmax.f32 %v5475_v49, 0.0  ;;  %v12478_v51 = vld [vmem:[#allocation42_spill] sm:$0xff]  ;;  %v12479_v29 = vld [vmem:[#allocation44_spill] sm:$0xff]  ;;  %v11460_v56 = vpop.f32.mrf.mxu1 }
 0x5de   : > { %v5195_v43 = vpop.f32.mrf.mxu0  ;;  %6063 = vmatmul.mubr.bf16.gmra.mxu1 %v5714_v42 }
 0x5df   : > { %v5477_v14 = vadd.f32 %v11295_v3, %v5192_v58  ;;  %v5604_v22 = vmax.f32 %v5476_v24, 0.0  ;;  %v5196_v54 = vadd.f32 %v5195_v43, %v12474_v32  ;;  %v12480_v43 = vmov 0  }
 0x5e0   : > { %v5197_v13 = vpop.f32.mrf.mxu0  ;;  %8248 = vmatprep.subr.bf16.mxu1 %v12480_v43 }
 0x5e1   : > { %v5605_v47 = vmax.f32 %v5477_v14, 0.0  ;;  %v5198_v39 = vadd.f32 %v5197_v13, %v12473_v0  ;;  %v5716_v46 = vpack.c.bf16 %v5604_v22, %v5602_v19  ;;  %v5478_v63 = vadd.f32 %v11299_v4, %v5196_v54  ;;  %v12481_v13 = vld [vmem:[#allocation45_spill] sm:$0xff]  ;;  %v11468_v19 = vpop.f32.mrf.mxu1 }
 0x5e2   : > { %v5199_v12 = vpop.f32.mrf.mxu0 }
 0x5e3   : > { %v5200_v52 = vadd.f32 %v5199_v12, %v12475_v59  ;;  %v5717_v21 = vpack.c.bf16 %v5605_v47, %v5603_v34  ;;  %v5479_v20 = vadd.f32 %v11295_v3, %v5198_v39  ;;  %v5606_v61 = vmax.f32 %v5478_v63, 0.0  ;;  %v12482_v12 = vld [vmem:[#allocation47_spill] sm:$0xff] }
 0x5e4   : > { %v5201_v27 = vpop.f32.mrf.mxu0 }
 0x5e5   : > { %v5480_v7 = vadd.f32 %v11299_v4, %v5200_v52  ;;  %v5202_v35 = vadd.f32 %v5201_v27, %v12476_v48  ;;  %6072 = vmatprep.mubr.bf16.mxu1 %v5717_v21  ;;  %v5607_v15 = vmax.f32 %v5479_v20, 0.0  ;;  %v8731_v52 = vld [vmem:[#allocation16 + $0x80] ss:$8 sps:$4 sm:$0xff]   ;;  %v8733_v21 = vld [vmem:[#allocation16 + $0x84] ss:$8 sps:$4 sm:$0xff]   ;;  %v12483_v27 = vld [vmem:[#allocation46_spill] sm:$0xff] }
 0x5e6   : > { %v5205_v23 = vpop.f32.mrf.mxu0  ;;  %6073 = vmatmul.mubr.bf16.gmra.mxu1 %v5716_v46  ;;  %v12484_v48 = vld [vmem:[#allocation48_spill] sm:$0xff]  ;;  %6749 = vmatprep.subr.bf16.mxu0 %v8733_v21 }
 0x5e7   : > { %v5481_v50 = vadd.f32 %v11295_v3, %v5202_v35  ;;  %v5608_v18 = vmax.f32 %v5480_v7, 0.0  ;;  %v5206_v16 = vadd.f32 %v5205_v23, %v12478_v51  ;;  %6750 = vmatpush2.bf16.msra.mxu0 %v8731_v52  ;;  %v12489_v52 = vld [vmem:[#allocation53_spill] sm:$0xff] }
 0x5e8   : > { %v5207_v10 = vpop.f32.mrf.mxu0  ;;  %7399 = vmatprep.subr.bf16.mxu0 %v12480_v43 }
 0x5e9   : > { %v5609_v53 = vmax.f32 %v5481_v50, 0.0  ;;  %v5208_v9 = vadd.f32 %v5207_v10, %v12477_v1  ;;  %v5718_v5 = vpack.c.bf16 %v5608_v18, %v5606_v61  ;;  %v5482_v47 = vadd.f32 %v11299_v4, %v5206_v16  ;;  %v11473_v18 = vpop.f32.mrf.mxu1 }
 0x5ea   : > { %v5209_v42 = vpop.f32.mrf.mxu0 }
 0x5eb   : > { %v5210_v49 = vadd.f32 %v5209_v42, %v12479_v29  ;;  %v5719_v24 = vpack.c.bf16 %v5609_v53, %v5607_v15  ;;  %v5483_v14 = vadd.f32 %v11295_v3, %v5208_v9  ;;  %v5610_v46 = vmax.f32 %v5482_v47, 0.0  ;;  %v12485_v53 = vld [vmem:[#allocation49_spill] sm:$0xff]  ;;  %v11481_v29 = vpop.f32.mrf.mxu1 }
 0x5ec   : > { %v5211_v58 = vpop.f32.mrf.mxu0 }
 0x5ed   : > { %v5484_v22 = vadd.f32 %v11299_v4, %v5210_v49  ;;  %v5212_v34 = vadd.f32 %v5211_v58, %v12481_v13  ;;  %6082 = vmatprep.mubr.bf16.mxu1 %v5719_v24  ;;  %v5611_v32 = vmax.f32 %v5483_v14, 0.0  ;;  %v11487_v14 = vld [vmem:[%s12360_s18 + $0x30] sm:$0xff]  }
 0x5ee   : > { %v5215_v0 = vpop.f32.mrf.mxu0  ;;  %6083 = vmatmul.mubr.bf16.gmra.mxu1 %v5718_v5  ;;  %v12486_v5 = vld [vmem:[#allocation51_spill] sm:$0xff]  ;;  %v12487_v13 = vld [vmem:[#allocation50_spill] sm:$0xff] }
 0x5ef   : > { %v5485_v39 = vadd.f32 %v11295_v3, %v5212_v34  ;;  %v5612_v55 = vmax.f32 %v5484_v22, 0.0  ;;  %v5216_v20 = vadd.f32 %v5215_v0, %v12483_v27  ;;  %v12488_v0 = vld [vmem:[#allocation52_spill] sm:$0xff]  ;;  %8264 = vmatpush1.bf16.msra.mxu1 %v11487_v14 }
 0x5f0   : > { %v5217_v38 = vpop.f32.mrf.mxu0  ;;  %8249 = vmatprep.subr.bf16.mxu1 %v12480_v43 }
 0x5f1   : > { %v5613_v54 = vmax.f32 %v5485_v39, 0.0  ;;  %v5218_v59 = vadd.f32 %v5217_v38, %v12482_v12  ;;  %v5720_v23 = vpack.c.bf16 %v5612_v55, %v5610_v46  ;;  %v5486_v9 = vadd.f32 %v11299_v4, %v5216_v20 }
 0x5f2   : > { %v5219_v7 = vpop.f32.mrf.mxu0 }
 0x5f3   : > { %v5220_v35 = vadd.f32 %v5219_v7, %v12484_v48  ;;  %v5721_v63 = vpack.c.bf16 %v5613_v54, %v5611_v32  ;;  %v5487_v10 = vadd.f32 %v11295_v3, %v5218_v59  ;;  %v5614_v22 = vmax.f32 %v5486_v9, 0.0  ;;  %v11492_v54 = vpop.f32.mrf.mxu1 }
 0x5f4   : > { %v5221_v50 = vpop.f32.mrf.mxu0 }
 0x5f5   : > { %v5488_v15 = vadd.f32 %v11299_v4, %v5220_v35  ;;  %v5222_v1 = vadd.f32 %v5221_v50, %v12485_v53  ;;  %6092 = vmatprep.mubr.bf16.mxu1 %v5721_v63  ;;  %v5615_v49 = vmax.f32 %v5487_v10, 0.0  ;;  %v11500_v35 = vpop.f32.mrf.mxu1  ;;  %v12490_v50 = vld [vmem:[#allocation55_spill] sm:$0xff]  ;;  %v12491_v53 = vld [vmem:[#allocation54_spill] sm:$0xff] }
 0x5f6   : > { %v5225_v61 = vpop.f32.mrf.mxu0  ;;  %6093 = vmatmul.mubr.bf16.gmra.mxu1 %v5720_v23 }
 0x5f7   : > { %v5489_v51 = vadd.f32 %v11295_v3, %v5222_v1  ;;  %v5616_v16 = vmax.f32 %v5488_v15, 0.0  ;;  %v5226_v34 = vadd.f32 %v5225_v61, %v12487_v13  ;;  %v12492_v61 = vld [vmem:[#allocation56_spill] sm:$0xff] }
 0x5f8   : > { %v5227_v42 = vpop.f32.mrf.mxu0 }
 0x5f9   : > { %v5617_v24 = vmax.f32 %v5489_v51, 0.0  ;;  %v5228_v58 = vadd.f32 %v5227_v42, %v12486_v5  ;;  %v5722_v38 = vpack.c.bf16 %v5616_v16, %v5614_v22  ;;  %v5490_v46 = vadd.f32 %v11299_v4, %v5226_v34  ;;  %v12493_v22 = vld [vmem:[#allocation57_spill] sm:$0xff] }
 0x5fa   : > { %v5229_v47 = vpop.f32.mrf.mxu0 }
 0x5fb   : > { %v5230_v39 = vadd.f32 %v5229_v47, %v12488_v0  ;;  %v5723_v55 = vpack.c.bf16 %v5617_v24, %v5615_v49  ;;  %v5491_v12 = vadd.f32 %v11295_v3, %v5228_v58  ;;  %v5618_v15 = vmax.f32 %v5490_v46, 0.0  ;;  %v11505_v24 = vpop.f32.mrf.mxu1 }
 0x5fc   : > { %v5231_v32 = vpop.f32.mrf.mxu0 }
 0x5fd   : > { %v5492_v59 = vadd.f32 %v11299_v4, %v5230_v39  ;;  %v5232_v21 = vadd.f32 %v5231_v32, %v12489_v52  ;;  %6102 = vmatprep.mubr.bf16.mxu1 %v5723_v55  ;;  %v5619_v63 = vmax.f32 %v5491_v12, 0.0 }
 0x5fe   : > { %v5235_v27 = vpop.f32.mrf.mxu0  ;;  %6103 = vmatmul.mubr.bf16.gmra.mxu1 %v5722_v38  ;;  %v11512_v38 = vpop.f32.mrf.mxu1 }
 0x5ff   : > { %v5493_v20 = vadd.f32 %v11295_v3, %v5232_v21  ;;  %v5620_v7 = vmax.f32 %v5492_v59, 0.0  ;;  %v5236_v1 = vadd.f32 %v5235_v27, %v12491_v53  ;;  %v12494_v59 = vld [vmem:[#allocation59_spill] sm:$0xff]  ;;  %v11518_v21 = vld [vmem:[%s12360_s18 + $0x28] sm:$0xff]  }
 0x600   : > { %v5237_v48 = vpop.f32.mrf.mxu0  ;;  %12495 = vst [vmem:[#allocation25_spill] sm:$0xff] %v11518_v21  ;;  %v12496_v27 = vld [vmem:[#allocation58_spill] sm:$0xff]  ;;  %8265 = vmatpush1.bf16.msra.mxu1 %v11518_v21 }
 0x601   : > { %v5621_v23 = vmax.f32 %v5493_v20, 0.0  ;;  %v5238_v10 = vadd.f32 %v5237_v48, %v12490_v50  ;;  %v5724_v42 = vpack.c.bf16 %v5620_v7, %v5618_v15  ;;  %v5494_v34 = vadd.f32 %v11299_v4, %v5236_v1  ;;  %v12497_v48 = vld [vmem:[#allocation60_spill] sm:$0xff]  ;;  %v11523_v15 = vpop.f32.mrf.mxu1  ;;  %8250 = vmatprep.subr.bf16.mxu1 %v12480_v43 }
 0x602   : > { %v5239_v9 = vpop.f32.mrf.mxu0 }
 0x603   : > { %v5240_v51 = vadd.f32 %v5239_v9, %v12492_v61  ;;  %v5725_v16 = vpack.c.bf16 %v5621_v23, %v5619_v63  ;;  %v5495_v5 = vadd.f32 %v11295_v3, %v5238_v10  ;;  %v5622_v46 = vmax.f32 %v5494_v34, 0.0  ;;  %v12498_v9 = vld [vmem:[#allocation61_spill] sm:$0xff]  ;;  %v12499_v34 = vld [vmem:[#allocation63_spill] sm:$0xff] }
 0x604   : > { %v5241_v49 = vpop.f32.mrf.mxu0 }
 0x605   : > { %v5496_v58 = vadd.f32 %v11299_v4, %v5240_v51  ;;  %v5242_v13 = vadd.f32 %v5241_v49, %v12493_v22  ;;  %6112 = vmatprep.mubr.bf16.mxu1 %v5725_v16  ;;  %v5623_v32 = vmax.f32 %v5495_v5, 0.0 }
 0x606   : > { %v5245_v47 = vpop.f32.mrf.mxu0  ;;  %6113 = vmatmul.mubr.bf16.gmra.mxu1 %v5724_v42 }
 0x607   : > { %v5497_v0 = vadd.f32 %v11295_v3, %v5242_v13  ;;  %v5624_v39 = vmax.f32 %v5496_v58, 0.0  ;;  %v5246_v20 = vadd.f32 %v5245_v47, %v12496_v27  ;;  %v11531_v58 = vpop.f32.mrf.mxu1 }
 0x608   : > { %v5247_v55 = vpop.f32.mrf.mxu0 }
 0x609   : > { %v5625_v12 = vmax.f32 %v5497_v0, 0.0  ;;  %v5248_v52 = vadd.f32 %v5247_v55, %v12494_v59  ;;  %v5726_v50 = vpack.c.bf16 %v5624_v39, %v5622_v46  ;;  %v5498_v51 = vadd.f32 %v11299_v4, %v5246_v20  ;;  %v12500_v39 = vld [vmem:[#allocation62_spill] sm:$0xff]  ;;  %v11536_v20 = vpop.f32.mrf.mxu1 }
 0x60a   : > { %v5249_v7 = vpop.f32.mrf.mxu0 }
 0x60b   : > { %v5250_v63 = vadd.f32 %v5249_v7, %v12497_v48  ;;  %v5727_v23 = vpack.c.bf16 %v5625_v12, %v5623_v32  ;;  %v5499_v53 = vadd.f32 %v11295_v3, %v5248_v52  ;;  %v5626_v0 = vmax.f32 %v5498_v51, 0.0  ;;  %v12501_v12 = vld [vmem:[#allocation64_spill] sm:$0xff] }
 0x60c   : > { %v5251_v10 = vpop.f32.mrf.mxu0 }
 0x60d   : > { %v5500_v1 = vadd.f32 %v11299_v4, %v5250_v63  ;;  %v5252_v61 = vadd.f32 %v5251_v10, %v12498_v9  ;;  %6122 = vmatprep.mubr.bf16.mxu1 %v5727_v23  ;;  %v5627_v22 = vmax.f32 %v5499_v53, 0.0  ;;  %v12502_v63 = vld [vmem:[#allocation65_spill] sm:$0xff] }
 0x60e   : > { %v5255_v16 = vpop.f32.mrf.mxu0  ;;  %6123 = vmatmul.mubr.bf16.gmra.mxu1 %v5726_v50 }
 0x60f   : > { %v5501_v42 = vadd.f32 %v11295_v3, %v5252_v61  ;;  %v5628_v49 = vmax.f32 %v5500_v1, 0.0  ;;  %v5256_v55 = vadd.f32 %v5255_v16, %v12500_v39  ;;  %v11543_v61 = vpop.f32.mrf.mxu1 }
 0x610   : > { %v5257_v5 = vpop.f32.mrf.mxu0 }
 0x611   : > { %v5629_v13 = vmax.f32 %v5501_v42, 0.0  ;;  %v5258_v47 = vadd.f32 %v5257_v5, %v12499_v34  ;;  %v5728_v46 = vpack.c.bf16 %v5628_v49, %v5626_v0  ;;  %v5502_v50 = vadd.f32 %v11299_v4, %v5256_v55  ;;  %v12503_v42 = vld [vmem:[#allocation67_spill] sm:$0xff]  ;;  %v11549_v5 = vld [vmem:[%s12360_s18 + $0x20] sm:$0xff]  }
 0x612   : > { %v5259_v32 = vpop.f32.mrf.mxu0  ;;  %12504 = vst [vmem:[#allocation26_spill] sm:$0xff] %v11549_v5  ;;  %v12506_v0 = vld [vmem:[#allocation68_spill] sm:$0xff]  ;;  %8266 = vmatpush1.bf16.msra.mxu1 %v11549_v5 }
 0x613   : > { %v5260_v59 = vadd.f32 %v5259_v32, %v12501_v12  ;;  %v5729_v52 = vpack.c.bf16 %v5629_v13, %v5627_v22  ;;  %v5503_v7 = vadd.f32 %v11295_v3, %v5258_v47  ;;  %v5630_v22 = vmax.f32 %v5502_v50, 0.0  ;;  %v12505_v13 = vld [vmem:[#allocation66_spill] sm:$0xff]  ;;  %8251 = vmatprep.subr.bf16.mxu1 %v12480_v43 }
 0x614   : > { %v5261_v27 = vpop.f32.mrf.mxu0 }
 0x615   : > { %v5504_v48 = vadd.f32 %v11299_v4, %v5260_v59  ;;  %v5262_v23 = vadd.f32 %v5261_v27, %v12502_v63  ;;  %6132 = vmatprep.mubr.bf16.mxu1 %v5729_v52  ;;  %v5631_v51 = vmax.f32 %v5503_v7, 0.0  ;;  %v11554_v59 = vpop.f32.mrf.mxu1  ;;  %v12507_v27 = vld [vmem:[#allocation69_spill] sm:$0xff] }
 0x616   : > { %v5265_v10 = vpop.f32.mrf.mxu0  ;;  %6133 = vmatmul.mubr.bf16.gmra.mxu1 %v5728_v46 }
 0x617   : > { %v5505_v53 = vadd.f32 %v11295_v3, %v5262_v23  ;;  %v5632_v1 = vmax.f32 %v5504_v48, 0.0  ;;  %v5266_v34 = vadd.f32 %v5265_v10, %v12505_v13 }
 0x618   : > { %v5267_v9 = vpop.f32.mrf.mxu0 }
 0x619   : > { %v5633_v16 = vmax.f32 %v5505_v53, 0.0  ;;  %v5268_v49 = vadd.f32 %v5267_v9, %v12503_v42  ;;  %v5730_v32 = vpack.c.bf16 %v5632_v1, %v5630_v22  ;;  %v5506_v48 = vadd.f32 %v11299_v4, %v5266_v34  ;;  %v11562_v53 = vpop.f32.mrf.mxu1 }
 0x61a   : > { %v5269_v47 = vpop.f32.mrf.mxu0 }
 0x61b   : > { %v5270_v39 = vadd.f32 %v5269_v47, %v12506_v0  ;;  %v5731_v55 = vpack.c.bf16 %v5633_v16, %v5631_v51  ;;  %v5507_v52 = vadd.f32 %v11295_v3, %v5268_v49  ;;  %v12508_v51 = vld [vmem:[#allocation71_spill] sm:$0xff]  ;;  %v5634_v42 = vmax.f32 %v5506_v48, 0.0  ;;  %v12509_v49 = vld [vmem:[#allocation70_spill] sm:$0xff]  ;;  %v12510_v47 = vld [vmem:[#allocation72_spill] sm:$0xff] }
 0x61c   : > { %v5271_v12 = vpop.f32.mrf.mxu0 }
 0x61d   : > { %v5508_v46 = vadd.f32 %v11299_v4, %v5270_v39  ;;  %v5272_v7 = vadd.f32 %v5271_v12, %v12507_v27  ;;  %6142 = vmatprep.mubr.bf16.mxu1 %v5731_v55  ;;  %v5635_v1 = vmax.f32 %v5507_v52, 0.0  ;;  %v12511_v27 = vld [vmem:[#allocation73_spill] sm:$0xff] }
 0x61e   : > { %v5275_v63 = vpop.f32.mrf.mxu0  ;;  %6143 = vmatmul.mubr.bf16.gmra.mxu1 %v5730_v32  ;;  %v11567_v32 = vpop.f32.mrf.mxu1 }
 0x61f   : > { %v5509_v23 = vadd.f32 %v11295_v3, %v5272_v7  ;;  %v5636_v50 = vmax.f32 %v5508_v46, 0.0  ;;  %v5276_v22 = vadd.f32 %v5275_v63, %v12509_v49 }
 0x620   : > { %v5277_v10 = vpop.f32.mrf.mxu0 }
 0x621   : > { %v5637_v9 = vmax.f32 %v5509_v23, 0.0  ;;  %v5278_v16 = vadd.f32 %v5277_v10, %v12508_v51  ;;  %v5732_v34 = vpack.c.bf16 %v5636_v50, %v5634_v42  ;;  %v5510_v7 = vadd.f32 %v11299_v4, %v5276_v22  ;;  %v11577_v23 = vld [vmem:[%s12360_s18 + $0x18] sm:$0xff]   ;;  %v12514_v22 = vld [vmem:[#allocation74_spill] sm:$0xff] }
 0x622   : > { %v5279_v13 = vpop.f32.mrf.mxu0  ;;  %12512 = vst [vmem:[#allocation27_spill] sm:$0xff] %v11577_v23  ;;  %8267 = vmatpush1.bf16.msra.mxu1 %v11577_v23  ;;  %v12519_v23 = vld [vmem:[#allocation78_spill] sm:$0xff] }
 0x623   : > { %v5280_v0 = vadd.f32 %v5279_v13, %v12510_v47  ;;  %v5733_v39 = vpack.c.bf16 %v5637_v9, %v5635_v1  ;;  %v5511_v12 = vadd.f32 %v11295_v3, %v5278_v16  ;;  %v11579_v1 = vpop.f32.mrf.mxu1  ;;  %v12513_v16 = vld [vmem:[#allocation75_spill] sm:$0xff]  ;;  %v5638_v49 = vmax.f32 %v5510_v7, 0.0  ;;  %8252 = vmatprep.subr.bf16.mxu1 %v12480_v43 }
 0x624   : > { %v5281_v55 = vpop.f32.mrf.mxu0 }
 0x625   : > { %v5512_v46 = vadd.f32 %v11299_v4, %v5280_v0  ;;  %v5282_v52 = vadd.f32 %v5281_v55, %v12511_v27  ;;  %6152 = vmatprep.mubr.bf16.mxu1 %v5733_v39  ;;  %v5639_v9 = vmax.f32 %v5511_v12, 0.0  ;;  %v12515_v0 = vld [vmem:[#allocation76_spill] sm:$0xff]  ;;  %v11586_v27 = vpop.f32.mrf.mxu1 }
 0x626   : > { %v5285_v48 = vpop.f32.mrf.mxu0  ;;  %6153 = vmatmul.mubr.bf16.gmra.mxu1 %v5732_v34 }
 0x627   : > { %v5513_v63 = vadd.f32 %v11295_v3, %v5282_v52  ;;  %v5640_v50 = vmax.f32 %v5512_v46, 0.0  ;;  %v5286_v13 = vadd.f32 %v5285_v48, %v12514_v22 }
 0x628   : > { %v5287_v10 = vpop.f32.mrf.mxu0 }
 0x629   : > { %v5641_v51 = vmax.f32 %v5513_v63, 0.0  ;;  %v5288_v42 = vadd.f32 %v5287_v10, %v12513_v16  ;;  %v5734_v55 = vpack.c.bf16 %v5640_v50, %v5638_v49  ;;  %v12516_v63 = vld [vmem:[#allocation77_spill] sm:$0xff]  ;;  %v5514_v7 = vadd.f32 %v11299_v4, %v5286_v13  ;;  %v12518_v49 = vld [vmem:[#allocation79_spill] sm:$0xff] }
 0x62a   : > { %v5289_v47 = vpop.f32.mrf.mxu0 }
 0x62b   : > { %v5290_v39 = vadd.f32 %v5289_v47, %v12515_v0  ;;  %v5735_v34 = vpack.c.bf16 %v5641_v51, %v5639_v9  ;;  %v5515_v12 = vadd.f32 %v11295_v3, %v5288_v42  ;;  %v11593_v9 = vpop.f32.mrf.mxu1  ;;  %v5642_v42 = vmax.f32 %v5514_v7, 0.0 }
 0x62c   : > { %v5291_v46 = vpop.f32.mrf.mxu0  ;;  %12517 = vst [vmem:[#allocation29_spill] sm:$0xff] %v11593_v9  ;;  %v12521_v9 = vld [vmem:[#allocation81_spill] sm:$0xff] }
 0x62d   : > { %v5516_v52 = vadd.f32 %v11299_v4, %v5290_v39  ;;  %v5292_v10 = vadd.f32 %v5291_v46, %v12516_v63  ;;  %6162 = vmatprep.mubr.bf16.mxu1 %v5735_v34  ;;  %v5643_v50 = vmax.f32 %v5515_v12, 0.0  ;;  %v12520_v46 = vld [vmem:[#allocation80_spill] sm:$0xff] }
 0x62e   : > { %v5295_v48 = vpop.f32.mrf.mxu0  ;;  %6163 = vmatmul.mubr.bf16.gmra.mxu1 %v5734_v55  ;;  %v11598_v55 = vpop.f32.mrf.mxu1 }
 0x62f   : > { %v5517_v16 = vadd.f32 %v11295_v3, %v5292_v10  ;;  %v5644_v22 = vmax.f32 %v5516_v52, 0.0  ;;  %v5296_v39 = vadd.f32 %v5295_v48, %v12519_v23 }
 0x630   : > { %v5297_v47 = vpop.f32.mrf.mxu0 }
 0x631   : > { %v5645_v51 = vmax.f32 %v5517_v16, 0.0  ;;  %v5298_v0 = vadd.f32 %v5297_v47, %v12518_v49  ;;  %v5736_v13 = vpack.c.bf16 %v5644_v22, %v5642_v42  ;;  %v5518_v16 = vadd.f32 %v11299_v4, %v5296_v39  ;;  %v11610_v47 = vpop.f32.mrf.mxu1  ;;  %v12522_v49 = vld [vmem:[#allocation82_spill] sm:$0xff] }
 0x632   : > { %v5299_v5 = vpop.f32.mrf.mxu0 }
 0x633   : > { %v5300_v34 = vadd.f32 %v5299_v5, %v12520_v46  ;;  %v5737_v63 = vpack.c.bf16 %v5645_v51, %v5643_v50  ;;  %v5519_v52 = vadd.f32 %v11295_v3, %v5298_v0  ;;  %v11608_v5 = vld [vmem:[%s12360_s18 + $0x10] sm:$0xff]  }
 0x634   : > { %v5301_v21 = vpop.f32.mrf.mxu0  ;;  %8268 = vmatpush1.bf16.msra.mxu1 %v11608_v5 }
 0x635   : > { %v5520_v10 = vadd.f32 %v11299_v4, %v5300_v34  ;;  %v5302_v12 = vadd.f32 %v5301_v21, %v12521_v9  ;;  %6172 = vmatprep.mubr.bf16.mxu1 %v5737_v63  ;;  %v5647_v50 = vmax.f32 %v5519_v52, 0.0  ;;  %v5646_v9 = vmax.f32 %v5518_v16, 0.0  ;;  %8253 = vmatprep.subr.bf16.mxu1 %v12480_v43 }
 0x636   : > { %v5305_v7 = vpop.f32.mrf.mxu0  ;;  %6173 = vmatmul.mubr.bf16.gmra.mxu1 %v5736_v13  ;;  %v11617_v13 = vpop.f32.mrf.mxu1 }
 0x637   : > { %v5521_v23 = vadd.f32 %v11295_v3, %v5302_v12  ;;  %v5648_v48 = vmax.f32 %v5520_v10, 0.0  ;;  %v5306_v0 = vadd.f32 %v5305_v7, %v12522_v49 }
 0x638   : > { %v5307_v22 = vpop.f32.mrf.mxu0 }
 0x639   : > { %v5649_v51 = vmax.f32 %v5521_v23, 0.0  ;;  %v5308_v21 = vadd.f32 %v5307_v22, %v11304_v6  ;;  %v5738_v34 = vpack.c.bf16 %v5648_v48, %v5646_v9  ;;  %v5522_v12 = vadd.f32 %v11299_v4, %v5306_v0  ;;  %v11624_v22 = vpop.f32.mrf.mxu1 }
 0x63a   : > { %v5309_v42 = vpop.f32.mrf.mxu0 }
 0x63b   : > { %v5310_v39 = vadd.f32 %v5309_v42, %v11317_v44  ;;  %v5739_v46 = vpack.c.bf16 %v5649_v51, %v5647_v50  ;;  %v5523_v52 = vadd.f32 %v11295_v3, %v5308_v21  ;;  %v5650_v21 = vmax.f32 %v5522_v12, 0.0 }
 0x63c   : > { %v5311_v63 = vpop.f32.mrf.mxu0 }
 0x63d   : > { %v5524_v10 = vadd.f32 %v11299_v4, %v5310_v39  ;;  %v5312_v6 = vadd.f32 %v5311_v63, %v11326_v2  ;;  %6182 = vmatprep.mubr.bf16.mxu1 %v5739_v46  ;;  %v5651_v48 = vmax.f32 %v5523_v52, 0.0  ;;  %v11629_v46 = vpop.f32.mrf.mxu1 }
 0x63e   : > { %v5315_v16 = vpop.f32.mrf.mxu0  ;;  %6183 = vmatmul.mubr.bf16.gmra.mxu1 %v5738_v34 }
 0x63f   : > { %v5525_v7 = vadd.f32 %v11295_v3, %v5312_v6  ;;  %v5652_v23 = vmax.f32 %v5524_v10, 0.0  ;;  %v5316_v9 = vadd.f32 %v5315_v16, %v11337_v41  ;;  %v11641_v16 = vpop.f32.mrf.mxu1 }
 0x640   : > { %v5317_v44 = vpop.f32.mrf.mxu0 }
 0x641   : > { %v5653_v50 = vmax.f32 %v5525_v7, 0.0  ;;  %v5318_v51 = vadd.f32 %v5317_v44, %v11344_v36  ;;  %v5740_v0 = vpack.c.bf16 %v5652_v23, %v5650_v21  ;;  %v5526_v36 = vadd.f32 %v11299_v4, %v5316_v9 }
 0x642   : > { %v5319_v49 = vpop.f32.mrf.mxu0 }
 0x643   : > { %v5320_v2 = vadd.f32 %v5319_v49, %v11357_v28  ;;  %v5741_v42 = vpack.c.bf16 %v5653_v50, %v5651_v48  ;;  %v5527_v34 = vadd.f32 %v11295_v3, %v5318_v51  ;;  %v11639_v28 = vld [vmem:[%s12360_s18 + $0x8] sm:$0xff]   ;;  %v5654_v44 = vmax.f32 %v5526_v36, 0.0 }
 0x644   : > { %v5321_v39 = vpop.f32.mrf.mxu0  ;;  %8269 = vmatpush1.bf16.msra.mxu1 %v11639_v28 }
 0x645   : > { %v5528_v63 = vadd.f32 %v11299_v4, %v5320_v2  ;;  %v5322_v52 = vadd.f32 %v5321_v39, %v11366_v25  ;;  %6192 = vmatprep.mubr.bf16.mxu1 %v5741_v42  ;;  %v5655_v7 = vmax.f32 %v5527_v34, 0.0  ;;  %8254 = vmatprep.subr.bf16.mxu1 %v12480_v43  ;;  %v11648_v2 = vpop.f32.mrf.mxu1 }
 0x646   : > { %v5325_v10 = vpop.f32.mrf.mxu0  ;;  %6193 = vmatmul.mubr.bf16.gmra.mxu1 %v5740_v0 }
 0x647   : > { %v5529_v41 = vadd.f32 %v11295_v3, %v5322_v52  ;;  %v5656_v6 = vmax.f32 %v5528_v63, 0.0  ;;  %v5326_v48 = vadd.f32 %v5325_v10, %v11377_v8  ;;  %v11655_v52 = vpop.f32.mrf.mxu1 }
 0x648   : > { %v5327_v12 = vpop.f32.mrf.mxu0 }
 0x649   : > { %v5657_v23 = vmax.f32 %v5529_v41, 0.0  ;;  %v5328_v25 = vadd.f32 %v5327_v12, %v11384_v45  ;;  %v5742_v9 = vpack.c.bf16 %v5656_v6, %v5654_v44  ;;  %v5530_v39 = vadd.f32 %v11299_v4, %v5326_v48  ;;  %v11660_v48 = vpop.f32.mrf.mxu1 }
 0x64a   : > { %v5329_v50 = vpop.f32.mrf.mxu0 }
 0x64b   : > { %v5330_v51 = vadd.f32 %v5329_v50, %v11397_v11  ;;  %v5743_v21 = vpack.c.bf16 %v5657_v23, %v5655_v7  ;;  %v5531_v42 = vadd.f32 %v11295_v3, %v5328_v25  ;;  %v5658_v6 = vmax.f32 %v5530_v39, 0.0 }
 0x64c   : > { %v5331_v49 = vpop.f32.mrf.mxu0 }
 0x64d   : > { %v5532_v0 = vadd.f32 %v11299_v4, %v5330_v51  ;;  %v5332_v45 = vadd.f32 %v5331_v49, %v11404_v40  ;;  %6202 = vmatprep.mubr.bf16.mxu1 %v5743_v21  ;;  %v5659_v36 = vmax.f32 %v5531_v42, 0.0 }
 0x64e   : > { %v5335_v8 = vpop.f32.mrf.mxu0  ;;  %6203 = vmatmul.mubr.bf16.gmra.mxu1 %v5742_v9 }
 0x64f   : > { %v5533_v34 = vadd.f32 %v11295_v3, %v5332_v45  ;;  %v5660_v63 = vmax.f32 %v5532_v0, 0.0  ;;  %v5336_v12 = vadd.f32 %v5335_v8, %v11413_v37  ;;  %v11672_v0 = vpop.f32.mrf.mxu1 }
 0x650   : > { %v5337_v11 = vpop.f32.mrf.mxu0 }
 0x651   : > { %v5661_v10 = vmax.f32 %v5533_v34, 0.0  ;;  %v5338_v41 = vadd.f32 %v5337_v11, %v11418_v33  ;;  %v5744_v25 = vpack.c.bf16 %v5660_v63, %v5658_v6  ;;  %v5534_v33 = vadd.f32 %v11299_v4, %v5336_v12  ;;  %v11679_v6 = vpop.f32.mrf.mxu1 }
 0x652   : > { %v5339_v7 = vpop.f32.mrf.mxu0 }
 0x653   : > { %v5340_v40 = vadd.f32 %v5339_v7, %v11425_v60  ;;  %v5745_v23 = vpack.c.bf16 %v5661_v10, %v5659_v36  ;;  %v5535_v50 = vadd.f32 %v11295_v3, %v5338_v41  ;;  %v11670_v60 = vld [vmem:[%s12360_s18] sm:$0xff]   ;;  %v5662_v8 = vmax.f32 %v5534_v33, 0.0 }
 0x654   : > { %v5341_v44 = vpop.f32.mrf.mxu0  ;;  %8270 = vmatpush1.bf16.msra.mxu1 %v11670_v60 }
 0x655   : > { %v5536_v51 = vadd.f32 %v11299_v4, %v5340_v40  ;;  %v5342_v21 = vadd.f32 %v5341_v44, %v11430_v30  ;;  %6212 = vmatprep.mubr.bf16.mxu1 %v5745_v23  ;;  %v5663_v45 = vmax.f32 %v5535_v50, 0.0  ;;  %8255 = vmatprep.subr.bf16.mxu1 %v12480_v43 }
 0x656   : > { %v5345_v9 = vpop.f32.mrf.mxu0  ;;  %6213 = vmatmul.mubr.bf16.gmra.mxu1 %v5744_v25 }
 0x657   : > { %v5537_v37 = vadd.f32 %v11295_v3, %v5342_v21  ;;  %v5664_v49 = vmax.f32 %v5536_v51, 0.0  ;;  %v5346_v34 = vadd.f32 %v5345_v9, %v11437_v31 }
 0x658   : > { %v5347_v42 = vpop.f32.mrf.mxu0 }
 0x659   : > { %v5665_v39 = vmax.f32 %v5537_v37, 0.0  ;;  %v5348_v30 = vadd.f32 %v5347_v42, %v11442_v62  ;;  %v5746_v10 = vpack.c.bf16 %v5664_v49, %v5662_v8  ;;  %v5538_v40 = vadd.f32 %v11299_v4, %v5346_v34 }
 0x65a   : > { %v5349_v63 = vpop.f32.mrf.mxu0 }
 0x65b   : > { %v5350_v11 = vadd.f32 %v5349_v63, %v11449_v57  ;;  %v5747_v36 = vpack.c.bf16 %v5665_v39, %v5663_v45  ;;  %v5539_v12 = vadd.f32 %v11295_v3, %v5348_v30  ;;  %v11686_v57 = vpop.f32.mrf.mxu1  ;;  %v5666_v33 = vmax.f32 %v5538_v40, 0.0 }
 0x65c   : > { %v5351_v41 = vpop.f32.mrf.mxu0 }
 0x65d   : > { %v5540_v7 = vadd.f32 %v11299_v4, %v5350_v11  ;;  %v5352_v62 = vadd.f32 %v5351_v41, %v11460_v56  ;;  %6222 = vmatprep.mubr.bf16.mxu1 %v5747_v36  ;;  %v5667_v50 = vmax.f32 %v5539_v12, 0.0  ;;  %v11691_v45 = vpop.f32.mrf.mxu1 }
 0x65e   : > { %v5355_v31 = vpop.f32.mrf.mxu0  ;;  %6223 = vmatmul.mubr.bf16.gmra.mxu1 %v5746_v10 }
 0x65f   : > { %v5541_v23 = vadd.f32 %v11295_v3, %v5352_v62  ;;  %v5668_v25 = vmax.f32 %v5540_v7, 0.0  ;;  %v5356_v9 = vadd.f32 %v5355_v31, %v11468_v19  ;;  %v11703_v36 = vpop.f32.mrf.mxu1 }
 0x660   : > { %v5357_v44 = vpop.f32.mrf.mxu0 }
 0x661   : > { %v5669_v51 = vmax.f32 %v5541_v23, 0.0  ;;  %v5358_v21 = vadd.f32 %v5357_v44, %v11473_v18  ;;  %v5748_v42 = vpack.c.bf16 %v5668_v25, %v5666_v33  ;;  %v5542_v18 = vadd.f32 %v11299_v4, %v5356_v9  ;;  %v11710_v44 = vpop.f32.mrf.mxu1  ;;  %v5798_v9 = vld [vmem:[#allocation15] sm:$0x3] }
 0x662   : > { %v5359_v37 = vpop.f32.mrf.mxu0 }
 0x663   : > { %v5360_v56 = vadd.f32 %v5359_v37, %v11481_v29  ;;  %v5749_v49 = vpack.c.bf16 %v5669_v51, %v5667_v50  ;;  %v5543_v30 = vadd.f32 %v11295_v3, %v5358_v21  ;;  %v11701_v29 = vld [vmem:[%s12360_s18 + $0x78] sm:$0xff]   ;;  %v5670_v7 = vmax.f32 %v5542_v18, 0.0 }
 0x664   : > { %v5361_v39 = vpop.f32.mrf.mxu0  ;;  %8271 = vmatpush2.bf16.msra.mxu1 %v11701_v29  ;;  %v11721_v18 = vrot.slane %v5798_v9, %v9655_v26 }
 0x665   : > { %v5544_v8 = vadd.f32 %v11299_v4, %v5360_v56  ;;  %v5362_v34 = vadd.f32 %v5361_v39, %v11492_v54  ;;  %6232 = vmatprep.mubr.bf16.mxu1 %v5749_v49  ;;  %v5671_v41 = vmax.f32 %v5543_v30, 0.0  ;;  %8256 = vmatprep.subr.bf16.mxu1 %v12480_v43 }
 0x666   : > { %v5365_v63 = vpop.f32.mrf.mxu0  ;;  %6233 = vmatmul.mubr.bf16.gmra.mxu1 %v5748_v42  ;;  %v12523_v42 = vld [vmem:[#allocation24_spill] sm:$0xff] }
 0x667   : > { %v5545_v19 = vadd.f32 %v11295_v3, %v5362_v34  ;;  %v5672_v11 = vmax.f32 %v5544_v8, 0.0  ;;  %v5366_v62 = vadd.f32 %v5365_v63, %v11500_v35  ;;  %v11718_v39 = vrot.slane %v5798_v9, %v12523_v42  ;;  %v11738_v9 = vld [vmem:[%s12360_s18 + $0x70] sm:$0xff]  }
 0x668   : > { %v5367_v10 = vpop.f32.mrf.mxu0  ;;  %8272 = vmatpush2.bf16.msra.mxu1 %v11738_v9 }
 0x669   : > { %v5673_v12 = vmax.f32 %v5545_v19, 0.0  ;;  %v5368_v54 = vadd.f32 %v5367_v10, %v11505_v24  ;;  %v5750_v25 = vpack.c.bf16 %v5672_v11, %v5670_v7  ;;  %v5546_v33 = vadd.f32 %v11299_v4, %v5366_v62  ;;  %8257 = vmatprep.subr.bf16.mxu1 %v12480_v43 }
 0x66a   : > { %v5369_v40 = vpop.f32.mrf.mxu0 }
 0x66b   : > { %v5370_v31 = vadd.f32 %v5369_v40, %v11512_v38  ;;  %v5751_v23 = vpack.c.bf16 %v5673_v12, %v5671_v41  ;;  %v5547_v51 = vadd.f32 %v11295_v3, %v5368_v54 }
 0x66c   : > { %v5371_v50 = vpop.f32.mrf.mxu0 }
 0x66d   : > { %v5548_v21 = vadd.f32 %v11299_v4, %v5370_v31  ;;  %v5372_v24 = vadd.f32 %v5371_v50, %v11523_v15  ;;  %6242 = vmatprep.mubr.bf16.mxu1 %v5751_v23  ;;  %v5675_v8 = vmax.f32 %v5547_v51, 0.0  ;;  %v5674_v15 = vmax.f32 %v5546_v33, 0.0 }
 0x66e   : > { %v5375_v35 = vpop.f32.mrf.mxu0  ;;  %v6004_v37 = vpop.f32.mrf.mxu1  ;;  %6243 = vmatmul.mubr.bf16.gmra.mxu1 %v5750_v25 }
 0x66f   : > { %v5549_v38 = vadd.f32 %v11295_v3, %v5372_v24  ;;  %v5676_v56 = vmax.f32 %v5548_v21, 0.0  ;;  %v5376_v10 = vadd.f32 %v5375_v35, %v11531_v58  ;;  %v6005_v23 = vadd.f32 %v6004_v37, %v11721_v18 }
 0x670   : > { %v5377_v49 = vpop.f32.mrf.mxu0  ;;  %v6006_v30 = vpop.f32.mrf.mxu1 }
 0x671   : > { %v5677_v34 = vmax.f32 %v5549_v38, 0.0  ;;  %v5378_v63 = vadd.f32 %v5377_v49, %v11536_v20  ;;  %v5752_v7 = vpack.c.bf16 %v5676_v56, %v5674_v15  ;;  %v6007_v62 = vadd.f32 %v6006_v30, %v11718_v39 }
 0x672   : > { %v5379_v19 = vpop.f32.mrf.mxu0  ;;  %v6008_v11 = vpop.f32.mrf.mxu1  ;;  %v5550_v21 = vadd.f32 %v11299_v4, %v5376_v10  ;;  %v6323_v56 = vmax.f32 %v6005_v23, 0.0 }
 0x673   : > { %v5380_v41 = vadd.f32 %v5379_v19, %v11543_v61  ;;  %v6009_v12 = vadd.f32 %v6008_v11, %v11721_v18  ;;  %v5753_v54 = vpack.c.bf16 %v5677_v34, %v5675_v8  ;;  %v5551_v58 = vadd.f32 %v11295_v3, %v5378_v63 }
 0x674   : > { %v5381_v40 = vpop.f32.mrf.mxu0  ;;  %v6010_v31 = vpop.f32.mrf.mxu1  ;;  %v5678_v10 = vmax.f32 %v5550_v21, 0.0 }
 0x675   : > { %v5552_v25 = vadd.f32 %v11299_v4, %v5380_v41  ;;  %v5382_v20 = vadd.f32 %v5381_v40, %v11554_v59  ;;  %v6011_v50 = vadd.f32 %v6010_v31, %v11718_v39  ;;  %6252 = vmatprep.mubr.bf16.mxu1 %v5753_v54  ;;  %v6325_v24 = vmax.f32 %v6009_v12, 0.0 }
 0x676   : > { %v5385_v61 = vpop.f32.mrf.mxu0  ;;  %v6014_v51 = vpop.f32.mrf.mxu1  ;;  %6253 = vmatmul.mubr.bf16.gmra.mxu1 %v5752_v7  ;;  %v6324_v59 = vmax.f32 %v6007_v62, 0.0  ;;  %v5679_v8 = vmax.f32 %v5551_v58, 0.0 }
 0x677   : > { %v5553_v33 = vadd.f32 %v11295_v3, %v5382_v20  ;;  %v6326_v35 = vmax.f32 %v6011_v50, 0.0  ;;  %v5680_v49 = vmax.f32 %v5552_v25, 0.0  ;;  %v5386_v34 = vadd.f32 %v5385_v61, %v11562_v53 }
 0x678   : > { %v5387_v37 = vpop.f32.mrf.mxu0  ;;  %v6016_v38 = vpop.f32.mrf.mxu1  ;;  %v6451_v41 = vpack.c.bf16 %v6325_v24, %v6323_v56 }
 0x679   : > { %v5681_v30 = vmax.f32 %v5553_v33, 0.0  ;;  %v5388_v15 = vadd.f32 %v5387_v37, %v11567_v32  ;;  %v6452_v11 = vpack.c.bf16 %v6326_v35, %v6324_v59  ;;  %v6017_v7 = vadd.f32 %v6016_v38, %v11718_v39 }
 0x67a   : > { %v5389_v63 = vpop.f32.mrf.mxu0  ;;  %v6018_v19 = vpop.f32.mrf.mxu1  ;;  %v5754_v53 = vpack.c.bf16 %v5680_v49, %v5678_v10  ;;  %v6015_v32 = vadd.f32 %v6014_v51, %v11721_v18  ;;  %v5554_v20 = vadd.f32 %v11299_v4, %v5386_v34 }
 0x67b   : > { %v5390_v12 = vadd.f32 %v5389_v63, %v11579_v1  ;;  %v6019_v54 = vadd.f32 %v6018_v19, %v11721_v18  ;;  %6751 = vmatprep.mubr.bf16.mxu0 %v6452_v11  ;;  %v5755_v31 = vpack.c.bf16 %v5681_v30, %v5679_v8  ;;  %v5555_v1 = vadd.f32 %v11295_v3, %v5388_v15  ;;  %v12524_v63 = vld [vmem:[#allocation29_spill] sm:$0xff] }
 0x67c   : > { %v5391_v62 = vpop.f32.mrf.mxu0  ;;  %v6020_v40 = vpop.f32.mrf.mxu1  ;;  %6752 = vmatmul.mubr.bf16.vlgmr.msra.gmra.mxu0 %v6451_v41  ;;  %v6328_v51 = vmax.f32 %v6017_v7, 0.0  ;;  %v6327_v59 = vmax.f32 %v6015_v32, 0.0  ;;  %v5682_v56 = vmax.f32 %v5554_v20, 0.0 }
 0x67d   : > { %v5556_v23 = vadd.f32 %v11299_v4, %v5390_v12  ;;  %v5392_v25 = vadd.f32 %v5391_v62, %v11586_v27  ;;  %v6021_v50 = vadd.f32 %v6020_v40, %v11718_v39  ;;  %6262 = vmatprep.mubr.bf16.mxu1 %v5755_v31  ;;  %7400 = vmatpush1.bf16.msra.mxu0 %v11455_v17  ;;  %v6329_v21 = vmax.f32 %v6019_v54, 0.0 }
 0x67e   : > { %v5395_v58 = vpop.f32.mrf.mxu0  ;;  %v6024_v61 = vpop.f32.mrf.mxu1  ;;  %6263 = vmatmul.mubr.bf16.gmra.mxu1 %v5754_v53  ;;  %7401 = vmatprep.subr.bf16.mxu0 %v12480_v43  ;;  %v5683_v49 = vmax.f32 %v5555_v1, 0.0 }
 0x67f   : > { %v5557_v24 = vadd.f32 %v11295_v3, %v5392_v25  ;;  %v6330_v27 = vmax.f32 %v6021_v50, 0.0  ;;  %v5684_v37 = vmax.f32 %v5556_v23, 0.0  ;;  %v6453_v15 = vpack.c.bf16 %v6329_v21, %v6327_v59  ;;  %v12525_v23 = vld [vmem:[#allocation25_spill] sm:$0xff] }
 0x680   : > { %v5397_v33 = vpop.f32.mrf.mxu0  ;;  %v6026_v35 = vpop.f32.mrf.mxu1  ;;  %v5396_v19 = vadd.f32 %v5395_v58, %v12524_v63  ;;  %v6025_v62 = vadd.f32 %v6024_v61, %v11721_v18 }
 0x681   : > { %v5685_v38 = vmax.f32 %v5557_v24, 0.0  ;;  %v5398_v30 = vadd.f32 %v5397_v33, %v11598_v55  ;;  %v6454_v17 = vpack.c.bf16 %v6330_v27, %v6328_v51  ;;  %7402 = vmatpush1.bf16.msra.mxu0 %v11487_v14  ;;  %v6027_v41 = vadd.f32 %v6026_v35, %v11718_v39 }
 0x682   : > { %v5399_v8 = vpop.f32.mrf.mxu0  ;;  %v6028_v34 = vpop.f32.mrf.mxu1  ;;  %7403 = vmatprep.subr.bf16.mxu0 %v12480_v43  ;;  %v5756_v7 = vpack.c.bf16 %v5684_v37, %v5682_v56  ;;  %v5558_v25 = vadd.f32 %v11299_v4, %v5396_v19  ;;  %v6331_v24 = vmax.f32 %v6025_v62, 0.0  ;;  %v12527_v62 = vld [vmem:[#allocation27_spill] sm:$0xff] }
 0x683   : > { %v5400_v11 = vadd.f32 %v5399_v8, %v11610_v47  ;;  %v6029_v10 = vadd.f32 %v6028_v34, %v11721_v18  ;;  %6761 = vmatprep.mubr.bf16.mxu0 %v6454_v17  ;;  %v5757_v55 = vpack.c.bf16 %v5685_v38, %v5683_v49  ;;  %v5559_v47 = vadd.f32 %v11295_v3, %v5398_v30  ;;  %v12526_v49 = vld [vmem:[#allocation26_spill] sm:$0xff] }
 0x684   : > { %v5401_v12 = vpop.f32.mrf.mxu0  ;;  %v6030_v54 = vpop.f32.mrf.mxu1  ;;  %6762 = vmatmul.mubr.bf16.gmra.mxu0 %v6453_v15  ;;  %v6332_v50 = vmax.f32 %v6027_v41, 0.0  ;;  %v5686_v30 = vmax.f32 %v5558_v25, 0.0 }
 0x685   : > { %v5560_v14 = vadd.f32 %v11299_v4, %v5400_v11  ;;  %v5402_v40 = vadd.f32 %v5401_v12, %v11617_v13  ;;  %v6031_v31 = vadd.f32 %v6030_v54, %v11718_v39  ;;  %6272 = vmatprep.mubr.bf16.mxu1 %v5757_v55  ;;  %7404 = vmatpush1.bf16.msra.mxu0 %v12525_v23  ;;  %v6333_v20 = vmax.f32 %v6029_v10, 0.0  ;;  %v11774_v13 = vld [vmem:[%s12360_s18 + $0x68] sm:$0xff]  }
 0x686   : > { %v5405_v53 = vpop.f32.mrf.mxu0  ;;  %v6034_v32 = vpop.f32.mrf.mxu1  ;;  %6273 = vmatmul.mubr.bf16.gmra.mxu1 %v5756_v7  ;;  %7405 = vmatprep.subr.bf16.mxu0 %v12480_v43  ;;  %v5687_v33 = vmax.f32 %v5559_v47, 0.0 }
 0x687   : > { %v5561_v1 = vadd.f32 %v11295_v3, %v5402_v40  ;;  %v6334_v58 = vmax.f32 %v6031_v31, 0.0  ;;  %v5688_v51 = vmax.f32 %v5560_v14, 0.0  ;;  %8273 = vmatpush2.bf16.msra.mxu1 %v11774_v13  ;;  %v5406_v35 = vadd.f32 %v5405_v53, %v11624_v22 }
 0x688   : > { %v5407_v61 = vpop.f32.mrf.mxu0  ;;  %v6036_v21 = vpop.f32.mrf.mxu1  ;;  %8258 = vmatprep.subr.bf16.mxu1 %v12480_v43  ;;  %v6455_v8 = vpack.c.bf16 %v6333_v20, %v6331_v24  ;;  %v6035_v11 = vadd.f32 %v6034_v32, %v11721_v18 }
 0x689   : > { %v5689_v27 = vmax.f32 %v5561_v1, 0.0  ;;  %v5408_v59 = vadd.f32 %v5407_v61, %v11629_v46  ;;  %v6456_v56 = vpack.c.bf16 %v6334_v58, %v6332_v50  ;;  %7406 = vmatpush1.bf16.msra.mxu0 %v12526_v49  ;;  %v6037_v15 = vadd.f32 %v6036_v21, %v11718_v39 }
 0x68a   : > { %v5409_v37 = vpop.f32.mrf.mxu0  ;;  %v6038_v38 = vpop.f32.mrf.mxu1  ;;  %7407 = vmatprep.subr.bf16.mxu0 %v12480_v43  ;;  %v5758_v19 = vpack.c.bf16 %v5688_v51, %v5686_v30  ;;  %v6335_v32 = vmax.f32 %v6035_v11, 0.0 }
 0x68b   : > { %v5410_v34 = vadd.f32 %v5409_v37, %v11641_v16  ;;  %v6039_v17 = vadd.f32 %v6038_v38, %v11721_v18  ;;  %6771 = vmatprep.mubr.bf16.mxu0 %v6456_v56  ;;  %v5759_v63 = vpack.c.bf16 %v5689_v27, %v5687_v33  ;;  %v5562_v16 = vadd.f32 %v11299_v4, %v5406_v35 }
 0x68c   : > { %v5411_v22 = vpop.f32.mrf.mxu0  ;;  %v6040_v46 = vpop.f32.mrf.mxu1  ;;  %6772 = vmatmul.mubr.bf16.gmra.mxu0 %v6455_v8  ;;  %v5563_v12 = vadd.f32 %v11295_v3, %v5408_v59  ;;  %v6336_v47 = vmax.f32 %v6037_v15, 0.0 }
 0x68d   : > { %v5564_v10 = vadd.f32 %v11299_v4, %v5410_v34  ;;  %v5412_v41 = vadd.f32 %v5411_v22, %v11648_v2  ;;  %v6041_v54 = vadd.f32 %v6040_v46, %v11718_v39  ;;  %6282 = vmatprep.mubr.bf16.mxu1 %v5759_v63  ;;  %7408 = vmatpush1.bf16.msra.mxu0 %v12527_v62  ;;  %v6337_v14 = vmax.f32 %v6039_v17, 0.0 }
 0x68e   : > { %v5415_v55 = vpop.f32.mrf.mxu0  ;;  %v6044_v7 = vpop.f32.mrf.mxu1  ;;  %6283 = vmatmul.mubr.bf16.gmra.mxu1 %v5758_v19  ;;  %7409 = vmatprep.subr.bf16.mxu0 %v12480_v43  ;;  %v5690_v20 = vmax.f32 %v5562_v16, 0.0  ;;  %v5691_v1 = vmax.f32 %v5563_v12, 0.0 }
 0x68f   : > { %v5565_v40 = vadd.f32 %v11295_v3, %v5412_v41  ;;  %v6338_v2 = vmax.f32 %v6041_v54, 0.0  ;;  %v5692_v23 = vmax.f32 %v5564_v10, 0.0  ;;  %v6457_v24 = vpack.c.bf16 %v6337_v14, %v6335_v32 }
 0x690   : > { %v5417_v31 = vpop.f32.mrf.mxu0  ;;  %v6046_v53 = vpop.f32.mrf.mxu1  ;;  %v5416_v51 = vadd.f32 %v5415_v55, %v11655_v52  ;;  %v6045_v56 = vadd.f32 %v6044_v7, %v11721_v18 }
 0x691   : > { %v5693_v25 = vmax.f32 %v5565_v40, 0.0  ;;  %v5418_v50 = vadd.f32 %v5417_v31, %v11660_v48  ;;  %v6458_v21 = vpack.c.bf16 %v6338_v2, %v6336_v47  ;;  %7410 = vmatpush1.bf16.msra.mxu0 %v11608_v5  ;;  %v6047_v35 = vadd.f32 %v6046_v53, %v11718_v39 }
 0x692   : > { %v5419_v58 = vpop.f32.mrf.mxu0  ;;  %v6048_v61 = vpop.f32.mrf.mxu1  ;;  %7411 = vmatprep.subr.bf16.mxu0 %v12480_v43  ;;  %v5760_v38 = vpack.c.bf16 %v5692_v23, %v5690_v20  ;;  %v5566_v34 = vadd.f32 %v11299_v4, %v5416_v51  ;;  %v6339_v11 = vmax.f32 %v6045_v56, 0.0 }
 0x693   : > { %v5420_v27 = vadd.f32 %v5419_v58, %v11672_v0  ;;  %v6049_v33 = vadd.f32 %v6048_v61, %v11721_v18  ;;  %6781 = vmatprep.mubr.bf16.mxu0 %v6458_v21  ;;  %v5761_v48 = vpack.c.bf16 %v5693_v25, %v5691_v1  ;;  %v5567_v52 = vadd.f32 %v11295_v3, %v5418_v50 }
 0x694   : > { %v5421_v59 = vpop.f32.mrf.mxu0  ;;  %v6050_v37 = vpop.f32.mrf.mxu1  ;;  %6782 = vmatmul.mubr.bf16.gmra.mxu0 %v6457_v24  ;;  %v6340_v22 = vmax.f32 %v6047_v35, 0.0  ;;  %v5694_v62 = vmax.f32 %v5566_v34, 0.0 }
 0x695   : > { %v5568_v5 = vadd.f32 %v11299_v4, %v5420_v27  ;;  %v5422_v49 = vadd.f32 %v5421_v59, %v11679_v6  ;;  %v6051_v0 = vadd.f32 %v6050_v37, %v11718_v39  ;;  %6292 = vmatprep.mubr.bf16.mxu1 %v5761_v48  ;;  %7412 = vmatpush1.bf16.msra.mxu0 %v11639_v28  ;;  %v6341_v17 = vmax.f32 %v6049_v33, 0.0  ;;  %v11813_v6 = vld [vmem:[%s12360_s18 + $0x60] sm:$0xff]  }
 0x696   : > { %v5425_v30 = vpop.f32.mrf.mxu0  ;;  %v6054_v8 = vpop.f32.mrf.mxu1  ;;  %6293 = vmatmul.mubr.bf16.gmra.mxu1 %v5760_v38  ;;  %7413 = vmatprep.subr.bf16.mxu0 %v12480_v43  ;;  %v5695_v16 = vmax.f32 %v5567_v52, 0.0 }
 0x697   : > { %v5569_v15 = vadd.f32 %v11295_v3, %v5422_v49  ;;  %v6342_v46 = vmax.f32 %v6051_v0, 0.0  ;;  %v5696_v10 = vmax.f32 %v5568_v5, 0.0  ;;  %8274 = vmatpush2.bf16.msra.mxu1 %v11813_v6  ;;  %v5426_v12 = vadd.f32 %v5425_v30, %v11686_v57 }
 0x698   : > { %v5427_v63 = vpop.f32.mrf.mxu0  ;;  %v6056_v19 = vpop.f32.mrf.mxu1  ;;  %8259 = vmatprep.subr.bf16.mxu1 %v12480_v43  ;;  %v6459_v14 = vpack.c.bf16 %v6341_v17, %v6339_v11 }
 0x699   : > { %v5697_v28 = vmax.f32 %v5569_v15, 0.0  ;;  %v5428_v41 = vadd.f32 %v5427_v63, %v11691_v45  ;;  %v6460_v7 = vpack.c.bf16 %v6342_v46, %v6340_v22  ;;  %7414 = vmatpush1.bf16.msra.mxu0 %v11670_v60  ;;  %v6055_v45 = vadd.f32 %v6054_v8, %v11721_v18  ;;  %v8745_v8 = vld [vmem:[%s12360_s18 + $0x58] sm:$0xff]  }
 0x69a   : > { %v5429_v54 = vpop.f32.mrf.mxu0  ;;  %v6058_v55 = vpop.f32.mrf.mxu1  ;;  %7415 = vmatprep.subr.bf16.mxu0 %v12480_v43  ;;  %v6057_v2 = vadd.f32 %v6056_v19, %v11718_v39  ;;  %v5762_v32 = vpack.c.bf16 %v5696_v10, %v5694_v62 }
 0x69b   : > { %v5430_v40 = vadd.f32 %v5429_v54, %v11703_v36  ;;  %v6059_v47 = vadd.f32 %v6058_v55, %v11721_v18  ;;  %6791 = vmatprep.mubr.bf16.mxu0 %v6460_v7  ;;  %v5763_v53 = vpack.c.bf16 %v5697_v28, %v5695_v16  ;;  %v5571_v23 = vadd.f32 %v11295_v3, %v5428_v41 }
 0x69c   : > { %v5431_v57 = vpop.f32.mrf.mxu0  ;;  %v6060_v31 = vpop.f32.mrf.mxu1  ;;  %6792 = vmatmul.mubr.bf16.gmra.mxu0 %v6459_v14  ;;  %v5570_v36 = vadd.f32 %v11299_v4, %v5426_v12  ;;  %v6344_v61 = vmax.f32 %v6057_v2, 0.0  ;;  %v6343_v51 = vmax.f32 %v6055_v45, 0.0  ;;  %8275 = vmatpush2.bf16.msra.mxu1 %v8745_v8 }
 0x69d   : > { %v5572_v60 = vadd.f32 %v11299_v4, %v5430_v40  ;;  %v5432_v25 = vadd.f32 %v5431_v57, %v11710_v44  ;;  %v6061_v20 = vadd.f32 %v6060_v31, %v11718_v39  ;;  %6302 = vmatprep.mubr.bf16.mxu1 %v5763_v53  ;;  %7416 = vmatpush2.bf16.msra.mxu0 %v11701_v29  ;;  %v6345_v50 = vmax.f32 %v6059_v47, 0.0 }
 0x69e   : > { %v6064_v1 = vpop.f32.mrf.mxu1  ;;  %6303 = vmatmul.mubr.bf16.gmra.mxu1 %v5762_v32  ;;  %7417 = vmatprep.subr.bf16.mxu0 %v12480_v43  ;;  %v5699_v44 = vmax.f32 %v5571_v23, 0.0  ;;  %v5698_v4 = vmax.f32 %v5570_v36, 0.0  ;;  %v8746_v23 = vld [vmem:[%s12360_s18 + $0x50] sm:$0xff]  }
 0x69f   : > { %v5573_v58 = vadd.f32 %v11295_v3, %v5432_v25  ;;  %v6346_v21 = vmax.f32 %v6061_v20, 0.0  ;;  %v5700_v27 = vmax.f32 %v5572_v60, 0.0  ;;  %v6461_v37 = vpack.c.bf16 %v6345_v50, %v6343_v51  ;;  %8260 = vmatprep.subr.bf16.mxu1 %v12480_v43 }
 0x6a0   : > { %v6066_v24 = vpop.f32.mrf.mxu1  ;;  %v6065_v5 = vadd.f32 %v6064_v1, %v11721_v18  ;;  %8276 = vmatpush2.bf16.msra.mxu1 %v8746_v23 }
 0x6a1   : > { %v5701_v33 = vmax.f32 %v5573_v58, 0.0  ;;  %v6462_v59 = vpack.c.bf16 %v6346_v21, %v6344_v61  ;;  %7418 = vmatpush2.bf16.msra.mxu0 %v11738_v9  ;;  %v6067_v29 = vadd.f32 %v6066_v24, %v11718_v39  ;;  %v5764_v56 = vpack.c.bf16 %v5700_v27, %v5698_v4  ;;  %8261 = vmatprep.subr.bf16.mxu1 %v12480_v43 }
 0x6a2   : > { %v6068_v35 = vpop.f32.mrf.mxu1  ;;  %7419 = vmatprep.subr.bf16.mxu0 %v12480_v43  ;;  %v6347_v17 = vmax.f32 %v6065_v5, 0.0 }
 0x6a3   : > { %v6069_v3 = vadd.f32 %v6068_v35, %v11721_v18  ;;  %v5765_v48 = vpack.c.bf16 %v5701_v33, %v5699_v44  ;;  %6801 = vmatprep.mubr.bf16.mxu0 %v6462_v59  ;;  %v6348_v9 = vmax.f32 %v6067_v29, 0.0 }
 0x6a4   : > { %v6070_v38 = vpop.f32.mrf.mxu1  ;;  %6802 = vmatmul.mubr.bf16.gmra.mxu0 %v6461_v37 }
 0x6a5   : > { %v6071_v49 = vadd.f32 %v6070_v38, %v11718_v39  ;;  %6312 = vmatprep.mubr.bf16.mxu1 %v5765_v48  ;;  %7420 = vmatpush2.bf16.msra.mxu0 %v11774_v13  ;;  %v6349_v0 = vmax.f32 %v6069_v3, 0.0 }
 0x6a6   : > { %v6074_v52 = vpop.f32.mrf.mxu1  ;;  %6313 = vmatmul.mubr.bf16.gmra.mxu1 %v5764_v56  ;;  %7421 = vmatprep.subr.bf16.mxu0 %v12480_v43 }
 0x6a7   : > { %v6350_v30 = vmax.f32 %v6071_v49, 0.0  ;;  %v6463_v13 = vpack.c.bf16 %v6349_v0, %v6347_v17  ;;  %v6075_v11 = vadd.f32 %v6074_v52, %v11721_v18 }
 0x6a8   : > { %v6076_v34 = vpop.f32.mrf.mxu1 }
 0x6a9   : > { %v6464_v15 = vpack.c.bf16 %v6350_v30, %v6348_v9  ;;  %7422 = vmatpush2.bf16.msra.mxu0 %v11813_v6  ;;  %v6077_v46 = vadd.f32 %v6076_v34, %v11718_v39  ;;  %v6351_v54 = vmax.f32 %v6075_v11, 0.0 }
 0x6aa   : > { %v6078_v22 = vpop.f32.mrf.mxu1  ;;  %7423 = vmatprep.subr.bf16.mxu0 %v12480_v43 }
 0x6ab   : > { %v6079_v63 = vadd.f32 %v6078_v22, %v11721_v18  ;;  %6811 = vmatprep.mubr.bf16.mxu0 %v6464_v15  ;;  %v6352_v41 = vmax.f32 %v6077_v46, 0.0 }
 0x6ac   : > { %v6080_v19 = vpop.f32.mrf.mxu1  ;;  %6812 = vmatmul.mubr.bf16.gmra.mxu0 %v6463_v13 }
 0x6ad   : > { %v6081_v10 = vadd.f32 %v6080_v19, %v11718_v39  ;;  %7424 = vmatpush2.bf16.msra.mxu0 %v8745_v8  ;;  %v6353_v16 = vmax.f32 %v6079_v63, 0.0  ;;  %v8747_v8 = vld [vmem:[%s12360_s18 + $0x48] sm:$0xff]  }
 0x6ae   : > { %v6084_v28 = vpop.f32.mrf.mxu1  ;;  %7425 = vmatprep.subr.bf16.mxu0 %v12480_v43  ;;  %8277 = vmatpush2.bf16.msra.mxu1 %v8747_v8 }
 0x6af   : > { %v6354_v12 = vmax.f32 %v6081_v10, 0.0  ;;  %v6465_v62 = vpack.c.bf16 %v6353_v16, %v6351_v54  ;;  %v6085_v45 = vadd.f32 %v6084_v28, %v11721_v18  ;;  %8262 = vmatprep.subr.bf16.mxu1 %v12480_v43 }
 0x6b0   : > { %v6086_v6 = vpop.f32.mrf.mxu1 }
 0x6b1   : > { %v6466_v55 = vpack.c.bf16 %v6354_v12, %v6352_v41  ;;  %v6087_v14 = vadd.f32 %v6086_v6, %v11718_v39  ;;  %v6355_v25 = vmax.f32 %v6085_v45, 0.0  ;;  %7426 = vmatpush2.bf16.msra.mxu0 %v8746_v23 }
 0x6b2   : > { %v6088_v7 = vpop.f32.mrf.mxu1  ;;  %7427 = vmatprep.subr.bf16.mxu0 %v12480_v43 }
 0x6b3   : > { %v6089_v40 = vadd.f32 %v6088_v7, %v11721_v18  ;;  %6821 = vmatprep.mubr.bf16.mxu0 %v6466_v55  ;;  %v6356_v31 = vmax.f32 %v6087_v14, 0.0 }
 0x6b4   : > { %v6090_v47 = vpop.f32.mrf.mxu1  ;;  %6822 = vmatmul.mubr.bf16.gmra.mxu0 %v6465_v62 }
 0x6b5   : > { %v6091_v2 = vadd.f32 %v6090_v47, %v11718_v39  ;;  %v6357_v53 = vmax.f32 %v6089_v40, 0.0  ;;  %7428 = vmatpush2.bf16.msra.mxu0 %v8747_v8 }
 0x6b6   : > { %v6094_v57 = vpop.f32.mrf.mxu1  ;;  %7429 = vmatprep.subr.bf16.mxu0 %v12480_v43 }
 0x6b7   : > { %v6358_v32 = vmax.f32 %v6091_v2, 0.0  ;;  %v6467_v1 = vpack.c.bf16 %v6357_v53, %v6355_v25  ;;  %v6095_v21 = vadd.f32 %v6094_v57, %v11721_v18 }
 0x6b8   : > { %v6096_v60 = vpop.f32.mrf.mxu1 }
 0x6b9   : > { %v6468_v36 = vpack.c.bf16 %v6358_v32, %v6356_v31  ;;  %v6097_v50 = vadd.f32 %v6096_v60, %v11718_v39  ;;  %v6359_v35 = vmax.f32 %v6095_v21, 0.0  ;;  %v8748_v32 = vld [vmem:[%s12360_s18 + $0x40] sm:$0xff]  }
 0x6ba   : > { %v6098_v20 = vpop.f32.mrf.mxu1  ;;  %8278 = vmatpush2.bf16.msra.mxu1 %v8748_v32  ;;  %7430 = vmatpush2.bf16.msra.mxu0 %v8748_v32 }
 0x6bb   : > { %v6099_v58 = vadd.f32 %v6098_v20, %v11721_v18  ;;  %6831 = vmatprep.mubr.bf16.mxu0 %v6468_v36  ;;  %v6360_v44 = vmax.f32 %v6097_v50, 0.0 }
 0x6bc   : > { %v6100_v61 = vpop.f32.mrf.mxu1  ;;  %6832 = vmatmul.mubr.bf16.gmra.mxu0 %v6467_v1 }
 0x6bd   : > { %v6101_v24 = vadd.f32 %v6100_v61, %v11718_v39  ;;  %v6361_v27 = vmax.f32 %v6099_v58, 0.0 }
 0x6be   : > { %v6104_v51 = vpop.f32.mrf.mxu1 }
 0x6bf   : > { %v6362_v33 = vmax.f32 %v6101_v24, 0.0  ;;  %v6469_v29 = vpack.c.bf16 %v6361_v27, %v6359_v35  ;;  %v6105_v56 = vadd.f32 %v6104_v51, %v11721_v18 }
 0x6c0   : > { %v6106_v4 = vpop.f32.mrf.mxu1 }
 0x6c1   : > { %v6470_v59 = vpack.c.bf16 %v6362_v33, %v6360_v44  ;;  %v6107_v3 = vadd.f32 %v6106_v4, %v11718_v39  ;;  %v6363_v34 = vmax.f32 %v6105_v56, 0.0 }
 0x6c2   : > { %v6108_v37 = vpop.f32.mrf.mxu1 }
 0x6c3   : > { %v6109_v48 = vadd.f32 %v6108_v37, %v11721_v18  ;;  %6841 = vmatprep.mubr.bf16.mxu0 %v6470_v59  ;;  %v6364_v52 = vmax.f32 %v6107_v3, 0.0 }
 0x6c4   : > { %v6110_v38 = vpop.f32.mrf.mxu1  ;;  %6842 = vmatmul.mubr.bf16.gmra.mxu0 %v6469_v29 }
 0x6c5   : > { %v6111_v5 = vadd.f32 %v6110_v38, %v11718_v39  ;;  %v6365_v9 = vmax.f32 %v6109_v48, 0.0 }
 0x6c6   : > { %v6114_v49 = vpop.f32.mrf.mxu1 }
 0x6c7   : > { %v6366_v0 = vmax.f32 %v6111_v5, 0.0  ;;  %v6471_v22 = vpack.c.bf16 %v6365_v9, %v6363_v34  ;;  %v6115_v19 = vadd.f32 %v6114_v49, %v11721_v18 }
 0x6c8   : > { %v6116_v30 = vpop.f32.mrf.mxu1 }
 0x6c9   : > { %v6472_v17 = vpack.c.bf16 %v6366_v0, %v6364_v52  ;;  %v6117_v13 = vadd.f32 %v6116_v30, %v11718_v39  ;;  %v6367_v6 = vmax.f32 %v6115_v19, 0.0 }
 0x6ca   : > { %v6118_v15 = vpop.f32.mrf.mxu1 }
 0x6cb   : > { %v6119_v46 = vadd.f32 %v6118_v15, %v11721_v18  ;;  %6851 = vmatprep.mubr.bf16.mxu0 %v6472_v17  ;;  %v6368_v28 = vmax.f32 %v6117_v13, 0.0 }
 0x6cc   : > { %v6120_v63 = vpop.f32.mrf.mxu1  ;;  %6852 = vmatmul.mubr.bf16.gmra.mxu0 %v6471_v22 }
 0x6cd   : > { %v6121_v11 = vadd.f32 %v6120_v63, %v11718_v39  ;;  %v6369_v41 = vmax.f32 %v6119_v46, 0.0 }
 0x6ce   : > { %v6124_v10 = vpop.f32.mrf.mxu1 }
 0x6cf   : > { %v6370_v16 = vmax.f32 %v6121_v11, 0.0  ;;  %v6473_v7 = vpack.c.bf16 %v6369_v41, %v6367_v6  ;;  %v6125_v40 = vadd.f32 %v6124_v10, %v11721_v18 }
 0x6d0   : > { %v6126_v12 = vpop.f32.mrf.mxu1 }
 0x6d1   : > { %v6474_v54 = vpack.c.bf16 %v6370_v16, %v6368_v28  ;;  %v6127_v62 = vadd.f32 %v6126_v12, %v11718_v39  ;;  %v6371_v23 = vmax.f32 %v6125_v40, 0.0 }
 0x6d2   : > { %v6128_v55 = vpop.f32.mrf.mxu1 }
 0x6d3   : > { %v6129_v14 = vadd.f32 %v6128_v55, %v11721_v18  ;;  %6861 = vmatprep.mubr.bf16.mxu0 %v6474_v54  ;;  %v6372_v2 = vmax.f32 %v6127_v62, 0.0 }
 0x6d4   : > { %v6130_v43 = vpop.f32.mrf.mxu1  ;;  %6862 = vmatmul.mubr.bf16.gmra.mxu0 %v6473_v7 }
 0x6d5   : > { %v6131_v47 = vadd.f32 %v6130_v43, %v11718_v39  ;;  %v6373_v57 = vmax.f32 %v6129_v14, 0.0 }
 0x6d6   : > { %v6134_v45 = vpop.f32.mrf.mxu1 }
 0x6d7   : > { %v6374_v31 = vmax.f32 %v6131_v47, 0.0  ;;  %v6475_v36 = vpack.c.bf16 %v6373_v57, %v6371_v23  ;;  %v6135_v58 = vadd.f32 %v6134_v45, %v11721_v18 }
 0x6d8   : > { %v6136_v53 = vpop.f32.mrf.mxu1 }
 0x6d9   : > { %v6476_v60 = vpack.c.bf16 %v6374_v31, %v6372_v2  ;;  %v6137_v20 = vadd.f32 %v6136_v53, %v11718_v39  ;;  %v6375_v33 = vmax.f32 %v6135_v58, 0.0 }
 0x6da   : > { %v6138_v25 = vpop.f32.mrf.mxu1 }
 0x6db   : > { %v6139_v1 = vadd.f32 %v6138_v25, %v11721_v18  ;;  %6871 = vmatprep.mubr.bf16.mxu0 %v6476_v60  ;;  %v6376_v24 = vmax.f32 %v6137_v20, 0.0 }
 0x6dc   : > { %v6140_v50 = vpop.f32.mrf.mxu1  ;;  %6872 = vmatmul.mubr.bf16.gmra.mxu0 %v6475_v36 }
 0x6dd   : > { %v6141_v61 = vadd.f32 %v6140_v50, %v11718_v39  ;;  %v6377_v51 = vmax.f32 %v6139_v1, 0.0 }
 0x6de   : > { %v6144_v21 = vpop.f32.mrf.mxu1 }
 0x6df   : > { %v6378_v44 = vmax.f32 %v6141_v61, 0.0  ;;  %v6477_v59 = vpack.c.bf16 %v6377_v51, %v6375_v33  ;;  %v6145_v48 = vadd.f32 %v6144_v21, %v11721_v18 }
 0x6e0   : > { %v6146_v27 = vpop.f32.mrf.mxu1 }
 0x6e1   : > { %v6478_v4 = vpack.c.bf16 %v6378_v44, %v6376_v24  ;;  %v6147_v37 = vadd.f32 %v6146_v27, %v11718_v39  ;;  %v6379_v0 = vmax.f32 %v6145_v48, 0.0 }
 0x6e2   : > { %v6148_v35 = vpop.f32.mrf.mxu1 }
 0x6e3   : > { %v6149_v29 = vadd.f32 %v6148_v35, %v11721_v18  ;;  %6881 = vmatprep.mubr.bf16.mxu0 %v6478_v4  ;;  %v6380_v5 = vmax.f32 %v6147_v37, 0.0 }
 0x6e4   : > { %v6150_v3 = vpop.f32.mrf.mxu1  ;;  %6882 = vmatmul.mubr.bf16.gmra.mxu0 %v6477_v59 }
 0x6e5   : > { %v6151_v38 = vadd.f32 %v6150_v3, %v11718_v39  ;;  %v6381_v49 = vmax.f32 %v6149_v29, 0.0 }
 0x6e6   : > { %v6154_v56 = vpop.f32.mrf.mxu1 }
 0x6e7   : > { %v6382_v52 = vmax.f32 %v6151_v38, 0.0  ;;  %v6479_v34 = vpack.c.bf16 %v6381_v49, %v6379_v0  ;;  %v6155_v13 = vadd.f32 %v6154_v56, %v11721_v18 }
 0x6e8   : > { %v6156_v9 = vpop.f32.mrf.mxu1 }
 0x6e9   : > { %v6480_v30 = vpack.c.bf16 %v6382_v52, %v6380_v5  ;;  %v6157_v17 = vadd.f32 %v6156_v9, %v11718_v39  ;;  %v6383_v41 = vmax.f32 %v6155_v13, 0.0 }
 0x6ea   : > { %v6158_v8 = vpop.f32.mrf.mxu1 }
 0x6eb   : > { %v6159_v15 = vadd.f32 %v6158_v8, %v11721_v18  ;;  %6891 = vmatprep.mubr.bf16.mxu0 %v6480_v30  ;;  %v6384_v19 = vmax.f32 %v6157_v17, 0.0 }
 0x6ec   : > { %v6160_v22 = vpop.f32.mrf.mxu1  ;;  %6892 = vmatmul.mubr.bf16.gmra.mxu0 %v6479_v34 }
 0x6ed   : > { %v6161_v46 = vadd.f32 %v6160_v22, %v11718_v39  ;;  %v6385_v11 = vmax.f32 %v6159_v15, 0.0 }
 0x6ee   : > { %v6164_v63 = vpop.f32.mrf.mxu1 }
 0x6ef   : > { %v6386_v10 = vmax.f32 %v6161_v46, 0.0  ;;  %v6481_v6 = vpack.c.bf16 %v6385_v11, %v6383_v41  ;;  %v6165_v62 = vadd.f32 %v6164_v63, %v11721_v18 }
 0x6f0   : > { %v6166_v28 = vpop.f32.mrf.mxu1 }
 0x6f1   : > { %v6482_v16 = vpack.c.bf16 %v6386_v10, %v6384_v19  ;;  %v6167_v54 = vadd.f32 %v6166_v28, %v11718_v39  ;;  %v6387_v57 = vmax.f32 %v6165_v62, 0.0 }
 0x6f2   : > { %v6168_v12 = vpop.f32.mrf.mxu1 }
 0x6f3   : > { %v6169_v55 = vadd.f32 %v6168_v12, %v11721_v18  ;;  %6901 = vmatprep.mubr.bf16.mxu0 %v6482_v16  ;;  %v6388_v40 = vmax.f32 %v6167_v54, 0.0 }
 0x6f4   : > { %v6170_v7 = vpop.f32.mrf.mxu1  ;;  %6902 = vmatmul.mubr.bf16.gmra.mxu0 %v6481_v6 }
 0x6f5   : > { %v6171_v14 = vadd.f32 %v6170_v7, %v11718_v39  ;;  %v6389_v47 = vmax.f32 %v6169_v55, 0.0 }
 0x6f6   : > { %v6174_v43 = vpop.f32.mrf.mxu1 }
 0x6f7   : > { %v6390_v45 = vmax.f32 %v6171_v14, 0.0  ;;  %v6483_v32 = vpack.c.bf16 %v6389_v47, %v6387_v57  ;;  %v6175_v36 = vadd.f32 %v6174_v43, %v11721_v18 }
 0x6f8   : > { %v6176_v2 = vpop.f32.mrf.mxu1 }
 0x6f9   : > { %v6484_v31 = vpack.c.bf16 %v6390_v45, %v6388_v40  ;;  %v6177_v23 = vadd.f32 %v6176_v2, %v11718_v39  ;;  %v6391_v24 = vmax.f32 %v6175_v36, 0.0 }
 0x6fa   : > { %v6178_v53 = vpop.f32.mrf.mxu1 }
 0x6fb   : > { %v6179_v60 = vadd.f32 %v6178_v53, %v11721_v18  ;;  %6911 = vmatprep.mubr.bf16.mxu0 %v6484_v31  ;;  %v6392_v50 = vmax.f32 %v6177_v23, 0.0 }
 0x6fc   : > { %v6180_v25 = vpop.f32.mrf.mxu1  ;;  %6912 = vmatmul.mubr.bf16.gmra.mxu0 %v6483_v32 }
 0x6fd   : > { %v6181_v20 = vadd.f32 %v6180_v25, %v11718_v39  ;;  %v6393_v58 = vmax.f32 %v6179_v60, 0.0 }
 0x6fe   : > { %v6184_v1 = vpop.f32.mrf.mxu1 }
 0x6ff   : > { %v6394_v61 = vmax.f32 %v6181_v20, 0.0  ;;  %v6485_v27 = vpack.c.bf16 %v6393_v58, %v6391_v24  ;;  %v6185_v59 = vadd.f32 %v6184_v1, %v11721_v18 }
 0x700   : > { %v6186_v21 = vpop.f32.mrf.mxu1 }
 0x701   : > { %v6486_v51 = vpack.c.bf16 %v6394_v61, %v6392_v50  ;;  %v6187_v33 = vadd.f32 %v6186_v21, %v11718_v39  ;;  %v6395_v5 = vmax.f32 %v6185_v59, 0.0 }
 0x702   : > { %v6188_v44 = vpop.f32.mrf.mxu1 }
 0x703   : > { %v6189_v4 = vadd.f32 %v6188_v44, %v11721_v18  ;;  %6921 = vmatprep.mubr.bf16.mxu0 %v6486_v51  ;;  %v6396_v3 = vmax.f32 %v6187_v33, 0.0 }
 0x704   : > { %v6190_v35 = vpop.f32.mrf.mxu1  ;;  %6922 = vmatmul.mubr.bf16.gmra.mxu0 %v6485_v27 }
 0x705   : > { %v6191_v37 = vadd.f32 %v6190_v35, %v11718_v39  ;;  %v6397_v48 = vmax.f32 %v6189_v4, 0.0 }
 0x706   : > { %v6194_v29 = vpop.f32.mrf.mxu1 }
 0x707   : > { %v6398_v38 = vmax.f32 %v6191_v37, 0.0  ;;  %v6487_v9 = vpack.c.bf16 %v6397_v48, %v6395_v5  ;;  %v6195_v34 = vadd.f32 %v6194_v29, %v11721_v18 }
 0x708   : > { %v6196_v56 = vpop.f32.mrf.mxu1 }
 0x709   : > { %v6488_v49 = vpack.c.bf16 %v6398_v38, %v6396_v3  ;;  %v6197_v0 = vadd.f32 %v6196_v56, %v11718_v39  ;;  %v6399_v19 = vmax.f32 %v6195_v34, 0.0 }
 0x70a   : > { %v6198_v52 = vpop.f32.mrf.mxu1 }
 0x70b   : > { %v6199_v30 = vadd.f32 %v6198_v52, %v11721_v18  ;;  %6931 = vmatprep.mubr.bf16.mxu0 %v6488_v49  ;;  %v6400_v22 = vmax.f32 %v6197_v0, 0.0 }
 0x70c   : > { %v6200_v8 = vpop.f32.mrf.mxu1  ;;  %6932 = vmatmul.mubr.bf16.gmra.mxu0 %v6487_v9 }
 0x70d   : > { %v6201_v17 = vadd.f32 %v6200_v8, %v11718_v39  ;;  %v6401_v13 = vmax.f32 %v6199_v30, 0.0 }
 0x70e   : > { %v6204_v15 = vpop.f32.mrf.mxu1 }
 0x70f   : > { %v6402_v46 = vmax.f32 %v6201_v17, 0.0  ;;  %v6489_v28 = vpack.c.bf16 %v6401_v13, %v6399_v19  ;;  %v6205_v6 = vadd.f32 %v6204_v15, %v11721_v18 }
 0x710   : > { %v6206_v63 = vpop.f32.mrf.mxu1 }
 0x711   : > { %v6490_v11 = vpack.c.bf16 %v6402_v46, %v6400_v22  ;;  %v6207_v41 = vadd.f32 %v6206_v63, %v11718_v39  ;;  %v6403_v40 = vmax.f32 %v6205_v6, 0.0 }
 0x712   : > { %v6208_v10 = vpop.f32.mrf.mxu1 }
 0x713   : > { %v6209_v16 = vadd.f32 %v6208_v10, %v11721_v18  ;;  %6941 = vmatprep.mubr.bf16.mxu0 %v6490_v11  ;;  %v6404_v7 = vmax.f32 %v6207_v41, 0.0 }
 0x714   : > { %v6210_v12 = vpop.f32.mrf.mxu1  ;;  %6942 = vmatmul.mubr.bf16.gmra.mxu0 %v6489_v28 }
 0x715   : > { %v6211_v54 = vadd.f32 %v6210_v12, %v11718_v39  ;;  %v6405_v62 = vmax.f32 %v6209_v16, 0.0 }
 0x716   : > { %v6214_v55 = vpop.f32.mrf.mxu1 }
 0x717   : > { %v6406_v14 = vmax.f32 %v6211_v54, 0.0  ;;  %v6491_v2 = vpack.c.bf16 %v6405_v62, %v6403_v40  ;;  %v6215_v32 = vadd.f32 %v6214_v55, %v11721_v18 }
 0x718   : > { %v6216_v43 = vpop.f32.mrf.mxu1 }
 0x719   : > { %v6492_v47 = vpack.c.bf16 %v6406_v14, %v6404_v7  ;;  %v6217_v57 = vadd.f32 %v6216_v43, %v11718_v39  ;;  %v6407_v50 = vmax.f32 %v6215_v32, 0.0 }
 0x71a   : > { %v6218_v45 = vpop.f32.mrf.mxu1 }
 0x71b   : > { %v6219_v31 = vadd.f32 %v6218_v45, %v11721_v18  ;;  %6951 = vmatprep.mubr.bf16.mxu0 %v6492_v47  ;;  %v6408_v25 = vmax.f32 %v6217_v57, 0.0 }
 0x71c   : > { %v6220_v53 = vpop.f32.mrf.mxu1  ;;  %6952 = vmatmul.mubr.bf16.gmra.mxu0 %v6491_v2 }
 0x71d   : > { %v6221_v23 = vadd.f32 %v6220_v53, %v11718_v39  ;;  %v6409_v36 = vmax.f32 %v6219_v31, 0.0 }
 0x71e   : > { %v6224_v60 = vpop.f32.mrf.mxu1 }
 0x71f   : > { %v6410_v20 = vmax.f32 %v6221_v23, 0.0  ;;  %v6493_v21 = vpack.c.bf16 %v6409_v36, %v6407_v50  ;;  %v6225_v27 = vadd.f32 %v6224_v60, %v11721_v18 }
 0x720   : > { %v6226_v1 = vpop.f32.mrf.mxu1 }
 0x721   : > { %v6494_v58 = vpack.c.bf16 %v6410_v20, %v6408_v25  ;;  %v6227_v24 = vadd.f32 %v6226_v1, %v11718_v39  ;;  %v6411_v3 = vmax.f32 %v6225_v27, 0.0 }
 0x722   : > { %v6228_v61 = vpop.f32.mrf.mxu1 }
 0x723   : > { %v6229_v51 = vadd.f32 %v6228_v61, %v11721_v18  ;;  %6961 = vmatprep.mubr.bf16.mxu0 %v6494_v58  ;;  %v6412_v35 = vmax.f32 %v6227_v24, 0.0 }
 0x724   : > { %v6230_v44 = vpop.f32.mrf.mxu1  ;;  %6962 = vmatmul.mubr.bf16.gmra.mxu0 %v6493_v21 }
 0x725   : > { %v6231_v33 = vadd.f32 %v6230_v44, %v11718_v39  ;;  %v6413_v59 = vmax.f32 %v6229_v51, 0.0 }
 0x726   : > { %v6234_v4 = vpop.f32.mrf.mxu1 }
 0x727   : > { %v6414_v37 = vmax.f32 %v6231_v33, 0.0  ;;  %v6495_v56 = vpack.c.bf16 %v6413_v59, %v6411_v3  ;;  %v6235_v9 = vadd.f32 %v6234_v4, %v11721_v18 }
 0x728   : > { %v6236_v29 = vpop.f32.mrf.mxu1 }
 0x729   : > { %v6496_v48 = vpack.c.bf16 %v6414_v37, %v6412_v35  ;;  %v6237_v5 = vadd.f32 %v6236_v29, %v11718_v39  ;;  %v6415_v22 = vmax.f32 %v6235_v9, 0.0 }
 0x72a   : > { %v6238_v38 = vpop.f32.mrf.mxu1 }
 0x72b   : > { %v6239_v49 = vadd.f32 %v6238_v38, %v11721_v18  ;;  %6971 = vmatprep.mubr.bf16.mxu0 %v6496_v48  ;;  %v6416_v8 = vmax.f32 %v6237_v5, 0.0 }
 0x72c   : > { %v6240_v52 = vpop.f32.mrf.mxu1  ;;  %6972 = vmatmul.mubr.bf16.gmra.mxu0 %v6495_v56 }
 0x72d   : > { %v6241_v0 = vadd.f32 %v6240_v52, %v11718_v39  ;;  %v6417_v34 = vmax.f32 %v6239_v49, 0.0 }
 0x72e   : > { %v6244_v30 = vpop.f32.mrf.mxu1 }
 0x72f   : > { %v6418_v17 = vmax.f32 %v6241_v0, 0.0  ;;  %v6497_v63 = vpack.c.bf16 %v6417_v34, %v6415_v22  ;;  %v6245_v28 = vadd.f32 %v6244_v30, %v11721_v18 }
 0x730   : > { %v6246_v15 = vpop.f32.mrf.mxu1 }
 0x731   : > { %v6498_v13 = vpack.c.bf16 %v6418_v17, %v6416_v8  ;;  %v6247_v19 = vadd.f32 %v6246_v15, %v11718_v39  ;;  %v6419_v7 = vmax.f32 %v6245_v28, 0.0 }
 0x732   : > { %v6248_v46 = vpop.f32.mrf.mxu1 }
 0x733   : > { %v6249_v11 = vadd.f32 %v6248_v46, %v11721_v18  ;;  %6981 = vmatprep.mubr.bf16.mxu0 %v6498_v13  ;;  %v6420_v12 = vmax.f32 %v6247_v19, 0.0 }
 0x734   : > { %v6250_v10 = vpop.f32.mrf.mxu1  ;;  %6982 = vmatmul.mubr.bf16.gmra.mxu0 %v6497_v63 }
 0x735   : > { %v6251_v41 = vadd.f32 %v6250_v10, %v11718_v39  ;;  %v6421_v6 = vmax.f32 %v6249_v11, 0.0 }
 0x736   : > { %v6254_v16 = vpop.f32.mrf.mxu1 }
 0x737   : > { %v6422_v54 = vmax.f32 %v6251_v41, 0.0  ;;  %v6499_v43 = vpack.c.bf16 %v6421_v6, %v6419_v7  ;;  %v6255_v2 = vadd.f32 %v6254_v16, %v11721_v18 }
 0x738   : > { %v6256_v55 = vpop.f32.mrf.mxu1 }
 0x739   : > { %v6500_v62 = vpack.c.bf16 %v6422_v54, %v6420_v12  ;;  %v6257_v40 = vadd.f32 %v6256_v55, %v11718_v39  ;;  %v6423_v36 = vmax.f32 %v6255_v2, 0.0  ;;  %v6547_v55 = vld [vmem:[%s12359_s17] sm:$0x3] }
 0x73a   : > { %v6258_v14 = vpop.f32.mrf.mxu1  ;;  %v11978_v2 = vrot.slane %v6547_v55, %v9655_v26 }
 0x73b   : > { %v6259_v47 = vadd.f32 %v6258_v14, %v11721_v18  ;;  %6991 = vmatprep.mubr.bf16.mxu0 %v6500_v62  ;;  %v6424_v53 = vmax.f32 %v6257_v40, 0.0 }
 0x73c   : > { %v6260_v45 = vpop.f32.mrf.mxu1  ;;  %v11938_v31 = vpop.f32.mrf.mxu0  ;;  %6992 = vmatmul.mubr.bf16.gmra.mxu0 %v6499_v43 }
 0x73d   : > { %v6261_v57 = vadd.f32 %v6260_v45, %v11718_v39  ;;  %v6425_v32 = vmax.f32 %v6259_v47, 0.0 }
 0x73e   : > { %v6264_v60 = vpop.f32.mrf.mxu1  ;;  %v11940_v25 = vpop.f32.mrf.mxu0 }
 0x73f   : > { %v6426_v23 = vmax.f32 %v6261_v57, 0.0  ;;  %v6501_v58 = vpack.c.bf16 %v6425_v32, %v6423_v36  ;;  %v6265_v33 = vadd.f32 %v6264_v60, %v11721_v18  ;;  %v11981_v32 = vrot.slane %v6547_v55, %v12523_v42 }
 0x740   : > { %v6266_v20 = vpop.f32.mrf.mxu1  ;;  %v11942_v1 = vpop.f32.mrf.mxu0 }
 0x741   : > { %v6502_v50 = vpack.c.bf16 %v6426_v23, %v6424_v53  ;;  %v6267_v51 = vadd.f32 %v6266_v20, %v11718_v39  ;;  %v6427_v56 = vmax.f32 %v6265_v33, 0.0 }
 0x742   : > { %v6268_v61 = vpop.f32.mrf.mxu1  ;;  %v11944_v21 = vpop.f32.mrf.mxu0 }
 0x743   : > { %7001 = vmatprep.mubr.bf16.mxu0 %v6502_v50  ;;  %v6269_v24 = vadd.f32 %v6268_v61, %v11721_v18  ;;  %v6428_v3 = vmax.f32 %v6267_v51, 0.0 }
 0x744   : > { %v6270_v44 = vpop.f32.mrf.mxu1  ;;  %v11948_v27 = vpop.f32.mrf.mxu0  ;;  %7002 = vmatmul.mubr.bf16.gmra.mxu0 %v6501_v58 }
 0x745   : > { %v6271_v4 = vadd.f32 %v6270_v44, %v11718_v39  ;;  %v6429_v37 = vmax.f32 %v6269_v24, 0.0 }
 0x746   : > { %v6274_v35 = vpop.f32.mrf.mxu1  ;;  %v11952_v59 = vpop.f32.mrf.mxu0 }
 0x747   : > { %v6430_v29 = vmax.f32 %v6271_v4, 0.0  ;;  %v6503_v9 = vpack.c.bf16 %v6429_v37, %v6427_v56  ;;  %v6275_v17 = vadd.f32 %v6274_v35, %v11721_v18 }
 0x748   : > { %v6276_v48 = vpop.f32.mrf.mxu1  ;;  %v11954_v38 = vpop.f32.mrf.mxu0 }
 0x749   : > { %v6504_v52 = vpack.c.bf16 %v6430_v29, %v6428_v3  ;;  %v6277_v30 = vadd.f32 %v6276_v48, %v11718_v39  ;;  %v6431_v28 = vmax.f32 %v6275_v17, 0.0 }
 0x74a   : > { %v6278_v5 = vpop.f32.mrf.mxu1  ;;  %v11956_v49 = vpop.f32.mrf.mxu0 }
 0x74b   : > { %v6279_v0 = vadd.f32 %v6278_v5, %v11721_v18  ;;  %7011 = vmatprep.mubr.bf16.mxu0 %v6504_v52  ;;  %v6432_v19 = vmax.f32 %v6277_v30, 0.0 }
 0x74c   : > { %v6280_v8 = vpop.f32.mrf.mxu1  ;;  %v11960_v34 = vpop.f32.mrf.mxu0  ;;  %7012 = vmatmul.mubr.bf16.gmra.mxu0 %v6503_v9 }
 0x74d   : > { %v6281_v15 = vadd.f32 %v6280_v8, %v11718_v39  ;;  %v6433_v46 = vmax.f32 %v6279_v0, 0.0 }
 0x74e   : > { %v6284_v22 = vpop.f32.mrf.mxu1  ;;  %v11964_v13 = vpop.f32.mrf.mxu0 }
 0x74f   : > { %v6434_v63 = vmax.f32 %v6281_v15, 0.0  ;;  %v6505_v6 = vpack.c.bf16 %v6433_v46, %v6431_v28  ;;  %v6285_v43 = vadd.f32 %v6284_v22, %v11721_v18 }
 0x750   : > { %v6286_v11 = vpop.f32.mrf.mxu1  ;;  %v11966_v10 = vpop.f32.mrf.mxu0 }
 0x751   : > { %v6506_v12 = vpack.c.bf16 %v6434_v63, %v6432_v19  ;;  %v6287_v7 = vadd.f32 %v6286_v11, %v11718_v39  ;;  %v6435_v20 = vmax.f32 %v6285_v43, 0.0 }
 0x752   : > { %v6288_v41 = vpop.f32.mrf.mxu1  ;;  %v11968_v16 = vpop.f32.mrf.mxu0 }
 0x753   : > { %v6289_v54 = vadd.f32 %v6288_v41, %v11721_v18  ;;  %7021 = vmatprep.mubr.bf16.mxu0 %v6506_v12  ;;  %v6436_v23 = vmax.f32 %v6287_v7, 0.0 }
 0x754   : > { %v6290_v62 = vpop.f32.mrf.mxu1  ;;  %v6783_v14 = vpop.f32.mrf.mxu0  ;;  %7022 = vmatmul.mubr.bf16.gmra.mxu0 %v6505_v6 }
 0x755   : > { %v6291_v40 = vadd.f32 %v6290_v62, %v11718_v39  ;;  %v6437_v57 = vmax.f32 %v6289_v54, 0.0  ;;  %v6784_v26 = vadd.f32 %v6783_v14, %v11978_v2 }
 0x756   : > { %v6294_v47 = vpop.f32.mrf.mxu1  ;;  %v6785_v45 = vpop.f32.mrf.mxu0 }
 0x757   : > { %v6438_v53 = vmax.f32 %v6291_v40, 0.0  ;;  %v6786_v58 = vadd.f32 %v6785_v45, %v11981_v32  ;;  %v6507_v44 = vpack.c.bf16 %v6437_v57, %v6435_v20  ;;  %v6295_v29 = vadd.f32 %v6294_v47, %v11721_v18 }
 0x758   : > { %v6296_v60 = vpop.f32.mrf.mxu1  ;;  %v6787_v36 = vpop.f32.mrf.mxu0  ;;  %v7084_v0 = vmax.f32 %v6784_v26, 0.0 }
 0x759   : > { %v6788_v50 = vadd.f32 %v6787_v36, %v11978_v2  ;;  %v6508_v51 = vpack.c.bf16 %v6438_v53, %v6436_v23  ;;  %v6297_v42 = vadd.f32 %v6296_v60, %v11718_v39  ;;  %v7085_v5 = vmax.f32 %v6786_v58, 0.0 }
 0x75a   : > { %v6298_v61 = vpop.f32.mrf.mxu1  ;;  %v6789_v24 = vpop.f32.mrf.mxu0  ;;  %v6439_v63 = vmax.f32 %v6295_v29, 0.0 }
 0x75b   : > { %v6299_v33 = vadd.f32 %v6298_v61, %v11721_v18  ;;  %v6790_v4 = vadd.f32 %v6789_v24, %v11981_v32  ;;  %7031 = vmatprep.mubr.bf16.mxu0 %v6508_v51  ;;  %v7086_v3 = vmax.f32 %v6788_v50, 0.0  ;;  %v6440_v17 = vmax.f32 %v6297_v42, 0.0 }
 0x75c   : > { %v6300_v35 = vpop.f32.mrf.mxu1  ;;  %v6793_v37 = vpop.f32.mrf.mxu0  ;;  %7032 = vmatmul.mubr.bf16.gmra.mxu0 %v6507_v44 }
 0x75d   : > { %v7087_v48 = vmax.f32 %v6790_v4, 0.0  ;;  %v6301_v56 = vadd.f32 %v6300_v35, %v11718_v39  ;;  %v6441_v30 = vmax.f32 %v6299_v33, 0.0  ;;  %v7206_v19 = vpack.c.bf16 %v7086_v3, %v7084_v0 }
 0x75e   : > { %v6304_v52 = vpop.f32.mrf.mxu1  ;;  %v6795_v9 = vpop.f32.mrf.mxu0  ;;  %v6794_v55 = vadd.f32 %v6793_v37, %v11978_v2 }
 0x75f   : > { %v6442_v8 = vmax.f32 %v6301_v56, 0.0  ;;  %v7207_v46 = vpack.c.bf16 %v7087_v48, %v7085_v5  ;;  %v6796_v28 = vadd.f32 %v6795_v9, %v11981_v32  ;;  %v6509_v54 = vpack.c.bf16 %v6441_v30, %v6439_v63 }
 0x760   : > { %v6306_v15 = vpop.f32.mrf.mxu1  ;;  %v6797_v22 = vpop.f32.mrf.mxu0  ;;  %v6305_v47 = vadd.f32 %v6304_v52, %v11721_v18  ;;  %v7088_v20 = vmax.f32 %v6794_v55, 0.0  ;;  %v6760_v9 = vadd.f32 %v11944_v21, %v11981_v32  ;;  %v6756_v63 = vadd.f32 %v11940_v25, %v11981_v32 }
 0x761   : > { %v6798_v11 = vadd.f32 %v6797_v22, %v11978_v2  ;;  %7455 = vmatprep.mubr.bf16.mxu1 %v7207_v46  ;;  %v6510_v6 = vpack.c.bf16 %v6442_v8, %v6440_v17  ;;  %v6307_v14 = vadd.f32 %v6306_v15, %v11718_v39  ;;  %v7089_v23 = vmax.f32 %v6796_v28, 0.0 }
 0x762   : > { %v6308_v41 = vpop.f32.mrf.mxu1  ;;  %v6799_v12 = vpop.f32.mrf.mxu0  ;;  %7456 = vmatmul.mubr.bf16.vlgmr.msra.gmra.mxu1 %v7206_v19  ;;  %v6443_v26 = vmax.f32 %v6305_v47, 0.0  ;;  %v6758_v25 = vadd.f32 %v11942_v1, %v11978_v2  ;;  %v6766_v1 = vadd.f32 %v11952_v59, %v11981_v32  ;;  %v6768_v59 = vadd.f32 %v11954_v38, %v11978_v2 }
 0x763   : > { %v6309_v7 = vadd.f32 %v6308_v41, %v11721_v18  ;;  %v6800_v62 = vadd.f32 %v6799_v12, %v11981_v32  ;;  %7041 = vmatprep.mubr.bf16.mxu0 %v6510_v6  ;;  %v7090_v45 = vmax.f32 %v6798_v11, 0.0  ;;  %v6444_v61 = vmax.f32 %v6307_v14, 0.0 }
 0x764   : > { %v6310_v43 = vpop.f32.mrf.mxu1  ;;  %v6803_v40 = vpop.f32.mrf.mxu0  ;;  %7042 = vmatmul.mubr.bf16.gmra.mxu0 %v6509_v54  ;;  %v7075_v6 = vmax.f32 %v6760_v9, 0.0  ;;  %v7073_v14 = vmax.f32 %v6756_v63, 0.0  ;;  %v6776_v38 = vadd.f32 %v11964_v13, %v11981_v32  ;;  %v6778_v13 = vadd.f32 %v11966_v10, %v11978_v2 }
 0x765   : > { %v7091_v57 = vmax.f32 %v6800_v62, 0.0  ;;  %v6311_v53 = vadd.f32 %v6310_v43, %v11718_v39  ;;  %v6445_v50 = vmax.f32 %v6309_v7, 0.0  ;;  %v7208_v33 = vpack.c.bf16 %v7090_v45, %v7088_v20 }
 0x766   : > { %v6314_v60 = vpop.f32.mrf.mxu1  ;;  %v6805_v36 = vpop.f32.mrf.mxu0  ;;  %v6804_v35 = vadd.f32 %v6803_v40, %v11978_v2 }
 0x767   : > { %v6446_v58 = vmax.f32 %v6311_v53, 0.0  ;;  %v7209_v44 = vpack.c.bf16 %v7091_v57, %v7089_v23  ;;  %v6806_v4 = vadd.f32 %v6805_v36, %v11981_v32  ;;  %v6511_v48 = vpack.c.bf16 %v6445_v50, %v6443_v26 }
 0x768   : > { %v6316_v24 = vpop.f32.mrf.mxu1  ;;  %v6807_v51 = vpop.f32.mrf.mxu0  ;;  %v6315_v0 = vadd.f32 %v6314_v60, %v11721_v18  ;;  %v7092_v19 = vmax.f32 %v6804_v35, 0.0  ;;  %v6770_v57 = vadd.f32 %v11956_v49, %v11981_v32  ;;  %v7201_v23 = vpack.c.bf16 %v7075_v6, %v7073_v14 }
 0x769   : > { %v6808_v42 = vadd.f32 %v6807_v51, %v11978_v2  ;;  %7463 = vmatprep.mubr.bf16.mxu1 %v7209_v44  ;;  %v6512_v3 = vpack.c.bf16 %v6446_v58, %v6444_v61  ;;  %v6317_v56 = vadd.f32 %v6316_v24, %v11718_v39  ;;  %v7093_v17 = vmax.f32 %v6806_v4, 0.0 }
 0x76a   : > { %v6318_v37 = vpop.f32.mrf.mxu1  ;;  %v6809_v29 = vpop.f32.mrf.mxu0  ;;  %7464 = vmatmul.mubr.bf16.gmra.mxu1 %v7208_v33  ;;  %v6754_v60 = vadd.f32 %v11938_v31, %v11978_v2  ;;  %v7074_v61 = vmax.f32 %v6758_v25, 0.0  ;;  %v7079_v44 = vmax.f32 %v6770_v57, 0.0  ;;  %v7082_v25 = vmax.f32 %v6778_v13, 0.0 }
 0x76b   : > { %v6319_v5 = vadd.f32 %v6318_v37, %v11721_v18  ;;  %v6810_v52 = vadd.f32 %v6809_v29, %v11981_v32  ;;  %7051 = vmatprep.mubr.bf16.mxu0 %v6512_v3  ;;  %v7094_v15 = vmax.f32 %v6808_v42, 0.0  ;;  %v6448_v28 = vmax.f32 %v6317_v56, 0.0 }
 0x76c   : > { %v6320_v30 = vpop.f32.mrf.mxu1  ;;  %v6813_v8 = vpop.f32.mrf.mxu0  ;;  %7052 = vmatmul.mubr.bf16.gmra.mxu0 %v6511_v48  ;;  %v6447_v18 = vmax.f32 %v6315_v0, 0.0  ;;  %v7072_v49 = vmax.f32 %v6754_v60, 0.0  ;;  %v7077_v42 = vmax.f32 %v6766_v1, 0.0  ;;  %v6780_v48 = vadd.f32 %v11968_v16, %v11981_v32 }
 0x76d   : > { %v7095_v22 = vmax.f32 %v6810_v52, 0.0  ;;  %v6321_v46 = vadd.f32 %v6320_v30, %v11718_v39  ;;  %v6449_v41 = vmax.f32 %v6319_v5, 0.0  ;;  %v7210_v55 = vpack.c.bf16 %v7094_v15, %v7092_v19 }
 0x76e   : > { %v6815_v11 = vpop.f32.mrf.mxu0  ;;  %v6814_v47 = vadd.f32 %v6813_v8, %v11978_v2  ;;  %v7200_v37 = vpack.c.bf16 %v7074_v61, %v7072_v49  ;;  %v7203_v5 = vpack.c.bf16 %v7079_v44, %v7077_v42  ;;  %v6764_v52 = vadd.f32 %v11948_v27, %v11978_v2 }
 0x76f   : > { %v6450_v12 = vmax.f32 %v6321_v46, 0.0  ;;  %v7211_v21 = vpack.c.bf16 %v7095_v22, %v7093_v17  ;;  %v6816_v7 = vadd.f32 %v6815_v11, %v11981_v32  ;;  %v6513_v40 = vpack.c.bf16 %v6449_v41, %v6447_v18 }
 0x770   : > { %v6817_v54 = vpop.f32.mrf.mxu0  ;;  %v7096_v24 = vmax.f32 %v6814_v47, 0.0  ;;  %v7078_v17 = vmax.f32 %v6768_v59, 0.0  ;;  %v7083_v46 = vmax.f32 %v6780_v48, 0.0  ;;  %v7076_v16 = vmax.f32 %v6764_v52, 0.0 }
 0x771   : > { %v6818_v62 = vadd.f32 %v6817_v54, %v11978_v2  ;;  %7471 = vmatprep.mubr.bf16.mxu1 %v7211_v21  ;;  %v6514_v39 = vpack.c.bf16 %v6450_v12, %v6448_v28  ;;  %v7097_v36 = vmax.f32 %v6816_v7, 0.0  ;;  %v7081_v28 = vmax.f32 %v6776_v38, 0.0 }
 0x772   : > { %v6819_v43 = vpop.f32.mrf.mxu0  ;;  %7472 = vmatmul.mubr.bf16.gmra.mxu1 %v7210_v55  ;;  %v7202_v12 = vpack.c.bf16 %v7078_v17, %v7076_v16  ;;  %v6774_v55 = vadd.f32 %v11960_v34, %v11978_v2 }
 0x773   : > { %v6820_v45 = vadd.f32 %v6819_v43, %v11981_v32  ;;  %7061 = vmatprep.mubr.bf16.mxu0 %v6514_v39  ;;  %v7098_v20 = vmax.f32 %v6818_v62, 0.0  ;;  %v7205_v54 = vpack.c.bf16 %v7083_v46, %v7081_v28 }
 0x774   : > { %v6823_v53 = vpop.f32.mrf.mxu0  ;;  %7062 = vmatmul.mubr.bf16.gmra.mxu0 %v6513_v40  ;;  %v7080_v47 = vmax.f32 %v6774_v55, 0.0 }
 0x775   : > { %v7099_v50 = vmax.f32 %v6820_v45, 0.0  ;;  %7431 = vmatprep.mubr.bf16.mxu0 %v7201_v23  ;;  %v7212_v33 = vpack.c.bf16 %v7098_v20, %v7096_v24  ;;  %v6824_v29 = vadd.f32 %v6823_v53, %v11978_v2 }
 0x776   : > { %v6825_v58 = vpop.f32.mrf.mxu0  ;;  %v7204_v60 = vpack.c.bf16 %v7082_v25, %v7080_v47 }
 0x777   : > { %v7213_v51 = vpack.c.bf16 %v7099_v50, %v7097_v36  ;;  %v6826_v4 = vadd.f32 %v6825_v58, %v11981_v32  ;;  %v7100_v15 = vmax.f32 %v6824_v29, 0.0 }
 0x778   : > { %v6827_v26 = vpop.f32.mrf.mxu0 }
 0x779   : > { %v6828_v31 = vadd.f32 %v6827_v26, %v11978_v2  ;;  %7479 = vmatprep.mubr.bf16.mxu1 %v7213_v51  ;;  %v7101_v9 = vmax.f32 %v6826_v4, 0.0 }
 0x77a   : > { %v6829_v35 = vpop.f32.mrf.mxu0  ;;  %7480 = vmatmul.mubr.bf16.gmra.mxu1 %v7212_v33 }
 0x77b   : > { %v6830_v3 = vadd.f32 %v6829_v35, %v11981_v32  ;;  %v7102_v0 = vmax.f32 %v6828_v31, 0.0 }
 0x77c   : > { %v6833_v56 = vpop.f32.mrf.mxu0  ;;  %7432 = vmatmul.mubr.bf16.vlgmr.msra.gmra.mxu0 %v7200_v37 }
 0x77d   : > { %v7103_v30 = vmax.f32 %v6830_v3, 0.0  ;;  %7439 = vmatprep.mubr.bf16.mxu0 %v7203_v5  ;;  %v7214_v19 = vpack.c.bf16 %v7102_v0, %v7100_v15  ;;  %v6834_v21 = vadd.f32 %v6833_v56, %v11978_v2 }
 0x77e   : > { %v6835_v8 = vpop.f32.mrf.mxu0 }
 0x77f   : > { %v7215_v22 = vpack.c.bf16 %v7103_v30, %v7101_v9  ;;  %v6836_v11 = vadd.f32 %v6835_v8, %v11981_v32  ;;  %v7104_v43 = vmax.f32 %v6834_v21, 0.0 }
 0x780   : > { %v6837_v63 = vpop.f32.mrf.mxu0 }
 0x781   : > { %v6838_v27 = vadd.f32 %v6837_v63, %v11978_v2  ;;  %7487 = vmatprep.mubr.bf16.mxu1 %v7215_v22  ;;  %v7105_v7 = vmax.f32 %v6836_v11, 0.0 }
 0x782   : > { %v6839_v41 = vpop.f32.mrf.mxu0  ;;  %7488 = vmatmul.mubr.bf16.gmra.mxu1 %v7214_v19 }
 0x783   : > { %v6840_v6 = vadd.f32 %v6839_v41, %v11981_v32  ;;  %v7106_v62 = vmax.f32 %v6838_v27, 0.0 }
 0x784   : > { %v6843_v18 = vpop.f32.mrf.mxu0  ;;  %7440 = vmatmul.mubr.bf16.gmra.mxu0 %v7202_v12 }
 0x785   : > { %v7107_v39 = vmax.f32 %v6840_v6, 0.0  ;;  %7447 = vmatprep.mubr.bf16.mxu0 %v7205_v54  ;;  %v7216_v45 = vpack.c.bf16 %v7106_v62, %v7104_v43  ;;  %v6844_v34 = vadd.f32 %v6843_v18, %v11978_v2 }
 0x786   : > { %v6845_v14 = vpop.f32.mrf.mxu0 }
 0x787   : > { %v7217_v40 = vpack.c.bf16 %v7107_v39, %v7105_v7  ;;  %v6846_v57 = vadd.f32 %v6845_v14, %v11981_v32  ;;  %v7108_v24 = vmax.f32 %v6844_v34, 0.0 }
 0x788   : > { %v6847_v10 = vpop.f32.mrf.mxu0 }
 0x789   : > { %v6848_v53 = vadd.f32 %v6847_v10, %v11978_v2  ;;  %7495 = vmatprep.mubr.bf16.mxu1 %v7217_v40  ;;  %v7109_v50 = vmax.f32 %v6846_v57, 0.0 }
 0x78a   : > { %v6849_v23 = vpop.f32.mrf.mxu0  ;;  %7496 = vmatmul.mubr.bf16.gmra.mxu1 %v7216_v45 }
 0x78b   : > { %v6850_v36 = vadd.f32 %v6849_v23, %v11981_v32  ;;  %v7110_v1 = vmax.f32 %v6848_v53, 0.0 }
 0x78c   : > { %v6853_v20 = vpop.f32.mrf.mxu0  ;;  %7448 = vmatmul.mubr.bf16.gmra.mxu0 %v7204_v60 }
 0x78d   : > { %v7111_v58 = vmax.f32 %v6850_v36, 0.0  ;;  %v7218_v26 = vpack.c.bf16 %v7110_v1, %v7108_v24  ;;  %v6854_v31 = vadd.f32 %v6853_v20, %v11978_v2 }
 0x78e   : > { %v6855_v61 = vpop.f32.mrf.mxu0 }
 0x78f   : > { %v7219_v51 = vpack.c.bf16 %v7111_v58, %v7109_v50  ;;  %v6856_v49 = vadd.f32 %v6855_v61, %v11981_v32  ;;  %v7112_v48 = vmax.f32 %v6854_v31, 0.0 }
 0x790   : > { %v6857_v44 = vpop.f32.mrf.mxu0 }
 0x791   : > { %v6858_v33 = vadd.f32 %v6857_v44, %v11978_v2  ;;  %7503 = vmatprep.mubr.bf16.mxu1 %v7219_v51  ;;  %v7113_v37 = vmax.f32 %v6856_v49, 0.0 }
 0x792   : > { %v6859_v4 = vpop.f32.mrf.mxu0  ;;  %7504 = vmatmul.mubr.bf16.gmra.mxu1 %v7218_v26 }
 0x793   : > { %v6860_v42 = vadd.f32 %v6859_v4, %v11981_v32  ;;  %v7114_v59 = vmax.f32 %v6858_v33, 0.0 }
 0x794   : > { %v6863_v35 = vpop.f32.mrf.mxu0 }
 0x795   : > { %v7115_v29 = vmax.f32 %v6860_v42, 0.0  ;;  %v7220_v52 = vpack.c.bf16 %v7114_v59, %v7112_v48  ;;  %v6864_v38 = vadd.f32 %v6863_v35, %v11978_v2 }
 0x796   : > { %v6865_v3 = vpop.f32.mrf.mxu0 }
 0x797   : > { %v7221_v56 = vpack.c.bf16 %v7115_v29, %v7113_v37  ;;  %v6866_v9 = vadd.f32 %v6865_v3, %v11981_v32  ;;  %v7116_v16 = vmax.f32 %v6864_v38, 0.0 }
 0x798   : > { %v6867_v5 = vpop.f32.mrf.mxu0 }
 0x799   : > { %v6868_v0 = vadd.f32 %v6867_v5, %v11978_v2  ;;  %7511 = vmatprep.mubr.bf16.mxu1 %v7221_v56  ;;  %v7117_v15 = vmax.f32 %v6866_v9, 0.0 }
 0x79a   : > { %v6869_v30 = vpop.f32.mrf.mxu0  ;;  %7512 = vmatmul.mubr.bf16.gmra.mxu1 %v7220_v52 }
 0x79b   : > { %v6870_v8 = vadd.f32 %v6869_v30, %v11981_v32  ;;  %v7118_v22 = vmax.f32 %v6868_v0, 0.0 }
 0x79c   : > { %v6873_v17 = vpop.f32.mrf.mxu0 }
 0x79d   : > { %v7119_v46 = vmax.f32 %v6870_v8, 0.0  ;;  %v7222_v27 = vpack.c.bf16 %v7118_v22, %v7116_v16  ;;  %v6874_v13 = vadd.f32 %v6873_v17, %v11978_v2 }
 0x79e   : > { %v6875_v63 = vpop.f32.mrf.mxu0 }
 0x79f   : > { %v7223_v19 = vpack.c.bf16 %v7119_v46, %v7117_v15  ;;  %v6876_v28 = vadd.f32 %v6875_v63, %v11981_v32  ;;  %v7120_v62 = vmax.f32 %v6874_v13, 0.0 }
 0x7a0   : > { %v6877_v11 = vpop.f32.mrf.mxu0 }
 0x7a1   : > { %v6878_v41 = vadd.f32 %v6877_v11, %v11978_v2  ;;  %7519 = vmatprep.mubr.bf16.mxu1 %v7223_v19  ;;  %v7121_v18 = vmax.f32 %v6876_v28, 0.0 }
 0x7a2   : > { %v6879_v12 = vpop.f32.mrf.mxu0  ;;  %7520 = vmatmul.mubr.bf16.gmra.mxu1 %v7222_v27 }
 0x7a3   : > { %v6880_v21 = vadd.f32 %v6879_v12, %v11981_v32  ;;  %v7122_v54 = vmax.f32 %v6878_v41, 0.0 }
 0x7a4   : > { %v6883_v6 = vpop.f32.mrf.mxu0 }
 0x7a5   : > { %v7123_v55 = vmax.f32 %v6880_v21, 0.0  ;;  %v7224_v25 = vpack.c.bf16 %v7122_v54, %v7120_v62  ;;  %v6884_v47 = vadd.f32 %v6883_v6, %v11978_v2 }
 0x7a6   : > { %v6885_v7 = vpop.f32.mrf.mxu0 }
 0x7a7   : > { %v7225_v39 = vpack.c.bf16 %v7123_v55, %v7121_v18  ;;  %v6886_v43 = vadd.f32 %v6885_v7, %v11981_v32  ;;  %v7124_v36 = vmax.f32 %v6884_v47, 0.0 }
 0x7a8   : > { %v6887_v14 = vpop.f32.mrf.mxu0 }
 0x7a9   : > { %v6888_v40 = vadd.f32 %v6887_v14, %v11978_v2  ;;  %7527 = vmatprep.mubr.bf16.mxu1 %v7225_v39  ;;  %v7125_v53 = vmax.f32 %v6886_v43, 0.0 }
 0x7aa   : > { %v6889_v10 = vpop.f32.mrf.mxu0  ;;  %7528 = vmatmul.mubr.bf16.gmra.mxu1 %v7224_v25 }
 0x7ab   : > { %v6890_v45 = vadd.f32 %v6889_v10, %v11981_v32  ;;  %v7126_v23 = vmax.f32 %v6888_v40, 0.0 }
 0x7ac   : > { %v6893_v57 = vpop.f32.mrf.mxu0 }
 0x7ad   : > { %v7127_v60 = vmax.f32 %v6890_v45, 0.0  ;;  %v7226_v1 = vpack.c.bf16 %v7126_v23, %v7124_v36  ;;  %v6894_v51 = vadd.f32 %v6893_v57, %v11978_v2 }
 0x7ae   : > { %v6895_v34 = vpop.f32.mrf.mxu0 }
 0x7af   : > { %v7227_v20 = vpack.c.bf16 %v7127_v60, %v7125_v53  ;;  %v6896_v58 = vadd.f32 %v6895_v34, %v11981_v32  ;;  %v7128_v42 = vmax.f32 %v6894_v51, 0.0 }
 0x7b0   : > { %v6897_v50 = vpop.f32.mrf.mxu0 }
 0x7b1   : > { %v6898_v61 = vadd.f32 %v6897_v50, %v11978_v2  ;;  %7535 = vmatprep.mubr.bf16.mxu1 %v7227_v20  ;;  %v7129_v49 = vmax.f32 %v6896_v58, 0.0 }
 0x7b2   : > { %v6899_v24 = vpop.f32.mrf.mxu0  ;;  %7536 = vmatmul.mubr.bf16.gmra.mxu1 %v7226_v1 }
 0x7b3   : > { %v6900_v44 = vadd.f32 %v6899_v24, %v11981_v32  ;;  %v7130_v33 = vmax.f32 %v6898_v61, 0.0 }
 0x7b4   : > { %v6903_v26 = vpop.f32.mrf.mxu0 }
 0x7b5   : > { %v7131_v4 = vmax.f32 %v6900_v44, 0.0  ;;  %v7228_v59 = vpack.c.bf16 %v7130_v33, %v7128_v42  ;;  %v6904_v56 = vadd.f32 %v6903_v26, %v11978_v2 }
 0x7b6   : > { %v6905_v31 = vpop.f32.mrf.mxu0 }
 0x7b7   : > { %v7229_v35 = vpack.c.bf16 %v7131_v4, %v7129_v49  ;;  %v6906_v29 = vadd.f32 %v6905_v31, %v11981_v32  ;;  %v7132_v8 = vmax.f32 %v6904_v56, 0.0 }
 0x7b8   : > { %v6907_v37 = vpop.f32.mrf.mxu0 }
 0x7b9   : > { %v6908_v3 = vadd.f32 %v6907_v37, %v11978_v2  ;;  %7543 = vmatprep.mubr.bf16.mxu1 %v7229_v35  ;;  %v7133_v9 = vmax.f32 %v6906_v29, 0.0 }
 0x7ba   : > { %v6909_v48 = vpop.f32.mrf.mxu0  ;;  %7544 = vmatmul.mubr.bf16.gmra.mxu1 %v7228_v59 }
 0x7bb   : > { %v6910_v5 = vadd.f32 %v6909_v48, %v11981_v32  ;;  %v7134_v0 = vmax.f32 %v6908_v3, 0.0 }
 0x7bc   : > { %v6913_v52 = vpop.f32.mrf.mxu0 }
 0x7bd   : > { %v7135_v30 = vmax.f32 %v6910_v5, 0.0  ;;  %v7230_v22 = vpack.c.bf16 %v7134_v0, %v7132_v8  ;;  %v6914_v19 = vadd.f32 %v6913_v52, %v11978_v2 }
 0x7be   : > { %v6915_v38 = vpop.f32.mrf.mxu0 }
 0x7bf   : > { %v7231_v17 = vpack.c.bf16 %v7135_v30, %v7133_v9  ;;  %v6916_v46 = vadd.f32 %v6915_v38, %v11981_v32  ;;  %v7136_v21 = vmax.f32 %v6914_v19, 0.0 }
 0x7c0   : > { %v6917_v15 = vpop.f32.mrf.mxu0 }
 0x7c1   : > { %v6918_v63 = vadd.f32 %v6917_v15, %v11978_v2  ;;  %7551 = vmatprep.mubr.bf16.mxu1 %v7231_v17  ;;  %v7137_v28 = vmax.f32 %v6916_v46, 0.0 }
 0x7c2   : > { %v6919_v16 = vpop.f32.mrf.mxu0  ;;  %7552 = vmatmul.mubr.bf16.gmra.mxu1 %v7230_v22 }
 0x7c3   : > { %v6920_v11 = vadd.f32 %v6919_v16, %v11981_v32  ;;  %v7138_v41 = vmax.f32 %v6918_v63, 0.0 }
 0x7c4   : > { %v6923_v27 = vpop.f32.mrf.mxu0 }
 0x7c5   : > { %v7139_v12 = vmax.f32 %v6920_v11, 0.0  ;;  %v7232_v54 = vpack.c.bf16 %v7138_v41, %v7136_v21  ;;  %v6924_v39 = vadd.f32 %v6923_v27, %v11978_v2 }
 0x7c6   : > { %v6925_v13 = vpop.f32.mrf.mxu0 }
 0x7c7   : > { %v7233_v6 = vpack.c.bf16 %v7139_v12, %v7137_v28  ;;  %v6926_v55 = vadd.f32 %v6925_v13, %v11981_v32  ;;  %v7140_v45 = vmax.f32 %v6924_v39, 0.0 }
 0x7c8   : > { %v6927_v18 = vpop.f32.mrf.mxu0 }
 0x7c9   : > { %v6928_v7 = vadd.f32 %v6927_v18, %v11978_v2  ;;  %7559 = vmatprep.mubr.bf16.mxu1 %v7233_v6  ;;  %v7141_v43 = vmax.f32 %v6926_v55, 0.0 }
 0x7ca   : > { %v6929_v62 = vpop.f32.mrf.mxu0  ;;  %7560 = vmatmul.mubr.bf16.gmra.mxu1 %v7232_v54 }
 0x7cb   : > { %v6930_v14 = vadd.f32 %v6929_v62, %v11981_v32  ;;  %v7142_v40 = vmax.f32 %v6928_v7, 0.0 }
 0x7cc   : > { %v6933_v25 = vpop.f32.mrf.mxu0 }
 0x7cd   : > { %v7143_v10 = vmax.f32 %v6930_v14, 0.0  ;;  %v7234_v23 = vpack.c.bf16 %v7142_v40, %v7140_v45  ;;  %v6934_v20 = vadd.f32 %v6933_v25, %v11978_v2 }
 0x7ce   : > { %v6935_v47 = vpop.f32.mrf.mxu0 }
 0x7cf   : > { %v7235_v57 = vpack.c.bf16 %v7143_v10, %v7141_v43  ;;  %v6936_v60 = vadd.f32 %v6935_v47, %v11981_v32  ;;  %v7144_v44 = vmax.f32 %v6934_v20, 0.0 }
 0x7d0   : > { %v6937_v53 = vpop.f32.mrf.mxu0 }
 0x7d1   : > { %v6938_v34 = vadd.f32 %v6937_v53, %v11978_v2  ;;  %7567 = vmatprep.mubr.bf16.mxu1 %v7235_v57  ;;  %v7145_v58 = vmax.f32 %v6936_v60, 0.0 }
 0x7d2   : > { %v6939_v36 = vpop.f32.mrf.mxu0  ;;  %7568 = vmatmul.mubr.bf16.gmra.mxu1 %v7234_v23 }
 0x7d3   : > { %v6940_v50 = vadd.f32 %v6939_v36, %v11981_v32  ;;  %v7146_v61 = vmax.f32 %v6938_v34, 0.0 }
 0x7d4   : > { %v6943_v1 = vpop.f32.mrf.mxu0 }
 0x7d5   : > { %v7147_v24 = vmax.f32 %v6940_v50, 0.0  ;;  %v7236_v33 = vpack.c.bf16 %v7146_v61, %v7144_v44  ;;  %v6944_v35 = vadd.f32 %v6943_v1, %v11978_v2 }
 0x7d6   : > { %v6945_v51 = vpop.f32.mrf.mxu0 }
 0x7d7   : > { %v7237_v26 = vpack.c.bf16 %v7147_v24, %v7145_v58  ;;  %v6946_v4 = vadd.f32 %v6945_v51, %v11981_v32  ;;  %v7148_v5 = vmax.f32 %v6944_v35, 0.0 }
 0x7d8   : > { %v6947_v49 = vpop.f32.mrf.mxu0 }
 0x7d9   : > { %v6948_v31 = vadd.f32 %v6947_v49, %v11978_v2  ;;  %7575 = vmatprep.mubr.bf16.mxu1 %v7237_v26  ;;  %v7149_v29 = vmax.f32 %v6946_v4, 0.0 }
 0x7da   : > { %v6949_v42 = vpop.f32.mrf.mxu0  ;;  %7576 = vmatmul.mubr.bf16.gmra.mxu1 %v7236_v33 }
 0x7db   : > { %v6950_v37 = vadd.f32 %v6949_v42, %v11981_v32  ;;  %v7150_v3 = vmax.f32 %v6948_v31, 0.0 }
 0x7dc   : > { %v6953_v59 = vpop.f32.mrf.mxu0 }
 0x7dd   : > { %v7151_v48 = vmax.f32 %v6950_v37, 0.0  ;;  %v7238_v0 = vpack.c.bf16 %v7150_v3, %v7148_v5  ;;  %v6954_v17 = vadd.f32 %v6953_v59, %v11978_v2 }
 0x7de   : > { %v6955_v56 = vpop.f32.mrf.mxu0 }
 0x7df   : > { %v7239_v52 = vpack.c.bf16 %v7151_v48, %v7149_v29  ;;  %v6956_v30 = vadd.f32 %v6955_v56, %v11981_v32  ;;  %v7152_v11 = vmax.f32 %v6954_v17, 0.0 }
 0x7e0   : > { %v6957_v9 = vpop.f32.mrf.mxu0 }
 0x7e1   : > { %v6958_v38 = vadd.f32 %v6957_v9, %v11978_v2  ;;  %7583 = vmatprep.mubr.bf16.mxu1 %v7239_v52  ;;  %v7153_v46 = vmax.f32 %v6956_v30, 0.0 }
 0x7e2   : > { %v6959_v8 = vpop.f32.mrf.mxu0  ;;  %7584 = vmatmul.mubr.bf16.gmra.mxu1 %v7238_v0 }
 0x7e3   : > { %v6960_v15 = vadd.f32 %v6959_v8, %v11981_v32  ;;  %v7154_v63 = vmax.f32 %v6958_v38, 0.0 }
 0x7e4   : > { %v6963_v22 = vpop.f32.mrf.mxu0 }
 0x7e5   : > { %v7155_v16 = vmax.f32 %v6960_v15, 0.0  ;;  %v7240_v41 = vpack.c.bf16 %v7154_v63, %v7152_v11  ;;  %v6964_v6 = vadd.f32 %v6963_v22, %v11978_v2 }
 0x7e6   : > { %v6965_v19 = vpop.f32.mrf.mxu0 }
 0x7e7   : > { %v7241_v27 = vpack.c.bf16 %v7155_v16, %v7153_v46  ;;  %v6966_v12 = vadd.f32 %v6965_v19, %v11981_v32  ;;  %v7156_v14 = vmax.f32 %v6964_v6, 0.0 }
 0x7e8   : > { %v6967_v28 = vpop.f32.mrf.mxu0 }
 0x7e9   : > { %v6968_v13 = vadd.f32 %v6967_v28, %v11978_v2  ;;  %7591 = vmatprep.mubr.bf16.mxu1 %v7241_v27  ;;  %v7157_v55 = vmax.f32 %v6966_v12, 0.0 }
 0x7ea   : > { %v6969_v21 = vpop.f32.mrf.mxu0  ;;  %7592 = vmatmul.mubr.bf16.gmra.mxu1 %v7240_v41 }
 0x7eb   : > { %v6970_v18 = vadd.f32 %v6969_v21, %v11981_v32  ;;  %v7158_v7 = vmax.f32 %v6968_v13, 0.0 }
 0x7ec   : > { %v6973_v54 = vpop.f32.mrf.mxu0 }
 0x7ed   : > { %v7159_v62 = vmax.f32 %v6970_v18, 0.0  ;;  %v7242_v40 = vpack.c.bf16 %v7158_v7, %v7156_v14  ;;  %v6974_v57 = vadd.f32 %v6973_v54, %v11978_v2 }
 0x7ee   : > { %v6975_v39 = vpop.f32.mrf.mxu0 }
 0x7ef   : > { %v7243_v25 = vpack.c.bf16 %v7159_v62, %v7157_v55  ;;  %v6976_v10 = vadd.f32 %v6975_v39, %v11981_v32  ;;  %v7160_v50 = vmax.f32 %v6974_v57, 0.0 }
 0x7f0   : > { %v6977_v43 = vpop.f32.mrf.mxu0 }
 0x7f1   : > { %v6978_v47 = vadd.f32 %v6977_v43, %v11978_v2  ;;  %7599 = vmatprep.mubr.bf16.mxu1 %v7243_v25  ;;  %v7161_v60 = vmax.f32 %v6976_v10, 0.0 }
 0x7f2   : > { %v6979_v45 = vpop.f32.mrf.mxu0  ;;  %7600 = vmatmul.mubr.bf16.gmra.mxu1 %v7242_v40 }
 0x7f3   : > { %v6980_v53 = vadd.f32 %v6979_v45, %v11981_v32  ;;  %v7162_v34 = vmax.f32 %v6978_v47, 0.0 }
 0x7f4   : > { %v6983_v23 = vpop.f32.mrf.mxu0 }
 0x7f5   : > { %v7163_v36 = vmax.f32 %v6980_v53, 0.0  ;;  %v7244_v61 = vpack.c.bf16 %v7162_v34, %v7160_v50  ;;  %v6984_v26 = vadd.f32 %v6983_v23, %v11978_v2 }
 0x7f6   : > { %v6985_v20 = vpop.f32.mrf.mxu0 }
 0x7f7   : > { %v7245_v1 = vpack.c.bf16 %v7163_v36, %v7161_v60  ;;  %v6986_v24 = vadd.f32 %v6985_v20, %v11981_v32  ;;  %v7164_v37 = vmax.f32 %v6984_v26, 0.0 }
 0x7f8   : > { %v6987_v58 = vpop.f32.mrf.mxu0 }
 0x7f9   : > { %v6988_v51 = vadd.f32 %v6987_v58, %v11978_v2  ;;  %7607 = vmatprep.mubr.bf16.mxu1 %v7245_v1  ;;  %v7165_v4 = vmax.f32 %v6986_v24, 0.0 }
 0x7fa   : > { %v6989_v44 = vpop.f32.mrf.mxu0  ;;  %7608 = vmatmul.mubr.bf16.gmra.mxu1 %v7244_v61 }
 0x7fb   : > { %v6990_v49 = vadd.f32 %v6989_v44, %v11981_v32  ;;  %v7166_v31 = vmax.f32 %v6988_v51, 0.0 }
 0x7fc   : > { %v6993_v33 = vpop.f32.mrf.mxu0 }
 0x7fd   : > { %v7167_v42 = vmax.f32 %v6990_v49, 0.0  ;;  %v7246_v3 = vpack.c.bf16 %v7166_v31, %v7164_v37  ;;  %v6994_v52 = vadd.f32 %v6993_v33, %v11978_v2 }
 0x7fe   : > { %v6995_v35 = vpop.f32.mrf.mxu0 }
 0x7ff   : > { %v7247_v59 = vpack.c.bf16 %v7167_v42, %v7165_v4  ;;  %v6996_v48 = vadd.f32 %v6995_v35, %v11981_v32  ;;  %v7168_v15 = vmax.f32 %v6994_v52, 0.0  ;;  %v12122_v42 = vld [vmem:[%s12361_s19] ss:$0 sm:$0xff] }
 0x800   : > { %v6997_v29 = vpop.f32.mrf.mxu0 }
 0x801   : > { %v6998_v56 = vadd.f32 %v6997_v29, %v11978_v2  ;;  %7615 = vmatprep.mubr.bf16.mxu1 %v7247_v59  ;;  %v7169_v30 = vmax.f32 %v6996_v48, 0.0 }
 0x802   : > { %v6999_v5 = vpop.f32.mrf.mxu0  ;;  %7616 = vmatmul.mubr.bf16.gmra.mxu1 %v7246_v3 }
 0x803   : > { %v7000_v9 = vadd.f32 %v6999_v5, %v11981_v32  ;;  %v7170_v38 = vmax.f32 %v6998_v56, 0.0 }
 0x804   : > { %v7003_v0 = vpop.f32.mrf.mxu0 }
 0x805   : > { %v7171_v8 = vmax.f32 %v7000_v9, 0.0  ;;  %v7248_v63 = vpack.c.bf16 %v7170_v38, %v7168_v15  ;;  %v7004_v27 = vadd.f32 %v7003_v0, %v11978_v2 }
 0x806   : > { %v7005_v17 = vpop.f32.mrf.mxu0 }
 0x807   : > { %v7249_v22 = vpack.c.bf16 %v7171_v8, %v7169_v30  ;;  %v7006_v16 = vadd.f32 %v7005_v17, %v11981_v32  ;;  %v7172_v6 = vmax.f32 %v7004_v27, 0.0 }
 0x808   : > { %v7007_v46 = vpop.f32.mrf.mxu0 }
 0x809   : > { %v7008_v19 = vadd.f32 %v7007_v46, %v11978_v2  ;;  %7623 = vmatprep.mubr.bf16.mxu1 %v7249_v22  ;;  %v7173_v41 = vmax.f32 %v7006_v16, 0.0 }
 0x80a   : > { %v7009_v11 = vpop.f32.mrf.mxu0  ;;  %7624 = vmatmul.mubr.bf16.gmra.mxu1 %v7248_v63 }
 0x80b   : > { %v7010_v28 = vadd.f32 %v7009_v11, %v11981_v32  ;;  %v7174_v12 = vmax.f32 %v7008_v19, 0.0 }
 0x80c   : > { %v7013_v21 = vpop.f32.mrf.mxu0 }
 0x80d   : > { %v7175_v13 = vmax.f32 %v7010_v28, 0.0  ;;  %v7250_v55 = vpack.c.bf16 %v7174_v12, %v7172_v6  ;;  %v7014_v14 = vadd.f32 %v7013_v21, %v11978_v2 }
 0x80e   : > { %v7015_v54 = vpop.f32.mrf.mxu0 }
 0x80f   : > { %v7251_v18 = vpack.c.bf16 %v7175_v13, %v7173_v41  ;;  %v7016_v62 = vadd.f32 %v7015_v54, %v11981_v32  ;;  %v7176_v57 = vmax.f32 %v7014_v14, 0.0 }
 0x810   : > { %v7017_v7 = vpop.f32.mrf.mxu0 }
 0x811   : > { %7631 = vmatprep.mubr.bf16.mxu1 %v7251_v18  ;;  %v7018_v39 = vadd.f32 %v7017_v7, %v11978_v2  ;;  %v7177_v47 = vmax.f32 %v7016_v62, 0.0 }
 0x812   : > { %v7019_v25 = vpop.f32.mrf.mxu0  ;;  %7632 = vmatmul.mubr.bf16.gmra.mxu1 %v7250_v55 }
 0x813   : > { %v7020_v43 = vadd.f32 %v7019_v25, %v11981_v32  ;;  %v7178_v40 = vmax.f32 %v7018_v39, 0.0 }
 0x814   : > { %v7023_v10 = vpop.f32.mrf.mxu0 }
 0x815   : > { %v7179_v45 = vmax.f32 %v7020_v43, 0.0  ;;  %v7252_v60 = vpack.c.bf16 %v7178_v40, %v7176_v57  ;;  %v7024_v50 = vadd.f32 %v7023_v10, %v11978_v2 }
 0x816   : > { %v7025_v53 = vpop.f32.mrf.mxu0 }
 0x817   : > { %v7253_v23 = vpack.c.bf16 %v7179_v45, %v7177_v47  ;;  %v7026_v36 = vadd.f32 %v7025_v53, %v11981_v32  ;;  %v7180_v26 = vmax.f32 %v7024_v50, 0.0 }
 0x818   : > { %v7027_v34 = vpop.f32.mrf.mxu0 }
 0x819   : > { %v7028_v20 = vadd.f32 %v7027_v34, %v11978_v2  ;;  %7639 = vmatprep.mubr.bf16.mxu1 %v7253_v23  ;;  %v7181_v51 = vmax.f32 %v7026_v36, 0.0 }
 0x81a   : > { %v7029_v1 = vpop.f32.mrf.mxu0  ;;  %7640 = vmatmul.mubr.bf16.gmra.mxu1 %v7252_v60 }
 0x81b   : > { %v7030_v58 = vadd.f32 %v7029_v1, %v11981_v32  ;;  %v7182_v61 = vmax.f32 %v7028_v20, 0.0 }
 0x81c   : > { %v7033_v24 = vpop.f32.mrf.mxu0 }
 0x81d   : > { %v7183_v44 = vmax.f32 %v7030_v58, 0.0  ;;  %v7254_v4 = vpack.c.bf16 %v7182_v61, %v7180_v26  ;;  %v7034_v59 = vadd.f32 %v7033_v24, %v11978_v2 }
 0x81e   : > { %v7035_v49 = vpop.f32.mrf.mxu0 }
 0x81f   : > { %v7255_v33 = vpack.c.bf16 %v7183_v44, %v7181_v51  ;;  %v7036_v35 = vadd.f32 %v7035_v49, %v11981_v32  ;;  %v7184_v38 = vmax.f32 %v7034_v59, 0.0 }
 0x820   : > { %v7037_v31 = vpop.f32.mrf.mxu0 }
 0x821   : > { %v7038_v37 = vadd.f32 %v7037_v31, %v11978_v2  ;;  %7647 = vmatprep.mubr.bf16.mxu1 %v7255_v33  ;;  %v7185_v0 = vmax.f32 %v7036_v35, 0.0 }
 0x822   : > { %v7039_v29 = vpop.f32.mrf.mxu0  ;;  %v7457_v3 = vpop.f32.mrf.mxu1  ;;  %7648 = vmatmul.mubr.bf16.gmra.mxu1 %v7254_v4 }
 0x823   : > { %v7040_v48 = vadd.f32 %v7039_v29, %v11981_v32  ;;  %v7458_v56 = vadd.f32 %v12122_v42, %v7457_v3  ;;  %v7186_v5 = vmax.f32 %v7038_v37, 0.0 }
 0x824   : > { %v7043_v52 = vpop.f32.mrf.mxu0  ;;  %v7459_v9 = vpop.f32.mrf.mxu1 }
 0x825   : > { %v7187_v30 = vmax.f32 %v7040_v48, 0.0  ;;  %7695 = vst.msk [vmem:[%s12132_s21 + $0x30] sm:$0xff] %vm7688_vm1, %v7458_v56  ;;  %v7256_v46 = vpack.c.bf16 %v7186_v5, %v7184_v38  ;;  %v7044_v27 = vadd.f32 %v7043_v52, %v11978_v2 }
 0x826   : > { %v7045_v8 = vpop.f32.mrf.mxu0  ;;  %v7460_v17 = vpop.f32.mrf.mxu1 }
 0x827   : > { %v7257_v15 = vpack.c.bf16 %v7187_v30, %v7185_v0  ;;  %v7461_v22 = vadd.f32 %v12122_v42, %v7460_v17  ;;  %v7046_v19 = vadd.f32 %v7045_v8, %v11981_v32  ;;  %v7188_v7 = vmax.f32 %v7044_v27, 0.0 }
 0x828   : > { %v7047_v63 = vpop.f32.mrf.mxu0  ;;  %v7462_v16 = vpop.f32.mrf.mxu1 }
 0x829   : > { %7696 = vst.msk [vmem:[%s12132_s21 + $0x38] sm:$0xff] %vm7688_vm1, %v7461_v22  ;;  %v7048_v11 = vadd.f32 %v7047_v63, %v11978_v2  ;;  %7655 = vmatprep.mubr.bf16.mxu1 %v7257_v15  ;;  %v7189_v54 = vmax.f32 %v7046_v19, 0.0 }
 0x82a   : > { %v7049_v28 = vpop.f32.mrf.mxu0  ;;  %v7465_v41 = vpop.f32.mrf.mxu1  ;;  %7656 = vmatmul.mubr.bf16.gmra.mxu1 %v7256_v46 }
 0x82b   : > { %v7050_v12 = vadd.f32 %v7049_v28, %v11981_v32  ;;  %v7466_v13 = vadd.f32 %v12122_v42, %v7465_v41  ;;  %v7190_v21 = vmax.f32 %v7048_v11, 0.0 }
 0x82c   : > { %v7053_v6 = vpop.f32.mrf.mxu0  ;;  %v7467_v18 = vpop.f32.mrf.mxu1 }
 0x82d   : > { %v7191_v55 = vmax.f32 %v7050_v12, 0.0  ;;  %7697 = vst.msk [vmem:[%s12132_s21 + $0x40] sm:$0xff] %vm7688_vm1, %v7466_v13  ;;  %v7258_v43 = vpack.c.bf16 %v7190_v21, %v7188_v7  ;;  %v7054_v57 = vadd.f32 %v7053_v6, %v11978_v2 }
 0x82e   : > { %v7055_v62 = vpop.f32.mrf.mxu0  ;;  %v7468_v39 = vpop.f32.mrf.mxu1 }
 0x82f   : > { %v7259_v14 = vpack.c.bf16 %v7191_v55, %v7189_v54  ;;  %v7469_v25 = vadd.f32 %v12122_v42, %v7468_v39  ;;  %v7056_v47 = vadd.f32 %v7055_v62, %v11981_v32  ;;  %v7192_v61 = vmax.f32 %v7054_v57, 0.0 }
 0x830   : > { %v7057_v40 = vpop.f32.mrf.mxu0  ;;  %v7470_v10 = vpop.f32.mrf.mxu1 }
 0x831   : > { %7698 = vst.msk [vmem:[%s12132_s21 + $0x48] sm:$0xff] %vm7688_vm1, %v7469_v25  ;;  %v7058_v45 = vadd.f32 %v7057_v40, %v11978_v2  ;;  %7663 = vmatprep.mubr.bf16.mxu1 %v7259_v14  ;;  %v7193_v1 = vmax.f32 %v7056_v47, 0.0 }
 0x832   : > { %v7059_v53 = vpop.f32.mrf.mxu0  ;;  %v7473_v23 = vpop.f32.mrf.mxu1  ;;  %7664 = vmatmul.mubr.bf16.gmra.mxu1 %v7258_v43 }
 0x833   : > { %v7060_v60 = vadd.f32 %v7059_v53, %v11981_v32  ;;  %v7474_v34 = vadd.f32 %v12122_v42, %v7473_v23  ;;  %v7194_v36 = vmax.f32 %v7058_v45, 0.0 }
 0x834   : > { %v7063_v20 = vpop.f32.mrf.mxu0  ;;  %v7475_v50 = vpop.f32.mrf.mxu1 }
 0x835   : > { %v7195_v58 = vmax.f32 %v7060_v60, 0.0  ;;  %7699 = vst.msk [vmem:[%s12132_s21 + $0x50] sm:$0xff] %vm7688_vm1, %v7474_v34  ;;  %v7260_v49 = vpack.c.bf16 %v7194_v36, %v7192_v61  ;;  %v7064_v37 = vadd.f32 %v7063_v20, %v11978_v2 }
 0x836   : > { %v7065_v24 = vpop.f32.mrf.mxu0  ;;  %v7476_v51 = vpop.f32.mrf.mxu1 }
 0x837   : > { %v7261_v44 = vpack.c.bf16 %v7195_v58, %v7193_v1  ;;  %v7477_v26 = vadd.f32 %v12122_v42, %v7476_v51  ;;  %v7066_v31 = vadd.f32 %v7065_v24, %v11981_v32 }
 0x838   : > { %v7067_v33 = vpop.f32.mrf.mxu0  ;;  %v7478_v4 = vpop.f32.mrf.mxu1 }
 0x839   : > { %7700 = vst.msk [vmem:[%s12132_s21 + $0x58] sm:$0xff] %vm7688_vm1, %v7477_v26  ;;  %v7068_v35 = vadd.f32 %v7067_v33, %v11978_v2  ;;  %7671 = vmatprep.mubr.bf16.mxu1 %v7261_v44  ;;  %v7197_v9 = vmax.f32 %v7066_v31, 0.0  ;;  %v7196_v2 = vmax.f32 %v7064_v37, 0.0 }
 0x83a   : > { %v7069_v59 = vpop.f32.mrf.mxu0  ;;  %v7481_v29 = vpop.f32.mrf.mxu1  ;;  %7672 = vmatmul.mubr.bf16.gmra.mxu1 %v7260_v49 }
 0x83b   : > { %v7070_v3 = vadd.f32 %v7069_v59, %v11981_v32  ;;  %v7482_v48 = vadd.f32 %v12122_v42, %v7481_v29  ;;  %v7198_v56 = vmax.f32 %v7068_v35, 0.0 }
 0x83c   : > { %v7433_v5 = vpop.f32.mrf.mxu0  ;;  %v7483_v52 = vpop.f32.mrf.mxu1 }
 0x83d   : > { %v7199_v0 = vmax.f32 %v7070_v3, 0.0  ;;  %7701 = vst.msk [vmem:[%s12132_s21 + $0x60] sm:$0xff] %vm7688_vm1, %v7482_v48  ;;  %v7434_v30 = vadd.f32 %v12122_v42, %v7433_v5  ;;  %v7262_v15 = vpack.c.bf16 %v7198_v56, %v7196_v2 }
 0x83e   : > { %v7435_v38 = vpop.f32.mrf.mxu0  ;;  %v7484_v8 = vpop.f32.mrf.mxu1 }
 0x83f   : > { %v7263_v17 = vpack.c.bf16 %v7199_v0, %v7197_v9  ;;  %7689 = vst.msk [vmem:[%s12132_s21] sm:$0xff] %vm7688_vm1, %v7434_v30  ;;  %v7485_v32 = vadd.f32 %v12122_v42, %v7484_v8 }
 0x840   : > { %v7436_v22 = vpop.f32.mrf.mxu0  ;;  %v7486_v46 = vpop.f32.mrf.mxu1 }
 0x841   : > { %7702 = vst.msk [vmem:[%s12132_s21 + $0x68] sm:$0xff] %vm7688_vm1, %v7485_v32  ;;  %v7437_v63 = vadd.f32 %v12122_v42, %v7436_v22  ;;  %7679 = vmatprep.mubr.bf16.mxu1 %v7263_v17 }
 0x842   : > { %v7438_v16 = vpop.f32.mrf.mxu0  ;;  %v7489_v19 = vpop.f32.mrf.mxu1  ;;  %7680 = vmatmul.mubr.bf16.gmra.mxu1 %v7262_v15 }
 0x843   : > { %7690 = vst.msk [vmem:[%s12132_s21 + $0x8] sm:$0xff] %vm7688_vm1, %v7437_v63  ;;  %v7490_v11 = vadd.f32 %v12122_v42, %v7489_v19 }
 0x844   : > { %v7441_v27 = vpop.f32.mrf.mxu0  ;;  %v7491_v28 = vpop.f32.mrf.mxu1 }
 0x845   : > { %7703 = vst.msk [vmem:[%s12132_s21 + $0x70] sm:$0xff] %vm7688_vm1, %v7490_v11  ;;  %v7442_v41 = vadd.f32 %v12122_v42, %v7441_v27 }
 0x846   : > { %v7443_v12 = vpop.f32.mrf.mxu0  ;;  %v7492_v13 = vpop.f32.mrf.mxu1 }
 0x847   : > { %7691 = vst.msk [vmem:[%s12132_s21 + $0x10] sm:$0xff] %vm7688_vm1, %v7442_v41  ;;  %v7493_v21 = vadd.f32 %v12122_v42, %v7492_v13 }
 0x848   : > { %v7444_v6 = vpop.f32.mrf.mxu0  ;;  %v7494_v18 = vpop.f32.mrf.mxu1 }
 0x849   : > { %7704 = vst.msk [vmem:[%s12132_s21 + $0x78] sm:$0xff] %vm7688_vm1, %v7493_v21  ;;  %v7445_v54 = vadd.f32 %v12122_v42, %v7444_v6 }
 0x84a   : > { %v7446_v55 = vpop.f32.mrf.mxu0  ;;  %v7497_v7 = vpop.f32.mrf.mxu1 }
 0x84b   : > { %7692 = vst.msk [vmem:[%s12132_s21 + $0x18] sm:$0xff] %vm7688_vm1, %v7445_v54  ;;  %v7498_v62 = vadd.f32 %v12122_v42, %v7497_v7 }
 0x84c   : > { %v7449_v39 = vpop.f32.mrf.mxu0  ;;  %v7499_v14 = vpop.f32.mrf.mxu1 }
 0x84d   : > { %7705 = vst.msk [vmem:[%s12132_s21 + $0x80] sm:$0xff] %vm7688_vm1, %v7498_v62  ;;  %v7450_v25 = vadd.f32 %v12122_v42, %v7449_v39 }
 0x84e   : > { %v7451_v43 = vpop.f32.mrf.mxu0  ;;  %v7500_v40 = vpop.f32.mrf.mxu1 }
 0x84f   : > { %7693 = vst.msk [vmem:[%s12132_s21 + $0x20] sm:$0xff] %vm7688_vm1, %v7450_v25  ;;  %v7501_v10 = vadd.f32 %v12122_v42, %v7500_v40 }
 0x850   : > { %v7452_v47 = vpop.f32.mrf.mxu0  ;;  %v7502_v45 = vpop.f32.mrf.mxu1 }
 0x851   : > { %7706 = vst.msk [vmem:[%s12132_s21 + $0x88] sm:$0xff] %vm7688_vm1, %v7501_v10  ;;  %v7453_v57 = vadd.f32 %v12122_v42, %v7452_v47 }
 0x852   : > { %v7454_v53 = vpop.f32.mrf.mxu0  ;;  %v7505_v23 = vpop.f32.mrf.mxu1 }
 0x853   : > { %7694 = vst.msk [vmem:[%s12132_s21 + $0x28] sm:$0xff] %vm7688_vm1, %v7453_v57  ;;  %v7506_v60 = vadd.f32 %v12122_v42, %v7505_v23 }
 0x854   : > { %v7507_v34 = vpop.f32.mrf.mxu1 }
 0x855   : > { %7707 = vst.msk [vmem:[%s12132_s21 + $0x90] sm:$0xff] %vm7688_vm1, %v7506_v60 }
 0x856   : > { %v7508_v36 = vpop.f32.mrf.mxu1 }
 0x857   : > { %v7509_v20 = vadd.f32 %v12122_v42, %v7508_v36 }
 0x858   : > { %v7510_v50 = vpop.f32.mrf.mxu1 }
 0x859   : > { %7708 = vst.msk [vmem:[%s12132_s21 + $0x98] sm:$0xff] %vm7688_vm1, %v7509_v20 }
 0x85a   : > { %v7513_v1 = vpop.f32.mrf.mxu1 }
 0x85b   : > { %v7514_v58 = vadd.f32 %v12122_v42, %v7513_v1 }
 0x85c   : > { %v7515_v61 = vpop.f32.mrf.mxu1 }
 0x85d   : > { %7709 = vst.msk [vmem:[%s12132_s21 + $0xa0] sm:$0xff] %vm7688_vm1, %v7514_v58 }
 0x85e   : > { %v7516_v24 = vpop.f32.mrf.mxu1 }
 0x85f   : > { %v7517_v51 = vadd.f32 %v12122_v42, %v7516_v24 }
 0x860   : > { %v7518_v44 = vpop.f32.mrf.mxu1 }
 0x861   : > { %7710 = vst.msk [vmem:[%s12132_s21 + $0xa8] sm:$0xff] %vm7688_vm1, %v7517_v51 }
 0x862   : > { %v7521_v26 = vpop.f32.mrf.mxu1 }
 0x863   : > { %v7522_v49 = vadd.f32 %v12122_v42, %v7521_v26 }
 0x864   : > { %v7523_v33 = vpop.f32.mrf.mxu1 }
 0x865   : > { %7711 = vst.msk [vmem:[%s12132_s21 + $0xb0] sm:$0xff] %vm7688_vm1, %v7522_v49 }
 0x866   : > { %v7524_v4 = vpop.f32.mrf.mxu1 }
 0x867   : > { %v7525_v31 = vadd.f32 %v12122_v42, %v7524_v4 }
 0x868   : > { %v7526_v35 = vpop.f32.mrf.mxu1 }
 0x869   : > { %7712 = vst.msk [vmem:[%s12132_s21 + $0xb8] sm:$0xff] %vm7688_vm1, %v7525_v31 }
 0x86a   : > { %v7529_v37 = vpop.f32.mrf.mxu1 }
 0x86b   : > { %v7530_v59 = vadd.f32 %v12122_v42, %v7529_v37 }
 0x86c   : > { %v7531_v29 = vpop.f32.mrf.mxu1 }
 0x86d   : > { %7713 = vst.msk [vmem:[%s12132_s21 + $0xc0] sm:$0xff] %vm7688_vm1, %v7530_v59 }
 0x86e   : > { %v7532_v3 = vpop.f32.mrf.mxu1 }
 0x86f   : > { %v7533_v48 = vadd.f32 %v12122_v42, %v7532_v3 }
 0x870   : > { %v7534_v56 = vpop.f32.mrf.mxu1 }
 0x871   : > { %7714 = vst.msk [vmem:[%s12132_s21 + $0xc8] sm:$0xff] %vm7688_vm1, %v7533_v48 }
 0x872   : > { %v7537_v5 = vpop.f32.mrf.mxu1 }
 0x873   : > { %v7538_v52 = vadd.f32 %v12122_v42, %v7537_v5 }
 0x874   : > { %v7539_v9 = vpop.f32.mrf.mxu1 }
 0x875   : > { %7715 = vst.msk [vmem:[%s12132_s21 + $0xd0] sm:$0xff] %vm7688_vm1, %v7538_v52 }
 0x876   : > { %v7540_v0 = vpop.f32.mrf.mxu1 }
 0x877   : > { %v7541_v30 = vadd.f32 %v12122_v42, %v7540_v0 }
 0x878   : > { %v7542_v2 = vpop.f32.mrf.mxu1 }
 0x879   : > { %7716 = vst.msk [vmem:[%s12132_s21 + $0xd8] sm:$0xff] %vm7688_vm1, %v7541_v30 }
 0x87a   : > { %v7545_v38 = vpop.f32.mrf.mxu1 }
 0x87b   : > { %v7546_v8 = vadd.f32 %v12122_v42, %v7545_v38 }
 0x87c   : > { %v7547_v17 = vpop.f32.mrf.mxu1 }
 0x87d   : > { %7717 = vst.msk [vmem:[%s12132_s21 + $0xe0] sm:$0xff] %vm7688_vm1, %v7546_v8 }
 0x87e   : > { %v7548_v32 = vpop.f32.mrf.mxu1 }
 0x87f   : > { %v7549_v15 = vadd.f32 %v12122_v42, %v7548_v32 }
 0x880   : > { %v7550_v22 = vpop.f32.mrf.mxu1 }
 0x881   : > { %7718 = vst.msk [vmem:[%s12132_s21 + $0xe8] sm:$0xff] %vm7688_vm1, %v7549_v15 }
 0x882   : > { %v7553_v46 = vpop.f32.mrf.mxu1 }
 0x883   : > { %v7554_v63 = vadd.f32 %v12122_v42, %v7553_v46 }
 0x884   : > { %v7555_v16 = vpop.f32.mrf.mxu1 }
 0x885   : > { %7719 = vst.msk [vmem:[%s12132_s21 + $0xf0] sm:$0xff] %vm7688_vm1, %v7554_v63 }
 0x886   : > { %v7556_v19 = vpop.f32.mrf.mxu1 }
 0x887   : > { %v7557_v11 = vadd.f32 %v12122_v42, %v7556_v19 }
 0x888   : > { %v7558_v27 = vpop.f32.mrf.mxu1 }
 0x889   : > { %7720 = vst.msk [vmem:[%s12132_s21 + $0xf8] sm:$0xff] %vm7688_vm1, %v7557_v11 }
 0x88a   : > { %v7561_v28 = vpop.f32.mrf.mxu1 }
 0x88b   : > { %v7562_v41 = vadd.f32 %v12122_v42, %v7561_v28 }
 0x88c   : > { %v7563_v12 = vpop.f32.mrf.mxu1 }
 0x88d   : > { %7721 = vst.msk [vmem:[%s12132_s21 + $0x100] sm:$0xff] %vm7688_vm1, %v7562_v41 }
 0x88e   : > { %v7564_v13 = vpop.f32.mrf.mxu1 }
 0x88f   : > { %v7565_v21 = vadd.f32 %v12122_v42, %v7564_v13 }
 0x890   : > { %v7566_v6 = vpop.f32.mrf.mxu1 }
 0x891   : > { %7722 = vst.msk [vmem:[%s12132_s21 + $0x108] sm:$0xff] %vm7688_vm1, %v7565_v21 }
 0x892   : > { %v7569_v18 = vpop.f32.mrf.mxu1 }
 0x893   : > { %v7570_v54 = vadd.f32 %v12122_v42, %v7569_v18 }
 0x894   : > { %v7571_v55 = vpop.f32.mrf.mxu1 }
 0x895   : > { %7723 = vst.msk [vmem:[%s12132_s21 + $0x110] sm:$0xff] %vm7688_vm1, %v7570_v54 }
 0x896   : > { %v7572_v7 = vpop.f32.mrf.mxu1 }
 0x897   : > { %v7573_v62 = vadd.f32 %v12122_v42, %v7572_v7 }
 0x898   : > { %v7574_v39 = vpop.f32.mrf.mxu1 }
 0x899   : > { %7724 = vst.msk [vmem:[%s12132_s21 + $0x118] sm:$0xff] %vm7688_vm1, %v7573_v62 }
 0x89a   : > { %v7577_v14 = vpop.f32.mrf.mxu1 }
 0x89b   : > { %v7578_v25 = vadd.f32 %v12122_v42, %v7577_v14 }
 0x89c   : > { %v7579_v43 = vpop.f32.mrf.mxu1 }
 0x89d   : > { %7725 = vst.msk [vmem:[%s12132_s21 + $0x120] sm:$0xff] %vm7688_vm1, %v7578_v25 }
 0x89e   : > { %v7580_v40 = vpop.f32.mrf.mxu1 }
 0x89f   : > { %v7581_v10 = vadd.f32 %v12122_v42, %v7580_v40 }
 0x8a0   : > { %v7582_v47 = vpop.f32.mrf.mxu1 }
 0x8a1   : > { %7726 = vst.msk [vmem:[%s12132_s21 + $0x128] sm:$0xff] %vm7688_vm1, %v7581_v10 }
 0x8a2   : > { %v7585_v45 = vpop.f32.mrf.mxu1 }
 0x8a3   : > { %v7586_v57 = vadd.f32 %v12122_v42, %v7585_v45 }
 0x8a4   : > { %v7587_v53 = vpop.f32.mrf.mxu1 }
 0x8a5   : > { %7727 = vst.msk [vmem:[%s12132_s21 + $0x130] sm:$0xff] %vm7688_vm1, %v7586_v57 }
 0x8a6   : > { %v7588_v23 = vpop.f32.mrf.mxu1 }
 0x8a7   : > { %v7589_v60 = vadd.f32 %v12122_v42, %v7588_v23 }
 0x8a8   : > { %v7590_v34 = vpop.f32.mrf.mxu1 }
 0x8a9   : > { %7728 = vst.msk [vmem:[%s12132_s21 + $0x138] sm:$0xff] %vm7688_vm1, %v7589_v60 }
 0x8aa   : > { %v7593_v36 = vpop.f32.mrf.mxu1 }
 0x8ab   : > { %v7594_v20 = vadd.f32 %v12122_v42, %v7593_v36 }
 0x8ac   : > { %v7595_v50 = vpop.f32.mrf.mxu1 }
 0x8ad   : > { %7729 = vst.msk [vmem:[%s12132_s21 + $0x140] sm:$0xff] %vm7688_vm1, %v7594_v20 }
 0x8ae   : > { %v7596_v1 = vpop.f32.mrf.mxu1 }
 0x8af   : > { %v7597_v58 = vadd.f32 %v12122_v42, %v7596_v1 }
 0x8b0   : > { %v7598_v61 = vpop.f32.mrf.mxu1 }
 0x8b1   : > { %7730 = vst.msk [vmem:[%s12132_s21 + $0x148] sm:$0xff] %vm7688_vm1, %v7597_v58 }
 0x8b2   : > { %v7601_v24 = vpop.f32.mrf.mxu1 }
 0x8b3   : > { %v7602_v51 = vadd.f32 %v12122_v42, %v7601_v24 }
 0x8b4   : > { %v7603_v44 = vpop.f32.mrf.mxu1 }
 0x8b5   : > { %7731 = vst.msk [vmem:[%s12132_s21 + $0x150] sm:$0xff] %vm7688_vm1, %v7602_v51 }
 0x8b6   : > { %v7604_v26 = vpop.f32.mrf.mxu1 }
 0x8b7   : > { %v7605_v49 = vadd.f32 %v12122_v42, %v7604_v26 }
 0x8b8   : > { %v7606_v33 = vpop.f32.mrf.mxu1 }
 0x8b9   : > { %7732 = vst.msk [vmem:[%s12132_s21 + $0x158] sm:$0xff] %vm7688_vm1, %v7605_v49 }
 0x8ba   : > { %v7609_v4 = vpop.f32.mrf.mxu1 }
 0x8bb   : > { %v7610_v31 = vadd.f32 %v12122_v42, %v7609_v4 }
 0x8bc   : > { %v7611_v35 = vpop.f32.mrf.mxu1 }
 0x8bd   : > { %7733 = vst.msk [vmem:[%s12132_s21 + $0x160] sm:$0xff] %vm7688_vm1, %v7610_v31 }
 0x8be   : > { %v7612_v37 = vpop.f32.mrf.mxu1 }
 0x8bf   : > { %v7613_v59 = vadd.f32 %v12122_v42, %v7612_v37 }
 0x8c0   : > { %v7614_v29 = vpop.f32.mrf.mxu1 }
 0x8c1   : > { %7734 = vst.msk [vmem:[%s12132_s21 + $0x168] sm:$0xff] %vm7688_vm1, %v7613_v59 }
 0x8c2   : > { %v7617_v3 = vpop.f32.mrf.mxu1 }
 0x8c3   : > { %v7618_v48 = vadd.f32 %v12122_v42, %v7617_v3 }
 0x8c4   : > { %v7619_v56 = vpop.f32.mrf.mxu1 }
 0x8c5   : > { %7735 = vst.msk [vmem:[%s12132_s21 + $0x170] sm:$0xff] %vm7688_vm1, %v7618_v48 }
 0x8c6   : > { %v7620_v5 = vpop.f32.mrf.mxu1 }
 0x8c7   : > { %v7621_v52 = vadd.f32 %v12122_v42, %v7620_v5 }
 0x8c8   : > { %v7622_v9 = vpop.f32.mrf.mxu1 }
 0x8c9   : > { %7736 = vst.msk [vmem:[%s12132_s21 + $0x178] sm:$0xff] %vm7688_vm1, %v7621_v52 }
 0x8ca   : > { %v7625_v0 = vpop.f32.mrf.mxu1 }
 0x8cb   : > { %v7626_v30 = vadd.f32 %v12122_v42, %v7625_v0 }
 0x8cc   : > { %v7627_v2 = vpop.f32.mrf.mxu1 }
 0x8cd   : > { %7737 = vst.msk [vmem:[%s12132_s21 + $0x180] sm:$0xff] %vm7688_vm1, %v7626_v30 }
 0x8ce   : > { %v7628_v38 = vpop.f32.mrf.mxu1 }
 0x8cf   : > { %v7629_v8 = vadd.f32 %v12122_v42, %v7628_v38 }
 0x8d0   : > { %v7630_v17 = vpop.f32.mrf.mxu1 }
 0x8d1   : > { %7738 = vst.msk [vmem:[%s12132_s21 + $0x188] sm:$0xff] %vm7688_vm1, %v7629_v8 }
 0x8d2   : > { %v7633_v32 = vpop.f32.mrf.mxu1 }
 0x8d3   : > { %v7634_v15 = vadd.f32 %v12122_v42, %v7633_v32 }
 0x8d4   : > { %v7635_v22 = vpop.f32.mrf.mxu1 }
 0x8d5   : > { %7739 = vst.msk [vmem:[%s12132_s21 + $0x190] sm:$0xff] %vm7688_vm1, %v7634_v15 }
 0x8d6   : > { %v7636_v46 = vpop.f32.mrf.mxu1 }
 0x8d7   : > { %v7637_v63 = vadd.f32 %v12122_v42, %v7636_v46 }
 0x8d8   : > { %v7638_v16 = vpop.f32.mrf.mxu1 }
 0x8d9   : > { %7740 = vst.msk [vmem:[%s12132_s21 + $0x198] sm:$0xff] %vm7688_vm1, %v7637_v63 }
 0x8da   : > { %v7641_v19 = vpop.f32.mrf.mxu1 }
 0x8db   : > { %v7642_v11 = vadd.f32 %v12122_v42, %v7641_v19 }
 0x8dc   : > { %v7643_v27 = vpop.f32.mrf.mxu1 }
 0x8dd   : > { %7741 = vst.msk [vmem:[%s12132_s21 + $0x1a0] sm:$0xff] %vm7688_vm1, %v7642_v11 }
 0x8de   : > { %v7644_v28 = vpop.f32.mrf.mxu1 }
 0x8df   : > { %v7645_v41 = vadd.f32 %v12122_v42, %v7644_v28 }
 0x8e0   : > { %v7646_v12 = vpop.f32.mrf.mxu1 }
 0x8e1   : > { %7742 = vst.msk [vmem:[%s12132_s21 + $0x1a8] sm:$0xff] %vm7688_vm1, %v7645_v41 }
 0x8e2   : > { %v7649_v13 = vpop.f32.mrf.mxu1 }
 0x8e3   : > { %v7650_v21 = vadd.f32 %v12122_v42, %v7649_v13 }
 0x8e4   : > { %v7651_v6 = vpop.f32.mrf.mxu1 }
 0x8e5   : > { %7743 = vst.msk [vmem:[%s12132_s21 + $0x1b0] sm:$0xff] %vm7688_vm1, %v7650_v21 }
 0x8e6   : > { %v7652_v18 = vpop.f32.mrf.mxu1 }
 0x8e7   : > { %v7653_v54 = vadd.f32 %v12122_v42, %v7652_v18 }
 0x8e8   : > { %v7654_v55 = vpop.f32.mrf.mxu1 }
 0x8e9   : > { %7744 = vst.msk [vmem:[%s12132_s21 + $0x1b8] sm:$0xff] %vm7688_vm1, %v7653_v54 }
 0x8ea   : > { %v7657_v7 = vpop.f32.mrf.mxu1 }
 0x8eb   : > { %v7658_v62 = vadd.f32 %v12122_v42, %v7657_v7 }
 0x8ec   : > { %v7659_v39 = vpop.f32.mrf.mxu1 }
 0x8ed   : > { %7745 = vst.msk [vmem:[%s12132_s21 + $0x1c0] sm:$0xff] %vm7688_vm1, %v7658_v62 }
 0x8ee   : > { %v7660_v14 = vpop.f32.mrf.mxu1 }
 0x8ef   : > { %v7661_v25 = vadd.f32 %v12122_v42, %v7660_v14 }
 0x8f0   : > { %v7662_v43 = vpop.f32.mrf.mxu1 }
 0x8f1   : > { %7746 = vst.msk [vmem:[%s12132_s21 + $0x1c8] sm:$0xff] %vm7688_vm1, %v7661_v25 }
 0x8f2   : > { %v7665_v40 = vpop.f32.mrf.mxu1 }
 0x8f3   : > { %v7666_v10 = vadd.f32 %v12122_v42, %v7665_v40 }
 0x8f4   : > { %v7667_v47 = vpop.f32.mrf.mxu1 }
 0x8f5   : > { %7747 = vst.msk [vmem:[%s12132_s21 + $0x1d0] sm:$0xff] %vm7688_vm1, %v7666_v10 }
 0x8f6   : > { %v7668_v45 = vpop.f32.mrf.mxu1 }
 0x8f7   : > { %v7669_v57 = vadd.f32 %v12122_v42, %v7668_v45 }
 0x8f8   : > { %v7670_v53 = vpop.f32.mrf.mxu1 }
 0x8f9   : > { %7748 = vst.msk [vmem:[%s12132_s21 + $0x1d8] sm:$0xff] %vm7688_vm1, %v7669_v57 }
 0x8fa   : > { %v7673_v23 = vpop.f32.mrf.mxu1 }
 0x8fb   : > { %v7674_v60 = vadd.f32 %v12122_v42, %v7673_v23 }
 0x8fc   : > { %v7675_v34 = vpop.f32.mrf.mxu1 }
 0x8fd   : > { %7749 = vst.msk [vmem:[%s12132_s21 + $0x1e0] sm:$0xff] %vm7688_vm1, %v7674_v60 }
 0x8fe   : > { %v7676_v36 = vpop.f32.mrf.mxu1 }
 0x8ff   : > { %v7677_v20 = vadd.f32 %v12122_v42, %v7676_v36 }
 0x900   : > { %v7678_v50 = vpop.f32.mrf.mxu1 }
 0x901   : > { %7750 = vst.msk [vmem:[%s12132_s21 + $0x1e8] sm:$0xff] %vm7688_vm1, %v7677_v20 }
 0x902   : > { %v7681_v1 = vpop.f32.mrf.mxu1 }
 0x903   : > { %v7682_v58 = vadd.f32 %v12122_v42, %v7681_v1 }
 0x904   : > { %v7683_v61 = vpop.f32.mrf.mxu1 }
 0x905   : > { %7751 = vst.msk [vmem:[%s12132_s21 + $0x1f0] sm:$0xff] %vm7688_vm1, %v7682_v58 }
 0x906   : > { %v7684_v24 = vpop.f32.mrf.mxu1 }
 0x907   : > { %v7685_v51 = vadd.f32 %v12122_v42, %v7684_v24 }
 0x908   : > { %v7686_v44 = vpop.f32.mrf.mxu1 }
 0x909   : > { %7752 = vst.msk [vmem:[%s12132_s21 + $0x1f8] sm:$0xff] %vm7688_vm1, %v7685_v51 }
 0x90a PF: > { %s36_s1 = sadd.s32 1, %s9039_s1  }
 0x90b   : > { %p33_p4 = scmp.ge.s32.totalorder %s36_s1, 4  }
 0x90d   :  { %35 = sbr.rel (!%p33_p4) target bundleno = 13 (0xd), region = 171 }
 0x912   :  { %7775 = vsyncpa [#allocation3], 1 }
 0x913   :  { %7777 = vsyncpa [#allocation3 + $0x1], 1 }
 0x914   :  { %7778 = vsyncpa [#allocation5], 1 }
 0x915   :  { %7779 = vsyncpa [#allocation8], 1 }
 0x916   :  { %7780 = vsyncpa [#allocation11], 1 }
 0x917   :  { %7781 = vsyncpa [#allocation14], 1 }
 0x918   :  { %7782 = vsyncpa [#allocation17], 1 }

</bundles_post_ra>
